<compile_context>
chip_gen: v6e
topology: v6e:2x2x1
jax: 0.10.0
libtpu: 0.0.40
codegen_flags: <defaults>
</compile_context>

<pallas_src>
import jax
import jax.numpy as jnp
from jax import lax
from jax.experimental import pallas as pl
from jax.experimental.pallas import tpu as pltpu

FILTER = 256
NUM_X_FREQ = 6
NUM_D_FREQ = 3
X_DIM = 3 + 2 * 3 * NUM_X_FREQ   # 39
D_DIM = 3 + 2 * 3 * NUM_D_FREQ   # 21
HID11 = 128                      # layer11 output width
OUT_PACK = 128                   # packed lane-dense output: cols 0..2 = rgb, col 3 = sigma
SIGMA_COL = 3


def _nerf_kernel(
    x_ref, d_ref,
    w1, b1, w2, b2, w3, b3, w4, b4, w5, b5,
    w6a, w6b, b6, w7, b7, w8, b8,
    w9p, b9p, w10, b10, w11a, w11b, b11, w12p, b12p,
    out_ref,
):
    f32 = jnp.float32
    bf16 = jnp.bfloat16

    # bf16 matmul operands (MXU-native), f32 accumulation + f32 elementwise.
    x = x_ref[...].astype(bf16)
    d = d_ref[...].astype(bf16)

    def lin(a, w, b):
        return jnp.dot(a, w[...], preferred_element_type=f32) + b[...]

    def relu_b(v):  # ReLU in f32, re-cast to bf16 for the next MXU pass
        return jnp.maximum(v, 0.0).astype(bf16)

    h1 = relu_b(lin(x, w1, b1))
    h2 = relu_b(lin(h1, w2, b2))
    h3 = relu_b(lin(h2, w3, b3))
    h4 = relu_b(lin(h3, w4, b4))
    h5 = relu_b(lin(h4, w5, b5))
    # layer6 on cat([x5, x]) == x5 @ W6a + x @ W6b + b6
    h6 = relu_b(jnp.dot(h5, w6a[...], preferred_element_type=f32)
                + jnp.dot(x, w6b[...], preferred_element_type=f32)
                + b6[...])
    h7 = relu_b(lin(h6, w7, b7))
    h8 = relu_b(lin(h7, w8, b8))

    # layer9 (sigma, no activation): weight padded to 128 lanes, value in SIGMA_COL.
    sigma_full = lin(h8, w9p, b9p)                     # (tile_n, 128) f32
    # layer10 (no activation)
    h10 = lin(h8, w10, b10).astype(bf16)
    # layer11 on cat([x10, d]) == x10 @ W11a + d @ W11b + b11
    h11 = relu_b(jnp.dot(h10, w11a[...], preferred_element_type=f32)
                 + jnp.dot(d, w11b[...], preferred_element_type=f32)
                 + b11[...])
    # layer12: weight padded to 128 lanes, rgb in cols 0..2.
    rgb_full = jax.nn.sigmoid(lin(h11, w12p, b12p))    # (tile_n, 128) f32

    # Pack [rgb | sigma | zeros] into a single lane-dense output block.
    col = lax.broadcasted_iota(jnp.int32, rgb_full.shape, 1)
    out_ref[...] = jnp.where(col < 3, rgb_full, sigma_full).astype(out_ref.dtype)


def nerf_forward(x, d, kparams, *, tile_n=512):
    N = x.shape[0]
    n_pad = (-N) % tile_n
    if n_pad:
        x = jnp.pad(x, ((0, n_pad), (0, 0)))
        d = jnp.pad(d, ((0, n_pad), (0, 0)))
    Np = N + n_pad
    grid = (Np // tile_n,)

    param_names = (
        "w1", "b1", "w2", "b2", "w3", "b3", "w4", "b4", "w5", "b5",
        "w6a", "w6b", "b6", "w7", "b7", "w8", "b8",
        "w9p", "b9p", "w10", "b10", "w11a", "w11b", "b11", "w12p", "b12p",
    )
    param_list = [kparams[k] for k in param_names]

    def row_spec(feat):
        return pl.BlockSpec((tile_n, feat), lambda i: (i, 0))

    def full_spec(arr):
        # Grid-invariant block (index_map constant): weights stay resident in
        # VMEM across all grid steps; no per-step re-DMA.
        return pl.BlockSpec(arr.shape, lambda i: (0, 0))

    in_specs = [row_spec(X_DIM), row_spec(D_DIM)] + [full_spec(p) for p in param_list]
    out_specs = row_spec(OUT_PACK)

    # Advisory cost estimate so XLA schedules surrounding ops sensibly.
    macs_per_row = (
        X_DIM * FILTER                      # layer1
        + 4 * FILTER * FILTER               # layers 2-5
        + (FILTER + X_DIM) * FILTER         # layer6 (split)
        + 2 * FILTER * FILTER               # layers 7-8
        + FILTER * OUT_PACK                 # layer9 (padded)
        + FILTER * FILTER                   # layer10
        + (FILTER + D_DIM) * HID11          # layer11 (split)
        + HID11 * OUT_PACK                  # layer12 (padded)
    )
    weight_bytes = sum(int(p.size) * p.dtype.itemsize for p in param_list)
    cost = pl.CostEstimate(
        flops=2 * Np * macs_per_row,
        transcendentals=Np * OUT_PACK,      # sigmoid
        bytes_accessed=weight_bytes + Np * (X_DIM + D_DIM) * 2 + Np * OUT_PACK * 4,
    )

    packed = pl.pallas_call(
        _nerf_kernel,
        out_shape=jax.ShapeDtypeStruct((Np, OUT_PACK), jnp.float32),
        grid_spec=pltpu.PrefetchScalarGridSpec(
            num_scalar_prefetch=0,
            grid=grid,
            in_specs=in_specs,
            out_specs=out_specs,
        ),
        compiler_params=pltpu.CompilerParams(
            dimension_semantics=("parallel",),
        ),
        cost_estimate=cost,
    )(x, d, *param_list)

    rgb = packed[:N, :3]
    sigma = packed[:N, SIGMA_COL:SIGMA_COL + 1]
    return rgb, sigma


def init_params(key):
    """Deterministic f32 parameters, weights stored (in, out) so y = x @ W + b."""
    def dense(key, fan_in, fan_out):
        kw, kb = jax.random.split(key)
        scale = 1.0 / jnp.sqrt(fan_in)
        w = jax.random.uniform(kw, (fan_in, fan_out), jnp.float32, -scale, scale)
        b = jax.random.uniform(kb, (1, fan_out), jnp.float32, -scale, scale)
        return w, b

    keys = jax.random.split(key, 12)
    p = {}
    p["w1"], p["b1"] = dense(keys[0], X_DIM, FILTER)
    p["w2"], p["b2"] = dense(keys[1], FILTER, FILTER)
    p["w3"], p["b3"] = dense(keys[2], FILTER, FILTER)
    p["w4"], p["b4"] = dense(keys[3], FILTER, FILTER)
    p["w5"], p["b5"] = dense(keys[4], FILTER, FILTER)
    p["w6"], p["b6"] = dense(keys[5], FILTER + X_DIM, FILTER)
    p["w7"], p["b7"] = dense(keys[6], FILTER, FILTER)
    p["w8"], p["b8"] = dense(keys[7], FILTER, FILTER)
    p["w9"], p["b9"] = dense(keys[8], FILTER, 1)
    p["w10"], p["b10"] = dense(keys[9], FILTER, FILTER)
    p["w11"], p["b11"] = dense(keys[10], FILTER + D_DIM, HID11)
    p["w12"], p["b12"] = dense(keys[11], HID11, 3)
    return p


def pack_params(p):
    """Kernel-side params: bf16 matmul weights (biases stay f32), split skip
    weights, layer9/layer12 zero-padded to 128 output lanes."""
    bf16 = jnp.bfloat16
    kp = {}
    for i in (1, 2, 3, 4, 5, 7, 8, 10):
        kp[f"w{i}"] = p[f"w{i}"].astype(bf16)
        kp[f"b{i}"] = p[f"b{i}"]
    kp["w6a"] = p["w6"][:FILTER].astype(bf16)
    kp["w6b"] = p["w6"][FILTER:].astype(bf16)
    kp["b6"] = p["b6"]
    kp["w11a"] = p["w11"][:FILTER].astype(bf16)
    kp["w11b"] = p["w11"][FILTER:].astype(bf16)
    kp["b11"] = p["b11"]
    # layer9: (256, 1) -> (256, 128) with sigma weights in column SIGMA_COL.
    w9p = jnp.zeros((FILTER, OUT_PACK), jnp.float32)
    w9p = w9p.at[:, SIGMA_COL:SIGMA_COL + 1].set(p["w9"])
    b9p = jnp.zeros((1, OUT_PACK), jnp.float32)
    b9p = b9p.at[:, SIGMA_COL:SIGMA_COL + 1].set(p["b9"])
    kp["w9p"] = w9p.astype(bf16)
    kp["b9p"] = b9p
    # layer12: (128, 3) -> (128, 128) with rgb weights in columns 0..2.
    w12p = jnp.zeros((HID11, OUT_PACK), jnp.float32).at[:, :3].set(p["w12"])
    b12p = jnp.zeros((1, OUT_PACK), jnp.float32).at[:, :3].set(p["b12"])
    kp["w12p"] = w12p.astype(bf16)
    kp["b12p"] = b12p
    return kp


def nerf_reference(x, d, p):
    """Pure-JAX f32 reference mirroring the PyTorch forward exactly."""
    relu = lambda v: jnp.maximum(v, 0.0)
    x1 = relu(x @ p["w1"] + p["b1"])
    x2 = relu(x1 @ p["w2"] + p["b2"])
    x3 = relu(x2 @ p["w3"] + p["b3"])
    x4 = relu(x3 @ p["w4"] + p["b4"])
    x5 = relu(x4 @ p["w5"] + p["b5"])
    x5com = jnp.concatenate([x5, x], axis=-1)
    x6 = relu(x5com @ p["w6"] + p["b6"])
    x7 = relu(x6 @ p["w7"] + p["b7"])
    x8 = relu(x7 @ p["w8"] + p["b8"])
    sigma = x8 @ p["w9"] + p["b9"]
    x10 = x8 @ p["w10"] + p["b10"]
    x10com = jnp.concatenate([x10, d], axis=-1)
    x11 = relu(x10com @ p["w11"] + p["b11"])
    rgb = jax.nn.sigmoid(x11 @ p["w12"] + p["b12"])
    return rgb, sigma


if __name__ == "__main__":
    key = jax.random.PRNGKey(0)
    kp_key, kx, kd = jax.random.split(key, 3)

    # Small demo batch; production batches are >= 64K samples. tile_n=512 keeps
    # the grid at >= 2 steps (v7x dual-TC) while filling the MXU per step.
    N = 2048
    TILE_N = 512

    params = init_params(kp_key)
    kparams = pack_params(params)
    x = jax.random.normal(kx, (N, X_DIM), jnp.float32)
    d = jax.random.normal(kd, (N, D_DIM), jnp.float32)

    rgb, sigma = nerf_forward(x, d, kparams, tile_n=TILE_N)
    rgb, sigma = jax.block_until_ready((rgb, sigma))

    rgb_ref, sigma_ref = nerf_reference(x, d, params)
    assert rgb.shape == (N, 3) and sigma.shape == (N, 1)
    # bf16 matmul operands (f32 accumulation) -> loosened tolerances vs f32 ref.
    assert jnp.allclose(rgb, rgb_ref, atol=3e-2, rtol=3e-2)
    assert jnp.allclose(sigma, sigma_ref, atol=1e-1, rtol=1e-1)

    print("KERNEL_OK")
</pallas_src>

<mosaic_0001>
module attributes {stable_mosaic.version = 11 : i64} {
  func.func @_nerf_kernel(%arg0: i32, %arg1: memref<512x39xf32, #tpu.memory_space<vmem>>, %arg2: memref<512x21xf32, #tpu.memory_space<vmem>>, %arg3: memref<39x256xbf16, #tpu.memory_space<vmem>>, %arg4: memref<1x256xf32, #tpu.memory_space<vmem>>, %arg5: memref<256x256xbf16, #tpu.memory_space<vmem>>, %arg6: memref<1x256xf32, #tpu.memory_space<vmem>>, %arg7: memref<256x256xbf16, #tpu.memory_space<vmem>>, %arg8: memref<1x256xf32, #tpu.memory_space<vmem>>, %arg9: memref<256x256xbf16, #tpu.memory_space<vmem>>, %arg10: memref<1x256xf32, #tpu.memory_space<vmem>>, %arg11: memref<256x256xbf16, #tpu.memory_space<vmem>>, %arg12: memref<1x256xf32, #tpu.memory_space<vmem>>, %arg13: memref<256x256xbf16, #tpu.memory_space<vmem>>, %arg14: memref<39x256xbf16, #tpu.memory_space<vmem>>, %arg15: memref<1x256xf32, #tpu.memory_space<vmem>>, %arg16: memref<256x256xbf16, #tpu.memory_space<vmem>>, %arg17: memref<1x256xf32, #tpu.memory_space<vmem>>, %arg18: memref<256x256xbf16, #tpu.memory_space<vmem>>, %arg19: memref<1x256xf32, #tpu.memory_space<vmem>>, %arg20: memref<256x128xbf16, #tpu.memory_space<vmem>>, %arg21: memref<1x128xf32, #tpu.memory_space<vmem>>, %arg22: memref<256x256xbf16, #tpu.memory_space<vmem>>, %arg23: memref<1x256xf32, #tpu.memory_space<vmem>>, %arg24: memref<256x128xbf16, #tpu.memory_space<vmem>>, %arg25: memref<21x128xbf16, #tpu.memory_space<vmem>>, %arg26: memref<1x128xf32, #tpu.memory_space<vmem>>, %arg27: memref<128x128xbf16, #tpu.memory_space<vmem>>, %arg28: memref<1x128xf32, #tpu.memory_space<vmem>>, %arg29: memref<512x128xf32, #tpu.memory_space<vmem>>) attributes {dimension_semantics = [#tpu.dimension_semantics<parallel>], iteration_bounds = array<i64: 4>, scalar_prefetch = 0 : i64, scratch_operands = 0 : i64, tpu.core_type = #tpu.core_type<tc>, window_params = [{transform_indices = @transform_0, window_bounds = array<i64: 512, 39>}, {transform_indices = @transform_1, window_bounds = array<i64: 512, 21>}, {pipeline_mode = #tpu.pipeline_mode<synchronous>, transform_indices = @transform_2, window_bounds = array<i64: 39, 256>}, {pipeline_mode = #tpu.pipeline_mode<synchronous>, transform_indices = @transform_3, window_bounds = array<i64: 1, 256>}, {pipeline_mode = #tpu.pipeline_mode<synchronous>, transform_indices = @transform_4, window_bounds = array<i64: 256, 256>}, {pipeline_mode = #tpu.pipeline_mode<synchronous>, transform_indices = @transform_5, window_bounds = array<i64: 1, 256>}, {pipeline_mode = #tpu.pipeline_mode<synchronous>, transform_indices = @transform_6, window_bounds = array<i64: 256, 256>}, {pipeline_mode = #tpu.pipeline_mode<synchronous>, transform_indices = @transform_7, window_bounds = array<i64: 1, 256>}, {pipeline_mode = #tpu.pipeline_mode<synchronous>, transform_indices = @transform_8, window_bounds = array<i64: 256, 256>}, {pipeline_mode = #tpu.pipeline_mode<synchronous>, transform_indices = @transform_9, window_bounds = array<i64: 1, 256>}, {pipeline_mode = #tpu.pipeline_mode<synchronous>, transform_indices = @transform_10, window_bounds = array<i64: 256, 256>}, {pipeline_mode = #tpu.pipeline_mode<synchronous>, transform_indices = @transform_11, window_bounds = array<i64: 1, 256>}, {pipeline_mode = #tpu.pipeline_mode<synchronous>, transform_indices = @transform_12, window_bounds = array<i64: 256, 256>}, {pipeline_mode = #tpu.pipeline_mode<synchronous>, transform_indices = @transform_13, window_bounds = array<i64: 39, 256>}, {pipeline_mode = #tpu.pipeline_mode<synchronous>, transform_indices = @transform_14, window_bounds = array<i64: 1, 256>}, {pipeline_mode = #tpu.pipeline_mode<synchronous>, transform_indices = @transform_15, window_bounds = array<i64: 256, 256>}, {pipeline_mode = #tpu.pipeline_mode<synchronous>, transform_indices = @transform_16, window_bounds = array<i64: 1, 256>}, {pipeline_mode = #tpu.pipeline_mode<synchronous>, transform_indices = @transform_17, window_bounds = array<i64: 256, 256>}, {pipeline_mode = #tpu.pipeline_mode<synchronous>, transform_indices = @transform_18, window_bounds = array<i64: 1, 256>}, {pipeline_mode = #tpu.pipeline_mode<synchronous>, transform_indices = @transform_19, window_bounds = array<i64: 256, 128>}, {pipeline_mode = #tpu.pipeline_mode<synchronous>, transform_indices = @transform_20, window_bounds = array<i64: 1, 128>}, {pipeline_mode = #tpu.pipeline_mode<synchronous>, transform_indices = @transform_21, window_bounds = array<i64: 256, 256>}, {pipeline_mode = #tpu.pipeline_mode<synchronous>, transform_indices = @transform_22, window_bounds = array<i64: 1, 256>}, {pipeline_mode = #tpu.pipeline_mode<synchronous>, transform_indices = @transform_23, window_bounds = array<i64: 256, 128>}, {pipeline_mode = #tpu.pipeline_mode<synchronous>, transform_indices = @transform_24, window_bounds = array<i64: 21, 128>}, {pipeline_mode = #tpu.pipeline_mode<synchronous>, transform_indices = @transform_25, window_bounds = array<i64: 1, 128>}, {pipeline_mode = #tpu.pipeline_mode<synchronous>, transform_indices = @transform_26, window_bounds = array<i64: 128, 128>}, {pipeline_mode = #tpu.pipeline_mode<synchronous>, transform_indices = @transform_27, window_bounds = array<i64: 1, 128>}, {transform_indices = @transform_28, window_bounds = array<i64: 512, 128>}]} {
    %c0 = arith.constant 0 : index
    %c0_0 = arith.constant 0 : index
    %0 = vector.load %arg1[%c0, %c0_0] : memref<512x39xf32, #tpu.memory_space<vmem>>, vector<512x39xf32>
    %1 = arith.truncf %0 : vector<512x39xf32> to vector<512x39xbf16>
    %c0_1 = arith.constant 0 : index
    %c0_2 = arith.constant 0 : index
    %2 = vector.load %arg2[%c0_1, %c0_2] : memref<512x21xf32, #tpu.memory_space<vmem>>, vector<512x21xf32>
    %3 = arith.truncf %2 : vector<512x21xf32> to vector<512x21xbf16>
    %c0_3 = arith.constant 0 : index
    %c0_4 = arith.constant 0 : index
    %4 = vector.load %arg3[%c0_3, %c0_4] : memref<39x256xbf16, #tpu.memory_space<vmem>>, vector<39x256xbf16>
    %cst = arith.constant dense<0.000000e+00> : vector<512x256xf32>
    %5 = tpu.matmul %1, %4, %cst {dimension_numbers = #tpu.dot_dimension_numbers<[1], [0], [0], [1], [0, 0, 1, 1], [], []>} : vector<512x39xbf16>, vector<39x256xbf16>, vector<512x256xf32> -> vector<512x256xf32>
    %c0_5 = arith.constant 0 : index
    %c0_6 = arith.constant 0 : index
    %6 = vector.load %arg4[%c0_5, %c0_6] : memref<1x256xf32, #tpu.memory_space<vmem>>, vector<1x256xf32>
    %7 = vector.broadcast %6 : vector<1x256xf32> to vector<512x256xf32>
    %8 = arith.addf %5, %7 : vector<512x256xf32>
    %cst_7 = arith.constant 0.000000e+00 : f32
    %9 = vector.broadcast %cst_7 : f32 to vector<512x256xf32>
    %10 = arith.maximumf %8, %9 : vector<512x256xf32>
    %11 = arith.truncf %10 : vector<512x256xf32> to vector<512x256xbf16>
    %c0_8 = arith.constant 0 : index
    %c0_9 = arith.constant 0 : index
    %12 = vector.load %arg5[%c0_8, %c0_9] : memref<256x256xbf16, #tpu.memory_space<vmem>>, vector<256x256xbf16>
    %cst_10 = arith.constant dense<0.000000e+00> : vector<512x256xf32>
    %13 = tpu.matmul %11, %12, %cst_10 {dimension_numbers = #tpu.dot_dimension_numbers<[1], [0], [0], [1], [0, 0, 1, 1], [], []>} : vector<512x256xbf16>, vector<256x256xbf16>, vector<512x256xf32> -> vector<512x256xf32>
    %c0_11 = arith.constant 0 : index
    %c0_12 = arith.constant 0 : index
    %14 = vector.load %arg6[%c0_11, %c0_12] : memref<1x256xf32, #tpu.memory_space<vmem>>, vector<1x256xf32>
    %15 = vector.broadcast %14 : vector<1x256xf32> to vector<512x256xf32>
    %16 = arith.addf %13, %15 : vector<512x256xf32>
    %cst_13 = arith.constant 0.000000e+00 : f32
    %17 = vector.broadcast %cst_13 : f32 to vector<512x256xf32>
    %18 = arith.maximumf %16, %17 : vector<512x256xf32>
    %19 = arith.truncf %18 : vector<512x256xf32> to vector<512x256xbf16>
    %c0_14 = arith.constant 0 : index
    %c0_15 = arith.constant 0 : index
    %20 = vector.load %arg7[%c0_14, %c0_15] : memref<256x256xbf16, #tpu.memory_space<vmem>>, vector<256x256xbf16>
    %cst_16 = arith.constant dense<0.000000e+00> : vector<512x256xf32>
    %21 = tpu.matmul %19, %20, %cst_16 {dimension_numbers = #tpu.dot_dimension_numbers<[1], [0], [0], [1], [0, 0, 1, 1], [], []>} : vector<512x256xbf16>, vector<256x256xbf16>, vector<512x256xf32> -> vector<512x256xf32>
    %c0_17 = arith.constant 0 : index
    %c0_18 = arith.constant 0 : index
    %22 = vector.load %arg8[%c0_17, %c0_18] : memref<1x256xf32, #tpu.memory_space<vmem>>, vector<1x256xf32>
    %23 = vector.broadcast %22 : vector<1x256xf32> to vector<512x256xf32>
    %24 = arith.addf %21, %23 : vector<512x256xf32>
    %cst_19 = arith.constant 0.000000e+00 : f32
    %25 = vector.broadcast %cst_19 : f32 to vector<512x256xf32>
    %26 = arith.maximumf %24, %25 : vector<512x256xf32>
    %27 = arith.truncf %26 : vector<512x256xf32> to vector<512x256xbf16>
    %c0_20 = arith.constant 0 : index
    %c0_21 = arith.constant 0 : index
    %28 = vector.load %arg9[%c0_20, %c0_21] : memref<256x256xbf16, #tpu.memory_space<vmem>>, vector<256x256xbf16>
    %cst_22 = arith.constant dense<0.000000e+00> : vector<512x256xf32>
    %29 = tpu.matmul %27, %28, %cst_22 {dimension_numbers = #tpu.dot_dimension_numbers<[1], [0], [0], [1], [0, 0, 1, 1], [], []>} : vector<512x256xbf16>, vector<256x256xbf16>, vector<512x256xf32> -> vector<512x256xf32>
    %c0_23 = arith.constant 0 : index
    %c0_24 = arith.constant 0 : index
    %30 = vector.load %arg10[%c0_23, %c0_24] : memref<1x256xf32, #tpu.memory_space<vmem>>, vector<1x256xf32>
    %31 = vector.broadcast %30 : vector<1x256xf32> to vector<512x256xf32>
    %32 = arith.addf %29, %31 : vector<512x256xf32>
    %cst_25 = arith.constant 0.000000e+00 : f32
    %33 = vector.broadcast %cst_25 : f32 to vector<512x256xf32>
    %34 = arith.maximumf %32, %33 : vector<512x256xf32>
    %35 = arith.truncf %34 : vector<512x256xf32> to vector<512x256xbf16>
    %c0_26 = arith.constant 0 : index
    %c0_27 = arith.constant 0 : index
    %36 = vector.load %arg11[%c0_26, %c0_27] : memref<256x256xbf16, #tpu.memory_space<vmem>>, vector<256x256xbf16>
    %cst_28 = arith.constant dense<0.000000e+00> : vector<512x256xf32>
    %37 = tpu.matmul %35, %36, %cst_28 {dimension_numbers = #tpu.dot_dimension_numbers<[1], [0], [0], [1], [0, 0, 1, 1], [], []>} : vector<512x256xbf16>, vector<256x256xbf16>, vector<512x256xf32> -> vector<512x256xf32>
    %c0_29 = arith.constant 0 : index
    %c0_30 = arith.constant 0 : index
    %38 = vector.load %arg12[%c0_29, %c0_30] : memref<1x256xf32, #tpu.memory_space<vmem>>, vector<1x256xf32>
    %39 = vector.broadcast %38 : vector<1x256xf32> to vector<512x256xf32>
    %40 = arith.addf %37, %39 : vector<512x256xf32>
    %cst_31 = arith.constant 0.000000e+00 : f32
    %41 = vector.broadcast %cst_31 : f32 to vector<512x256xf32>
    %42 = arith.maximumf %40, %41 : vector<512x256xf32>
    %43 = arith.truncf %42 : vector<512x256xf32> to vector<512x256xbf16>
    %c0_32 = arith.constant 0 : index
    %c0_33 = arith.constant 0 : index
    %44 = vector.load %arg13[%c0_32, %c0_33] : memref<256x256xbf16, #tpu.memory_space<vmem>>, vector<256x256xbf16>
    %cst_34 = arith.constant dense<0.000000e+00> : vector<512x256xf32>
    %45 = tpu.matmul %43, %44, %cst_34 {dimension_numbers = #tpu.dot_dimension_numbers<[1], [0], [0], [1], [0, 0, 1, 1], [], []>} : vector<512x256xbf16>, vector<256x256xbf16>, vector<512x256xf32> -> vector<512x256xf32>
    %c0_35 = arith.constant 0 : index
    %c0_36 = arith.constant 0 : index
    %46 = vector.load %arg14[%c0_35, %c0_36] : memref<39x256xbf16, #tpu.memory_space<vmem>>, vector<39x256xbf16>
    %cst_37 = arith.constant dense<0.000000e+00> : vector<512x256xf32>
    %47 = tpu.matmul %1, %46, %cst_37 {dimension_numbers = #tpu.dot_dimension_numbers<[1], [0], [0], [1], [0, 0, 1, 1], [], []>} : vector<512x39xbf16>, vector<39x256xbf16>, vector<512x256xf32> -> vector<512x256xf32>
    %48 = arith.addf %45, %47 : vector<512x256xf32>
    %c0_38 = arith.constant 0 : index
    %c0_39 = arith.constant 0 : index
    %49 = vector.load %arg15[%c0_38, %c0_39] : memref<1x256xf32, #tpu.memory_space<vmem>>, vector<1x256xf32>
    %50 = vector.broadcast %49 : vector<1x256xf32> to vector<512x256xf32>
    %51 = arith.addf %48, %50 : vector<512x256xf32>
    %cst_40 = arith.constant 0.000000e+00 : f32
    %52 = vector.broadcast %cst_40 : f32 to vector<512x256xf32>
    %53 = arith.maximumf %51, %52 : vector<512x256xf32>
    %54 = arith.truncf %53 : vector<512x256xf32> to vector<512x256xbf16>
    %c0_41 = arith.constant 0 : index
    %c0_42 = arith.constant 0 : index
    %55 = vector.load %arg16[%c0_41, %c0_42] : memref<256x256xbf16, #tpu.memory_space<vmem>>, vector<256x256xbf16>
    %cst_43 = arith.constant dense<0.000000e+00> : vector<512x256xf32>
    %56 = tpu.matmul %54, %55, %cst_43 {dimension_numbers = #tpu.dot_dimension_numbers<[1], [0], [0], [1], [0, 0, 1, 1], [], []>} : vector<512x256xbf16>, vector<256x256xbf16>, vector<512x256xf32> -> vector<512x256xf32>
    %c0_44 = arith.constant 0 : index
    %c0_45 = arith.constant 0 : index
    %57 = vector.load %arg17[%c0_44, %c0_45] : memref<1x256xf32, #tpu.memory_space<vmem>>, vector<1x256xf32>
    %58 = vector.broadcast %57 : vector<1x256xf32> to vector<512x256xf32>
    %59 = arith.addf %56, %58 : vector<512x256xf32>
    %cst_46 = arith.constant 0.000000e+00 : f32
    %60 = vector.broadcast %cst_46 : f32 to vector<512x256xf32>
    %61 = arith.maximumf %59, %60 : vector<512x256xf32>
    %62 = arith.truncf %61 : vector<512x256xf32> to vector<512x256xbf16>
    %c0_47 = arith.constant 0 : index
    %c0_48 = arith.constant 0 : index
    %63 = vector.load %arg18[%c0_47, %c0_48] : memref<256x256xbf16, #tpu.memory_space<vmem>>, vector<256x256xbf16>
    %cst_49 = arith.constant dense<0.000000e+00> : vector<512x256xf32>
    %64 = tpu.matmul %62, %63, %cst_49 {dimension_numbers = #tpu.dot_dimension_numbers<[1], [0], [0], [1], [0, 0, 1, 1], [], []>} : vector<512x256xbf16>, vector<256x256xbf16>, vector<512x256xf32> -> vector<512x256xf32>
    %c0_50 = arith.constant 0 : index
    %c0_51 = arith.constant 0 : index
    %65 = vector.load %arg19[%c0_50, %c0_51] : memref<1x256xf32, #tpu.memory_space<vmem>>, vector<1x256xf32>
    %66 = vector.broadcast %65 : vector<1x256xf32> to vector<512x256xf32>
    %67 = arith.addf %64, %66 : vector<512x256xf32>
    %cst_52 = arith.constant 0.000000e+00 : f32
    %68 = vector.broadcast %cst_52 : f32 to vector<512x256xf32>
    %69 = arith.maximumf %67, %68 : vector<512x256xf32>
    %70 = arith.truncf %69 : vector<512x256xf32> to vector<512x256xbf16>
    %c0_53 = arith.constant 0 : index
    %c0_54 = arith.constant 0 : index
    %71 = vector.load %arg20[%c0_53, %c0_54] : memref<256x128xbf16, #tpu.memory_space<vmem>>, vector<256x128xbf16>
    %cst_55 = arith.constant dense<0.000000e+00> : vector<512x128xf32>
    %72 = tpu.matmul %70, %71, %cst_55 {dimension_numbers = #tpu.dot_dimension_numbers<[1], [0], [0], [1], [0, 0, 1, 1], [], []>} : vector<512x256xbf16>, vector<256x128xbf16>, vector<512x128xf32> -> vector<512x128xf32>
    %c0_56 = arith.constant 0 : index
    %c0_57 = arith.constant 0 : index
    %73 = vector.load %arg21[%c0_56, %c0_57] : memref<1x128xf32, #tpu.memory_space<vmem>>, vector<1x128xf32>
    %74 = vector.broadcast %73 : vector<1x128xf32> to vector<512x128xf32>
    %75 = arith.addf %72, %74 : vector<512x128xf32>
    %c0_58 = arith.constant 0 : index
    %c0_59 = arith.constant 0 : index
    %76 = vector.load %arg22[%c0_58, %c0_59] : memref<256x256xbf16, #tpu.memory_space<vmem>>, vector<256x256xbf16>
    %cst_60 = arith.constant dense<0.000000e+00> : vector<512x256xf32>
    %77 = tpu.matmul %70, %76, %cst_60 {dimension_numbers = #tpu.dot_dimension_numbers<[1], [0], [0], [1], [0, 0, 1, 1], [], []>} : vector<512x256xbf16>, vector<256x256xbf16>, vector<512x256xf32> -> vector<512x256xf32>
    %c0_61 = arith.constant 0 : index
    %c0_62 = arith.constant 0 : index
    %78 = vector.load %arg23[%c0_61, %c0_62] : memref<1x256xf32, #tpu.memory_space<vmem>>, vector<1x256xf32>
    %79 = vector.broadcast %78 : vector<1x256xf32> to vector<512x256xf32>
    %80 = arith.addf %77, %79 : vector<512x256xf32>
    %81 = arith.truncf %80 : vector<512x256xf32> to vector<512x256xbf16>
    %c0_63 = arith.constant 0 : index
    %c0_64 = arith.constant 0 : index
    %82 = vector.load %arg24[%c0_63, %c0_64] : memref<256x128xbf16, #tpu.memory_space<vmem>>, vector<256x128xbf16>
    %cst_65 = arith.constant dense<0.000000e+00> : vector<512x128xf32>
    %83 = tpu.matmul %81, %82, %cst_65 {dimension_numbers = #tpu.dot_dimension_numbers<[1], [0], [0], [1], [0, 0, 1, 1], [], []>} : vector<512x256xbf16>, vector<256x128xbf16>, vector<512x128xf32> -> vector<512x128xf32>
    %c0_66 = arith.constant 0 : index
    %c0_67 = arith.constant 0 : index
    %84 = vector.load %arg25[%c0_66, %c0_67] : memref<21x128xbf16, #tpu.memory_space<vmem>>, vector<21x128xbf16>
    %cst_68 = arith.constant dense<0.000000e+00> : vector<512x128xf32>
    %85 = tpu.matmul %3, %84, %cst_68 {dimension_numbers = #tpu.dot_dimension_numbers<[1], [0], [0], [1], [0, 0, 1, 1], [], []>} : vector<512x21xbf16>, vector<21x128xbf16>, vector<512x128xf32> -> vector<512x128xf32>
    %86 = arith.addf %83, %85 : vector<512x128xf32>
    %c0_69 = arith.constant 0 : index
    %c0_70 = arith.constant 0 : index
    %87 = vector.load %arg26[%c0_69, %c0_70] : memref<1x128xf32, #tpu.memory_space<vmem>>, vector<1x128xf32>
    %88 = vector.broadcast %87 : vector<1x128xf32> to vector<512x128xf32>
    %89 = arith.addf %86, %88 : vector<512x128xf32>
    %cst_71 = arith.constant 0.000000e+00 : f32
    %90 = vector.broadcast %cst_71 : f32 to vector<512x128xf32>
    %91 = arith.maximumf %89, %90 : vector<512x128xf32>
    %92 = arith.truncf %91 : vector<512x128xf32> to vector<512x128xbf16>
    %c0_72 = arith.constant 0 : index
    %c0_73 = arith.constant 0 : index
    %93 = vector.load %arg27[%c0_72, %c0_73] : memref<128x128xbf16, #tpu.memory_space<vmem>>, vector<128x128xbf16>
    %cst_74 = arith.constant dense<0.000000e+00> : vector<512x128xf32>
    %94 = tpu.matmul %92, %93, %cst_74 {dimension_numbers = #tpu.dot_dimension_numbers<[1], [0], [0], [1], [0, 0, 1, 1], [], []>} : vector<512x128xbf16>, vector<128x128xbf16>, vector<512x128xf32> -> vector<512x128xf32>
    %c0_75 = arith.constant 0 : index
    %c0_76 = arith.constant 0 : index
    %95 = vector.load %arg28[%c0_75, %c0_76] : memref<1x128xf32, #tpu.memory_space<vmem>>, vector<1x128xf32>
    %96 = vector.broadcast %95 : vector<1x128xf32> to vector<512x128xf32>
    %97 = arith.addf %94, %96 : vector<512x128xf32>
    %98 = arith.negf %97 : vector<512x128xf32>
    %99 = math.exp %98 : vector<512x128xf32>
    %cst_77 = arith.constant 1.000000e+00 : f32
    %100 = vector.broadcast %cst_77 : f32 to vector<512x128xf32>
    %101 = arith.addf %100, %99 : vector<512x128xf32>
    %102 = arith.divf %100, %101 : vector<512x128xf32>
    %103 = tpu.iota {dimensions = array<i32: 1>} : vector<512x128xi32>
    %c3_i32 = arith.constant 3 : i32
    %104 = vector.broadcast %c3_i32 : i32 to vector<512x128xi32>
    %105 = arith.cmpi slt, %103, %104 : vector<512x128xi32>
    %106 = arith.select %105, %102, %75 : vector<512x128xi1>, vector<512x128xf32>
    %c0_78 = arith.constant 0 : index
    %c0_79 = arith.constant 0 : index
    %107 = vector.load %arg29[%c0_78, %c0_79] : memref<512x128xf32, #tpu.memory_space<vmem>>, vector<512x128xf32>
    tpu.vector_store %arg29[%c0_78, %c0_79], %106 {strides = array<i32>} : memref<512x128xf32, #tpu.memory_space<vmem>>, vector<512x128xf32>,
    return
  }
  func.func @transform_0(%arg0: i32) -> (i32, i32) {
    %c0_i32 = arith.constant 0 : i32
    %c0_i32_0 = arith.constant 0 : i32
    return %arg0, %c0_i32 : i32, i32
  }
  func.func @transform_1(%arg0: i32) -> (i32, i32) {
    %c0_i32 = arith.constant 0 : i32
    %c0_i32_0 = arith.constant 0 : i32
    return %arg0, %c0_i32 : i32, i32
  }
  func.func @transform_2(%arg0: i32) -> (i32, i32) {
    %c0_i32 = arith.constant 0 : i32
    %c0_i32_0 = arith.constant 0 : i32
    %c0_i32_1 = arith.constant 0 : i32
    return %c0_i32, %c0_i32_0 : i32, i32
  }
  func.func @transform_3(%arg0: i32) -> (i32, i32) {
    %c0_i32 = arith.constant 0 : i32
    %c0_i32_0 = arith.constant 0 : i32
    %c0_i32_1 = arith.constant 0 : i32
    return %c0_i32, %c0_i32_0 : i32, i32
  }
  func.func @transform_4(%arg0: i32) -> (i32, i32) {
    %c0_i32 = arith.constant 0 : i32
    %c0_i32_0 = arith.constant 0 : i32
    %c0_i32_1 = arith.constant 0 : i32
    return %c0_i32, %c0_i32_0 : i32, i32
  }
  func.func @transform_5(%arg0: i32) -> (i32, i32) {
    %c0_i32 = arith.constant 0 : i32
    %c0_i32_0 = arith.constant 0 : i32
    %c0_i32_1 = arith.constant 0 : i32
    return %c0_i32, %c0_i32_0 : i32, i32
  }
  func.func @transform_6(%arg0: i32) -> (i32, i32) {
    %c0_i32 = arith.constant 0 : i32
    %c0_i32_0 = arith.constant 0 : i32
    %c0_i32_1 = arith.constant 0 : i32
    return %c0_i32, %c0_i32_0 : i32, i32
  }
  func.func @transform_7(%arg0: i32) -> (i32, i32) {
    %c0_i32 = arith.constant 0 : i32
    %c0_i32_0 = arith.constant 0 : i32
    %c0_i32_1 = arith.constant 0 : i32
    return %c0_i32, %c0_i32_0 : i32, i32
  }
  func.func @transform_8(%arg0: i32) -> (i32, i32) {
    %c0_i32 = arith.constant 0 : i32
    %c0_i32_0 = arith.constant 0 : i32
    %c0_i32_1 = arith.constant 0 : i32
    return %c0_i32, %c0_i32_0 : i32, i32
  }
  func.func @transform_9(%arg0: i32) -> (i32, i32) {
    %c0_i32 = arith.constant 0 : i32
    %c0_i32_0 = arith.constant 0 : i32
    %c0_i32_1 = arith.constant 0 : i32
    return %c0_i32, %c0_i32_0 : i32, i32
  }
  func.func @transform_10(%arg0: i32) -> (i32, i32) {
    %c0_i32 = arith.constant 0 : i32
    %c0_i32_0 = arith.constant 0 : i32
    %c0_i32_1 = arith.constant 0 : i32
    return %c0_i32, %c0_i32_0 : i32, i32
  }
  func.func @transform_11(%arg0: i32) -> (i32, i32) {
    %c0_i32 = arith.constant 0 : i32
    %c0_i32_0 = arith.constant 0 : i32
    %c0_i32_1 = arith.constant 0 : i32
    return %c0_i32, %c0_i32_0 : i32, i32
  }
  func.func @transform_12(%arg0: i32) -> (i32, i32) {
    %c0_i32 = arith.constant 0 : i32
    %c0_i32_0 = arith.constant 0 : i32
    %c0_i32_1 = arith.constant 0 : i32
    return %c0_i32, %c0_i32_0 : i32, i32
  }
  func.func @transform_13(%arg0: i32) -> (i32, i32) {
    %c0_i32 = arith.constant 0 : i32
    %c0_i32_0 = arith.constant 0 : i32
    %c0_i32_1 = arith.constant 0 : i32
    return %c0_i32, %c0_i32_0 : i32, i32
  }
  func.func @transform_14(%arg0: i32) -> (i32, i32) {
    %c0_i32 = arith.constant 0 : i32
    %c0_i32_0 = arith.constant 0 : i32
    %c0_i32_1 = arith.constant 0 : i32
    return %c0_i32, %c0_i32_0 : i32, i32
  }
  func.func @transform_15(%arg0: i32) -> (i32, i32) {
    %c0_i32 = arith.constant 0 : i32
    %c0_i32_0 = arith.constant 0 : i32
    %c0_i32_1 = arith.constant 0 : i32
    return %c0_i32, %c0_i32_0 : i32, i32
  }
  func.func @transform_16(%arg0: i32) -> (i32, i32) {
    %c0_i32 = arith.constant 0 : i32
    %c0_i32_0 = arith.constant 0 : i32
    %c0_i32_1 = arith.constant 0 : i32
    return %c0_i32, %c0_i32_0 : i32, i32
  }
  func.func @transform_17(%arg0: i32) -> (i32, i32) {
    %c0_i32 = arith.constant 0 : i32
    %c0_i32_0 = arith.constant 0 : i32
    %c0_i32_1 = arith.constant 0 : i32
    return %c0_i32, %c0_i32_0 : i32, i32
  }
  func.func @transform_18(%arg0: i32) -> (i32, i32) {
    %c0_i32 = arith.constant 0 : i32
    %c0_i32_0 = arith.constant 0 : i32
    %c0_i32_1 = arith.constant 0 : i32
    return %c0_i32, %c0_i32_0 : i32, i32
  }
  func.func @transform_19(%arg0: i32) -> (i32, i32) {
    %c0_i32 = arith.constant 0 : i32
    %c0_i32_0 = arith.constant 0 : i32
    %c0_i32_1 = arith.constant 0 : i32
    return %c0_i32, %c0_i32_0 : i32, i32
  }
  func.func @transform_20(%arg0: i32) -> (i32, i32) {
    %c0_i32 = arith.constant 0 : i32
    %c0_i32_0 = arith.constant 0 : i32
    %c0_i32_1 = arith.constant 0 : i32
    return %c0_i32, %c0_i32_0 : i32, i32
  }
  func.func @transform_21(%arg0: i32) -> (i32, i32) {
    %c0_i32 = arith.constant 0 : i32
    %c0_i32_0 = arith.constant 0 : i32
    %c0_i32_1 = arith.constant 0 : i32
    return %c0_i32, %c0_i32_0 : i32, i32
  }
  func.func @transform_22(%arg0: i32) -> (i32, i32) {
    %c0_i32 = arith.constant 0 : i32
    %c0_i32_0 = arith.constant 0 : i32
    %c0_i32_1 = arith.constant 0 : i32
    return %c0_i32, %c0_i32_0 : i32, i32
  }
  func.func @transform_23(%arg0: i32) -> (i32, i32) {
    %c0_i32 = arith.constant 0 : i32
    %c0_i32_0 = arith.constant 0 : i32
    %c0_i32_1 = arith.constant 0 : i32
    return %c0_i32, %c0_i32_0 : i32, i32
  }
  func.func @transform_24(%arg0: i32) -> (i32, i32) {
    %c0_i32 = arith.constant 0 : i32
    %c0_i32_0 = arith.constant 0 : i32
    %c0_i32_1 = arith.constant 0 : i32
    return %c0_i32, %c0_i32_0 : i32, i32
  }
  func.func @transform_25(%arg0: i32) -> (i32, i32) {
    %c0_i32 = arith.constant 0 : i32
    %c0_i32_0 = arith.constant 0 : i32
    %c0_i32_1 = arith.constant 0 : i32
    return %c0_i32, %c0_i32_0 : i32, i32
  }
  func.func @transform_26(%arg0: i32) -> (i32, i32) {
    %c0_i32 = arith.constant 0 : i32
    %c0_i32_0 = arith.constant 0 : i32
    %c0_i32_1 = arith.constant 0 : i32
    return %c0_i32, %c0_i32_0 : i32, i32
  }
  func.func @transform_27(%arg0: i32) -> (i32, i32) {
    %c0_i32 = arith.constant 0 : i32
    %c0_i32_0 = arith.constant 0 : i32
    %c0_i32_1 = arith.constant 0 : i32
    return %c0_i32, %c0_i32_0 : i32, i32
  }
  func.func @transform_28(%arg0: i32) -> (i32, i32) {
    %c0_i32 = arith.constant 0 : i32
    %c0_i32_0 = arith.constant 0 : i32
    return %arg0, %c0_i32 : i32, i32
  }
}

</mosaic_0001>

<bundles_post_ra>
// kernel: tpu_custom_call.1
= control target key start
LH: loop header
LB: loop body
LE: loop exit
PB: predicated region body
PF: predicated region fallthrough
CT: control target
= control target key end

     0   :  { %s17130_s0 = inlined_call_operand.vmem [shape: f32[2048,39], index: 0, kind: input, shape index: {}]   ;;  %s17131_s1 = inlined_call_operand.vmem [shape: f32[2048,21], index: 1, kind: input, shape index: {}]   ;;  %s17132_s2 = inlined_call_operand.vmem [shape: bf16[39,256], index: 2, kind: input, shape index: {}]   ;;  %s17133_s3 = inlined_call_operand.vmem [shape: f32[1,256], index: 3, kind: input, shape index: {}]   ;;  %s17134_s4 = inlined_call_operand.vmem [shape: bf16[256,256], index: 4, kind: input, shape index: {}]   ;;  %s17135_s5 = inlined_call_operand.vmem [shape: f32[1,256], index: 5, kind: input, shape index: {}]   ;;  %s17136_s6 = inlined_call_operand.vmem [shape: bf16[256,256], index: 6, kind: input, shape index: {}]   ;;  %s17137_s7 = inlined_call_operand.vmem [shape: f32[1,256], index: 7, kind: input, shape index: {}]   ;;  %s17138_s8 = inlined_call_operand.vmem [shape: bf16[256,256], index: 8, kind: input, shape index: {}]   ;;  %s17139_s9 = inlined_call_operand.vmem [shape: f32[1,256], index: 9, kind: input, shape index: {}]   ;;  %s17140_s10 = inlined_call_operand.vmem [shape: bf16[256,256], index: 10, kind: input, shape index: {}]   ;;  %s17141_s11 = inlined_call_operand.vmem [shape: f32[1,256], index: 11, kind: input, shape index: {}]   ;;  %s17142_s12 = inlined_call_operand.vmem [shape: bf16[256,256], index: 12, kind: input, shape index: {}]   ;;  %s17143_s13 = inlined_call_operand.vmem [shape: bf16[39,256], index: 13, kind: input, shape index: {}]   ;;  %s17144_s14 = inlined_call_operand.vmem [shape: f32[1,256], index: 14, kind: input, shape index: {}]   ;;  %s17145_s15 = inlined_call_operand.vmem [shape: bf16[256,256], index: 15, kind: input, shape index: {}]   ;;  %s17146_s16 = inlined_call_operand.vmem [shape: f32[1,256], index: 16, kind: input, shape index: {}]   ;;  %s17147_s17 = inlined_call_operand.vmem [shape: bf16[256,256], index: 17, kind: input, shape index: {}]   ;;  %s17148_s18 = inlined_call_operand.vmem [shape: f32[1,256], index: 18, kind: input, shape index: {}]   ;;  %s17149_s19 = inlined_call_operand.vmem [shape: bf16[256,128], index: 19, kind: input, shape index: {}]   ;;  %s17150_s20 = inlined_call_operand.vmem [shape: f32[1,128], index: 20, kind: input, shape index: {}]   ;;  %s17151_s21 = inlined_call_operand.vmem [shape: bf16[256,256], index: 21, kind: input, shape index: {}]   ;;  %s17152_s22 = inlined_call_operand.vmem [shape: f32[1,256], index: 22, kind: input, shape index: {}]   ;;  %s17153_s23 = inlined_call_operand.vmem [shape: bf16[256,128], index: 23, kind: input, shape index: {}]   ;;  %s17154_s24 = inlined_call_operand.vmem [shape: bf16[21,128], index: 24, kind: input, shape index: {}]   ;;  %s17155_s25 = inlined_call_operand.vmem [shape: f32[1,128], index: 25, kind: input, shape index: {}]   ;;  %s17156_s26 = inlined_call_operand.vmem [shape: bf16[128,128], index: 26, kind: input, shape index: {}]   ;;  %s17157_s27 = inlined_call_operand.vmem [shape: f32[1,128], index: 27, kind: input, shape index: {}]   ;;  %s17158_s28 = inlined_call_operand.hbm [shape: f32[2048,128], index: 28, kind: output, shape index: {}]  }
   0x1   :  { %17190 = sst [smem:[#allocation111_spill]] %s17130_s0 }
   0x2   :  { %17191 = sst [smem:[#allocation112_spill]] %s17131_s1 }
   0x3   :  { %17192 = sst [smem:[#allocation113_spill]] %s17132_s2 }
   0x4   :  { %17193 = sst [smem:[#allocation114_spill]] %s17133_s3 }
   0x5   :  { %17194 = sst [smem:[#allocation115_spill]] %s17134_s4 }
   0x6   :  { %17195 = sst [smem:[#allocation116_spill]] %s17135_s5 }
   0x7   :  { %17196 = sst [smem:[#allocation117_spill]] %s17136_s6 }
   0x8   :  { %17197 = sst [smem:[#allocation118_spill]] %s17137_s7 }
   0x9   :  { %17198 = sst [smem:[#allocation119_spill]] %s17138_s8 }
   0xa   :  { %17199 = sst [smem:[#allocation120_spill]] %s17139_s9 }
   0xb   :  { %17200 = sst [smem:[#allocation121_spill]] %s17140_s10 }
   0xc   :  { %17201 = sst [smem:[#allocation122_spill]] %s17141_s11 }
   0xd   :  { %17202 = sst [smem:[#allocation123_spill]] %s17142_s12 }
   0xe   :  { %17203 = sst [smem:[#allocation124_spill]] %s17143_s13 }
   0xf   :  { %17204 = sst [smem:[#allocation125_spill]] %s17158_s28 }
  0x10   :  { %33 = vsyncpa [#allocation3], 0 }
  0x11   :  { %35 = vsyncpa [#allocation3 + $0x1], 0  ;;  %s12178_s8 = smov 0   ;;  %s12180_s5 = smov 0  }
  0x12   :  { %s12182_s9 = smov 0   ;;  %s12184_s30 = smov 0  }
  0x13 LB: > { %17205 = sst [smem:[#allocation5_spill]] %s12014_s8  ;;  %s12199_s3 = sadd.s32 4294967295, %s12026_s30   ;;  %s12026_s30 = sphi %s12184_s30, %s17604_s30   ;;  %s12022_s9 = sphi %s12182_s9, %s17606_s9   ;;  %s12018_s5 = sphi %s12180_s5, %s17608_s5   ;;  %s12014_s8 = sphi %s12178_s8, %s17607_s8  }
  0x14   : > { %17206 = sst [smem:[#allocation6_spill]] %s12022_s9  ;;  %s10512_s6 = sadd.s32 4294967294, %s12026_s30  }
  0x15   : > { %17207 = sst [smem:[#allocation7_spill]] %s12026_s30  ;;  %s12203_s10 = sadd.s32 1, %s12026_s30  }
  0x16   : > { %17208 = sst [smem:[#allocation8_spill]] %s12199_s3  ;;  %s646_s0 = sadd.s32 1, %s12022_s9 }
  0x17   : > { %17209 = sst [smem:[#allocation9_spill]] %s12203_s10  ;;  %s643_s11 = ssub.s32 %s12026_s30, %s12203_s10 }
  0x18   : > { %p656_p0 = scmp.ne.s32.totalorder %s12022_s9, %s12018_s5  ;;  %p644_p1 = scmp.eq.s32.totalorder %s643_s11, 0 }
  0x19   : > { %p657_p2 = scmp.eq.s32.totalorder %s12199_s3, 3  ;;  %p662_p3 = scmp.ne.s32.totalorder %s12018_s5, %s12014_s8 }
  0x1a   : > { %p663_p4 = scmp.eq.s32.totalorder %s10512_s6, 3  ;;  %p10515_p7 = scmp.ge.s32.totalorder %s12026_s30, 1 }
  0x1b   : > { %s12214_s29 = scalar_select %p644_p1, %s12022_s9, %s646_s0  }
  0x1c   : > { %p12216_p5 = por %p657_p2, %p656_p0  ;;  %p12220_p6 = por %p663_p4, %p662_p3 }
  0x1d   : > { %17210 = sst [smem:[#allocation10_spill]] %s12214_s29  ;;  %p777_p8 = scmp.lt.s32.totalorder %s12026_s30, 5 }
  0x1e   : > { %s17211_s2 = scalar_select %p12216_p5, 1, 0 }
  0x1f   : > { %s17213_s7 = scalar_select %p12220_p6, 1, 0 }
  0x20   : > { %17212 = sst [smem:[#allocation11_spill]] %s17211_s2  ;;  %p778_p9 = pnand %p10515_p7, %p777_p8 }
  0x21   : > { %17214 = sst [smem:[#allocation12_spill]] %s17213_s7 }
  0x22   : > { %781 = sbr.rel (%p778_p9) target bundleno = 2848 (0xb20), region = 132 }
  0x27   : > { %s17215_s4 = sld [smem:[#allocation113_spill]]  ;;  %vm1201_vm0 = vcmask 1042432   ;;  %vm1202_vm1 = vcmask 1043456   ;;  %v17178_v2 = vmov 65535   ;;  %s10517_s11 = sshll.u32 %s12199_s3, 6  ;;  %v17179_v10 = vmov 0  }
  0x28   : > { %v1203_v3 = vsel %vm1201_vm0, 4294967295, %v17178_v2  ;;  %1243 = vmatprep.mubr.bf16.mxu0 %v17179_v10  ;;  %p857_p10 = scmp.lt.s32.totalorder %s10517_s11, 255  ;;  %s17216_s1 = sld [smem:[#allocation111_spill]]  ;;  %vm1104_vm2 = vcmask 318464   ;;  %vm8702_vm3 = vcmask 1041408   ;;  %vm8605_vm4 = vcmask 171008  }
  0x29   : > { %v12231_v5 = vsel %vm1202_vm1, %v1203_v3, 0  ;;  %s17218_s9 = sld [smem:[#allocation117_spill]] }
  0x2a   : > { %s17610_s11 = smov (!%p857_p10, %s10517_s11), 255  ;;  %s17221_s8 = sld [smem:[#allocation114_spill]] }
  0x2b   : > { %s17168_s6 = sshll.u32 %s17610_s11, 3  ;;  %s17226_s30 = sld [smem:[#allocation116_spill]] }
  0x2c   : > { %s17230_s13 = sld [smem:[#allocation124_spill]] }
  0x2d   : > { %v1066_v0 = vld [vmem:[%s17215_s4 + $0x20] sm:$0xff]  ;;  %v11267_v6 = vld [vmem:[%s17215_s4 + $0x14] ss:$8 sps:$4 sm:$0xff]   ;;  %v11269_v9 = vld [vmem:[%s17215_s4 + $0x10] ss:$8 sps:$4 sm:$0xff]   ;;  %s17232_s28 = sld [smem:[#allocation120_spill]] }
  0x2e   : > { %v10526_v1 = vcombine.high %v1066_v0, %v1066_v0  ;;  %v10525_v4 = vcombine.low %v1066_v0, %v1066_v0  ;;  %v11270_v11 = vld [vmem:[%s17215_s4 + $0x4] ss:$8 sps:$4 sm:$0xff]   ;;  %s12254_s10 = scalar_lea.vmem %s17216_s1, %s17168_s6  ;;  %v11272_v12 = vld [vmem:[%s17215_s4] ss:$8 sps:$4 sm:$0xff]   ;;  %s17217_s1 = sld [smem:[#allocation115_spill]] }
  0x2f   : > { %v870_v13 = vld [vmem:[%s12254_s10] sm:$0xff]  ;;  %v871_v14 = vld [vmem:[%s12254_s10 + $0x8] sm:$0xff]  ;;  %v872_v16 = vld [vmem:[%s12254_s10 + $0x10] sm:$0xff]  ;;  %s17219_s29 = smov %s17218_s9  ;;  %s17231_s4 = sld [smem:[#allocation123_spill]] }
  0x30   : > { %v1209_v7 = vand.u32 %v10526_v1, %v12231_v5  ;;  %v1206_v8 = vand.u32 %v10525_v4, %v12231_v5  ;;  %v12261_v15 = vpack.c.bf16 %v871_v14, %v870_v13  ;;  %v873_v17 = vld [vmem:[%s12254_s10 + $0x18] sm:$0xff]  ;;  %v874_v20 = vld [vmem:[%s12254_s10 + $0x20] sm:$0xff]  ;;  %v875_v21 = vld [vmem:[%s12254_s10 + $0x28] sm:$0xff]  ;;  %s17592_s6 = sld [smem:[#allocation8_spill]] }
  0x31   : > { %v12268_v18 = vpack.c.bf16 %v873_v17, %v872_v16  ;;  %v12281_v23 = vpack.c.bf16 %v875_v21, %v874_v20  ;;  %v876_v27 = vld [vmem:[%s12254_s10 + $0x30] sm:$0xff]  ;;  %v877_v28 = vld [vmem:[%s12254_s10 + $0x38] sm:$0xff]  ;;  %v878_v31 = vld [vmem:[%s12254_s10 + $0x40] sm:$0xff] }
  0x32   : > { %1221 = vmatprep.subr.bf16.mxu0 %v1209_v7  ;;  %v12300_v30 = vpack.c.bf16 %v877_v28, %v876_v27  ;;  %v11285_v34 = vld [vmem:[%s17218_s9 + $0x70] ss:$8 sps:$4 sm:$0xff]   ;;  %v879_v35 = vld [vmem:[%s12254_s10 + $0x48] sm:$0xff]  ;;  %v11287_v36 = vld [vmem:[%s17219_s29 + $0x74] ss:$8 sps:$4 sm:$0xff]   ;;  %s17229_s9 = sld [smem:[#allocation118_spill]] }
  0x33   : > { %1222 = vmatpush1.bf16.msra.mxu0 %v1206_v8  ;;  %v12325_v39 = vpack.c.bf16 %v879_v35, %v878_v31  ;;  %v880_v43 = vld [vmem:[%s12254_s10 + $0x50] sm:$0xff]  ;;  %v881_v44 = vld [vmem:[%s12254_s10 + $0x58] sm:$0xff]  ;;  %v882_v47 = vld [vmem:[%s12254_s10 + $0x60] sm:$0xff] }
  0x34   : > { %1223 = vmatprep.subr.bf16.mxu0 %v11267_v6  ;;  %v11273_v19 = vld [vmem:[%s17217_s1 + $0x74] ss:$8 sps:$4 sm:$0xff]   ;;  %v11275_v22 = vld [vmem:[%s17217_s1 + $0x70] ss:$8 sps:$4 sm:$0xff]   ;;  %v11276_v24 = vld [vmem:[%s17217_s1 + $0x64] ss:$8 sps:$4 sm:$0xff]   ;;  %v12344_v46 = vpack.c.bf16 %v881_v44, %v880_v43 }
  0x35   : > { %1960 = vmatprep.subr.bf16.mxu1 %v11273_v19  ;;  %v11278_v25 = vld [vmem:[%s17217_s1 + $0x60] ss:$8 sps:$4 sm:$0xff]   ;;  %v11279_v26 = vld [vmem:[%s17217_s1 + $0x54] ss:$8 sps:$4 sm:$0xff]   ;;  %v11281_v29 = vld [vmem:[%s17217_s1 + $0x50] ss:$8 sps:$4 sm:$0xff]  }
  0x36   : > { %1961 = vmatpush1.bf16.msra.mxu1 %v11275_v22  ;;  %v11282_v32 = vld [vmem:[%s17217_s1 + $0x44] ss:$8 sps:$4 sm:$0xff]   ;;  %v11284_v33 = vld [vmem:[%s17217_s1 + $0x40] ss:$8 sps:$4 sm:$0xff]   ;;  %v11288_v37 = vld [vmem:[%s17217_s1 + $0x34] ss:$8 sps:$4 sm:$0xff]  }
  0x37   : > { %1224 = vmatpush1.bf16.msra.mxu0 %v11269_v9  ;;  %1962 = vmatprep.subr.bf16.mxu1 %v11276_v24  ;;  %v11290_v38 = vld [vmem:[%s17217_s1 + $0x30] ss:$8 sps:$4 sm:$0xff]   ;;  %v11291_v40 = vld [vmem:[%s17217_s1 + $0x24] ss:$8 sps:$4 sm:$0xff]   ;;  %v11293_v41 = vld [vmem:[%s17217_s1 + $0x20] ss:$8 sps:$4 sm:$0xff]  }
  0x38   : > { %1225 = vmatprep.subr.bf16.mxu0 %v11270_v11  ;;  %v11294_v42 = vld [vmem:[%s17217_s1 + $0x14] ss:$8 sps:$4 sm:$0xff]   ;;  %v11296_v45 = vld [vmem:[%s17217_s1 + $0x10] ss:$8 sps:$4 sm:$0xff]   ;;  %v11297_v48 = vld [vmem:[%s17217_s1 + $0x4] ss:$8 sps:$4 sm:$0xff]  }
  0x39   : > { %v11299_v49 = vld [vmem:[%s17217_s1] ss:$8 sps:$4 sm:$0xff]   ;;  %v11302_v52 = vld [vmem:[%s17219_s29 + $0x64] ss:$8 sps:$4 sm:$0xff]   ;;  %v11303_v53 = vld [vmem:[%s17217_s1 + $0xf4] ss:$8 sps:$4 sm:$0xff]  }
  0x3a   : > { %1963 = vmatpush1.bf16.msra.mxu1 %v11278_v25  ;;  %v11300_v50 = vld [vmem:[%s17219_s29 + $0x60] ss:$8 sps:$4 sm:$0xff]   ;;  %v11305_v54 = vld [vmem:[%s17217_s1 + $0xf0] ss:$8 sps:$4 sm:$0xff]   ;;  %v11306_v56 = vld [vmem:[%s17217_s1 + $0xe4] ss:$8 sps:$4 sm:$0xff]  }
  0x3b   : > { %1226 = vmatpush1.bf16.msra.mxu0 %v11272_v12  ;;  %1964 = vmatprep.subr.bf16.mxu1 %v11279_v26  ;;  %v883_v51 = vld [vmem:[%s12254_s10 + $0x68] sm:$0xff]  ;;  %v11309_v58 = vld [vmem:[%s17217_s1 + $0xd4] ss:$8 sps:$4 sm:$0xff]   ;;  %v11311_v61 = vld [vmem:[%s17217_s1 + $0xd0] ss:$8 sps:$4 sm:$0xff]  }
  0x3c   : > { %2709 = vmatprep.subr.bf16.mxu0 %v11287_v36  ;;  %v12369_v55 = vpack.c.bf16 %v883_v51, %v882_v47  ;;  %v11308_v57 = vld [vmem:[%s17217_s1 + $0xe0] ss:$8 sps:$4 sm:$0xff]   ;;  %v884_v59 = vld [vmem:[%s12254_s10 + $0x70] sm:$0xff]  ;;  %v885_v60 = vld [vmem:[%s12254_s10 + $0x78] sm:$0xff] }
  0x3d   : > { %v12388_v62 = vpack.c.bf16 %v885_v60, %v884_v59  ;;  %v886_v63 = vld [vmem:[%s12254_s10 + $0x80] sm:$0xff]  ;;  %v11315_v3 = vld [vmem:[%s17219_s29 + $0x50] ss:$8 sps:$4 sm:$0xff]   ;;  %v887_v4 = vld [vmem:[%s12254_s10 + $0x88] sm:$0xff] }
  0x3e   : > { %10527 = vmatmul.mubr.msk.bf16.vlgmr.msra.gmra.mxu0 %vm1104_vm2, %v12261_v15  ;;  %1965 = vmatpush1.bf16.msra.mxu1 %v11281_v29  ;;  %v11312_v0 = vld [vmem:[%s17217_s1 + $0xc4] ss:$8 sps:$4 sm:$0xff]   ;;  %v11314_v1 = vld [vmem:[%s17217_s1 + $0xc0] ss:$8 sps:$4 sm:$0xff]   ;;  %v11317_v6 = vld [vmem:[%s17219_s29 + $0x54] ss:$8 sps:$4 sm:$0xff]   ;;  %v12413_v9 = vpack.c.bf16 %v887_v4, %v886_v63 }
  0x3f   : > { %1253 = vmatprep.mubr.bf16.mxu0 %v17179_v10  ;;  %1966 = vmatprep.subr.bf16.mxu1 %v11282_v32  ;;  %v11318_v7 = vld [vmem:[%s17217_s1 + $0xb4] ss:$8 sps:$4 sm:$0xff]   ;;  %v11320_v8 = vld [vmem:[%s17217_s1 + $0xb0] ss:$8 sps:$4 sm:$0xff]   ;;  %v11321_v13 = vld [vmem:[%s17217_s1 + $0xa4] ss:$8 sps:$4 sm:$0xff]  }
  0x40   : > { %2710 = vmatpush1.bf16.msra.mxu0 %v11285_v34  ;;  %v888_v11 = vld [vmem:[%s12254_s10 + $0x90] sm:$0xff]  ;;  %v889_v12 = vld [vmem:[%s12254_s10 + $0x98] sm:$0xff]  ;;  %v11323_v14 = vld [vmem:[%s17217_s1 + $0xa0] ss:$8 sps:$4 sm:$0xff]  }
  0x41   : > { %2711 = vmatprep.subr.bf16.mxu0 %v11302_v52  ;;  %v12426_v16 = vpack.c.bf16 %v889_v12, %v888_v11  ;;  %v11324_v17 = vld [vmem:[%s17217_s1 + $0x94] ss:$8 sps:$4 sm:$0xff]   ;;  %v11326_v19 = vld [vmem:[%s17217_s1 + $0x90] ss:$8 sps:$4 sm:$0xff]   ;;  %v890_v20 = vld [vmem:[%s12254_s10 + $0xa0] sm:$0xff] }
  0x42   : > { %1967 = vmatpush1.bf16.msra.mxu1 %v11284_v33  ;;  %v891_v21 = vld [vmem:[%s12254_s10 + $0xa8] sm:$0xff]  ;;  %v892_v28 = vld [vmem:[%s12254_s10 + $0xb0] sm:$0xff]  ;;  %v893_v29 = vld [vmem:[%s12254_s10 + $0xb8] sm:$0xff] }
  0x43   : > { %1968 = vmatprep.subr.bf16.mxu1 %v11288_v37  ;;  %v11327_v22 = vld [vmem:[%s17217_s1 + $0x84] ss:$8 sps:$4 sm:$0xff]   ;;  %v11329_v24 = vld [vmem:[%s17217_s1 + $0x80] ss:$8 sps:$4 sm:$0xff]   ;;  %v12445_v25 = vpack.c.bf16 %v891_v21, %v890_v20  ;;  %v12458_v31 = vpack.c.bf16 %v893_v29, %v892_v28  ;;  %v11333_v35 = vld [vmem:[%s17219_s29 + $0x30] ss:$8 sps:$4 sm:$0xff]   ;;  %v17177_v29 = vlaneseq }
  0x44   : > { %2712 = vmatpush1.bf16.msra.mxu0 %v11300_v50  ;;  %v11330_v26 = vld [vmem:[%s17219_s29 + $0x40] ss:$8 sps:$4 sm:$0xff]   ;;  %v11332_v27 = vld [vmem:[%s17219_s29 + $0x44] ss:$8 sps:$4 sm:$0xff]   ;;  %v11335_v36 = vld [vmem:[%s17219_s29 + $0x34] ss:$8 sps:$4 sm:$0xff]  }
  0x45   : > { %2713 = vmatprep.subr.bf16.mxu0 %v11317_v6  ;;  %v894_v32 = vld [vmem:[%s12254_s10 + $0xc0] sm:$0xff]  ;;  %v895_v33 = vld [vmem:[%s12254_s10 + $0xc8] sm:$0xff]  ;;  %v896_v37 = vld [vmem:[%s12254_s10 + $0xd0] sm:$0xff] }
  0x46   : > { %10528 = vmatmul.mubr.msk.bf16.gmra.mxu0 %vm1104_vm2, %v12268_v18  ;;  %1969 = vmatpush1.bf16.msra.mxu1 %v11290_v38  ;;  %v12465_v34 = vpack.c.bf16 %v895_v33, %v894_v32  ;;  %v897_v38 = vld [vmem:[%s12254_s10 + $0xd8] sm:$0xff]  ;;  %v11336_v44 = vld [vmem:[%s17219_s29 + $0x20] ss:$8 sps:$4 sm:$0xff]   ;;  %v900_v47 = vld [vmem:[%s12254_s10 + $0xf0] sm:$0xff] }
  0x47   : > { %1263 = vmatprep.mubr.bf16.mxu0 %v17179_v10  ;;  %1970 = vmatprep.subr.bf16.mxu1 %v11291_v40  ;;  %v12478_v40 = vpack.c.bf16 %v897_v38, %v896_v37  ;;  %v902_v50 = vld [vmem:[%s12254_s10 + $0x100] sm:$0xff]  ;;  %v903_v51 = vld [vmem:[%s12254_s10 + $0x108] sm:$0xff]  ;;  %v11345_v11 = vld [vmem:[%s17219_s29 + $0xf0] ss:$8 sps:$4 sm:$0xff]  }
  0x48   : > { %2714 = vmatpush1.bf16.msra.mxu0 %v11315_v3  ;;  %v12505_v52 = vpack.c.bf16 %v903_v51, %v902_v50  ;;  %v906_v59 = vld [vmem:[%s12254_s10 + $0x120] sm:$0xff]  ;;  %v907_v60 = vld [vmem:[%s12254_s10 + $0x128] sm:$0xff]  ;;  %v909_v3 = vld [vmem:[%s12254_s10 + $0x138] sm:$0xff] }
  0x49   : > { %2715 = vmatprep.subr.bf16.mxu0 %v11332_v27  ;;  %v11342_v63 = vld [vmem:[%s17219_s29] ss:$8 sps:$4 sm:$0xff]   ;;  %v11347_v12 = vld [vmem:[%s17219_s29 + $0xf4] ss:$8 sps:$4 sm:$0xff]   ;;  %v11351_v38 = vld [vmem:[%s17219_s29 + $0xd0] ss:$8 sps:$4 sm:$0xff]  }
  0x4a   : > { %1971 = vmatpush1.bf16.msra.mxu1 %v11293_v41  ;;  %v898_v41 = vld [vmem:[%s12254_s10 + $0xe0] sm:$0xff]  ;;  %v915_v20 = vld [vmem:[%s12254_s10 + $0x168] sm:$0xff]  ;;  %v917_v27 = vld [vmem:[%s12254_s10 + $0x178] sm:$0xff] }
  0x4b   : > { %1972 = vmatprep.subr.bf16.mxu1 %v11294_v42  ;;  %v899_v42 = vld [vmem:[%s12254_s10 + $0xe8] sm:$0xff]  ;;  %v910_v6 = vld [vmem:[%s12254_s10 + $0x140] sm:$0xff]  ;;  %v921_v50 = vld [vmem:[%s12254_s10 + $0x198] sm:$0xff] }
  0x4c   : > { %2716 = vmatpush1.bf16.msra.mxu0 %v11330_v26  ;;  %v12485_v43 = vpack.c.bf16 %v899_v42, %v898_v41  ;;  %v916_v26 = vld [vmem:[%s12254_s10 + $0x170] sm:$0xff]  ;;  %v918_v32 = vld [vmem:[%s12254_s10 + $0x180] sm:$0xff]  ;;  %v919_v33 = vld [vmem:[%s12254_s10 + $0x188] sm:$0xff] }
  0x4d   : > { %2717 = vmatprep.subr.bf16.mxu0 %v11335_v36  ;;  %v12578_v28 = vpack.c.bf16 %v917_v27, %v916_v26  ;;  %v12586_v36 = vpack.c.bf16 %v919_v33, %v918_v32  ;;  %v11353_v41 = vld [vmem:[%s17219_s29 + $0xd4] ss:$8 sps:$4 sm:$0xff]   ;;  %v11354_v32 = vld [vmem:[%s17219_s29 + $0xc0] ss:$8 sps:$4 sm:$0xff]   ;;  %v11356_v33 = vld [vmem:[%s17219_s29 + $0xc4] ss:$8 sps:$4 sm:$0xff]  }
  0x4e   : > { %10529 = vmatmul.mubr.msk.bf16.gmra.mxu0 %vm1104_vm2, %v12281_v23  ;;  %1973 = vmatpush1.bf16.msra.mxu1 %v11296_v45  ;;  %v11338_v45 = vld [vmem:[%s17219_s29 + $0x24] ss:$8 sps:$4 sm:$0xff]  }
  0x4f   : > { %1273 = vmatprep.mubr.bf16.mxu0 %v17179_v10  ;;  %1974 = vmatprep.subr.bf16.mxu1 %v11297_v48  ;;  %v901_v48 = vld [vmem:[%s12254_s10 + $0xf8] sm:$0xff] }
  0x50   : > { %2718 = vmatpush1.bf16.msra.mxu0 %v11333_v35  ;;  %v1070_v35 = vshrl.u32 %v17177_v29, 7 }
  0x51   : > { %2719 = vmatprep.subr.bf16.mxu0 %v11338_v45 }
  0x52   : > { %1975 = vmatpush1.bf16.msra.mxu1 %v11299_v49  ;;  %v12498_v49 = vpack.c.bf16 %v901_v48, %v900_v47  ;;  %v12588_v37 = vsub.s32 1, %v1070_v35  ;;  %v12596_v42 = vsub.s32 0, %v1070_v35  ;;  %v920_v48 = vld [vmem:[%s12254_s10 + $0x190] sm:$0xff] }
  0x53   : > { %1976 = vmatprep.subr.bf16.mxu1 %v11303_v53  ;;  %v11339_v53 = vld [vmem:[%s17219_s29 + $0x10] ss:$8 sps:$4 sm:$0xff]  }
  0x54   : > { %2720 = vmatpush1.bf16.msra.mxu0 %v11336_v44  ;;  %17220 = vst [vmem:[#allocation13_spill] sm:$0xff] %v12588_v37  ;;  %v1067_v44 = vld [vmem:[%s17221_s8] sm:$0x3]  ;;  %s17222_s8 = sld [smem:[#allocation119_spill]] }
  0x55   : > { %v12604_v47 = vrot.slane %v1067_v44, %v12588_v37  ;;  %v12610_v51 = vrot.slane %v1067_v44, %v12596_v42 }
  0x56   : > { %10530 = vmatmul.mubr.msk.bf16.gmra.mxu0 %vm1104_vm2, %v12300_v30  ;;  %1977 = vmatpush2.bf16.msra.mxu1 %v11305_v54  ;;  %v11341_v54 = vld [vmem:[%s17219_s29 + $0x14] ss:$8 sps:$4 sm:$0xff]  }
  0x57   : > { %1283 = vmatprep.mubr.bf16.mxu0 %v17179_v10  ;;  %1978 = vmatprep.subr.bf16.mxu1 %v11306_v56  ;;  %v904_v56 = vld [vmem:[%s12254_s10 + $0x110] sm:$0xff] }
  0x58   : > { %2721 = vmatprep.subr.bf16.mxu0 %v11341_v54 }
  0x59   : > { %2722 = vmatpush1.bf16.msra.mxu0 %v11339_v53 }
  0x5a   : > { %1979 = vmatpush2.bf16.msra.mxu1 %v11308_v57  ;;  %v905_v57 = vld [vmem:[%s12254_s10 + $0x118] sm:$0xff]  ;;  %s17223_s7 = smov %s17222_s8 }
  0x5b   : > { %1980 = vmatprep.subr.bf16.mxu1 %v11309_v58  ;;  %v12518_v58 = vpack.c.bf16 %v905_v57, %v904_v56  ;;  %v12612_v56 = vpack.c.bf16 %v921_v50, %v920_v48 }
  0x5e   : > { %10531 = vmatmul.mubr.msk.bf16.gmra.mxu0 %vm1104_vm2, %v12325_v39  ;;  %1981 = vmatpush2.bf16.msra.mxu1 %v11311_v61  ;;  %v12525_v61 = vpack.c.bf16 %v907_v60, %v906_v59 }
  0x5f   : > { %1293 = vmatprep.mubr.bf16.mxu0 %v17179_v10  ;;  %1982 = vmatprep.subr.bf16.mxu1 %v11312_v0  ;;  %v11344_v0 = vld [vmem:[%s17219_s29 + $0x4] ss:$8 sps:$4 sm:$0xff]  }
  0x60   : > { %2723 = vmatprep.subr.bf16.mxu0 %v11344_v0 }
  0x61   : > { %2724 = vmatpush1.bf16.msra.mxu0 %v11342_v63 }
  0x62   : > { %1983 = vmatpush2.bf16.msra.mxu1 %v11314_v1  ;;  %v908_v1 = vld [vmem:[%s12254_s10 + $0x130] sm:$0xff]  ;;  %2725 = vmatprep.subr.bf16.mxu0 %v11347_v12  ;;  %v923_v12 = vld [vmem:[%s12254_s10 + $0x1a8] sm:$0xff] }
  0x63   : > { %1984 = vmatprep.subr.bf16.mxu1 %v11318_v7  ;;  %v12538_v4 = vpack.c.bf16 %v909_v3, %v908_v1  ;;  %v911_v7 = vld [vmem:[%s12254_s10 + $0x148] sm:$0xff] }
  0x65   : > { %2726 = vmatpush2.bf16.msra.mxu0 %v11345_v11  ;;  %v922_v11 = vld [vmem:[%s12254_s10 + $0x1a0] sm:$0xff] }
  0x66   : > { %10532 = vmatmul.mubr.msk.bf16.gmra.mxu0 %vm1104_vm2, %v12344_v46  ;;  %1985 = vmatpush2.bf16.msra.mxu1 %v11320_v8  ;;  %v12545_v8 = vpack.c.bf16 %v911_v7, %v910_v6 }
  0x67   : > { %1303 = vmatprep.mubr.bf16.mxu0 %v17179_v10  ;;  %1986 = vmatprep.subr.bf16.mxu1 %v11321_v13  ;;  %v912_v13 = vld [vmem:[%s12254_s10 + $0x150] sm:$0xff] }
  0x6a   : > { %1987 = vmatpush2.bf16.msra.mxu1 %v11323_v14  ;;  %v913_v14 = vld [vmem:[%s12254_s10 + $0x158] sm:$0xff] }
  0x6b   : > { %1988 = vmatprep.subr.bf16.mxu1 %v11324_v17  ;;  %v12558_v17 = vpack.c.bf16 %v913_v14, %v912_v13 }
  0x6e   : > { %10533 = vmatmul.mubr.msk.bf16.gmra.mxu0 %vm1104_vm2, %v12369_v55  ;;  %1989 = vmatpush2.bf16.msra.mxu1 %v11326_v19  ;;  %v914_v19 = vld [vmem:[%s12254_s10 + $0x160] sm:$0xff] }
  0x6f   : > { %1313 = vmatprep.mubr.bf16.mxu0 %v17179_v10  ;;  %1990 = vmatprep.subr.bf16.mxu1 %v11327_v22  ;;  %v12565_v21 = vpack.c.bf16 %v915_v20, %v914_v19  ;;  %v11348_v22 = vld [vmem:[%s17219_s29 + $0xe0] ss:$8 sps:$4 sm:$0xff]  }
  0x72   : > { %1991 = vmatpush2.bf16.msra.mxu1 %v11329_v24  ;;  %v11350_v24 = vld [vmem:[%s17219_s29 + $0xe4] ss:$8 sps:$4 sm:$0xff]  }
  0x73   : > { %2727 = vmatprep.subr.bf16.mxu0 %v11350_v24  ;;  %v12623_v24 = vpack.c.bf16 %v923_v12, %v922_v11 }
  0x74   : > { %2728 = vmatpush2.bf16.msra.mxu0 %v11348_v22 }
  0x75   : > { %2729 = vmatprep.subr.bf16.mxu0 %v11353_v41 }
  0x76   : > { %10534 = vmatmul.mubr.msk.bf16.gmra.mxu0 %vm1104_vm2, %v12388_v62 }
  0x77   : > { %1323 = vmatprep.mubr.bf16.mxu0 %v17179_v10 }
  0x78   : > { %2730 = vmatpush2.bf16.msra.mxu0 %v11351_v38 }
  0x79   : > { %2731 = vmatprep.subr.bf16.mxu0 %v11356_v33 }
  0x7c   : > { %2732 = vmatpush2.bf16.msra.mxu0 %v11354_v32 }
  0x7e   : > { %10535 = vmatmul.mubr.msk.bf16.gmra.mxu0 %vm1104_vm2, %v12413_v9 }
  0x7f   : > { %1333 = vmatprep.mubr.bf16.mxu0 %v17179_v10 }
  0x86   : > { %10536 = vmatmul.mubr.msk.bf16.gmra.mxu0 %vm1104_vm2, %v12426_v16 }
  0x87   : > { %1343 = vmatprep.mubr.bf16.mxu0 %v17179_v10 }
  0x8e   : > { %10537 = vmatmul.mubr.msk.bf16.gmra.mxu0 %vm1104_vm2, %v12445_v25 }
  0x8f   : > { %1353 = vmatprep.mubr.bf16.mxu0 %v17179_v10 }
  0x96   : > { %10538 = vmatmul.mubr.msk.bf16.gmra.mxu0 %vm1104_vm2, %v12458_v31 }
  0x97   : > { %1363 = vmatprep.mubr.bf16.mxu0 %v17179_v10 }
  0x9e   : > { %10539 = vmatmul.mubr.msk.bf16.gmra.mxu0 %vm1104_vm2, %v12465_v34 }
  0x9f   : > { %1373 = vmatprep.mubr.bf16.mxu0 %v17179_v10 }
  0xa6   : > { %10540 = vmatmul.mubr.msk.bf16.gmra.mxu0 %vm1104_vm2, %v12478_v40 }
  0xa7   : > { %1383 = vmatprep.mubr.bf16.mxu0 %v17179_v10 }
  0xae   : > { %10541 = vmatmul.mubr.msk.bf16.gmra.mxu0 %vm1104_vm2, %v12485_v43 }
  0xaf   : > { %1393 = vmatprep.mubr.bf16.mxu0 %v17179_v10 }
  0xb6   : > { %10542 = vmatmul.mubr.msk.bf16.gmra.mxu0 %vm1104_vm2, %v12498_v49 }
  0xb7   : > { %1403 = vmatprep.mubr.bf16.mxu0 %v17179_v10 }
  0xbe   : > { %10543 = vmatmul.mubr.msk.bf16.gmra.mxu0 %vm1104_vm2, %v12505_v52 }
  0xbf   : > { %1413 = vmatprep.mubr.bf16.mxu0 %v17179_v10 }
  0xc6   : > { %10544 = vmatmul.mubr.msk.bf16.gmra.mxu0 %vm1104_vm2, %v12518_v58 }
  0xc7   : > { %1423 = vmatprep.mubr.bf16.mxu0 %v17179_v10 }
  0xce   : > { %10545 = vmatmul.mubr.msk.bf16.gmra.mxu0 %vm1104_vm2, %v12525_v61 }
  0xcf   : > { %1433 = vmatprep.mubr.bf16.mxu0 %v17179_v10 }
  0xd6   : > { %10546 = vmatmul.mubr.msk.bf16.gmra.mxu0 %vm1104_vm2, %v12538_v4 }
  0xd7   : > { %1443 = vmatprep.mubr.bf16.mxu0 %v17179_v10 }
  0xde   : > { %10547 = vmatmul.mubr.msk.bf16.gmra.mxu0 %vm1104_vm2, %v12545_v8 }
  0xdf   : > { %1453 = vmatprep.mubr.bf16.mxu0 %v17179_v10 }
  0xe6   : > { %10548 = vmatmul.mubr.msk.bf16.gmra.mxu0 %vm1104_vm2, %v12558_v17 }
  0xe7   : > { %1463 = vmatprep.mubr.bf16.mxu0 %v17179_v10 }
  0xee   : > { %10549 = vmatmul.mubr.msk.bf16.gmra.mxu0 %vm1104_vm2, %v12565_v21 }
  0xef   : > { %1473 = vmatprep.mubr.bf16.mxu0 %v17179_v10 }
  0xf6   : > { %10550 = vmatmul.mubr.msk.bf16.gmra.mxu0 %vm1104_vm2, %v12578_v28 }
  0xf7   : > { %1483 = vmatprep.mubr.bf16.mxu0 %v17179_v10 }
  0xfe   : > { %v1245_v45 = vpop.f32.mrf.mxu0  ;;  %10551 = vmatmul.mubr.msk.bf16.gmra.mxu0 %vm1104_vm2, %v12586_v36 }
  0xff   : > { %1493 = vmatprep.mubr.bf16.mxu0 %v17179_v10  ;;  %v1246_v60 = vadd.f32 %v1245_v45, %v12610_v51 }
 0x100   : > { %v1247_v53 = vpop.f32.mrf.mxu0 }
 0x101   : > { %v1248_v57 = vadd.f32 %v1247_v53, %v12604_v47  ;;  %v1564_v13 = vmax.f32 %v1246_v60, 0.0  ;;  %v924_v53 = vld [vmem:[%s12254_s10 + $0x1b0] sm:$0xff] }
 0x102   : > { %v1249_v54 = vpop.f32.mrf.mxu0 }
 0x103   : > { %v1250_v59 = vadd.f32 %v1249_v54, %v12610_v51  ;;  %v1565_v6 = vmax.f32 %v1248_v57, 0.0  ;;  %v925_v54 = vld [vmem:[%s12254_s10 + $0x1b8] sm:$0xff] }
 0x104   : > { %v1251_v63 = vpop.f32.mrf.mxu0 }
 0x105   : > { %v1252_v0 = vadd.f32 %v1251_v63, %v12604_v47  ;;  %v1566_v1 = vmax.f32 %v1250_v59, 0.0 }
 0x106   : > { %v1255_v3 = vpop.f32.mrf.mxu0  ;;  %10552 = vmatmul.mubr.msk.bf16.gmra.mxu0 %vm1104_vm2, %v12612_v56 }
 0x107   : > { %v1567_v7 = vmax.f32 %v1252_v0, 0.0  ;;  %1503 = vmatprep.mubr.bf16.mxu0 %v17179_v10  ;;  %v1692_v20 = vpack.c.bf16 %v1566_v1, %v1564_v13  ;;  %v1256_v35 = vadd.f32 %v1255_v3, %v12610_v51  ;;  %v12640_v1 = vpack.c.bf16 %v925_v54, %v924_v53 }
 0x108   : > { %v1257_v14 = vpop.f32.mrf.mxu0 }
 0x109   : > { %v1693_v19 = vpack.c.bf16 %v1567_v7, %v1565_v6  ;;  %v1258_v26 = vadd.f32 %v1257_v14, %v12604_v47  ;;  %v1568_v57 = vmax.f32 %v1256_v35, 0.0 }
 0x10a   : > { %v1259_v22 = vpop.f32.mrf.mxu0 }
 0x10b   : > { %v1260_v27 = vadd.f32 %v1259_v22, %v12610_v51  ;;  %1992 = vmatprep.mubr.bf16.mxu1 %v1693_v19  ;;  %v1569_v48 = vmax.f32 %v1258_v26, 0.0  ;;  %v926_v22 = vld [vmem:[%s12254_s10 + $0x1c0] sm:$0xff]  ;;  %v927_v26 = vld [vmem:[%s12254_s10 + $0x1c8] sm:$0xff] }
 0x10c   : > { %v1261_v38 = vpop.f32.mrf.mxu0  ;;  %1993 = vmatmul.mubr.bf16.vlgmr.msra.gmra.mxu1 %v1692_v20 }
 0x10d   : > { %v1262_v41 = vadd.f32 %v1261_v38, %v12604_v47  ;;  %v1570_v44 = vmax.f32 %v1260_v27, 0.0 }
 0x10e   : > { %v1265_v45 = vpop.f32.mrf.mxu0  ;;  %10553 = vmatmul.mubr.msk.bf16.gmra.mxu0 %vm1104_vm2, %v12623_v24 }
 0x10f   : > { %v1571_v50 = vmax.f32 %v1262_v41, 0.0  ;;  %1513 = vmatprep.mubr.bf16.mxu0 %v17179_v10  ;;  %v1694_v63 = vpack.c.bf16 %v1570_v44, %v1568_v57  ;;  %v1266_v7 = vadd.f32 %v1265_v45, %v12610_v51  ;;  %v12651_v41 = vpack.c.bf16 %v927_v26, %v926_v22 }
 0x110   : > { %v1267_v59 = vpop.f32.mrf.mxu0 }
 0x111   : > { %v1695_v60 = vpack.c.bf16 %v1571_v50, %v1569_v48  ;;  %v1268_v3 = vadd.f32 %v1267_v59, %v12604_v47  ;;  %v1572_v27 = vmax.f32 %v1266_v7, 0.0  ;;  %v11357_v48 = vld [vmem:[%s17219_s29 + $0xb0] ss:$8 sps:$4 sm:$0xff]   ;;  %v11359_v50 = vld [vmem:[%s17219_s29 + $0xb4] ss:$8 sps:$4 sm:$0xff]  }
 0x112   : > { %v1269_v0 = vpop.f32.mrf.mxu0  ;;  %2733 = vmatprep.subr.bf16.mxu0 %v11359_v50 }
 0x113   : > { %v1270_v6 = vadd.f32 %v1269_v0, %v12610_v51  ;;  %2002 = vmatprep.mubr.bf16.mxu1 %v1695_v60  ;;  %v1573_v19 = vmax.f32 %v1268_v3, 0.0  ;;  %v928_v3 = vld [vmem:[%s12254_s10 + $0x1d0] sm:$0xff]  ;;  %2734 = vmatpush2.bf16.msra.mxu0 %v11357_v48  ;;  %v931_v48 = vld [vmem:[%s12254_s10 + $0x1e8] sm:$0xff] }
 0x114   : > { %v1271_v11 = vpop.f32.mrf.mxu0  ;;  %2003 = vmatmul.mubr.bf16.gmra.mxu1 %v1694_v63 }
 0x115   : > { %v1272_v12 = vadd.f32 %v1271_v11, %v12604_v47  ;;  %v1574_v13 = vmax.f32 %v1270_v6, 0.0  ;;  %v929_v6 = vld [vmem:[%s12254_s10 + $0x1d8] sm:$0xff] }
 0x116   : > { %v1275_v14 = vpop.f32.mrf.mxu0  ;;  %10554 = vmatmul.mubr.msk.bf16.gmra.mxu0 %vm1104_vm2, %v12640_v1 }
 0x117   : > { %v1575_v20 = vmax.f32 %v1272_v12, 0.0  ;;  %1523 = vmatprep.mubr.bf16.mxu0 %v17179_v10  ;;  %v1696_v35 = vpack.c.bf16 %v1574_v13, %v1572_v27  ;;  %v1276_v53 = vadd.f32 %v1275_v14, %v12610_v51 }
 0x118   : > { %v1277_v32 = vpop.f32.mrf.mxu0 }
 0x119   : > { %v1697_v33 = vpack.c.bf16 %v1575_v20, %v1573_v19  ;;  %v1278_v44 = vadd.f32 %v1277_v32, %v12604_v47  ;;  %v1576_v7 = vmax.f32 %v1276_v53, 0.0  ;;  %v12668_v19 = vpack.c.bf16 %v929_v6, %v928_v3 }
 0x11a   : > { %v1279_v38 = vpop.f32.mrf.mxu0 }
 0x11b   : > { %v1280_v45 = vadd.f32 %v1279_v38, %v12610_v51  ;;  %2012 = vmatprep.mubr.bf16.mxu1 %v1697_v33  ;;  %v1577_v63 = vmax.f32 %v1278_v44, 0.0 }
 0x11c   : > { %v1281_v54 = vpop.f32.mrf.mxu0  ;;  %2013 = vmatmul.mubr.bf16.gmra.mxu1 %v1696_v35 }
 0x11d   : > { %v1282_v57 = vadd.f32 %v1281_v54, %v12604_v47  ;;  %v1578_v59 = vmax.f32 %v1280_v45, 0.0  ;;  %v930_v45 = vld [vmem:[%s12254_s10 + $0x1e0] sm:$0xff] }
 0x11e   : > { %v1285_v60 = vpop.f32.mrf.mxu0  ;;  %10555 = vmatmul.mubr.msk.bf16.gmra.mxu0 %vm1104_vm2, %v12651_v41 }
 0x11f   : > { %v1579_v0 = vmax.f32 %v1282_v57, 0.0  ;;  %1533 = vmatprep.mubr.bf16.mxu0 %v17179_v10  ;;  %v1698_v13 = vpack.c.bf16 %v1578_v59, %v1576_v7  ;;  %v1286_v26 = vadd.f32 %v1285_v60, %v12610_v51  ;;  %v11360_v57 = vld [vmem:[%s17222_s8 + $0x70] ss:$8 sps:$4 sm:$0xff]   ;;  %v11362_v59 = vld [vmem:[%s17223_s7 + $0x74] ss:$8 sps:$4 sm:$0xff]   ;;  %s17598_s8 = sld [smem:[#allocation125_spill]] }
 0x120   : > { %v1287_v11 = vpop.f32.mrf.mxu0  ;;  %3458 = vmatprep.subr.bf16.mxu1 %v11362_v59  ;;  %v11363_v7 = vld [vmem:[%s17219_s29 + $0xa0] ss:$8 sps:$4 sm:$0xff]  }
 0x121   : > { %v1699_v12 = vpack.c.bf16 %v1579_v0, %v1577_v63  ;;  %v1288_v20 = vadd.f32 %v1287_v11, %v12604_v47  ;;  %v1580_v50 = vmax.f32 %v1286_v26, 0.0  ;;  %v12685_v0 = vpack.c.bf16 %v931_v48, %v930_v45  ;;  %v11365_v11 = vld [vmem:[%s17219_s29 + $0xa4] ss:$8 sps:$4 sm:$0xff]   ;;  %3459 = vmatpush1.bf16.msra.mxu1 %v11360_v57 }
 0x122   : > { %v1289_v14 = vpop.f32.mrf.mxu0  ;;  %2735 = vmatprep.subr.bf16.mxu0 %v11365_v11 }
 0x123   : > { %v1290_v22 = vadd.f32 %v1289_v14, %v12610_v51  ;;  %2022 = vmatprep.mubr.bf16.mxu1 %v1699_v12  ;;  %v1581_v38 = vmax.f32 %v1288_v20, 0.0  ;;  %17224 = vst [vmem:[#allocation14_spill] sm:$0xff] %v12685_v0  ;;  %2736 = vmatpush2.bf16.msra.mxu0 %v11363_v7 }
 0x124   : > { %v1291_v27 = vpop.f32.mrf.mxu0  ;;  %2023 = vmatmul.mubr.bf16.gmra.mxu1 %v1698_v13 }
 0x125   : > { %v1292_v32 = vadd.f32 %v1291_v27, %v12604_v47  ;;  %v1582_v33 = vmax.f32 %v1290_v22, 0.0 }
 0x126   : > { %v1295_v35 = vpop.f32.mrf.mxu0  ;;  %10556 = vmatmul.mubr.msk.bf16.gmra.mxu0 %vm1104_vm2, %v12668_v19 }
 0x127   : > { %v1583_v44 = vmax.f32 %v1292_v32, 0.0  ;;  %1543 = vmatprep.mubr.bf16.mxu0 %v17179_v10  ;;  %v1700_v60 = vpack.c.bf16 %v1582_v33, %v1580_v50  ;;  %v1296_v12 = vadd.f32 %v1295_v35, %v12610_v51  ;;  %v932_v32 = vld [vmem:[%s12254_s10 + $0x1f0] sm:$0xff]  ;;  %v933_v33 = vld [vmem:[%s12254_s10 + $0x1f8] sm:$0xff]  ;;  %s10999_s10 = sshll.u32 %s17592_s6, 13  ;;  %s17600_s6 = sand.u32 1, %s12018_s5  }
 0x128   : > { %v1297_v53 = vpop.f32.mrf.mxu0  ;;  %v12702_v50 = vpack.c.bf16 %v933_v33, %v932_v32  ;;  %v11369_v33 = vld [vmem:[%s17219_s29 + $0x90] ss:$8 sps:$4 sm:$0xff]   ;;  %s17090_s1 = scalar_lea.sflag [#allocation3], %s17600_s6 }
 0x129   : > { %v1701_v54 = vpack.c.bf16 %v1583_v44, %v1581_v38  ;;  %v1298_v3 = vadd.f32 %v1297_v53, %v12604_v47  ;;  %v1584_v38 = vmax.f32 %v1296_v12, 0.0 }
 0x12a   : > { %v1299_v63 = vpop.f32.mrf.mxu0  ;;  %17225 = vst [vmem:[#allocation15_spill] sm:$0xff] %v12702_v50 }
 0x12b   : > { %v1300_v6 = vadd.f32 %v1299_v63, %v12610_v51  ;;  %2032 = vmatprep.mubr.bf16.mxu1 %v1701_v54  ;;  %v1585_v26 = vmax.f32 %v1298_v3, 0.0 }
 0x12c   : > { %v1301_v13 = vpop.f32.mrf.mxu0  ;;  %2033 = vmatmul.mubr.bf16.gmra.mxu1 %v1700_v60 }
 0x12d   : > { %v1302_v14 = vadd.f32 %v1301_v13, %v12604_v47  ;;  %v1586_v20 = vmax.f32 %v1300_v6, 0.0 }
 0x12e   : > { %v1305_v22 = vpop.f32.mrf.mxu0  ;;  %10557 = vmatmul.mubr.msk.bf16.gmra.mxu0 %vm1104_vm2, %v12685_v0 }
 0x12f   : > { %v1587_v27 = vmax.f32 %v1302_v14, 0.0  ;;  %1553 = vmatprep.mubr.bf16.mxu0 %v17179_v10  ;;  %v1702_v45 = vpack.c.bf16 %v1586_v20, %v1584_v38  ;;  %v1306_v57 = vadd.f32 %v1305_v22, %v12610_v51  ;;  %v11366_v14 = vld [vmem:[%s17223_s7 + $0x60] ss:$8 sps:$4 sm:$0xff]   ;;  %v11368_v20 = vld [vmem:[%s17223_s7 + $0x64] ss:$8 sps:$4 sm:$0xff]  }
 0x130   : > { %v1307_v35 = vpop.f32.mrf.mxu0  ;;  %3460 = vmatprep.subr.bf16.mxu1 %v11368_v20  ;;  %v11371_v38 = vld [vmem:[%s17219_s29 + $0x94] ss:$8 sps:$4 sm:$0xff]  }
 0x131   : > { %v1703_v44 = vpack.c.bf16 %v1587_v27, %v1585_v26  ;;  %v1308_v53 = vadd.f32 %v1307_v35, %v12604_v47  ;;  %v1588_v11 = vmax.f32 %v1306_v57, 0.0  ;;  %3461 = vmatpush1.bf16.msra.mxu1 %v11366_v14  ;;  %2737 = vmatprep.subr.bf16.mxu0 %v11371_v38 }
 0x132   : > { %v1309_v48 = vpop.f32.mrf.mxu0  ;;  %2738 = vmatpush2.bf16.msra.mxu0 %v11369_v33 }
 0x133   : > { %v1310_v54 = vadd.f32 %v1309_v48, %v12610_v51  ;;  %2042 = vmatprep.mubr.bf16.mxu1 %v1703_v44  ;;  %v1589_v6 = vmax.f32 %v1308_v53, 0.0 }
 0x134   : > { %v1311_v59 = vpop.f32.mrf.mxu0  ;;  %2043 = vmatmul.mubr.bf16.gmra.mxu1 %v1702_v45 }
 0x135   : > { %v1312_v60 = vadd.f32 %v1311_v59, %v12604_v47  ;;  %v1590_v63 = vmax.f32 %v1310_v54, 0.0 }
 0x136   : > { %v1315_v3 = vpop.f32.mrf.mxu0  ;;  %10558 = vmatmul.mubr.msk.bf16.gmra.mxu0 %vm1104_vm2, %v12702_v50 }
 0x137   : > { %v1591_v7 = vmax.f32 %v1312_v60, 0.0  ;;  %v1704_v22 = vpack.c.bf16 %v1590_v63, %v1588_v11  ;;  %v1316_v35 = vadd.f32 %v1315_v3, %v12610_v51 }
 0x138   : > { %v1317_v12 = vpop.f32.mrf.mxu0 }
 0x139   : > { %v1705_v13 = vpack.c.bf16 %v1591_v7, %v1589_v6  ;;  %v1318_v27 = vadd.f32 %v1317_v12, %v12604_v47  ;;  %v1592_v59 = vmax.f32 %v1316_v35, 0.0  ;;  %v11372_v35 = vld [vmem:[%s17223_s7 + $0x50] ss:$8 sps:$4 sm:$0xff]  }
 0x13a   : > { %v1319_v26 = vpop.f32.mrf.mxu0 }
 0x13b   : > { %v1320_v32 = vadd.f32 %v1319_v26, %v12610_v51  ;;  %2052 = vmatprep.mubr.bf16.mxu1 %v1705_v13  ;;  %v1593_v54 = vmax.f32 %v1318_v27, 0.0 }
 0x13c   : > { %v1321_v44 = vpop.f32.mrf.mxu0  ;;  %2053 = vmatmul.mubr.bf16.gmra.mxu1 %v1704_v22 }
 0x13d   : > { %v1322_v45 = vadd.f32 %v1321_v44, %v12604_v47  ;;  %v1594_v48 = vmax.f32 %v1320_v32, 0.0  ;;  %v11374_v44 = vld [vmem:[%s17223_s7 + $0x54] ss:$8 sps:$4 sm:$0xff]  }
 0x13e   : > { %v1325_v53 = vpop.f32.mrf.mxu0  ;;  %3462 = vmatprep.subr.bf16.mxu1 %v11374_v44 }
 0x13f   : > { %v1595_v57 = vmax.f32 %v1322_v45, 0.0  ;;  %v1706_v6 = vpack.c.bf16 %v1594_v48, %v1592_v59  ;;  %v1326_v12 = vadd.f32 %v1325_v53, %v12610_v51  ;;  %v11377_v59 = vld [vmem:[%s17219_s29 + $0x84] ss:$8 sps:$4 sm:$0xff]   ;;  %3463 = vmatpush1.bf16.msra.mxu1 %v11372_v35 }
 0x140   : > { %v1327_v60 = vpop.f32.mrf.mxu0  ;;  %2739 = vmatprep.subr.bf16.mxu0 %v11377_v59 }
 0x141   : > { %v1707_v63 = vpack.c.bf16 %v1595_v57, %v1593_v54  ;;  %v1328_v11 = vadd.f32 %v1327_v60, %v12604_v47  ;;  %v1596_v32 = vmax.f32 %v1326_v12, 0.0  ;;  %v11375_v57 = vld [vmem:[%s17219_s29 + $0x80] ss:$8 sps:$4 sm:$0xff]  }
 0x142   : > { %v1329_v7 = vpop.f32.mrf.mxu0  ;;  %2740 = vmatpush2.bf16.msra.mxu0 %v11375_v57 }
 0x143   : > { %v1330_v3 = vadd.f32 %v1329_v7, %v12610_v51  ;;  %2062 = vmatprep.mubr.bf16.mxu1 %v1707_v63  ;;  %v1597_v26 = vmax.f32 %v1328_v11, 0.0 }
 0x144   : > { %v1331_v13 = vpop.f32.mrf.mxu0  ;;  %2063 = vmatmul.mubr.bf16.gmra.mxu1 %v1706_v6 }
 0x145   : > { %v1332_v14 = vadd.f32 %v1331_v13, %v12604_v47  ;;  %v1598_v20 = vmax.f32 %v1330_v3, 0.0 }
 0x146   : > { %v1335_v22 = vpop.f32.mrf.mxu0 }
 0x147   : > { %v1599_v27 = vmax.f32 %v1332_v14, 0.0  ;;  %v1708_v45 = vpack.c.bf16 %v1598_v20, %v1596_v32  ;;  %v1336_v60 = vadd.f32 %v1335_v22, %v12610_v51 }
 0x148   : > { %v1337_v33 = vpop.f32.mrf.mxu0 }
 0x149   : > { %v1709_v38 = vpack.c.bf16 %v1599_v27, %v1597_v26  ;;  %v1338_v53 = vadd.f32 %v1337_v33, %v12604_v47  ;;  %v1600_v13 = vmax.f32 %v1336_v60, 0.0  ;;  %v11378_v60 = vld [vmem:[%s17223_s7 + $0x40] ss:$8 sps:$4 sm:$0xff]  }
 0x14a   : > { %v1339_v48 = vpop.f32.mrf.mxu0 }
 0x14b   : > { %v1340_v54 = vadd.f32 %v1339_v48, %v12610_v51  ;;  %2072 = vmatprep.mubr.bf16.mxu1 %v1709_v38  ;;  %v1601_v3 = vmax.f32 %v1338_v53, 0.0 }
 0x14c   : > { %v1341_v63 = vpop.f32.mrf.mxu0  ;;  %2073 = vmatmul.mubr.bf16.gmra.mxu1 %v1708_v45 }
 0x14d   : > { %v1342_v6 = vadd.f32 %v1341_v63, %v12604_v47  ;;  %v1602_v7 = vmax.f32 %v1340_v54, 0.0  ;;  %v11380_v63 = vld [vmem:[%s17223_s7 + $0x44] ss:$8 sps:$4 sm:$0xff]  }
 0x14e   : > { %v1345_v11 = vpop.f32.mrf.mxu0  ;;  %3464 = vmatprep.subr.bf16.mxu1 %v11380_v63 }
 0x14f   : > { %v1603_v12 = vmax.f32 %v1342_v6, 0.0  ;;  %v1710_v26 = vpack.c.bf16 %v1602_v7, %v1600_v13  ;;  %v1346_v33 = vadd.f32 %v1345_v11, %v12610_v51  ;;  %3465 = vmatpush1.bf16.msra.mxu1 %v11378_v60 }
 0x150   : > { %v1347_v14 = vpop.f32.mrf.mxu0 }
 0x151   : > { %v1711_v20 = vpack.c.bf16 %v1603_v12, %v1601_v3  ;;  %v1348_v32 = vadd.f32 %v1347_v14, %v12604_v47  ;;  %v1604_v54 = vmax.f32 %v1346_v33, 0.0 }
 0x152   : > { %v1349_v27 = vpop.f32.mrf.mxu0 }
 0x153   : > { %v1350_v22 = vadd.f32 %v1349_v27, %v12610_v51  ;;  %2082 = vmatprep.mubr.bf16.mxu1 %v1711_v20  ;;  %v1605_v48 = vmax.f32 %v1348_v32, 0.0 }
 0x154   : > { %v1351_v38 = vpop.f32.mrf.mxu0  ;;  %2083 = vmatmul.mubr.bf16.gmra.mxu1 %v1710_v26 }
 0x155   : > { %v1352_v35 = vadd.f32 %v1351_v38, %v12604_v47  ;;  %v1606_v44 = vmax.f32 %v1350_v22, 0.0 }
 0x156   : > { %v1355_v45 = vpop.f32.mrf.mxu0 }
 0x157   : > { %v1607_v53 = vmax.f32 %v1352_v35, 0.0  ;;  %v1712_v6 = vpack.c.bf16 %v1606_v44, %v1604_v54  ;;  %v1356_v12 = vadd.f32 %v1355_v45, %v12610_v51 }
 0x158   : > { %v1357_v57 = vpop.f32.mrf.mxu0 }
 0x159   : > { %v1713_v59 = vpack.c.bf16 %v1607_v53, %v1605_v48  ;;  %v1358_v11 = vadd.f32 %v1357_v57, %v12604_v47  ;;  %v1608_v22 = vmax.f32 %v1356_v12, 0.0  ;;  %v11381_v12 = vld [vmem:[%s17223_s7 + $0x30] ss:$8 sps:$4 sm:$0xff]  }
 0x15a   : > { %v1359_v7 = vpop.f32.mrf.mxu0 }
 0x15b   : > { %v1360_v3 = vadd.f32 %v1359_v7, %v12610_v51  ;;  %2092 = vmatprep.mubr.bf16.mxu1 %v1713_v59  ;;  %v1609_v27 = vmax.f32 %v1358_v11, 0.0 }
 0x15c   : > { %v1361_v13 = vpop.f32.mrf.mxu0  ;;  %2093 = vmatmul.mubr.bf16.gmra.mxu1 %v1712_v6 }
 0x15d   : > { %v1362_v14 = vadd.f32 %v1361_v13, %v12604_v47  ;;  %v1610_v20 = vmax.f32 %v1360_v3, 0.0  ;;  %v11383_v13 = vld [vmem:[%s17223_s7 + $0x34] ss:$8 sps:$4 sm:$0xff]  }
 0x15e   : > { %v1365_v26 = vpop.f32.mrf.mxu0  ;;  %3466 = vmatprep.subr.bf16.mxu1 %v11383_v13 }
 0x15f   : > { %v1611_v32 = vmax.f32 %v1362_v14, 0.0  ;;  %v1714_v35 = vpack.c.bf16 %v1610_v20, %v1608_v22  ;;  %v1366_v45 = vadd.f32 %v1365_v26, %v12610_v51  ;;  %3467 = vmatpush1.bf16.msra.mxu1 %v11381_v12 }
 0x160   : > { %v1367_v33 = vpop.f32.mrf.mxu0 }
 0x161   : > { %v1715_v38 = vpack.c.bf16 %v1611_v32, %v1609_v27  ;;  %v1368_v48 = vadd.f32 %v1367_v33, %v12604_v47  ;;  %v1612_v7 = vmax.f32 %v1366_v45, 0.0 }
 0x162   : > { %v1369_v44 = vpop.f32.mrf.mxu0 }
 0x163   : > { %v1370_v53 = vadd.f32 %v1369_v44, %v12610_v51  ;;  %2102 = vmatprep.mubr.bf16.mxu1 %v1715_v38  ;;  %v1613_v63 = vmax.f32 %v1368_v48, 0.0 }
 0x164   : > { %v1371_v54 = vpop.f32.mrf.mxu0  ;;  %2103 = vmatmul.mubr.bf16.gmra.mxu1 %v1714_v35 }
 0x165   : > { %v1372_v57 = vadd.f32 %v1371_v54, %v12604_v47  ;;  %v1614_v59 = vmax.f32 %v1370_v53, 0.0 }
 0x166   : > { %v1375_v60 = vpop.f32.mrf.mxu0 }
 0x167   : > { %v1615_v6 = vmax.f32 %v1372_v57, 0.0  ;;  %v1716_v14 = vpack.c.bf16 %v1614_v59, %v1612_v7  ;;  %v1376_v32 = vadd.f32 %v1375_v60, %v12610_v51 }
 0x168   : > { %v1377_v11 = vpop.f32.mrf.mxu0 }
 0x169   : > { %v1717_v3 = vpack.c.bf16 %v1615_v6, %v1613_v63  ;;  %v1378_v26 = vadd.f32 %v1377_v11, %v12604_v47  ;;  %v1616_v53 = vmax.f32 %v1376_v32, 0.0  ;;  %v11384_v32 = vld [vmem:[%s17223_s7 + $0x20] ss:$8 sps:$4 sm:$0xff]  }
 0x16a   : > { %v1379_v20 = vpop.f32.mrf.mxu0 }
 0x16b   : > { %v1380_v27 = vadd.f32 %v1379_v20, %v12610_v51  ;;  %2112 = vmatprep.mubr.bf16.mxu1 %v1717_v3  ;;  %v1617_v44 = vmax.f32 %v1378_v26, 0.0 }
 0x16c   : > { %v1381_v22 = vpop.f32.mrf.mxu0  ;;  %2113 = vmatmul.mubr.bf16.gmra.mxu1 %v1716_v14 }
 0x16d   : > { %v1382_v33 = vadd.f32 %v1381_v22, %v12604_v47  ;;  %v1618_v38 = vmax.f32 %v1380_v27, 0.0  ;;  %v11386_v22 = vld [vmem:[%s17223_s7 + $0x24] ss:$8 sps:$4 sm:$0xff]  }
 0x16e   : > { %v1385_v35 = vpop.f32.mrf.mxu0  ;;  %3468 = vmatprep.subr.bf16.mxu1 %v11386_v22 }
 0x16f   : > { %v1619_v48 = vmax.f32 %v1382_v33, 0.0  ;;  %v1718_v57 = vpack.c.bf16 %v1618_v38, %v1616_v53  ;;  %v1386_v60 = vadd.f32 %v1385_v35, %v12610_v51  ;;  %3469 = vmatpush1.bf16.msra.mxu1 %v11384_v32 }
 0x170   : > { %v1387_v45 = vpop.f32.mrf.mxu0 }
 0x171   : > { %v1719_v54 = vpack.c.bf16 %v1619_v48, %v1617_v44  ;;  %v1388_v63 = vadd.f32 %v1387_v45, %v12604_v47  ;;  %v1620_v20 = vmax.f32 %v1386_v60, 0.0 }
 0x172   : > { %v1389_v59 = vpop.f32.mrf.mxu0 }
 0x173   : > { %v1390_v6 = vadd.f32 %v1389_v59, %v12610_v51  ;;  %2122 = vmatprep.mubr.bf16.mxu1 %v1719_v54  ;;  %v1621_v13 = vmax.f32 %v1388_v63, 0.0 }
 0x174   : > { %v1391_v7 = vpop.f32.mrf.mxu0  ;;  %2123 = vmatmul.mubr.bf16.gmra.mxu1 %v1718_v57 }
 0x175   : > { %v1392_v11 = vadd.f32 %v1391_v7, %v12604_v47  ;;  %v1622_v3 = vmax.f32 %v1390_v6, 0.0 }
 0x176   : > { %v1395_v12 = vpop.f32.mrf.mxu0 }
 0x177   : > { %v1623_v14 = vmax.f32 %v1392_v11, 0.0  ;;  %v1720_v33 = vpack.c.bf16 %v1622_v3, %v1620_v20  ;;  %v1396_v48 = vadd.f32 %v1395_v12, %v12610_v51 }
 0x178   : > { %v1397_v26 = vpop.f32.mrf.mxu0 }
 0x179   : > { %v1721_v27 = vpack.c.bf16 %v1623_v14, %v1621_v13  ;;  %v1398_v35 = vadd.f32 %v1397_v26, %v12604_v47  ;;  %v1624_v6 = vmax.f32 %v1396_v48, 0.0  ;;  %v11387_v48 = vld [vmem:[%s17223_s7 + $0x10] ss:$8 sps:$4 sm:$0xff]  }
 0x17a   : > { %v1399_v38 = vpop.f32.mrf.mxu0 }
 0x17b   : > { %v1400_v44 = vadd.f32 %v1399_v38, %v12610_v51  ;;  %2132 = vmatprep.mubr.bf16.mxu1 %v1721_v27  ;;  %v1625_v59 = vmax.f32 %v1398_v35, 0.0 }
 0x17c   : > { %v1401_v53 = vpop.f32.mrf.mxu0  ;;  %2133 = vmatmul.mubr.bf16.gmra.mxu1 %v1720_v33 }
 0x17d   : > { %v1402_v45 = vadd.f32 %v1401_v53, %v12604_v47  ;;  %v1626_v54 = vmax.f32 %v1400_v44, 0.0  ;;  %v11389_v53 = vld [vmem:[%s17223_s7 + $0x14] ss:$8 sps:$4 sm:$0xff]  }
 0x17e   : > { %v1405_v57 = vpop.f32.mrf.mxu0  ;;  %3470 = vmatprep.subr.bf16.mxu1 %v11389_v53 }
 0x17f   : > { %v1627_v63 = vmax.f32 %v1402_v45, 0.0  ;;  %v1722_v11 = vpack.c.bf16 %v1626_v54, %v1624_v6  ;;  %v1406_v12 = vadd.f32 %v1405_v57, %v12610_v51  ;;  %3471 = vmatpush1.bf16.msra.mxu1 %v11387_v48 }
 0x180   : > { %v1407_v60 = vpop.f32.mrf.mxu0 }
 0x181   : > { %v1723_v7 = vpack.c.bf16 %v1627_v63, %v1625_v59  ;;  %v1408_v13 = vadd.f32 %v1407_v60, %v12604_v47  ;;  %v1628_v38 = vmax.f32 %v1406_v12, 0.0 }
 0x182   : > { %v1409_v3 = vpop.f32.mrf.mxu0 }
 0x183   : > { %v1410_v14 = vadd.f32 %v1409_v3, %v12610_v51  ;;  %2142 = vmatprep.mubr.bf16.mxu1 %v1723_v7  ;;  %v1629_v22 = vmax.f32 %v1408_v13, 0.0 }
 0x184   : > { %v1411_v20 = vpop.f32.mrf.mxu0  ;;  %2143 = vmatmul.mubr.bf16.gmra.mxu1 %v1722_v11 }
 0x185   : > { %v1412_v26 = vadd.f32 %v1411_v20, %v12604_v47  ;;  %v1630_v27 = vmax.f32 %v1410_v14, 0.0 }
 0x186   : > { %v1415_v32 = vpop.f32.mrf.mxu0 }
 0x187   : > { %v1631_v33 = vmax.f32 %v1412_v26, 0.0  ;;  %v1724_v45 = vpack.c.bf16 %v1630_v27, %v1628_v38  ;;  %v1416_v63 = vadd.f32 %v1415_v32, %v12610_v51 }
 0x188   : > { %v1417_v35 = vpop.f32.mrf.mxu0 }
 0x189   : > { %v1725_v44 = vpack.c.bf16 %v1631_v33, %v1629_v22  ;;  %v1418_v57 = vadd.f32 %v1417_v35, %v12604_v47  ;;  %v1632_v14 = vmax.f32 %v1416_v63, 0.0  ;;  %v11390_v63 = vld [vmem:[%s17223_s7] ss:$8 sps:$4 sm:$0xff]  }
 0x18a   : > { %v1419_v54 = vpop.f32.mrf.mxu0 }
 0x18b   : > { %v1420_v59 = vadd.f32 %v1419_v54, %v12610_v51  ;;  %2152 = vmatprep.mubr.bf16.mxu1 %v1725_v44  ;;  %v1633_v3 = vmax.f32 %v1418_v57, 0.0 }
 0x18c   : > { %v1421_v6 = vpop.f32.mrf.mxu0  ;;  %2153 = vmatmul.mubr.bf16.gmra.mxu1 %v1724_v45 }
 0x18d   : > { %v1422_v60 = vadd.f32 %v1421_v6, %v12604_v47  ;;  %v1634_v7 = vmax.f32 %v1420_v59, 0.0  ;;  %v11392_v6 = vld [vmem:[%s17223_s7 + $0x4] ss:$8 sps:$4 sm:$0xff]  }
 0x18e   : > { %v1425_v11 = vpop.f32.mrf.mxu0  ;;  %3472 = vmatprep.subr.bf16.mxu1 %v11392_v6 }
 0x18f   : > { %v1635_v13 = vmax.f32 %v1422_v60, 0.0  ;;  %v1726_v26 = vpack.c.bf16 %v1634_v7, %v1632_v14  ;;  %v1426_v32 = vadd.f32 %v1425_v11, %v12610_v51  ;;  %3473 = vmatpush1.bf16.msra.mxu1 %v11390_v63 }
 0x190   : > { %v1427_v12 = vpop.f32.mrf.mxu0 }
 0x191   : > { %v1727_v20 = vpack.c.bf16 %v1635_v13, %v1633_v3  ;;  %v1428_v22 = vadd.f32 %v1427_v12, %v12604_v47  ;;  %v1636_v54 = vmax.f32 %v1426_v32, 0.0 }
 0x192   : > { %v1429_v27 = vpop.f32.mrf.mxu0 }
 0x193   : > { %v1430_v33 = vadd.f32 %v1429_v27, %v12610_v51  ;;  %2162 = vmatprep.mubr.bf16.mxu1 %v1727_v20  ;;  %v1637_v53 = vmax.f32 %v1428_v22, 0.0 }
 0x194   : > { %v1431_v38 = vpop.f32.mrf.mxu0  ;;  %2163 = vmatmul.mubr.bf16.gmra.mxu1 %v1726_v26 }
 0x195   : > { %v1432_v35 = vadd.f32 %v1431_v38, %v12604_v47  ;;  %v1638_v44 = vmax.f32 %v1430_v33, 0.0 }
 0x196   : > { %v1435_v48 = vpop.f32.mrf.mxu0 }
 0x197   : > { %v1639_v45 = vmax.f32 %v1432_v35, 0.0  ;;  %v1728_v60 = vpack.c.bf16 %v1638_v44, %v1636_v54  ;;  %v1436_v13 = vadd.f32 %v1435_v48, %v12610_v51 }
 0x198   : > { %v1437_v57 = vpop.f32.mrf.mxu0 }
 0x199   : > { %v1729_v59 = vpack.c.bf16 %v1639_v45, %v1637_v53  ;;  %v1438_v11 = vadd.f32 %v1437_v57, %v12604_v47  ;;  %v1640_v33 = vmax.f32 %v1436_v13, 0.0  ;;  %v11393_v13 = vld [vmem:[%s17223_s7 + $0xf0] ss:$8 sps:$4 sm:$0xff]  }
 0x19a   : > { %v1439_v7 = vpop.f32.mrf.mxu0 }
 0x19b   : > { %v1440_v3 = vadd.f32 %v1439_v7, %v12610_v51  ;;  %2172 = vmatprep.mubr.bf16.mxu1 %v1729_v59  ;;  %v1641_v27 = vmax.f32 %v1438_v11, 0.0 }
 0x19c   : > { %v1441_v14 = vpop.f32.mrf.mxu0  ;;  %2173 = vmatmul.mubr.bf16.gmra.mxu1 %v1728_v60 }
 0x19d   : > { %v1442_v12 = vadd.f32 %v1441_v14, %v12604_v47  ;;  %v1642_v20 = vmax.f32 %v1440_v3, 0.0  ;;  %v11395_v14 = vld [vmem:[%s17223_s7 + $0xf4] ss:$8 sps:$4 sm:$0xff]  }
 0x19e   : > { %v1445_v26 = vpop.f32.mrf.mxu0  ;;  %3474 = vmatprep.subr.bf16.mxu1 %v11395_v14 }
 0x19f   : > { %v1643_v22 = vmax.f32 %v1442_v12, 0.0  ;;  %v1730_v35 = vpack.c.bf16 %v1642_v20, %v1640_v33  ;;  %v1446_v48 = vadd.f32 %v1445_v26, %v12610_v51  ;;  %3475 = vmatpush2.bf16.msra.mxu1 %v11393_v13 }
 0x1a0   : > { %v1447_v32 = vpop.f32.mrf.mxu0 }
 0x1a1   : > { %v1731_v38 = vpack.c.bf16 %v1643_v22, %v1641_v27  ;;  %v1448_v53 = vadd.f32 %v1447_v32, %v12604_v47  ;;  %v1644_v7 = vmax.f32 %v1446_v48, 0.0 }
 0x1a2   : > { %v1449_v44 = vpop.f32.mrf.mxu0 }
 0x1a3   : > { %v1450_v45 = vadd.f32 %v1449_v44, %v12610_v51  ;;  %2182 = vmatprep.mubr.bf16.mxu1 %v1731_v38  ;;  %v1645_v6 = vmax.f32 %v1448_v53, 0.0 }
 0x1a4   : > { %v1451_v54 = vpop.f32.mrf.mxu0  ;;  %2183 = vmatmul.mubr.bf16.gmra.mxu1 %v1730_v35 }
 0x1a5   : > { %v1452_v57 = vadd.f32 %v1451_v54, %v12604_v47  ;;  %v1646_v59 = vmax.f32 %v1450_v45, 0.0 }
 0x1a6   : > { %v1455_v63 = vpop.f32.mrf.mxu0 }
 0x1a7   : > { %v1647_v60 = vmax.f32 %v1452_v57, 0.0  ;;  %v1732_v12 = vpack.c.bf16 %v1646_v59, %v1644_v7  ;;  %v1456_v22 = vadd.f32 %v1455_v63, %v12610_v51 }
 0x1a8   : > { %v1457_v11 = vpop.f32.mrf.mxu0 }
 0x1a9   : > { %v1733_v3 = vpack.c.bf16 %v1647_v60, %v1645_v6  ;;  %v1458_v26 = vadd.f32 %v1457_v11, %v12604_v47  ;;  %v1648_v45 = vmax.f32 %v1456_v22, 0.0  ;;  %v11396_v22 = vld [vmem:[%s17223_s7 + $0xe0] ss:$8 sps:$4 sm:$0xff]  }
 0x1aa   : > { %v1459_v20 = vpop.f32.mrf.mxu0 }
 0x1ab   : > { %v1460_v27 = vadd.f32 %v1459_v20, %v12610_v51  ;;  %2192 = vmatprep.mubr.bf16.mxu1 %v1733_v3  ;;  %v1649_v44 = vmax.f32 %v1458_v26, 0.0 }
 0x1ac   : > { %v1461_v33 = vpop.f32.mrf.mxu0  ;;  %2193 = vmatmul.mubr.bf16.gmra.mxu1 %v1732_v12 }
 0x1ad   : > { %v1462_v32 = vadd.f32 %v1461_v33, %v12604_v47  ;;  %v1650_v38 = vmax.f32 %v1460_v27, 0.0  ;;  %v11398_v33 = vld [vmem:[%s17223_s7 + $0xe4] ss:$8 sps:$4 sm:$0xff]  }
 0x1ae   : > { %v1465_v35 = vpop.f32.mrf.mxu0  ;;  %3476 = vmatprep.subr.bf16.mxu1 %v11398_v33 }
 0x1af   : > { %v1651_v53 = vmax.f32 %v1462_v32, 0.0  ;;  %v1734_v57 = vpack.c.bf16 %v1650_v38, %v1648_v45  ;;  %v1466_v63 = vadd.f32 %v1465_v35, %v12610_v51  ;;  %3477 = vmatpush2.bf16.msra.mxu1 %v11396_v22 }
 0x1b0   : > { %v1467_v48 = vpop.f32.mrf.mxu0 }
 0x1b1   : > { %v1735_v54 = vpack.c.bf16 %v1651_v53, %v1649_v44  ;;  %v1468_v6 = vadd.f32 %v1467_v48, %v12604_v47  ;;  %v1652_v20 = vmax.f32 %v1466_v63, 0.0 }
 0x1b2   : > { %v1469_v59 = vpop.f32.mrf.mxu0 }
 0x1b3   : > { %v1470_v60 = vadd.f32 %v1469_v59, %v12610_v51  ;;  %2202 = vmatprep.mubr.bf16.mxu1 %v1735_v54  ;;  %v1653_v14 = vmax.f32 %v1468_v6, 0.0 }
 0x1b4   : > { %v1471_v7 = vpop.f32.mrf.mxu0  ;;  %2203 = vmatmul.mubr.bf16.gmra.mxu1 %v1734_v57 }
 0x1b5   : > { %v1472_v11 = vadd.f32 %v1471_v7, %v12604_v47  ;;  %v1654_v3 = vmax.f32 %v1470_v60, 0.0 }
 0x1b6   : > { %v1475_v13 = vpop.f32.mrf.mxu0 }
 0x1b7   : > { %v1655_v12 = vmax.f32 %v1472_v11, 0.0  ;;  %v1736_v32 = vpack.c.bf16 %v1654_v3, %v1652_v20  ;;  %v1476_v53 = vadd.f32 %v1475_v13, %v12610_v51 }
 0x1b8   : > { %v1477_v26 = vpop.f32.mrf.mxu0 }
 0x1b9   : > { %v1737_v27 = vpack.c.bf16 %v1655_v12, %v1653_v14  ;;  %v1478_v35 = vadd.f32 %v1477_v26, %v12604_v47  ;;  %v1656_v60 = vmax.f32 %v1476_v53, 0.0  ;;  %v11399_v53 = vld [vmem:[%s17223_s7 + $0xd0] ss:$8 sps:$4 sm:$0xff]  }
 0x1ba   : > { %v1479_v38 = vpop.f32.mrf.mxu0 }
 0x1bb   : > { %v1480_v44 = vadd.f32 %v1479_v38, %v12610_v51  ;;  %2212 = vmatprep.mubr.bf16.mxu1 %v1737_v27  ;;  %v1657_v59 = vmax.f32 %v1478_v35, 0.0 }
 0x1bc   : > { %v1481_v45 = vpop.f32.mrf.mxu0  ;;  %2213 = vmatmul.mubr.bf16.gmra.mxu1 %v1736_v32 }
 0x1bd   : > { %v1482_v48 = vadd.f32 %v1481_v45, %v12604_v47  ;;  %v1658_v54 = vmax.f32 %v1480_v44, 0.0  ;;  %v11401_v45 = vld [vmem:[%s17223_s7 + $0xd4] ss:$8 sps:$4 sm:$0xff]  }
 0x1be   : > { %v1485_v57 = vpop.f32.mrf.mxu0  ;;  %3478 = vmatprep.subr.bf16.mxu1 %v11401_v45 }
 0x1bf   : > { %v1659_v6 = vmax.f32 %v1482_v48, 0.0  ;;  %v1738_v11 = vpack.c.bf16 %v1658_v54, %v1656_v60  ;;  %v1486_v13 = vadd.f32 %v1485_v57, %v12610_v51  ;;  %3479 = vmatpush2.bf16.msra.mxu1 %v11399_v53 }
 0x1c0   : > { %v1487_v63 = vpop.f32.mrf.mxu0 }
 0x1c1   : > { %v1739_v7 = vpack.c.bf16 %v1659_v6, %v1657_v59  ;;  %v1488_v14 = vadd.f32 %v1487_v63, %v12604_v47  ;;  %v1660_v38 = vmax.f32 %v1486_v13, 0.0  ;;  %v1788_v63 = vld [vmem:[%s17226_s30] sm:$0x3]  ;;  %s17227_s30 = sld [smem:[#allocation121_spill]] }
 0x1c2   : > { %v1489_v3 = vpop.f32.mrf.mxu0 }
 0x1c3   : > { %v1490_v12 = vadd.f32 %v1489_v3, %v12610_v51  ;;  %2222 = vmatprep.mubr.bf16.mxu1 %v1739_v7  ;;  %v1661_v33 = vmax.f32 %v1488_v14, 0.0 }
 0x1c4   : > { %v1491_v20 = vpop.f32.mrf.mxu0  ;;  %2223 = vmatmul.mubr.bf16.gmra.mxu1 %v1738_v11 }
 0x1c5   : > { %v1492_v26 = vadd.f32 %v1491_v20, %v12604_v47  ;;  %v1662_v27 = vmax.f32 %v1490_v12, 0.0  ;;  %v12862_v12 = vrot.slane %v1788_v63, %v12588_v37 }
 0x1c6   : > { %v1495_v22 = vpop.f32.mrf.mxu0 }
 0x1c7   : > { %v1663_v32 = vmax.f32 %v1492_v26, 0.0  ;;  %v1740_v48 = vpack.c.bf16 %v1662_v27, %v1660_v38  ;;  %v1496_v6 = vadd.f32 %v1495_v22, %v12610_v51  ;;  %v12865_v27 = vrot.slane %v1788_v63, %v12596_v42  ;;  %s17228_s3 = smov %s17227_s30 }
 0x1c8   : > { %v1497_v35 = vpop.f32.mrf.mxu0 }
 0x1c9   : > { %v1741_v44 = vpack.c.bf16 %v1663_v32, %v1661_v33  ;;  %v1498_v57 = vadd.f32 %v1497_v35, %v12604_v47  ;;  %v1664_v22 = vmax.f32 %v1496_v6, 0.0 }
 0x1ca   : > { %v1499_v54 = vpop.f32.mrf.mxu0 }
 0x1cb   : > { %v1500_v59 = vadd.f32 %v1499_v54, %v12610_v51  ;;  %2232 = vmatprep.mubr.bf16.mxu1 %v1741_v44  ;;  %v1665_v20 = vmax.f32 %v1498_v57, 0.0 }
 0x1cc   : > { %v1501_v60 = vpop.f32.mrf.mxu0  ;;  %v1994_v7 = vpop.f32.mrf.mxu1  ;;  %2233 = vmatmul.mubr.bf16.gmra.mxu1 %v1740_v48 }
 0x1cd   : > { %v1502_v11 = vadd.f32 %v1501_v60, %v12604_v47  ;;  %v1666_v3 = vmax.f32 %v1500_v59, 0.0  ;;  %v1995_v54 = vadd.f32 %v1994_v7, %v12865_v27 }
 0x1ce   : > { %v1505_v14 = vpop.f32.mrf.mxu0  ;;  %v1996_v13 = vpop.f32.mrf.mxu1 }
 0x1cf   : > { %v1667_v26 = vmax.f32 %v1502_v11, 0.0  ;;  %v1742_v44 = vpack.c.bf16 %v1666_v3, %v1664_v22  ;;  %v1997_v53 = vadd.f32 %v1996_v13, %v12862_v12  ;;  %v1506_v11 = vadd.f32 %v1505_v14, %v12610_v51  ;;  %v11402_v14 = vld [vmem:[%s17223_s7 + $0xc0] ss:$8 sps:$4 sm:$0xff]  }
 0x1d0   : > { %v1507_v33 = vpop.f32.mrf.mxu0  ;;  %v1998_v32 = vpop.f32.mrf.mxu1  ;;  %v2313_v7 = vmax.f32 %v1995_v54, 0.0 }
 0x1d1   : > { %v1999_v38 = vadd.f32 %v1998_v32, %v12865_v27  ;;  %v1743_v35 = vpack.c.bf16 %v1667_v26, %v1665_v20  ;;  %v1508_v60 = vadd.f32 %v1507_v33, %v12604_v47  ;;  %v2314_v26 = vmax.f32 %v1997_v53, 0.0 }
 0x1d2   : > { %v1509_v45 = vpop.f32.mrf.mxu0  ;;  %v2000_v48 = vpop.f32.mrf.mxu1  ;;  %v1668_v33 = vmax.f32 %v1506_v11, 0.0 }
 0x1d3   : > { %v1510_v59 = vadd.f32 %v1509_v45, %v12610_v51  ;;  %v2001_v57 = vadd.f32 %v2000_v48, %v12862_v12  ;;  %2242 = vmatprep.mubr.bf16.mxu1 %v1743_v35  ;;  %v2315_v20 = vmax.f32 %v1999_v38, 0.0  ;;  %v1669_v2 = vmax.f32 %v1508_v60, 0.0  ;;  %v11404_v38 = vld [vmem:[%s17223_s7 + $0xc4] ss:$8 sps:$4 sm:$0xff]  }
 0x1d4   : > { %v1511_v6 = vpop.f32.mrf.mxu0  ;;  %v2004_v63 = vpop.f32.mrf.mxu1  ;;  %2243 = vmatmul.mubr.bf16.gmra.mxu1 %v1742_v44  ;;  %3480 = vmatprep.subr.bf16.mxu1 %v11404_v38 }
 0x1d5   : > { %v2316_v3 = vmax.f32 %v2001_v57, 0.0  ;;  %v1512_v13 = vadd.f32 %v1511_v6, %v12604_v47  ;;  %v1670_v29 = vmax.f32 %v1510_v59, 0.0  ;;  %v2441_v50 = vpack.c.bf16 %v2315_v20, %v2313_v7  ;;  %3481 = vmatpush2.bf16.msra.mxu1 %v11402_v14 }
 0x1d6   : > { %v1515_v22 = vpop.f32.mrf.mxu0  ;;  %v2006_v32 = vpop.f32.mrf.mxu1  ;;  %v2005_v53 = vadd.f32 %v2004_v63, %v12865_v27 }
 0x1d7   : > { %v1671_v45 = vmax.f32 %v1512_v13, 0.0  ;;  %v2442_v10 = vpack.c.bf16 %v2316_v3, %v2314_v26  ;;  %v2007_v54 = vadd.f32 %v2006_v32, %v12862_v12  ;;  %v1744_v6 = vpack.c.bf16 %v1670_v29, %v1668_v33 }
 0x1d8   : > { %v1517_v48 = vpop.f32.mrf.mxu0  ;;  %v2008_v35 = vpop.f32.mrf.mxu1  ;;  %v1516_v63 = vadd.f32 %v1515_v22, %v12610_v51 }
 0x1d9   : > { %v2009_v44 = vadd.f32 %v2008_v35, %v12865_v27  ;;  %2741 = vmatprep.mubr.bf16.mxu0 %v2442_v10  ;;  %v1745_v60 = vpack.c.bf16 %v1671_v45, %v1669_v2  ;;  %v1518_v3 = vadd.f32 %v1517_v48, %v12604_v47  ;;  %v2318_v2 = vmax.f32 %v2007_v54, 0.0 }
 0x1da   : > { %v1519_v59 = vpop.f32.mrf.mxu0  ;;  %v2010_v57 = vpop.f32.mrf.mxu1  ;;  %2742 = vmatmul.mubr.bf16.vlgmr.msra.gmra.mxu0 %v2441_v50  ;;  %v2317_v35 = vmax.f32 %v2005_v53, 0.0 }
 0x1db   : > { %v1520_v11 = vadd.f32 %v1519_v59, %v12610_v51  ;;  %v2011_v20 = vadd.f32 %v2010_v57, %v12862_v12  ;;  %2252 = vmatprep.mubr.bf16.mxu1 %v1745_v60  ;;  %v2319_v32 = vmax.f32 %v2009_v44, 0.0  ;;  %v1673_v38 = vmax.f32 %v1518_v3, 0.0 }
 0x1dc   : > { %v1521_v13 = vpop.f32.mrf.mxu0  ;;  %v2014_v26 = vpop.f32.mrf.mxu1  ;;  %2253 = vmatmul.mubr.bf16.gmra.mxu1 %v1744_v6  ;;  %v1672_v60 = vmax.f32 %v1516_v63, 0.0 }
 0x1dd   : > { %v2320_v10 = vmax.f32 %v2011_v20, 0.0  ;;  %v1522_v7 = vadd.f32 %v1521_v13, %v12604_v47  ;;  %v1674_v33 = vmax.f32 %v1520_v11, 0.0  ;;  %v2443_v0 = vpack.c.bf16 %v2319_v32, %v2317_v35 }
 0x1de   : > { %v1525_v29 = vpop.f32.mrf.mxu0  ;;  %v2016_v45 = vpop.f32.mrf.mxu1  ;;  %v2015_v13 = vadd.f32 %v2014_v26, %v12865_v27 }
 0x1df   : > { %v1675_v50 = vmax.f32 %v1522_v7, 0.0  ;;  %v2444_v57 = vpack.c.bf16 %v2320_v10, %v2318_v2  ;;  %v2017_v22 = vadd.f32 %v2016_v45, %v12862_v12  ;;  %v1746_v54 = vpack.c.bf16 %v1674_v33, %v1672_v60 }
 0x1e0   : > { %v1527_v59 = vpop.f32.mrf.mxu0  ;;  %v2018_v48 = vpop.f32.mrf.mxu1  ;;  %v1526_v10 = vadd.f32 %v1525_v29, %v12610_v51  ;;  %v11405_v29 = vld [vmem:[%s17223_s7 + $0xb0] ss:$8 sps:$4 sm:$0xff]  }
 0x1e1   : > { %v2019_v14 = vadd.f32 %v2018_v48, %v12865_v27  ;;  %2751 = vmatprep.mubr.bf16.mxu0 %v2444_v57  ;;  %v1747_v6 = vpack.c.bf16 %v1675_v50, %v1673_v38  ;;  %v1528_v3 = vadd.f32 %v1527_v59, %v12604_v47  ;;  %v2322_v35 = vmax.f32 %v2017_v22, 0.0 }
 0x1e2   : > { %v1529_v44 = vpop.f32.mrf.mxu0  ;;  %v2020_v20 = vpop.f32.mrf.mxu1  ;;  %2752 = vmatmul.mubr.bf16.gmra.mxu0 %v2443_v0  ;;  %v2321_v50 = vmax.f32 %v2015_v13, 0.0 }
 0x1e3   : > { %v1530_v53 = vadd.f32 %v1529_v44, %v12610_v51  ;;  %v2021_v11 = vadd.f32 %v2020_v20, %v12862_v12  ;;  %2262 = vmatprep.mubr.bf16.mxu1 %v1747_v6  ;;  %v2323_v7 = vmax.f32 %v2019_v14, 0.0  ;;  %v1677_v57 = vmax.f32 %v1528_v3, 0.0  ;;  %v11407_v14 = vld [vmem:[%s17223_s7 + $0xb4] ss:$8 sps:$4 sm:$0xff]  }
 0x1e4   : > { %v1531_v63 = vpop.f32.mrf.mxu0  ;;  %v2024_v32 = vpop.f32.mrf.mxu1  ;;  %2263 = vmatmul.mubr.bf16.gmra.mxu1 %v1746_v54  ;;  %v1676_v44 = vmax.f32 %v1526_v10, 0.0  ;;  %3482 = vmatprep.subr.bf16.mxu1 %v11407_v14 }
 0x1e5   : > { %v2324_v2 = vmax.f32 %v2021_v11, 0.0  ;;  %v1532_v45 = vadd.f32 %v1531_v63, %v12604_v47  ;;  %v1678_v38 = vmax.f32 %v1530_v53, 0.0  ;;  %v2445_v20 = vpack.c.bf16 %v2323_v7, %v2321_v50  ;;  %3483 = vmatpush2.bf16.msra.mxu1 %v11405_v29 }
 0x1e6   : > { %v1535_v33 = vpop.f32.mrf.mxu0  ;;  %v2026_v26 = vpop.f32.mrf.mxu1  ;;  %v2025_v22 = vadd.f32 %v2024_v32, %v12865_v27 }
 0x1e7   : > { %v1679_v48 = vmax.f32 %v1532_v45, 0.0  ;;  %v2446_v59 = vpack.c.bf16 %v2324_v2, %v2322_v35  ;;  %v2027_v54 = vadd.f32 %v2026_v26, %v12862_v12  ;;  %v1748_v3 = vpack.c.bf16 %v1678_v38, %v1676_v44 }
 0x1e8   : > { %v1537_v0 = vpop.f32.mrf.mxu0  ;;  %v2028_v60 = vpop.f32.mrf.mxu1  ;;  %v1536_v32 = vadd.f32 %v1535_v33, %v12610_v51 }
 0x1e9   : > { %v2029_v6 = vadd.f32 %v2028_v60, %v12865_v27  ;;  %2761 = vmatprep.mubr.bf16.mxu0 %v2446_v59  ;;  %v1749_v11 = vpack.c.bf16 %v1679_v48, %v1677_v57  ;;  %v1538_v7 = vadd.f32 %v1537_v0, %v12604_v47  ;;  %v2326_v38 = vmax.f32 %v2027_v54, 0.0 }
 0x1ea   : > { %v1539_v13 = vpop.f32.mrf.mxu0  ;;  %v2030_v53 = vpop.f32.mrf.mxu1  ;;  %2762 = vmatmul.mubr.bf16.gmra.mxu0 %v2445_v20  ;;  %v2325_v60 = vmax.f32 %v2025_v22, 0.0 }
 0x1eb   : > { %v1540_v63 = vadd.f32 %v1539_v13, %v12610_v51  ;;  %v2031_v10 = vadd.f32 %v2030_v53, %v12862_v12  ;;  %2272 = vmatprep.mubr.bf16.mxu1 %v1749_v11  ;;  %v2327_v35 = vmax.f32 %v2029_v6, 0.0  ;;  %v1681_v20 = vmax.f32 %v1538_v7, 0.0 }
 0x1ec   : > { %v1541_v2 = vpop.f32.mrf.mxu0  ;;  %v2034_v45 = vpop.f32.mrf.mxu1  ;;  %2273 = vmatmul.mubr.bf16.gmra.mxu1 %v1748_v3  ;;  %v1680_v53 = vmax.f32 %v1536_v32, 0.0 }
 0x1ed   : > { %v2328_v26 = vmax.f32 %v2031_v10, 0.0  ;;  %v1542_v50 = vadd.f32 %v1541_v2, %v12604_v47  ;;  %v1682_v59 = vmax.f32 %v1540_v63, 0.0  ;;  %v2447_v11 = vpack.c.bf16 %v2327_v35, %v2325_v60 }
 0x1ee   : > { %v1545_v48 = vpop.f32.mrf.mxu0  ;;  %v2036_v57 = vpop.f32.mrf.mxu1  ;;  %v2035_v2 = vadd.f32 %v2034_v45, %v12865_v27 }
 0x1ef   : > { %v1683_v44 = vmax.f32 %v1542_v50, 0.0  ;;  %v2448_v13 = vpack.c.bf16 %v2328_v26, %v2326_v38  ;;  %v2037_v33 = vadd.f32 %v2036_v57, %v12862_v12  ;;  %v1750_v54 = vpack.c.bf16 %v1682_v59, %v1680_v53 }
 0x1f0   : > { %v1547_v14 = vpop.f32.mrf.mxu0  ;;  %v2038_v0 = vpop.f32.mrf.mxu1  ;;  %v1546_v7 = vadd.f32 %v1545_v48, %v12610_v51  ;;  %v11408_v48 = vld [vmem:[%s17227_s30 + $0x70] ss:$8 sps:$4 sm:$0xff]   ;;  %s17234_s30 = sld [smem:[#allocation122_spill]] }
 0x1f1   : > { %v2039_v29 = vadd.f32 %v2038_v0, %v12865_v27  ;;  %2771 = vmatprep.mubr.bf16.mxu0 %v2448_v13  ;;  %v1751_v3 = vpack.c.bf16 %v1683_v44, %v1681_v20  ;;  %v1548_v32 = vadd.f32 %v1547_v14, %v12604_v47  ;;  %v2330_v60 = vmax.f32 %v2037_v33, 0.0  ;;  %v11410_v14 = vld [vmem:[%s17228_s3 + $0x74] ss:$8 sps:$4 sm:$0xff]  }
 0x1f2   : > { %v1549_v6 = vpop.f32.mrf.mxu0  ;;  %v2040_v10 = vpop.f32.mrf.mxu1  ;;  %2772 = vmatmul.mubr.bf16.gmra.mxu0 %v2447_v11  ;;  %v2329_v20 = vmax.f32 %v2035_v2, 0.0  ;;  %v1684_v13 = vmax.f32 %v1546_v7, 0.0  ;;  %4207 = vmatprep.subr.bf16.mxu0 %v11410_v14  ;;  %v11413_v2 = vld [vmem:[%s17223_s7 + $0xa4] ss:$8 sps:$4 sm:$0xff]  }
 0x1f3   : > { %v1550_v22 = vadd.f32 %v1549_v6, %v12610_v51  ;;  %v2041_v63 = vadd.f32 %v2040_v10, %v12862_v12  ;;  %2282 = vmatprep.mubr.bf16.mxu1 %v1751_v3  ;;  %v2331_v50 = vmax.f32 %v2039_v29, 0.0  ;;  %v1685_v53 = vmax.f32 %v1548_v32, 0.0  ;;  %4208 = vmatpush1.bf16.msra.mxu0 %v11408_v48 }
 0x1f4   : > { %v1551_v35 = vpop.f32.mrf.mxu0  ;;  %v2044_v26 = vpop.f32.mrf.mxu1  ;;  %2283 = vmatmul.mubr.bf16.gmra.mxu1 %v1750_v54  ;;  %v11411_v54 = vld [vmem:[%s17223_s7 + $0xa0] ss:$8 sps:$4 sm:$0xff]   ;;  %3484 = vmatprep.subr.bf16.mxu1 %v11413_v2 }
 0x1f5   : > { %v2332_v38 = vmax.f32 %v2041_v63, 0.0  ;;  %v1552_v57 = vadd.f32 %v1551_v35, %v12604_v47  ;;  %v1686_v59 = vmax.f32 %v1550_v22, 0.0  ;;  %v2449_v10 = vpack.c.bf16 %v2331_v50, %v2329_v20  ;;  %3485 = vmatpush2.bf16.msra.mxu1 %v11411_v54 }
 0x1f6   : > { %v1555_v45 = vpop.f32.mrf.mxu0  ;;  %v2046_v44 = vpop.f32.mrf.mxu1  ;;  %v2045_v63 = vadd.f32 %v2044_v26, %v12865_v27 }
 0x1f7   : > { %v1687_v0 = vmax.f32 %v1552_v57, 0.0  ;;  %v2450_v6 = vpack.c.bf16 %v2332_v38, %v2330_v60  ;;  %v2047_v33 = vadd.f32 %v2046_v44, %v12862_v12  ;;  %v1752_v22 = vpack.c.bf16 %v1686_v59, %v1684_v13 }
 0x1f8   : > { %v1557_v11 = vpop.f32.mrf.mxu0  ;;  %v2048_v29 = vpop.f32.mrf.mxu1  ;;  %v1556_v60 = vadd.f32 %v1555_v45, %v12610_v51  ;;  %v2333_v48 = vmax.f32 %v2045_v63, 0.0 }
 0x1f9   : > { %v2049_v3 = vadd.f32 %v2048_v29, %v12865_v27  ;;  %2781 = vmatprep.mubr.bf16.mxu0 %v2450_v6  ;;  %v1753_v35 = vpack.c.bf16 %v1687_v0, %v1685_v53  ;;  %v1558_v50 = vadd.f32 %v1557_v11, %v12604_v47  ;;  %v2334_v26 = vmax.f32 %v2047_v33, 0.0 }
 0x1fa   : > { %v1559_v7 = vpop.f32.mrf.mxu0  ;;  %v2050_v32 = vpop.f32.mrf.mxu1  ;;  %2782 = vmatmul.mubr.bf16.gmra.mxu0 %v2449_v10  ;;  %v1688_v10 = vmax.f32 %v1556_v60, 0.0 }
 0x1fb   : > { %v1560_v38 = vadd.f32 %v1559_v7, %v12610_v51  ;;  %v2051_v57 = vadd.f32 %v2050_v32, %v12862_v12  ;;  %2292 = vmatprep.mubr.bf16.mxu1 %v1753_v35  ;;  %v2335_v20 = vmax.f32 %v2049_v3, 0.0  ;;  %v1689_v53 = vmax.f32 %v1558_v50, 0.0 }
 0x1fc   : > { %v1561_v44 = vpop.f32.mrf.mxu0  ;;  %v2054_v59 = vpop.f32.mrf.mxu1  ;;  %2293 = vmatmul.mubr.bf16.gmra.mxu1 %v1752_v22 }
 0x1fd   : > { %v2336_v14 = vmax.f32 %v2051_v57, 0.0  ;;  %v1562_v0 = vadd.f32 %v1561_v44, %v12604_v47  ;;  %v1690_v11 = vmax.f32 %v1560_v38, 0.0  ;;  %v2451_v7 = vpack.c.bf16 %v2335_v20, %v2333_v48  ;;  %v11414_v44 = vld [vmem:[%s17228_s3 + $0x60] ss:$8 sps:$4 sm:$0xff]   ;;  %v11417_v48 = vld [vmem:[%s17223_s7 + $0x90] ss:$8 sps:$4 sm:$0xff]  }
 0x1fe   : > { %v2056_v13 = vpop.f32.mrf.mxu1  ;;  %v2055_v47 = vadd.f32 %v2054_v59, %v12865_v27  ;;  %v11416_v59 = vld [vmem:[%s17228_s3 + $0x64] ss:$8 sps:$4 sm:$0xff]  }
 0x1ff   : > { %v1691_v29 = vmax.f32 %v1562_v0, 0.0  ;;  %v2452_v6 = vpack.c.bf16 %v2336_v14, %v2334_v26  ;;  %v2057_v51 = vadd.f32 %v2056_v13, %v12862_v12  ;;  %v1754_v54 = vpack.c.bf16 %v1690_v11, %v1688_v10  ;;  %4209 = vmatprep.subr.bf16.mxu0 %v11416_v59  ;;  %v11419_v13 = vld [vmem:[%s17223_s7 + $0x94] ss:$8 sps:$4 sm:$0xff]  }
 0x200   : > { %v2058_v2 = vpop.f32.mrf.mxu1  ;;  %v2337_v57 = vmax.f32 %v2055_v47, 0.0  ;;  %4210 = vmatpush1.bf16.msra.mxu0 %v11414_v44  ;;  %3486 = vmatprep.subr.bf16.mxu1 %v11419_v13 }
 0x201   : > { %v2059_v45 = vadd.f32 %v2058_v2, %v12865_v27  ;;  %2791 = vmatprep.mubr.bf16.mxu0 %v2452_v6  ;;  %v1755_v33 = vpack.c.bf16 %v1691_v29, %v1689_v53  ;;  %v2338_v32 = vmax.f32 %v2057_v51, 0.0  ;;  %3487 = vmatpush2.bf16.msra.mxu1 %v11417_v48 }
 0x202   : > { %v2060_v3 = vpop.f32.mrf.mxu1  ;;  %2792 = vmatmul.mubr.bf16.gmra.mxu0 %v2451_v7 }
 0x203   : > { %v2061_v22 = vadd.f32 %v2060_v3, %v12862_v12  ;;  %2302 = vmatprep.mubr.bf16.mxu1 %v1755_v33  ;;  %v2339_v35 = vmax.f32 %v2059_v45, 0.0 }
 0x204   : > { %v2064_v63 = vpop.f32.mrf.mxu1  ;;  %2303 = vmatmul.mubr.bf16.gmra.mxu1 %v1754_v54 }
 0x205   : > { %v2340_v50 = vmax.f32 %v2061_v22, 0.0  ;;  %v2453_v20 = vpack.c.bf16 %v2339_v35, %v2337_v57  ;;  %v2065_v11 = vadd.f32 %v2064_v63, %v12865_v27 }
 0x206   : > { %v2066_v38 = vpop.f32.mrf.mxu1 }
 0x207   : > { %v2454_v60 = vpack.c.bf16 %v2340_v50, %v2338_v32  ;;  %v2067_v14 = vadd.f32 %v2066_v38, %v12862_v12  ;;  %v2341_v45 = vmax.f32 %v2065_v11, 0.0  ;;  %v11423_v11 = vld [vmem:[%s17223_s7 + $0x80] ss:$8 sps:$4 sm:$0xff]  }
 0x208   : > { %v2068_v26 = vpop.f32.mrf.mxu1 }
 0x209   : > { %v2069_v0 = vadd.f32 %v2068_v26, %v12865_v27  ;;  %2801 = vmatprep.mubr.bf16.mxu0 %v2454_v60  ;;  %v2342_v10 = vmax.f32 %v2067_v14, 0.0  ;;  %v11422_v14 = vld [vmem:[%s17228_s3 + $0x54] ss:$8 sps:$4 sm:$0xff]  }
 0x20a   : > { %v2070_v53 = vpop.f32.mrf.mxu1  ;;  %2802 = vmatmul.mubr.bf16.gmra.mxu0 %v2453_v20  ;;  %v11420_v20 = vld [vmem:[%s17228_s3 + $0x50] ss:$8 sps:$4 sm:$0xff]   ;;  %4211 = vmatprep.subr.bf16.mxu0 %v11422_v14 }
 0x20b   : > { %v2071_v29 = vadd.f32 %v2070_v53, %v12862_v12  ;;  %v2343_v2 = vmax.f32 %v2069_v0, 0.0  ;;  %4212 = vmatpush1.bf16.msra.mxu0 %v11420_v20 }
 0x20c   : > { %v2074_v6 = vpop.f32.mrf.mxu1 }
 0x20d   : > { %v2344_v7 = vmax.f32 %v2071_v29, 0.0  ;;  %v2455_v54 = vpack.c.bf16 %v2343_v2, %v2341_v45  ;;  %v2075_v32 = vadd.f32 %v2074_v6, %v12865_v27  ;;  %v11425_v29 = vld [vmem:[%s17223_s7 + $0x84] ss:$8 sps:$4 sm:$0xff]  }
 0x20e   : > { %v2076_v51 = vpop.f32.mrf.mxu1  ;;  %3488 = vmatprep.subr.bf16.mxu1 %v11425_v29 }
 0x20f   : > { %v2456_v33 = vpack.c.bf16 %v2344_v7, %v2342_v10  ;;  %v2077_v47 = vadd.f32 %v2076_v51, %v12862_v12  ;;  %v2345_v59 = vmax.f32 %v2075_v32, 0.0  ;;  %3489 = vmatpush2.bf16.msra.mxu1 %v11423_v11 }
 0x210   : > { %v2078_v3 = vpop.f32.mrf.mxu1 }
 0x211   : > { %v2079_v22 = vadd.f32 %v2078_v3, %v12865_v27  ;;  %2811 = vmatprep.mubr.bf16.mxu0 %v2456_v33  ;;  %v2346_v38 = vmax.f32 %v2077_v47, 0.0 }
 0x212   : > { %v2080_v63 = vpop.f32.mrf.mxu1  ;;  %2812 = vmatmul.mubr.bf16.gmra.mxu0 %v2455_v54 }
 0x213   : > { %v2081_v35 = vadd.f32 %v2080_v63, %v12862_v12  ;;  %v2347_v57 = vmax.f32 %v2079_v22, 0.0 }
 0x214   : > { %v2084_v50 = vpop.f32.mrf.mxu1 }
 0x215   : > { %v2348_v60 = vmax.f32 %v2081_v35, 0.0  ;;  %v2457_v48 = vpack.c.bf16 %v2347_v57, %v2345_v59  ;;  %v2085_v10 = vadd.f32 %v2084_v50, %v12865_v27 }
 0x216   : > { %v2086_v44 = vpop.f32.mrf.mxu1 }
 0x217   : > { %v2458_v26 = vpack.c.bf16 %v2348_v60, %v2346_v38  ;;  %v2087_v13 = vadd.f32 %v2086_v44, %v12862_v12  ;;  %v2349_v54 = vmax.f32 %v2085_v10, 0.0 }
 0x218   : > { %v2088_v0 = vpop.f32.mrf.mxu1 }
 0x219   : > { %v2089_v53 = vadd.f32 %v2088_v0, %v12865_v27  ;;  %2821 = vmatprep.mubr.bf16.mxu0 %v2458_v26  ;;  %v2350_v51 = vmax.f32 %v2087_v13, 0.0  ;;  %v11426_v13 = vld [vmem:[%s17228_s3 + $0x40] ss:$8 sps:$4 sm:$0xff]  }
 0x21a   : > { %v2090_v6 = vpop.f32.mrf.mxu1  ;;  %2822 = vmatmul.mubr.bf16.gmra.mxu0 %v2457_v48 }
 0x21b   : > { %v2091_v2 = vadd.f32 %v2090_v6, %v12862_v12  ;;  %v2351_v45 = vmax.f32 %v2089_v53, 0.0  ;;  %v11428_v53 = vld [vmem:[%s17228_s3 + $0x44] ss:$8 sps:$4 sm:$0xff]  }
 0x21c   : > { %v2094_v7 = vpop.f32.mrf.mxu1  ;;  %4213 = vmatprep.subr.bf16.mxu0 %v11428_v53  ;;  %v11429_v53 = vld [vmem:[%s17228_s3 + $0x30] ss:$8 sps:$4 sm:$0xff]  }
 0x21d   : > { %v2352_v33 = vmax.f32 %v2091_v2, 0.0  ;;  %v2459_v63 = vpack.c.bf16 %v2351_v45, %v2349_v54  ;;  %v2095_v38 = vadd.f32 %v2094_v7, %v12865_v27  ;;  %4214 = vmatpush1.bf16.msra.mxu0 %v11426_v13 }
 0x21e   : > { %v2096_v3 = vpop.f32.mrf.mxu1 }
 0x21f   : > { %v2460_v47 = vpack.c.bf16 %v2352_v33, %v2350_v51  ;;  %v2097_v32 = vadd.f32 %v2096_v3, %v12862_v12  ;;  %v2353_v14 = vmax.f32 %v2095_v38, 0.0 }
 0x220   : > { %v2098_v22 = vpop.f32.mrf.mxu1 }
 0x221   : > { %v2099_v35 = vadd.f32 %v2098_v22, %v12865_v27  ;;  %2831 = vmatprep.mubr.bf16.mxu0 %v2460_v47  ;;  %v2354_v44 = vmax.f32 %v2097_v32, 0.0 }
 0x222   : > { %v2100_v50 = vpop.f32.mrf.mxu1  ;;  %2832 = vmatmul.mubr.bf16.gmra.mxu0 %v2459_v63 }
 0x223   : > { %v2101_v57 = vadd.f32 %v2100_v50, %v12862_v12  ;;  %v2355_v59 = vmax.f32 %v2099_v35, 0.0 }
 0x224   : > { %v2104_v60 = vpop.f32.mrf.mxu1 }
 0x225   : > { %v2356_v26 = vmax.f32 %v2101_v57, 0.0  ;;  %v2461_v11 = vpack.c.bf16 %v2355_v59, %v2353_v14  ;;  %v2105_v2 = vadd.f32 %v2104_v60, %v12865_v27 }
 0x226   : > { %v2106_v20 = vpop.f32.mrf.mxu1 }
 0x227   : > { %v2462_v0 = vpack.c.bf16 %v2356_v26, %v2354_v44  ;;  %v2107_v29 = vadd.f32 %v2106_v20, %v12862_v12  ;;  %v2357_v47 = vmax.f32 %v2105_v2, 0.0 }
 0x228   : > { %v2108_v48 = vpop.f32.mrf.mxu1 }
 0x229   : > { %v2109_v6 = vadd.f32 %v2108_v48, %v12865_v27  ;;  %2841 = vmatprep.mubr.bf16.mxu0 %v2462_v0  ;;  %v2358_v45 = vmax.f32 %v2107_v29, 0.0 }
 0x22a   : > { %v2110_v10 = vpop.f32.mrf.mxu1  ;;  %2842 = vmatmul.mubr.bf16.gmra.mxu0 %v2461_v11  ;;  %v11431_v11 = vld [vmem:[%s17228_s3 + $0x34] ss:$8 sps:$4 sm:$0xff]  }
 0x22b   : > { %v2111_v7 = vadd.f32 %v2110_v10, %v12862_v12  ;;  %v2359_v33 = vmax.f32 %v2109_v6, 0.0  ;;  %4215 = vmatprep.subr.bf16.mxu0 %v11431_v11  ;;  %v11432_v11 = vld [vmem:[%s17228_s3 + $0x20] ss:$8 sps:$4 sm:$0xff]  }
 0x22c   : > { %v2114_v51 = vpop.f32.mrf.mxu1  ;;  %4216 = vmatpush1.bf16.msra.mxu0 %v11429_v53 }
 0x22d   : > { %v2360_v3 = vmax.f32 %v2111_v7, 0.0  ;;  %v2463_v32 = vpack.c.bf16 %v2359_v33, %v2357_v47  ;;  %v2115_v57 = vadd.f32 %v2114_v51, %v12865_v27 }
 0x22e   : > { %v2116_v54 = vpop.f32.mrf.mxu1 }
 0x22f   : > { %v2464_v22 = vpack.c.bf16 %v2360_v3, %v2358_v45  ;;  %v2117_v35 = vadd.f32 %v2116_v54, %v12862_v12  ;;  %v2361_v0 = vmax.f32 %v2115_v57, 0.0 }
 0x230   : > { %v2118_v63 = vpop.f32.mrf.mxu1 }
 0x231   : > { %v2119_v50 = vadd.f32 %v2118_v63, %v12865_v27  ;;  %2851 = vmatprep.mubr.bf16.mxu0 %v2464_v22  ;;  %v2362_v59 = vmax.f32 %v2117_v35, 0.0 }
 0x232   : > { %v2120_v38 = vpop.f32.mrf.mxu1  ;;  %2852 = vmatmul.mubr.bf16.gmra.mxu0 %v2463_v32 }
 0x233   : > { %v2121_v60 = vadd.f32 %v2120_v38, %v12862_v12  ;;  %v2363_v26 = vmax.f32 %v2119_v50, 0.0 }
 0x234   : > { %v2124_v44 = vpop.f32.mrf.mxu1 }
 0x235   : > { %v2364_v20 = vmax.f32 %v2121_v60, 0.0  ;;  %v2465_v29 = vpack.c.bf16 %v2363_v26, %v2361_v0  ;;  %v2125_v7 = vadd.f32 %v2124_v44, %v12865_v27 }
 0x236   : > { %v2126_v14 = vpop.f32.mrf.mxu1 }
 0x237   : > { %v2466_v48 = vpack.c.bf16 %v2364_v20, %v2362_v59  ;;  %v2127_v6 = vadd.f32 %v2126_v14, %v12862_v12  ;;  %v2365_v22 = vmax.f32 %v2125_v7, 0.0 }
 0x238   : > { %v2128_v13 = vpop.f32.mrf.mxu1 }
 0x239   : > { %v2129_v10 = vadd.f32 %v2128_v13, %v12865_v27  ;;  %2861 = vmatprep.mubr.bf16.mxu0 %v2466_v48  ;;  %v2366_v33 = vmax.f32 %v2127_v6, 0.0 }
 0x23a   : > { %v2130_v2 = vpop.f32.mrf.mxu1  ;;  %2862 = vmatmul.mubr.bf16.gmra.mxu0 %v2465_v29  ;;  %v11434_v29 = vld [vmem:[%s17228_s3 + $0x24] ss:$8 sps:$4 sm:$0xff]  }
 0x23b   : > { %v2131_v51 = vadd.f32 %v2130_v2, %v12862_v12  ;;  %v2367_v3 = vmax.f32 %v2129_v10, 0.0  ;;  %4217 = vmatprep.subr.bf16.mxu0 %v11434_v29  ;;  %v11435_v29 = vld [vmem:[%s17228_s3 + $0x10] ss:$8 sps:$4 sm:$0xff]  }
 0x23c   : > { %v2134_v45 = vpop.f32.mrf.mxu1  ;;  %4218 = vmatpush1.bf16.msra.mxu0 %v11432_v11 }
 0x23d   : > { %v2368_v54 = vmax.f32 %v2131_v51, 0.0  ;;  %v2467_v35 = vpack.c.bf16 %v2367_v3, %v2365_v22  ;;  %v2135_v60 = vadd.f32 %v2134_v45, %v12865_v27 }
 0x23e   : > { %v2136_v47 = vpop.f32.mrf.mxu1 }
 0x23f   : > { %v2468_v63 = vpack.c.bf16 %v2368_v54, %v2366_v33  ;;  %v2137_v50 = vadd.f32 %v2136_v47, %v12862_v12  ;;  %v2369_v48 = vmax.f32 %v2135_v60, 0.0 }
 0x240   : > { %v2138_v32 = vpop.f32.mrf.mxu1 }
 0x241   : > { %v2139_v38 = vadd.f32 %v2138_v32, %v12865_v27  ;;  %2871 = vmatprep.mubr.bf16.mxu0 %v2468_v63  ;;  %v2370_v26 = vmax.f32 %v2137_v50, 0.0 }
 0x242   : > { %v2140_v57 = vpop.f32.mrf.mxu1  ;;  %2872 = vmatmul.mubr.bf16.gmra.mxu0 %v2467_v35 }
 0x243   : > { %v2141_v44 = vadd.f32 %v2140_v57, %v12862_v12  ;;  %v2371_v20 = vmax.f32 %v2139_v38, 0.0 }
 0x244   : > { %v2144_v59 = vpop.f32.mrf.mxu1 }
 0x245   : > { %v2372_v14 = vmax.f32 %v2141_v44, 0.0  ;;  %v2469_v6 = vpack.c.bf16 %v2371_v20, %v2369_v48  ;;  %v2145_v51 = vadd.f32 %v2144_v59, %v12865_v27 }
 0x246   : > { %v2146_v0 = vpop.f32.mrf.mxu1 }
 0x247   : > { %v2470_v13 = vpack.c.bf16 %v2372_v14, %v2370_v26  ;;  %v2147_v10 = vadd.f32 %v2146_v0, %v12862_v12  ;;  %v2373_v63 = vmax.f32 %v2145_v51, 0.0 }
 0x248   : > { %v2148_v53 = vpop.f32.mrf.mxu1 }
 0x249   : > { %v2149_v2 = vadd.f32 %v2148_v53, %v12865_v27  ;;  %2881 = vmatprep.mubr.bf16.mxu0 %v2470_v13  ;;  %v2374_v3 = vmax.f32 %v2147_v10, 0.0 }
 0x24a   : > { %v2150_v7 = vpop.f32.mrf.mxu1  ;;  %2882 = vmatmul.mubr.bf16.gmra.mxu0 %v2469_v6  ;;  %v11437_v6 = vld [vmem:[%s17228_s3 + $0x14] ss:$8 sps:$4 sm:$0xff]  }
 0x24b   : > { %v2151_v45 = vadd.f32 %v2150_v7, %v12862_v12  ;;  %v2375_v54 = vmax.f32 %v2149_v2, 0.0  ;;  %4219 = vmatprep.subr.bf16.mxu0 %v11437_v6  ;;  %v11438_v6 = vld [vmem:[%s17228_s3] ss:$8 sps:$4 sm:$0xff]  }
 0x24c   : > { %v2154_v33 = vpop.f32.mrf.mxu1  ;;  %4220 = vmatpush1.bf16.msra.mxu0 %v11435_v29 }
 0x24d   : > { %v2376_v47 = vmax.f32 %v2151_v45, 0.0  ;;  %v2471_v50 = vpack.c.bf16 %v2375_v54, %v2373_v63  ;;  %v2155_v44 = vadd.f32 %v2154_v33, %v12865_v27 }
 0x24e   : > { %v2156_v22 = vpop.f32.mrf.mxu1 }
 0x24f   : > { %v2472_v32 = vpack.c.bf16 %v2376_v47, %v2374_v3  ;;  %v2157_v38 = vadd.f32 %v2156_v22, %v12862_v12  ;;  %v2377_v13 = vmax.f32 %v2155_v44, 0.0 }
 0x250   : > { %v2158_v35 = vpop.f32.mrf.mxu1 }
 0x251   : > { %v2159_v57 = vadd.f32 %v2158_v35, %v12865_v27  ;;  %2891 = vmatprep.mubr.bf16.mxu0 %v2472_v32  ;;  %v2378_v20 = vmax.f32 %v2157_v38, 0.0 }
 0x252   : > { %v2160_v60 = vpop.f32.mrf.mxu1  ;;  %2892 = vmatmul.mubr.bf16.gmra.mxu0 %v2471_v50 }
 0x253   : > { %v2161_v59 = vadd.f32 %v2160_v60, %v12862_v12  ;;  %v2379_v14 = vmax.f32 %v2159_v57, 0.0 }
 0x254   : > { %v2164_v26 = vpop.f32.mrf.mxu1 }
 0x255   : > { %v2380_v0 = vmax.f32 %v2161_v59, 0.0  ;;  %v2473_v10 = vpack.c.bf16 %v2379_v14, %v2377_v13  ;;  %v2165_v45 = vadd.f32 %v2164_v26, %v12865_v27 }
 0x256   : > { %v2166_v48 = vpop.f32.mrf.mxu1 }
 0x257   : > { %v2474_v53 = vpack.c.bf16 %v2380_v0, %v2378_v20  ;;  %v2167_v2 = vadd.f32 %v2166_v48, %v12862_v12  ;;  %v2381_v32 = vmax.f32 %v2165_v45, 0.0 }
 0x258   : > { %v2168_v11 = vpop.f32.mrf.mxu1 }
 0x259   : > { %v2169_v7 = vadd.f32 %v2168_v11, %v12865_v27  ;;  %2901 = vmatprep.mubr.bf16.mxu0 %v2474_v53  ;;  %v2382_v54 = vmax.f32 %v2167_v2, 0.0 }
 0x25a   : > { %v2170_v51 = vpop.f32.mrf.mxu1  ;;  %2902 = vmatmul.mubr.bf16.gmra.mxu0 %v2473_v10  ;;  %v11440_v10 = vld [vmem:[%s17228_s3 + $0x4] ss:$8 sps:$4 sm:$0xff]  }
 0x25b   : > { %v2171_v33 = vadd.f32 %v2170_v51, %v12862_v12  ;;  %v2383_v47 = vmax.f32 %v2169_v7, 0.0  ;;  %4221 = vmatprep.subr.bf16.mxu0 %v11440_v10  ;;  %v11441_v10 = vld [vmem:[%s17228_s3 + $0xf0] ss:$8 sps:$4 sm:$0xff]  }
 0x25c   : > { %v2174_v3 = vpop.f32.mrf.mxu1  ;;  %4222 = vmatpush1.bf16.msra.mxu0 %v11438_v6 }
 0x25d   : > { %v2384_v22 = vmax.f32 %v2171_v33, 0.0  ;;  %v2475_v38 = vpack.c.bf16 %v2383_v47, %v2381_v32  ;;  %v2175_v59 = vadd.f32 %v2174_v3, %v12865_v27 }
 0x25e   : > { %v2176_v63 = vpop.f32.mrf.mxu1 }
 0x25f   : > { %v2476_v35 = vpack.c.bf16 %v2384_v22, %v2382_v54  ;;  %v2177_v57 = vadd.f32 %v2176_v63, %v12862_v12  ;;  %v2385_v53 = vmax.f32 %v2175_v59, 0.0 }
 0x260   : > { %v2178_v50 = vpop.f32.mrf.mxu1 }
 0x261   : > { %v2179_v60 = vadd.f32 %v2178_v50, %v12865_v27  ;;  %2911 = vmatprep.mubr.bf16.mxu0 %v2476_v35  ;;  %v2386_v14 = vmax.f32 %v2177_v57, 0.0 }
 0x262   : > { %v2180_v44 = vpop.f32.mrf.mxu1  ;;  %2912 = vmatmul.mubr.bf16.gmra.mxu0 %v2475_v38 }
 0x263   : > { %v2181_v26 = vadd.f32 %v2180_v44, %v12862_v12  ;;  %v2387_v0 = vmax.f32 %v2179_v60, 0.0 }
 0x264   : > { %v2184_v20 = vpop.f32.mrf.mxu1 }
 0x265   : > { %v2388_v48 = vmax.f32 %v2181_v26, 0.0  ;;  %v2477_v2 = vpack.c.bf16 %v2387_v0, %v2385_v53  ;;  %v2185_v33 = vadd.f32 %v2184_v20, %v12865_v27 }
 0x266   : > { %v2186_v13 = vpop.f32.mrf.mxu1 }
 0x267   : > { %v2478_v11 = vpack.c.bf16 %v2388_v48, %v2386_v14  ;;  %v2187_v7 = vadd.f32 %v2186_v13, %v12862_v12  ;;  %v2389_v35 = vmax.f32 %v2185_v33, 0.0 }
 0x268   : > { %v2188_v29 = vpop.f32.mrf.mxu1 }
 0x269   : > { %v2189_v51 = vadd.f32 %v2188_v29, %v12865_v27  ;;  %2921 = vmatprep.mubr.bf16.mxu0 %v2478_v11  ;;  %v2390_v47 = vmax.f32 %v2187_v7, 0.0 }
 0x26a   : > { %v2190_v45 = vpop.f32.mrf.mxu1  ;;  %2922 = vmatmul.mubr.bf16.gmra.mxu0 %v2477_v2  ;;  %v11443_v2 = vld [vmem:[%s17228_s3 + $0xf4] ss:$8 sps:$4 sm:$0xff]  }
 0x26b   : > { %v2191_v3 = vadd.f32 %v2190_v45, %v12862_v12  ;;  %v2391_v22 = vmax.f32 %v2189_v51, 0.0  ;;  %4223 = vmatprep.subr.bf16.mxu0 %v11443_v2  ;;  %v11444_v2 = vld [vmem:[%s17228_s3 + $0xe0] ss:$8 sps:$4 sm:$0xff]  }
 0x26c   : > { %v2194_v54 = vpop.f32.mrf.mxu1  ;;  %4224 = vmatpush2.bf16.msra.mxu0 %v11441_v10 }
 0x26d   : > { %v2392_v63 = vmax.f32 %v2191_v3, 0.0  ;;  %v2479_v57 = vpack.c.bf16 %v2391_v22, %v2389_v35  ;;  %v2195_v26 = vadd.f32 %v2194_v54, %v12865_v27 }
 0x26e   : > { %v2196_v32 = vpop.f32.mrf.mxu1 }
 0x26f   : > { %v2480_v50 = vpack.c.bf16 %v2392_v63, %v2390_v47  ;;  %v2197_v60 = vadd.f32 %v2196_v32, %v12862_v12  ;;  %v2393_v11 = vmax.f32 %v2195_v26, 0.0 }
 0x270   : > { %v2198_v38 = vpop.f32.mrf.mxu1 }
 0x271   : > { %v2199_v44 = vadd.f32 %v2198_v38, %v12865_v27  ;;  %2931 = vmatprep.mubr.bf16.mxu0 %v2480_v50  ;;  %v2394_v0 = vmax.f32 %v2197_v60, 0.0 }
 0x272   : > { %v2200_v59 = vpop.f32.mrf.mxu1  ;;  %2932 = vmatmul.mubr.bf16.gmra.mxu0 %v2479_v57 }
 0x273   : > { %v2201_v20 = vadd.f32 %v2200_v59, %v12862_v12  ;;  %v2395_v48 = vmax.f32 %v2199_v44, 0.0 }
 0x274   : > { %v2204_v14 = vpop.f32.mrf.mxu1 }
 0x275   : > { %v2396_v13 = vmax.f32 %v2201_v20, 0.0  ;;  %v2481_v7 = vpack.c.bf16 %v2395_v48, %v2393_v11  ;;  %v2205_v3 = vadd.f32 %v2204_v14, %v12865_v27 }
 0x276   : > { %v2206_v53 = vpop.f32.mrf.mxu1 }
 0x277   : > { %v2482_v29 = vpack.c.bf16 %v2396_v13, %v2394_v0  ;;  %v2207_v51 = vadd.f32 %v2206_v53, %v12862_v12  ;;  %v2397_v50 = vmax.f32 %v2205_v3, 0.0 }
 0x278   : > { %v2208_v6 = vpop.f32.mrf.mxu1 }
 0x279   : > { %v2209_v45 = vadd.f32 %v2208_v6, %v12865_v27  ;;  %2941 = vmatprep.mubr.bf16.mxu0 %v2482_v29  ;;  %v2398_v22 = vmax.f32 %v2207_v51, 0.0 }
 0x27a   : > { %v2210_v33 = vpop.f32.mrf.mxu1  ;;  %2942 = vmatmul.mubr.bf16.gmra.mxu0 %v2481_v7  ;;  %v11446_v7 = vld [vmem:[%s17228_s3 + $0xe4] ss:$8 sps:$4 sm:$0xff]  }
 0x27b   : > { %v2211_v54 = vadd.f32 %v2210_v33, %v12862_v12  ;;  %v2399_v63 = vmax.f32 %v2209_v45, 0.0  ;;  %4225 = vmatprep.subr.bf16.mxu0 %v11446_v7  ;;  %v11447_v7 = vld [vmem:[%s17228_s3 + $0xd0] ss:$8 sps:$4 sm:$0xff]  }
 0x27c   : > { %v2214_v47 = vpop.f32.mrf.mxu1  ;;  %4226 = vmatpush2.bf16.msra.mxu0 %v11444_v2 }
 0x27d   : > { %v2400_v32 = vmax.f32 %v2211_v54, 0.0  ;;  %v2483_v60 = vpack.c.bf16 %v2399_v63, %v2397_v50  ;;  %v2215_v20 = vadd.f32 %v2214_v47, %v12865_v27 }
 0x27e   : > { %v2216_v35 = vpop.f32.mrf.mxu1 }
 0x27f   : > { %v2484_v38 = vpack.c.bf16 %v2400_v32, %v2398_v22  ;;  %v2217_v44 = vadd.f32 %v2216_v35, %v12862_v12  ;;  %v2401_v29 = vmax.f32 %v2215_v20, 0.0 }
 0x280   : > { %v2218_v57 = vpop.f32.mrf.mxu1 }
 0x281   : > { %v2219_v59 = vadd.f32 %v2218_v57, %v12865_v27  ;;  %2951 = vmatprep.mubr.bf16.mxu0 %v2484_v38  ;;  %v2402_v48 = vmax.f32 %v2217_v44, 0.0 }
 0x282   : > { %v2220_v26 = vpop.f32.mrf.mxu1  ;;  %2952 = vmatmul.mubr.bf16.gmra.mxu0 %v2483_v60 }
 0x283   : > { %v2221_v14 = vadd.f32 %v2220_v26, %v12862_v12  ;;  %v2403_v13 = vmax.f32 %v2219_v59, 0.0 }
 0x284   : > { %v2224_v0 = vpop.f32.mrf.mxu1 }
 0x285   : > { %v2404_v53 = vmax.f32 %v2221_v14, 0.0  ;;  %v2485_v51 = vpack.c.bf16 %v2403_v13, %v2401_v29  ;;  %v2225_v54 = vadd.f32 %v2224_v0, %v12865_v27 }
 0x286   : > { %v2226_v11 = vpop.f32.mrf.mxu1 }
 0x287   : > { %v2486_v6 = vpack.c.bf16 %v2404_v53, %v2402_v48  ;;  %v2227_v45 = vadd.f32 %v2226_v11, %v12862_v12  ;;  %v2405_v38 = vmax.f32 %v2225_v54, 0.0 }
 0x288   : > { %v2228_v10 = vpop.f32.mrf.mxu1 }
 0x289   : > { %v2229_v33 = vadd.f32 %v2228_v10, %v12865_v27  ;;  %2961 = vmatprep.mubr.bf16.mxu0 %v2486_v6  ;;  %v2406_v63 = vmax.f32 %v2227_v45, 0.0 }
 0x28a   : > { %v2230_v3 = vpop.f32.mrf.mxu1  ;;  %2962 = vmatmul.mubr.bf16.gmra.mxu0 %v2485_v51  ;;  %v11449_v51 = vld [vmem:[%s17228_s3 + $0xd4] ss:$8 sps:$4 sm:$0xff]  }
 0x28b   : > { %v2231_v47 = vadd.f32 %v2230_v3, %v12862_v12  ;;  %v2407_v32 = vmax.f32 %v2229_v33, 0.0  ;;  %4227 = vmatprep.subr.bf16.mxu0 %v11449_v51 }
 0x28c   : > { %v2234_v22 = vpop.f32.mrf.mxu1  ;;  %4228 = vmatpush2.bf16.msra.mxu0 %v11447_v7 }
 0x28d   : > { %v2408_v35 = vmax.f32 %v2231_v47, 0.0  ;;  %v2487_v44 = vpack.c.bf16 %v2407_v32, %v2405_v38  ;;  %v2235_v14 = vadd.f32 %v2234_v22, %v12865_v27 }
 0x28e   : > { %v2236_v50 = vpop.f32.mrf.mxu1 }
 0x28f   : > { %v2488_v57 = vpack.c.bf16 %v2408_v35, %v2406_v63  ;;  %v2237_v59 = vadd.f32 %v2236_v50, %v12862_v12  ;;  %v2409_v6 = vmax.f32 %v2235_v14, 0.0  ;;  %v2537_v63 = vld [vmem:[%s17229_s9] sm:$0x3]  ;;  %s17369_s9 = sshll.u32 %s17610_s11, 3 }
 0x290   : > { %v2238_v60 = vpop.f32.mrf.mxu1 }
 0x291   : > { %v2239_v26 = vadd.f32 %v2238_v60, %v12865_v27  ;;  %2971 = vmatprep.mubr.bf16.mxu0 %v2488_v57  ;;  %v2410_v13 = vmax.f32 %v2237_v59, 0.0  ;;  %v13095_v60 = vrot.slane %v2537_v63, %v12588_v37  ;;  %v13098_v59 = vrot.slane %v2537_v63, %v12596_v42 }
 0x292   : > { %v2240_v20 = vpop.f32.mrf.mxu1  ;;  %2972 = vmatmul.mubr.bf16.gmra.mxu0 %v2487_v44 }
 0x293   : > { %v2241_v0 = vadd.f32 %v2240_v20, %v12862_v12  ;;  %v2411_v53 = vmax.f32 %v2239_v26, 0.0 }
 0x294   : > { %v2244_v48 = vpop.f32.mrf.mxu1 }
 0x295   : > { %v2412_v11 = vmax.f32 %v2241_v0, 0.0  ;;  %v2489_v45 = vpack.c.bf16 %v2411_v53, %v2409_v6  ;;  %v2245_v47 = vadd.f32 %v2244_v48, %v12865_v27 }
 0x296   : > { %v2246_v29 = vpop.f32.mrf.mxu1 }
 0x297   : > { %v2490_v10 = vpack.c.bf16 %v2412_v11, %v2410_v13  ;;  %v2247_v33 = vadd.f32 %v2246_v29, %v12862_v12  ;;  %v2413_v26 = vmax.f32 %v2245_v47, 0.0 }
 0x298   : > { %v2248_v2 = vpop.f32.mrf.mxu1 }
 0x299   : > { %v2249_v3 = vadd.f32 %v2248_v2, %v12865_v27  ;;  %2981 = vmatprep.mubr.bf16.mxu0 %v2490_v10  ;;  %v2414_v35 = vmax.f32 %v2247_v33, 0.0 }
 0x29a   : > { %v2250_v54 = vpop.f32.mrf.mxu1  ;;  %v2743_v32 = vpop.f32.mrf.mxu0  ;;  %2982 = vmatmul.mubr.bf16.gmra.mxu0 %v2489_v45 }
 0x29b   : > { %v2251_v22 = vadd.f32 %v2250_v54, %v12862_v12  ;;  %v2415_v50 = vmax.f32 %v2249_v3, 0.0  ;;  %v2744_v6 = vadd.f32 %v2743_v32, %v13098_v59 }
 0x29c   : > { %v2254_v57 = vpop.f32.mrf.mxu1  ;;  %v2745_v44 = vpop.f32.mrf.mxu0 }
 0x29d   : > { %v2416_v38 = vmax.f32 %v2251_v22, 0.0  ;;  %v2491_v13 = vpack.c.bf16 %v2415_v50, %v2413_v26  ;;  %v2746_v53 = vadd.f32 %v2745_v44, %v13095_v60  ;;  %v2255_v33 = vadd.f32 %v2254_v57, %v12865_v27  ;;  %v11450_v57 = vld [vmem:[%s17228_s3 + $0xc0] ss:$8 sps:$4 sm:$0xff]  }
 0x29e   : > { %v2256_v20 = vpop.f32.mrf.mxu1  ;;  %v2747_v14 = vpop.f32.mrf.mxu0  ;;  %v3062_v50 = vmax.f32 %v2744_v6, 0.0 }
 0x29f   : > { %v2492_v0 = vpack.c.bf16 %v2416_v38, %v2414_v35  ;;  %v2748_v48 = vadd.f32 %v2747_v14, %v13098_v59  ;;  %v2257_v7 = vadd.f32 %v2256_v20, %v12862_v12  ;;  %v3063_v22 = vmax.f32 %v2746_v53, 0.0 }
 0x2a0   : > { %v2258_v11 = vpop.f32.mrf.mxu1  ;;  %v2749_v29 = vpop.f32.mrf.mxu0  ;;  %v2417_v20 = vmax.f32 %v2255_v33, 0.0 }
 0x2a1   : > { %2991 = vmatprep.mubr.bf16.mxu0 %v2492_v0  ;;  %v2259_v10 = vadd.f32 %v2258_v11, %v12865_v27  ;;  %v2750_v2 = vadd.f32 %v2749_v29, %v13095_v60  ;;  %v3064_v3 = vmax.f32 %v2748_v48, 0.0  ;;  %v2418_v44 = vmax.f32 %v2257_v7, 0.0  ;;  %v11452_v48 = vld [vmem:[%s17228_s3 + $0xc4] ss:$8 sps:$4 sm:$0xff]  }
 0x2a2   : > { %v2260_v51 = vpop.f32.mrf.mxu1  ;;  %v2753_v45 = vpop.f32.mrf.mxu0  ;;  %2992 = vmatmul.mubr.bf16.gmra.mxu0 %v2491_v13  ;;  %4229 = vmatprep.subr.bf16.mxu0 %v11452_v48 }
 0x2a3   : > { %v3065_v54 = vmax.f32 %v2750_v2, 0.0  ;;  %v2261_v47 = vadd.f32 %v2260_v51, %v12862_v12  ;;  %v2419_v32 = vmax.f32 %v2259_v10, 0.0  ;;  %v3190_v11 = vpack.c.bf16 %v3064_v3, %v3062_v50  ;;  %4230 = vmatpush2.bf16.msra.mxu0 %v11450_v57 }
 0x2a4   : > { %v2264_v63 = vpop.f32.mrf.mxu1  ;;  %v2755_v35 = vpop.f32.mrf.mxu0  ;;  %v2754_v53 = vadd.f32 %v2753_v45, %v13098_v59 }
 0x2a5   : > { %v2420_v38 = vmax.f32 %v2261_v47, 0.0  ;;  %v3191_v0 = vpack.c.bf16 %v3065_v54, %v3063_v22  ;;  %v2756_v29 = vadd.f32 %v2755_v35, %v13095_v60  ;;  %v2493_v7 = vpack.c.bf16 %v2419_v32, %v2417_v20 }
 0x2a6   : > { %v2266_v26 = vpop.f32.mrf.mxu1  ;;  %v2757_v14 = vpop.f32.mrf.mxu0  ;;  %v2265_v45 = vadd.f32 %v2264_v63, %v12865_v27 }
 0x2a7   : > { %v2758_v13 = vadd.f32 %v2757_v14, %v13098_v59  ;;  %3490 = vmatprep.mubr.bf16.mxu1 %v3191_v0  ;;  %v2494_v2 = vpack.c.bf16 %v2420_v38, %v2418_v44  ;;  %v2267_v3 = vadd.f32 %v2266_v26, %v12862_v12  ;;  %v3067_v32 = vmax.f32 %v2756_v29, 0.0 }
 0x2a8   : > { %v2268_v6 = vpop.f32.mrf.mxu1  ;;  %v2759_v10 = vpop.f32.mrf.mxu0  ;;  %3491 = vmatmul.mubr.bf16.vlgmr.msra.gmra.mxu1 %v3190_v11  ;;  %v3066_v14 = vmax.f32 %v2754_v53, 0.0 }
 0x2a9   : > { %v2269_v51 = vadd.f32 %v2268_v6, %v12865_v27  ;;  %v2760_v33 = vadd.f32 %v2759_v10, %v13095_v60  ;;  %3001 = vmatprep.mubr.bf16.mxu0 %v2494_v2  ;;  %v3068_v22 = vmax.f32 %v2758_v13, 0.0  ;;  %v2422_v11 = vmax.f32 %v2267_v3, 0.0 }
 0x2aa   : > { %v2270_v54 = vpop.f32.mrf.mxu1  ;;  %v2763_v47 = vpop.f32.mrf.mxu0  ;;  %3002 = vmatmul.mubr.bf16.gmra.mxu0 %v2493_v7  ;;  %v2421_v10 = vmax.f32 %v2265_v45, 0.0 }
 0x2ab   : > { %v3069_v35 = vmax.f32 %v2760_v33, 0.0  ;;  %v2271_v50 = vadd.f32 %v2270_v54, %v12862_v12  ;;  %v2423_v0 = vmax.f32 %v2269_v51, 0.0  ;;  %v3192_v2 = vpack.c.bf16 %v3068_v22, %v3066_v14 }
 0x2ac   : > { %v2274_v38 = vpop.f32.mrf.mxu1  ;;  %v2765_v44 = vpop.f32.mrf.mxu0  ;;  %v2764_v54 = vadd.f32 %v2763_v47, %v13098_v59 }
 0x2ad   : > { %v2424_v20 = vmax.f32 %v2271_v50, 0.0  ;;  %v3193_v6 = vpack.c.bf16 %v3069_v35, %v3067_v32  ;;  %v2766_v63 = vadd.f32 %v2765_v44, %v13095_v60  ;;  %v2495_v29 = vpack.c.bf16 %v2423_v0, %v2421_v10 }
 0x2ae   : > { %v2276_v48 = vpop.f32.mrf.mxu1  ;;  %v2767_v26 = vpop.f32.mrf.mxu0  ;;  %v2275_v35 = vadd.f32 %v2274_v38, %v12865_v27  ;;  %v11453_v38 = vld [vmem:[%s17228_s3 + $0xb0] ss:$8 sps:$4 sm:$0xff]  }
 0x2af   : > { %v2768_v57 = vadd.f32 %v2767_v26, %v13098_v59  ;;  %3500 = vmatprep.mubr.bf16.mxu1 %v3193_v6  ;;  %v2496_v7 = vpack.c.bf16 %v2424_v20, %v2422_v11  ;;  %v2277_v3 = vadd.f32 %v2276_v48, %v12862_v12  ;;  %v3071_v14 = vmax.f32 %v2766_v63, 0.0 }
 0x2b0   : > { %v2278_v13 = vpop.f32.mrf.mxu1  ;;  %v2769_v33 = vpop.f32.mrf.mxu0  ;;  %3501 = vmatmul.mubr.bf16.gmra.mxu1 %v3192_v2  ;;  %v3070_v20 = vmax.f32 %v2764_v54, 0.0 }
 0x2b1   : > { %v2279_v53 = vadd.f32 %v2278_v13, %v12865_v27  ;;  %v2770_v51 = vadd.f32 %v2769_v33, %v13095_v60  ;;  %3011 = vmatprep.mubr.bf16.mxu0 %v2496_v7  ;;  %v3072_v50 = vmax.f32 %v2768_v57, 0.0  ;;  %v2426_v6 = vmax.f32 %v2277_v3, 0.0  ;;  %v11455_v57 = vld [vmem:[%s17228_s3 + $0xb4] ss:$8 sps:$4 sm:$0xff]  }
 0x2b2   : > { %v2280_v45 = vpop.f32.mrf.mxu1  ;;  %v2773_v22 = vpop.f32.mrf.mxu0  ;;  %3012 = vmatmul.mubr.bf16.gmra.mxu0 %v2495_v29  ;;  %v2425_v13 = vmax.f32 %v2275_v35, 0.0  ;;  %4231 = vmatprep.subr.bf16.mxu0 %v11455_v57 }
 0x2b3   : > { %v3073_v32 = vmax.f32 %v2770_v51, 0.0  ;;  %v2281_v44 = vadd.f32 %v2280_v45, %v12862_v12  ;;  %v2427_v11 = vmax.f32 %v2279_v53, 0.0  ;;  %v3194_v33 = vpack.c.bf16 %v3072_v50, %v3070_v20  ;;  %4232 = vmatpush2.bf16.msra.mxu0 %v11453_v38 }
 0x2b4   : > { %v2284_v0 = vpop.f32.mrf.mxu1  ;;  %v2775_v47 = vpop.f32.mrf.mxu0  ;;  %v2774_v63 = vadd.f32 %v2773_v22, %v13098_v59 }
 0x2b5   : > { %v2428_v26 = vmax.f32 %v2281_v44, 0.0  ;;  %v3195_v48 = vpack.c.bf16 %v3073_v32, %v3071_v14  ;;  %v2776_v29 = vadd.f32 %v2775_v47, %v13095_v60  ;;  %v2497_v3 = vpack.c.bf16 %v2427_v11, %v2425_v13 }
 0x2b6   : > { %v2286_v10 = vpop.f32.mrf.mxu1  ;;  %v2777_v2 = vpop.f32.mrf.mxu0  ;;  %v2285_v22 = vadd.f32 %v2284_v0, %v12865_v27 }
 0x2b7   : > { %v2778_v7 = vadd.f32 %v2777_v2, %v13098_v59  ;;  %3510 = vmatprep.mubr.bf16.mxu1 %v3195_v48  ;;  %v2498_v51 = vpack.c.bf16 %v2428_v26, %v2426_v6  ;;  %v2287_v50 = vadd.f32 %v2286_v10, %v12862_v12  ;;  %v3075_v11 = vmax.f32 %v2776_v29, 0.0 }
 0x2b8   : > { %v2288_v54 = vpop.f32.mrf.mxu1  ;;  %v2779_v53 = vpop.f32.mrf.mxu0  ;;  %3511 = vmatmul.mubr.bf16.gmra.mxu1 %v3194_v33  ;;  %v3074_v2 = vmax.f32 %v2774_v63, 0.0 }
 0x2b9   : > { %v2289_v45 = vadd.f32 %v2288_v54, %v12865_v27  ;;  %v2780_v35 = vadd.f32 %v2779_v53, %v13095_v60  ;;  %3021 = vmatprep.mubr.bf16.mxu0 %v2498_v51  ;;  %v3076_v14 = vmax.f32 %v2778_v7, 0.0  ;;  %v2430_v33 = vmax.f32 %v2287_v50, 0.0 }
 0x2ba   : > { %v2290_v32 = vpop.f32.mrf.mxu1  ;;  %v2783_v44 = vpop.f32.mrf.mxu0  ;;  %3022 = vmatmul.mubr.bf16.gmra.mxu0 %v2497_v3  ;;  %v2429_v53 = vmax.f32 %v2285_v22, 0.0 }
 0x2bb   : > { %v3077_v47 = vmax.f32 %v2780_v35, 0.0  ;;  %v2291_v20 = vadd.f32 %v2290_v32, %v12862_v12  ;;  %v2431_v48 = vmax.f32 %v2289_v45, 0.0  ;;  %v3196_v51 = vpack.c.bf16 %v3076_v14, %v3074_v2 }
 0x2bc   : > { %v2294_v26 = vpop.f32.mrf.mxu1  ;;  %v2785_v6 = vpop.f32.mrf.mxu0  ;;  %v2784_v32 = vadd.f32 %v2783_v44, %v13098_v59 }
 0x2bd   : > { %v2432_v13 = vmax.f32 %v2291_v20, 0.0  ;;  %v3197_v54 = vpack.c.bf16 %v3077_v47, %v3075_v11  ;;  %v2786_v0 = vadd.f32 %v2785_v6, %v13095_v60  ;;  %v2499_v29 = vpack.c.bf16 %v2431_v48, %v2429_v53 }
 0x2be   : > { %v2296_v57 = vpop.f32.mrf.mxu1  ;;  %v2787_v10 = vpop.f32.mrf.mxu0  ;;  %v2295_v50 = vadd.f32 %v2294_v26, %v12865_v27 }
 0x2bf   : > { %v2788_v38 = vadd.f32 %v2787_v10, %v13098_v59  ;;  %3520 = vmatprep.mubr.bf16.mxu1 %v3197_v54  ;;  %v2500_v3 = vpack.c.bf16 %v2432_v13, %v2430_v33  ;;  %v2297_v22 = vadd.f32 %v2296_v57, %v12862_v12  ;;  %v3079_v2 = vmax.f32 %v2786_v0, 0.0  ;;  %v11458_v0 = vld [vmem:[%s17228_s3 + $0xa4] ss:$8 sps:$4 sm:$0xff]  }
 0x2c0   : > { %v2298_v7 = vpop.f32.mrf.mxu1  ;;  %v2789_v35 = vpop.f32.mrf.mxu0  ;;  %3521 = vmatmul.mubr.bf16.gmra.mxu1 %v3196_v51  ;;  %v3078_v33 = vmax.f32 %v2784_v32, 0.0  ;;  %v2433_v54 = vmax.f32 %v2295_v50, 0.0  ;;  %4233 = vmatprep.subr.bf16.mxu0 %v11458_v0 }
 0x2c1   : > { %v2299_v63 = vadd.f32 %v2298_v7, %v12865_v27  ;;  %v2790_v45 = vadd.f32 %v2789_v35, %v13095_v60  ;;  %3031 = vmatprep.mubr.bf16.mxu0 %v2500_v3  ;;  %v3080_v20 = vmax.f32 %v2788_v38, 0.0  ;;  %v2434_v53 = vmax.f32 %v2297_v22, 0.0  ;;  %v11456_v3 = vld [vmem:[%s17228_s3 + $0xa0] ss:$8 sps:$4 sm:$0xff]  }
 0x2c2   : > { %v2300_v14 = vpop.f32.mrf.mxu1  ;;  %v2793_v47 = vpop.f32.mrf.mxu0  ;;  %3032 = vmatmul.mubr.bf16.gmra.mxu0 %v2499_v29  ;;  %v4788_v22 = vld [vmem:[%s17230_s13 + $0x20] sm:$0xff] }
 0x2c3   : > { %v3081_v11 = vmax.f32 %v2790_v45, 0.0  ;;  %v2301_v6 = vadd.f32 %v2300_v14, %v12862_v12  ;;  %v2435_v48 = vmax.f32 %v2299_v63, 0.0  ;;  %v3198_v57 = vpack.c.bf16 %v3080_v20, %v3078_v33  ;;  %4234 = vmatpush2.bf16.msra.mxu0 %v11456_v3 }
 0x2c4   : > { %v2304_v44 = vpop.f32.mrf.mxu1  ;;  %v2795_v13 = vpop.f32.mrf.mxu0  ;;  %v2794_v32 = vadd.f32 %v2793_v47, %v13098_v59 }
 0x2c5   : > { %v2436_v10 = vmax.f32 %v2301_v6, 0.0  ;;  %v3199_v7 = vpack.c.bf16 %v3081_v11, %v3079_v2  ;;  %v2796_v35 = vadd.f32 %v2795_v13, %v13095_v60  ;;  %v2501_v29 = vpack.c.bf16 %v2435_v48, %v2433_v54 }
 0x2c6   : > { %v2306_v51 = vpop.f32.mrf.mxu1  ;;  %v2797_v26 = vpop.f32.mrf.mxu0  ;;  %v10691_v48 = vcombine.low %v4788_v22, %v4788_v22  ;;  %v10692_v13 = vcombine.high %v4788_v22, %v4788_v22  ;;  %v2305_v33 = vadd.f32 %v2304_v44, %v12865_v27 }
 0x2c7   : > { %v2798_v38 = vadd.f32 %v2797_v26, %v13098_v59  ;;  %3530 = vmatprep.mubr.bf16.mxu1 %v3199_v7  ;;  %v2502_v50 = vpack.c.bf16 %v2436_v10, %v2434_v53  ;;  %v2307_v14 = vadd.f32 %v2306_v51, %v12862_v12  ;;  %v3083_v10 = vmax.f32 %v2796_v35, 0.0 }
 0x2c8   : > { %v2308_v63 = vpop.f32.mrf.mxu1  ;;  %v2799_v45 = vpop.f32.mrf.mxu0  ;;  %3531 = vmatmul.mubr.bf16.gmra.mxu1 %v3198_v57  ;;  %v3082_v51 = vmax.f32 %v2794_v32, 0.0  ;;  %v4818_v7 = vand.u32 %v10692_v13, %v12231_v5  ;;  %v4815_v57 = vand.u32 %v10691_v48, %v12231_v5  ;;  %v2437_v3 = vmax.f32 %v2305_v33, 0.0 }
 0x2c9   : > { %v2309_v20 = vadd.f32 %v2308_v63, %v12865_v27  ;;  %v2800_v11 = vadd.f32 %v2799_v45, %v13095_v60  ;;  %v3084_v6 = vmax.f32 %v2798_v38, 0.0  ;;  %3041 = vmatprep.mubr.bf16.mxu0 %v2502_v50  ;;  %v2438_v38 = vmax.f32 %v2307_v14, 0.0 }
 0x2ca   : > { %v2310_v2 = vpop.f32.mrf.mxu1  ;;  %v2803_v47 = vpop.f32.mrf.mxu0  ;;  %3042 = vmatmul.mubr.bf16.gmra.mxu0 %v2501_v29  ;;  %4830 = vmatprep.subr.bf16.mxu1 %v4818_v7 }
 0x2cb   : > { %v3085_v54 = vmax.f32 %v2800_v11, 0.0  ;;  %v2311_v53 = vadd.f32 %v2310_v2, %v12862_v12  ;;  %v2439_v0 = vmax.f32 %v2309_v20, 0.0  ;;  %v3200_v50 = vpack.c.bf16 %v3084_v6, %v3082_v51  ;;  %4831 = vmatpush1.bf16.msra.mxu1 %v4815_v57  ;;  %v11463_v51 = vld [vmem:[%s17228_s3 + $0x94] ss:$8 sps:$4 sm:$0xff]  }
 0x2cc   : > { %v2805_v26 = vpop.f32.mrf.mxu0  ;;  %v2804_v32 = vadd.f32 %v2803_v47, %v13098_v59  ;;  %v11461_v47 = vld [vmem:[%s17228_s3 + $0x90] ss:$8 sps:$4 sm:$0xff]   ;;  %4235 = vmatprep.subr.bf16.mxu0 %v11463_v51  ;;  %v11466_v51 = vld [vmem:[%s17228_s3 + $0x84] ss:$8 sps:$4 sm:$0xff]  }
 0x2cd   : > { %v2440_v63 = vmax.f32 %v2311_v53, 0.0  ;;  %v3201_v45 = vpack.c.bf16 %v3085_v54, %v3083_v10  ;;  %v2806_v27 = vadd.f32 %v2805_v26, %v13095_v60  ;;  %v2503_v29 = vpack.c.bf16 %v2439_v0, %v2437_v3  ;;  %4236 = vmatpush2.bf16.msra.mxu0 %v11461_v47  ;;  %v11464_v47 = vld [vmem:[%s17228_s3 + $0x80] ss:$8 sps:$4 sm:$0xff]  }
 0x2ce   : > { %v2807_v22 = vpop.f32.mrf.mxu0  ;;  %v3086_v48 = vmax.f32 %v2804_v32, 0.0  ;;  %4237 = vmatprep.subr.bf16.mxu0 %v11466_v51 }
 0x2cf   : > { %v2808_v44 = vadd.f32 %v2807_v22, %v13098_v59  ;;  %3540 = vmatprep.mubr.bf16.mxu1 %v3201_v45  ;;  %v2504_v12 = vpack.c.bf16 %v2440_v63, %v2438_v38  ;;  %v3087_v20 = vmax.f32 %v2806_v27, 0.0 }
 0x2d0   : > { %v2809_v35 = vpop.f32.mrf.mxu0  ;;  %3541 = vmatmul.mubr.bf16.gmra.mxu1 %v3200_v50 }
 0x2d1   : > { %v2810_v5 = vadd.f32 %v2809_v35, %v13095_v60  ;;  %3051 = vmatprep.mubr.bf16.mxu0 %v2504_v12  ;;  %v3088_v11 = vmax.f32 %v2808_v44, 0.0  ;;  %4238 = vmatpush2.bf16.msra.mxu0 %v11464_v47 }
 0x2d2   : > { %v2813_v14 = vpop.f32.mrf.mxu0  ;;  %3052 = vmatmul.mubr.bf16.gmra.mxu0 %v2503_v29 }
 0x2d3   : > { %v3089_v6 = vmax.f32 %v2810_v5, 0.0  ;;  %v3202_v10 = vpack.c.bf16 %v3088_v11, %v3086_v48  ;;  %v2814_v7 = vadd.f32 %v2813_v14, %v13098_v59 }
 0x2d4   : > { %v2815_v2 = vpop.f32.mrf.mxu0 }
 0x2d5   : > { %v3203_v13 = vpack.c.bf16 %v3089_v6, %v3087_v20  ;;  %v2816_v54 = vadd.f32 %v2815_v2, %v13095_v60  ;;  %v3090_v22 = vmax.f32 %v2814_v7, 0.0 }
 0x2d6   : > { %v2817_v33 = vpop.f32.mrf.mxu0 }
 0x2d7   : > { %v2818_v53 = vadd.f32 %v2817_v33, %v13098_v59  ;;  %3550 = vmatprep.mubr.bf16.mxu1 %v3203_v13  ;;  %v3091_v0 = vmax.f32 %v2816_v54, 0.0 }
 0x2d8   : > { %v2819_v26 = vpop.f32.mrf.mxu0  ;;  %3551 = vmatmul.mubr.bf16.gmra.mxu1 %v3202_v10 }
 0x2d9   : > { %v2820_v57 = vadd.f32 %v2819_v26, %v13095_v60  ;;  %v3092_v63 = vmax.f32 %v2818_v53, 0.0 }
 0x2da   : > { %v2823_v38 = vpop.f32.mrf.mxu0 }
 0x2db   : > { %v3093_v45 = vmax.f32 %v2820_v57, 0.0  ;;  %v3204_v44 = vpack.c.bf16 %v3092_v63, %v3090_v22  ;;  %v2824_v32 = vadd.f32 %v2823_v38, %v13098_v59 }
 0x2dc   : > { %v2825_v50 = vpop.f32.mrf.mxu0 }
 0x2dd   : > { %v3205_v3 = vpack.c.bf16 %v3093_v45, %v3091_v0  ;;  %v2826_v12 = vadd.f32 %v2825_v50, %v13095_v60  ;;  %v3094_v48 = vmax.f32 %v2824_v32, 0.0 }
 0x2de   : > { %v2827_v27 = vpop.f32.mrf.mxu0 }
 0x2df   : > { %v2828_v35 = vadd.f32 %v2827_v27, %v13098_v59  ;;  %3560 = vmatprep.mubr.bf16.mxu1 %v3205_v3  ;;  %v3095_v20 = vmax.f32 %v2826_v12, 0.0 }
 0x2e0   : > { %v2829_v29 = vpop.f32.mrf.mxu0  ;;  %3561 = vmatmul.mubr.bf16.gmra.mxu1 %v3204_v44 }
 0x2e1   : > { %v2830_v5 = vadd.f32 %v2829_v29, %v13095_v60  ;;  %v3096_v11 = vmax.f32 %v2828_v35, 0.0 }
 0x2e2   : > { %v2833_v14 = vpop.f32.mrf.mxu0 }
 0x2e3   : > { %v3097_v6 = vmax.f32 %v2830_v5, 0.0  ;;  %v3206_v10 = vpack.c.bf16 %v3096_v11, %v3094_v48  ;;  %v2834_v7 = vadd.f32 %v2833_v14, %v13098_v59 }
 0x2e4   : > { %v2835_v2 = vpop.f32.mrf.mxu0 }
 0x2e5   : > { %v3207_v13 = vpack.c.bf16 %v3097_v6, %v3095_v20  ;;  %v2836_v54 = vadd.f32 %v2835_v2, %v13095_v60  ;;  %v3098_v22 = vmax.f32 %v2834_v7, 0.0 }
 0x2e6   : > { %v2837_v33 = vpop.f32.mrf.mxu0 }
 0x2e7   : > { %v2838_v53 = vadd.f32 %v2837_v33, %v13098_v59  ;;  %3570 = vmatprep.mubr.bf16.mxu1 %v3207_v13  ;;  %v3099_v0 = vmax.f32 %v2836_v54, 0.0 }
 0x2e8   : > { %v2839_v26 = vpop.f32.mrf.mxu0  ;;  %3571 = vmatmul.mubr.bf16.gmra.mxu1 %v3206_v10 }
 0x2e9   : > { %v2840_v57 = vadd.f32 %v2839_v26, %v13095_v60  ;;  %v3100_v63 = vmax.f32 %v2838_v53, 0.0 }
 0x2ea   : > { %v2843_v38 = vpop.f32.mrf.mxu0 }
 0x2eb   : > { %v3101_v45 = vmax.f32 %v2840_v57, 0.0  ;;  %v3208_v44 = vpack.c.bf16 %v3100_v63, %v3098_v22  ;;  %v2844_v32 = vadd.f32 %v2843_v38, %v13098_v59  ;;  %v11469_v57 = vld [vmem:[%s17231_s4 + $0x74] ss:$8 sps:$4 sm:$0xff]  }
 0x2ec   : > { %v2845_v50 = vpop.f32.mrf.mxu0  ;;  %5333 = vmatprep.subr.bf16.mxu0 %v11469_v57 }
 0x2ed   : > { %v3209_v3 = vpack.c.bf16 %v3101_v45, %v3099_v0  ;;  %v2846_v12 = vadd.f32 %v2845_v50, %v13095_v60  ;;  %v3102_v48 = vmax.f32 %v2844_v32, 0.0 }
 0x2ee   : > { %v2847_v27 = vpop.f32.mrf.mxu0 }
 0x2ef   : > { %v2848_v35 = vadd.f32 %v2847_v27, %v13098_v59  ;;  %3580 = vmatprep.mubr.bf16.mxu1 %v3209_v3  ;;  %v3103_v20 = vmax.f32 %v2846_v12, 0.0 }
 0x2f0   : > { %v2849_v29 = vpop.f32.mrf.mxu0  ;;  %3581 = vmatmul.mubr.bf16.gmra.mxu1 %v3208_v44 }
 0x2f1   : > { %v2850_v5 = vadd.f32 %v2849_v29, %v13095_v60  ;;  %v3104_v11 = vmax.f32 %v2848_v35, 0.0 }
 0x2f2   : > { %v2853_v14 = vpop.f32.mrf.mxu0 }
 0x2f3   : > { %v3105_v6 = vmax.f32 %v2850_v5, 0.0  ;;  %v3210_v10 = vpack.c.bf16 %v3104_v11, %v3102_v48  ;;  %v2854_v51 = vadd.f32 %v2853_v14, %v13098_v59 }
 0x2f4   : > { %v2855_v2 = vpop.f32.mrf.mxu0 }
 0x2f5   : > { %v3211_v13 = vpack.c.bf16 %v3105_v6, %v3103_v20  ;;  %v2856_v54 = vadd.f32 %v2855_v2, %v13095_v60  ;;  %v3106_v50 = vmax.f32 %v2854_v51, 0.0 }
 0x2f6   : > { %v2857_v33 = vpop.f32.mrf.mxu0 }
 0x2f7   : > { %v2858_v53 = vadd.f32 %v2857_v33, %v13098_v59  ;;  %3590 = vmatprep.mubr.bf16.mxu1 %v3211_v13  ;;  %v3107_v38 = vmax.f32 %v2856_v54, 0.0 }
 0x2f8   : > { %v2859_v47 = vpop.f32.mrf.mxu0  ;;  %3591 = vmatmul.mubr.bf16.gmra.mxu1 %v3210_v10 }
 0x2f9   : > { %v2860_v26 = vadd.f32 %v2859_v47, %v13095_v60  ;;  %v3108_v0 = vmax.f32 %v2858_v53, 0.0 }
 0x2fa   : > { %v2863_v7 = vpop.f32.mrf.mxu0 }
 0x2fb   : > { %v3109_v63 = vmax.f32 %v2860_v26, 0.0  ;;  %v3212_v27 = vpack.c.bf16 %v3108_v0, %v3106_v50  ;;  %v2864_v29 = vadd.f32 %v2863_v7, %v13098_v59 }
 0x2fc   : > { %v2865_v45 = vpop.f32.mrf.mxu0 }
 0x2fd   : > { %v3213_v22 = vpack.c.bf16 %v3109_v63, %v3107_v38  ;;  %v2866_v44 = vadd.f32 %v2865_v45, %v13095_v60  ;;  %v3110_v2 = vmax.f32 %v2864_v29, 0.0 }
 0x2fe   : > { %v2867_v3 = vpop.f32.mrf.mxu0 }
 0x2ff   : > { %v2868_v12 = vadd.f32 %v2867_v3, %v13098_v59  ;;  %3600 = vmatprep.mubr.bf16.mxu1 %v3213_v22  ;;  %v3111_v14 = vmax.f32 %v2866_v44, 0.0 }
 0x300   : > { %v2869_v35 = vpop.f32.mrf.mxu0  ;;  %3601 = vmatmul.mubr.bf16.gmra.mxu1 %v3212_v27 }
 0x301   : > { %v2870_v32 = vadd.f32 %v2869_v35, %v13095_v60  ;;  %v3112_v20 = vmax.f32 %v2868_v12, 0.0 }
 0x302   : > { %v2873_v5 = vpop.f32.mrf.mxu0 }
 0x303   : > { %v3113_v11 = vmax.f32 %v2870_v32, 0.0  ;;  %v3214_v33 = vpack.c.bf16 %v3112_v20, %v3110_v2  ;;  %v2874_v47 = vadd.f32 %v2873_v5, %v13098_v59 }
 0x304   : > { %v2875_v6 = vpop.f32.mrf.mxu0 }
 0x305   : > { %v3215_v48 = vpack.c.bf16 %v3113_v11, %v3111_v14  ;;  %v2876_v10 = vadd.f32 %v2875_v6, %v13095_v60  ;;  %v3114_v63 = vmax.f32 %v2874_v47, 0.0 }
 0x306   : > { %v2877_v13 = vpop.f32.mrf.mxu0 }
 0x307   : > { %v2878_v54 = vadd.f32 %v2877_v13, %v13098_v59  ;;  %3610 = vmatprep.mubr.bf16.mxu1 %v3215_v48  ;;  %v3115_v7 = vmax.f32 %v2876_v10, 0.0 }
 0x308   : > { %v2879_v53 = vpop.f32.mrf.mxu0  ;;  %3611 = vmatmul.mubr.bf16.gmra.mxu1 %v3214_v33 }
 0x309   : > { %v2880_v51 = vadd.f32 %v2879_v53, %v13095_v60  ;;  %v3116_v57 = vmax.f32 %v2878_v54, 0.0 }
 0x30a   : > { %v2883_v26 = vpop.f32.mrf.mxu0 }
 0x30b   : > { %v3117_v38 = vmax.f32 %v2880_v51, 0.0  ;;  %v3216_v22 = vpack.c.bf16 %v3116_v57, %v3114_v63  ;;  %v2884_v12 = vadd.f32 %v2883_v26, %v13098_v59 }
 0x30c   : > { %v2885_v0 = vpop.f32.mrf.mxu0 }
 0x30d   : > { %v3217_v45 = vpack.c.bf16 %v3117_v38, %v3115_v7  ;;  %v2886_v3 = vadd.f32 %v2885_v0, %v13095_v60  ;;  %v3118_v11 = vmax.f32 %v2884_v12, 0.0 }
 0x30e   : > { %v2887_v50 = vpop.f32.mrf.mxu0 }
 0x30f   : > { %v2888_v27 = vadd.f32 %v2887_v50, %v13098_v59  ;;  %3620 = vmatprep.mubr.bf16.mxu1 %v3217_v45  ;;  %v3119_v32 = vmax.f32 %v2886_v3, 0.0  ;;  %v11476_v45 = vld [vmem:[%s17230_s13 + $0x10] ss:$8 sps:$4 sm:$0xff]   ;;  %v11478_v50 = vld [vmem:[%s17230_s13 + $0x14] ss:$8 sps:$4 sm:$0xff]  }
 0x310   : > { %v2889_v44 = vpop.f32.mrf.mxu0  ;;  %3621 = vmatmul.mubr.bf16.gmra.mxu1 %v3216_v22  ;;  %4832 = vmatprep.subr.bf16.mxu1 %v11478_v50 }
 0x311   : > { %v2890_v35 = vadd.f32 %v2889_v44, %v13095_v60  ;;  %v3120_v5 = vmax.f32 %v2888_v27, 0.0  ;;  %4833 = vmatpush1.bf16.msra.mxu1 %v11476_v45 }
 0x312   : > { %v2893_v29 = vpop.f32.mrf.mxu0 }
 0x313   : > { %v3121_v14 = vmax.f32 %v2890_v35, 0.0  ;;  %v3218_v48 = vpack.c.bf16 %v3120_v5, %v3118_v11  ;;  %v2894_v54 = vadd.f32 %v2893_v29, %v13098_v59 }
 0x314   : > { %v2895_v20 = vpop.f32.mrf.mxu0 }
 0x315   : > { %v3219_v6 = vpack.c.bf16 %v3121_v14, %v3119_v32  ;;  %v2896_v13 = vadd.f32 %v2895_v20, %v13095_v60  ;;  %v3122_v38 = vmax.f32 %v2894_v54, 0.0 }
 0x316   : > { %v2897_v2 = vpop.f32.mrf.mxu0 }
 0x317   : > { %v2898_v33 = vadd.f32 %v2897_v2, %v13098_v59  ;;  %3630 = vmatprep.mubr.bf16.mxu1 %v3219_v6  ;;  %v3123_v51 = vmax.f32 %v2896_v13, 0.0 }
 0x318   : > { %v2899_v10 = vpop.f32.mrf.mxu0  ;;  %3631 = vmatmul.mubr.bf16.gmra.mxu1 %v3218_v48 }
 0x319   : > { %v2900_v53 = vadd.f32 %v2899_v10, %v13095_v60  ;;  %v3124_v26 = vmax.f32 %v2898_v33, 0.0 }
 0x31a   : > { %v2903_v47 = vpop.f32.mrf.mxu0 }
 0x31b   : > { %v3125_v7 = vmax.f32 %v2900_v53, 0.0  ;;  %v3220_v22 = vpack.c.bf16 %v3124_v26, %v3122_v38  ;;  %v2904_v12 = vadd.f32 %v2903_v47, %v13098_v59 }
 0x31c   : > { %v2905_v57 = vpop.f32.mrf.mxu0 }
 0x31d   : > { %v3221_v0 = vpack.c.bf16 %v3125_v7, %v3123_v51  ;;  %v2906_v3 = vadd.f32 %v2905_v57, %v13095_v60  ;;  %v3126_v11 = vmax.f32 %v2904_v12, 0.0 }
 0x31e   : > { %v2907_v63 = vpop.f32.mrf.mxu0 }
 0x31f   : > { %v2908_v27 = vadd.f32 %v2907_v63, %v13098_v59  ;;  %3640 = vmatprep.mubr.bf16.mxu1 %v3221_v0  ;;  %v3127_v32 = vmax.f32 %v2906_v3, 0.0 }
 0x320   : > { %v2909_v44 = vpop.f32.mrf.mxu0  ;;  %3641 = vmatmul.mubr.bf16.gmra.mxu1 %v3220_v22 }
 0x321   : > { %v2910_v35 = vadd.f32 %v2909_v44, %v13095_v60  ;;  %v3128_v5 = vmax.f32 %v2908_v27, 0.0 }
 0x322   : > { %v2913_v29 = vpop.f32.mrf.mxu0 }
 0x323   : > { %v3129_v14 = vmax.f32 %v2910_v35, 0.0  ;;  %v3222_v48 = vpack.c.bf16 %v3128_v5, %v3126_v11  ;;  %v2914_v54 = vadd.f32 %v2913_v29, %v13098_v59 }
 0x324   : > { %v2915_v20 = vpop.f32.mrf.mxu0 }
 0x325   : > { %v3223_v6 = vpack.c.bf16 %v3129_v14, %v3127_v32  ;;  %v2916_v13 = vadd.f32 %v2915_v20, %v13095_v60  ;;  %v3130_v38 = vmax.f32 %v2914_v54, 0.0 }
 0x326   : > { %v2917_v2 = vpop.f32.mrf.mxu0 }
 0x327   : > { %v2918_v33 = vadd.f32 %v2917_v2, %v13098_v59  ;;  %3650 = vmatprep.mubr.bf16.mxu1 %v3223_v6  ;;  %v3131_v51 = vmax.f32 %v2916_v13, 0.0 }
 0x328   : > { %v2919_v10 = vpop.f32.mrf.mxu0  ;;  %3651 = vmatmul.mubr.bf16.gmra.mxu1 %v3222_v48 }
 0x329   : > { %v2920_v53 = vadd.f32 %v2919_v10, %v13095_v60  ;;  %v3132_v26 = vmax.f32 %v2918_v33, 0.0 }
 0x32a   : > { %v2923_v47 = vpop.f32.mrf.mxu0 }
 0x32b   : > { %v3133_v7 = vmax.f32 %v2920_v53, 0.0  ;;  %v3224_v45 = vpack.c.bf16 %v3132_v26, %v3130_v38  ;;  %v2924_v27 = vadd.f32 %v2923_v47, %v13098_v59 }
 0x32c   : > { %v2925_v57 = vpop.f32.mrf.mxu0 }
 0x32d   : > { %v3225_v0 = vpack.c.bf16 %v3133_v7, %v3131_v51  ;;  %v2926_v50 = vadd.f32 %v2925_v57, %v13095_v60  ;;  %v3134_v14 = vmax.f32 %v2924_v27, 0.0 }
 0x32e   : > { %v2927_v63 = vpop.f32.mrf.mxu0 }
 0x32f   : > { %v2928_v22 = vadd.f32 %v2927_v63, %v13098_v59  ;;  %3660 = vmatprep.mubr.bf16.mxu1 %v3225_v0  ;;  %v3135_v35 = vmax.f32 %v2926_v50, 0.0 }
 0x330   : > { %v2929_v3 = vpop.f32.mrf.mxu0  ;;  %3661 = vmatmul.mubr.bf16.gmra.mxu1 %v3224_v45 }
 0x331   : > { %v2930_v44 = vadd.f32 %v2929_v3, %v13095_v60  ;;  %v3136_v29 = vmax.f32 %v2928_v22, 0.0 }
 0x332   : > { %v2933_v12 = vpop.f32.mrf.mxu0 }
 0x333   : > { %v3137_v32 = vmax.f32 %v2930_v44, 0.0  ;;  %v3226_v6 = vpack.c.bf16 %v3136_v29, %v3134_v14  ;;  %v2934_v33 = vadd.f32 %v2933_v12, %v13098_v59 }
 0x334   : > { %v2935_v5 = vpop.f32.mrf.mxu0 }
 0x335   : > { %v3227_v20 = vpack.c.bf16 %v3137_v32, %v3135_v35  ;;  %v2936_v2 = vadd.f32 %v2935_v5, %v13095_v60  ;;  %v3138_v7 = vmax.f32 %v2934_v33, 0.0 }
 0x336   : > { %v2937_v11 = vpop.f32.mrf.mxu0 }
 0x337   : > { %v2938_v48 = vadd.f32 %v2937_v11, %v13098_v59  ;;  %3670 = vmatprep.mubr.bf16.mxu1 %v3227_v20  ;;  %v3139_v53 = vmax.f32 %v2936_v2, 0.0 }
 0x338   : > { %v2939_v13 = vpop.f32.mrf.mxu0  ;;  %3671 = vmatmul.mubr.bf16.gmra.mxu1 %v3226_v6 }
 0x339   : > { %v2940_v10 = vadd.f32 %v2939_v13, %v13095_v60  ;;  %v3140_v47 = vmax.f32 %v2938_v48, 0.0 }
 0x33a   : > { %v2943_v54 = vpop.f32.mrf.mxu0 }
 0x33b   : > { %v3141_v51 = vmax.f32 %v2940_v10, 0.0  ;;  %v3228_v0 = vpack.c.bf16 %v3140_v47, %v3138_v7  ;;  %v2944_v22 = vadd.f32 %v2943_v54, %v13098_v59 }
 0x33c   : > { %v2945_v26 = vpop.f32.mrf.mxu0 }
 0x33d   : > { %v3229_v57 = vpack.c.bf16 %v3141_v51, %v3139_v53  ;;  %v2946_v63 = vadd.f32 %v2945_v26, %v13095_v60  ;;  %v3142_v32 = vmax.f32 %v2944_v22, 0.0 }
 0x33e   : > { %v2947_v38 = vpop.f32.mrf.mxu0 }
 0x33f   : > { %v2948_v45 = vadd.f32 %v2947_v38, %v13098_v59  ;;  %3680 = vmatprep.mubr.bf16.mxu1 %v3229_v57  ;;  %v3143_v44 = vmax.f32 %v2946_v63, 0.0 }
 0x340   : > { %v2949_v50 = vpop.f32.mrf.mxu0  ;;  %3681 = vmatmul.mubr.bf16.gmra.mxu1 %v3228_v0 }
 0x341   : > { %v2950_v3 = vadd.f32 %v2949_v50, %v13095_v60  ;;  %v3144_v12 = vmax.f32 %v2948_v45, 0.0 }
 0x342   : > { %v2953_v27 = vpop.f32.mrf.mxu0 }
 0x343   : > { %v3145_v35 = vmax.f32 %v2950_v3, 0.0  ;;  %v3230_v20 = vpack.c.bf16 %v3144_v12, %v3142_v32  ;;  %v2954_v48 = vadd.f32 %v2953_v27, %v13098_v59 }
 0x344   : > { %v2955_v29 = vpop.f32.mrf.mxu0 }
 0x345   : > { %v3231_v5 = vpack.c.bf16 %v3145_v35, %v3143_v44  ;;  %v2956_v11 = vadd.f32 %v2955_v29, %v13095_v60  ;;  %v3146_v51 = vmax.f32 %v2954_v48, 0.0 }
 0x346   : > { %v2957_v14 = vpop.f32.mrf.mxu0 }
 0x347   : > { %v2958_v6 = vadd.f32 %v2957_v14, %v13098_v59  ;;  %3690 = vmatprep.mubr.bf16.mxu1 %v3231_v5  ;;  %v3147_v10 = vmax.f32 %v2956_v11, 0.0 }
 0x348   : > { %v2959_v2 = vpop.f32.mrf.mxu0  ;;  %3691 = vmatmul.mubr.bf16.gmra.mxu1 %v3230_v20 }
 0x349   : > { %v2960_v13 = vadd.f32 %v2959_v2, %v13095_v60  ;;  %v3148_v54 = vmax.f32 %v2958_v6, 0.0 }
 0x34a   : > { %v2963_v33 = vpop.f32.mrf.mxu0 }
 0x34b   : > { %v3149_v53 = vmax.f32 %v2960_v13, 0.0  ;;  %v3232_v57 = vpack.c.bf16 %v3148_v54, %v3146_v51  ;;  %v2964_v45 = vadd.f32 %v2963_v33, %v13098_v59 }
 0x34c   : > { %v2965_v47 = vpop.f32.mrf.mxu0 }
 0x34d   : > { %v3233_v26 = vpack.c.bf16 %v3149_v53, %v3147_v10  ;;  %v2966_v38 = vadd.f32 %v2965_v47, %v13095_v60  ;;  %v3150_v35 = vmax.f32 %v2964_v45, 0.0 }
 0x34e   : > { %v2967_v7 = vpop.f32.mrf.mxu0 }
 0x34f   : > { %v2968_v0 = vadd.f32 %v2967_v7, %v13098_v59  ;;  %3700 = vmatprep.mubr.bf16.mxu1 %v3233_v26  ;;  %v3151_v3 = vmax.f32 %v2966_v38, 0.0 }
 0x350   : > { %v2969_v63 = vpop.f32.mrf.mxu0  ;;  %3701 = vmatmul.mubr.bf16.gmra.mxu1 %v3232_v57 }
 0x351   : > { %v2970_v50 = vadd.f32 %v2969_v63, %v13095_v60  ;;  %v3152_v27 = vmax.f32 %v2968_v0, 0.0 }
 0x352   : > { %v2973_v22 = vpop.f32.mrf.mxu0 }
 0x353   : > { %v3153_v44 = vmax.f32 %v2970_v50, 0.0  ;;  %v3234_v5 = vpack.c.bf16 %v3152_v27, %v3150_v35  ;;  %v2974_v6 = vadd.f32 %v2973_v22, %v13098_v59 }
 0x354   : > { %v2975_v12 = vpop.f32.mrf.mxu0 }
 0x355   : > { %v3235_v29 = vpack.c.bf16 %v3153_v44, %v3151_v3  ;;  %v2976_v14 = vadd.f32 %v2975_v12, %v13095_v60  ;;  %v3154_v53 = vmax.f32 %v2974_v6, 0.0 }
 0x356   : > { %v2977_v32 = vpop.f32.mrf.mxu0 }
 0x357   : > { %v2978_v20 = vadd.f32 %v2977_v32, %v13098_v59  ;;  %3710 = vmatprep.mubr.bf16.mxu1 %v3235_v29  ;;  %v3155_v13 = vmax.f32 %v2976_v14, 0.0  ;;  %v3286_v14 = vld [vmem:[%s17232_s28] sm:$0x3]  ;;  %s17185_s28 = sand.u32 1, %s12018_s5  }
 0x358   : > { %v2979_v11 = vpop.f32.mrf.mxu0  ;;  %3711 = vmatmul.mubr.bf16.gmra.mxu1 %v3234_v5 }
 0x359   : > { %v2980_v2 = vadd.f32 %v2979_v11, %v13095_v60  ;;  %v3156_v33 = vmax.f32 %v2978_v20, 0.0 }
 0x35a   : > { %v2983_v48 = vpop.f32.mrf.mxu0 }
 0x35b   : > { %v3157_v10 = vmax.f32 %v2980_v2, 0.0  ;;  %v3236_v26 = vpack.c.bf16 %v3156_v33, %v3154_v53  ;;  %v2984_v0 = vadd.f32 %v2983_v48, %v13098_v59  ;;  %v13276_v48 = vrot.slane %v3286_v14, %v12596_v42 }
 0x35c   : > { %v2985_v54 = vpop.f32.mrf.mxu0  ;;  %v13279_v53 = vrot.slane %v3286_v14, %v12588_v37 }
 0x35d   : > { %v3237_v47 = vpack.c.bf16 %v3157_v10, %v3155_v13  ;;  %v2986_v7 = vadd.f32 %v2985_v54, %v13095_v60  ;;  %v3158_v44 = vmax.f32 %v2984_v0, 0.0 }
 0x35e   : > { %v2987_v51 = vpop.f32.mrf.mxu0 }
 0x35f   : > { %v2988_v57 = vadd.f32 %v2987_v51, %v13098_v59  ;;  %3720 = vmatprep.mubr.bf16.mxu1 %v3237_v47  ;;  %v3159_v50 = vmax.f32 %v2986_v7, 0.0 }
 0x360   : > { %v2989_v38 = vpop.f32.mrf.mxu0  ;;  %3721 = vmatmul.mubr.bf16.gmra.mxu1 %v3236_v26 }
 0x361   : > { %v2990_v63 = vadd.f32 %v2989_v38, %v13095_v60  ;;  %v3160_v22 = vmax.f32 %v2988_v57, 0.0 }
 0x362   : > { %v2993_v45 = vpop.f32.mrf.mxu0 }
 0x363   : > { %v3161_v3 = vmax.f32 %v2990_v63, 0.0  ;;  %v3238_v29 = vpack.c.bf16 %v3160_v22, %v3158_v44  ;;  %v2994_v11 = vadd.f32 %v2993_v45, %v13098_v59 }
 0x364   : > { %v2995_v27 = vpop.f32.mrf.mxu0 }
 0x365   : > { %v3239_v12 = vpack.c.bf16 %v3161_v3, %v3159_v50  ;;  %v2996_v32 = vadd.f32 %v2995_v27, %v13095_v60  ;;  %v3162_v51 = vmax.f32 %v2994_v11, 0.0 }
 0x366   : > { %v2997_v35 = vpop.f32.mrf.mxu0 }
 0x367   : > { %v2998_v5 = vadd.f32 %v2997_v35, %v13098_v59  ;;  %3730 = vmatprep.mubr.bf16.mxu1 %v3239_v12  ;;  %v3163_v13 = vmax.f32 %v2996_v32, 0.0 }
 0x368   : > { %v2999_v20 = vpop.f32.mrf.mxu0  ;;  %v3492_v2 = vpop.f32.mrf.mxu1  ;;  %3731 = vmatmul.mubr.bf16.gmra.mxu1 %v3238_v29 }
 0x369   : > { %v3000_v6 = vadd.f32 %v2999_v20, %v13095_v60  ;;  %v3164_v33 = vmax.f32 %v2998_v5, 0.0  ;;  %v3493_v63 = vadd.f32 %v3492_v2, %v13276_v48 }
 0x36a   : > { %v3003_v54 = vpop.f32.mrf.mxu0  ;;  %v3494_v47 = vpop.f32.mrf.mxu1 }
 0x36b   : > { %v3165_v10 = vmax.f32 %v3000_v6, 0.0  ;;  %v3240_v0 = vpack.c.bf16 %v3164_v33, %v3162_v51  ;;  %v3495_v45 = vadd.f32 %v3494_v47, %v13279_v53  ;;  %v3004_v29 = vadd.f32 %v3003_v54, %v13098_v59  ;;  %v11496_v47 = vld [vmem:[%s17230_s13 + $0x4] ss:$8 sps:$4 sm:$0xff]  }
 0x36c   : > { %v3005_v26 = vpop.f32.mrf.mxu0  ;;  %v3496_v7 = vpop.f32.mrf.mxu1  ;;  %v3811_v20 = vmax.f32 %v3493_v63, 0.0  ;;  %4834 = vmatprep.subr.bf16.mxu1 %v11496_v47 }
 0x36d   : > { %v3241_v57 = vpack.c.bf16 %v3165_v10, %v3163_v13  ;;  %v3497_v38 = vadd.f32 %v3496_v7, %v13276_v48  ;;  %v3006_v44 = vadd.f32 %v3005_v26, %v13095_v60  ;;  %v3812_v11 = vmax.f32 %v3495_v45, 0.0  ;;  %v11494_v10 = vld [vmem:[%s17230_s13] ss:$8 sps:$4 sm:$0xff]   ;;  %v11472_v45 = vld [vmem:[%s17231_s4 + $0x64] ss:$8 sps:$4 sm:$0xff]  }
 0x36e   : > { %v3007_v50 = vpop.f32.mrf.mxu0  ;;  %v3498_v22 = vpop.f32.mrf.mxu1  ;;  %4835 = vmatpush1.bf16.msra.mxu1 %v11494_v10  ;;  %v11475_v10 = vld [vmem:[%s17231_s4 + $0x54] ss:$8 sps:$4 sm:$0xff]  }
 0x36f   : > { %3740 = vmatprep.mubr.bf16.mxu1 %v3241_v57  ;;  %v3008_v3 = vadd.f32 %v3007_v50, %v13098_v59  ;;  %v3499_v27 = vadd.f32 %v3498_v22, %v13279_v53  ;;  %v3813_v32 = vmax.f32 %v3497_v38, 0.0  ;;  %v3167_v51 = vmax.f32 %v3006_v44, 0.0  ;;  %v11467_v57 = vld [vmem:[%s17231_s4 + $0x70] ss:$8 sps:$4 sm:$0xff]  }
 0x370   : > { %v3009_v12 = vpop.f32.mrf.mxu0  ;;  %v3502_v35 = vpop.f32.mrf.mxu1  ;;  %3741 = vmatmul.mubr.bf16.gmra.mxu1 %v3240_v0  ;;  %v3166_v38 = vmax.f32 %v3004_v29, 0.0 }
 0x371   : > { %v3814_v5 = vmax.f32 %v3499_v27, 0.0  ;;  %v3010_v14 = vadd.f32 %v3009_v12, %v13095_v60  ;;  %v3168_v13 = vmax.f32 %v3008_v3, 0.0  ;;  %v3939_v0 = vpack.c.bf16 %v3813_v32, %v3811_v20 }
 0x372   : > { %v3013_v6 = vpop.f32.mrf.mxu0  ;;  %v3504_v2 = vpop.f32.mrf.mxu1  ;;  %v3503_v12 = vadd.f32 %v3502_v35, %v13276_v48 }
 0x373   : > { %v3169_v33 = vmax.f32 %v3010_v14, 0.0  ;;  %v3940_v7 = vpack.c.bf16 %v3814_v5, %v3812_v11  ;;  %v3505_v50 = vadd.f32 %v3504_v2, %v13279_v53  ;;  %v3242_v44 = vpack.c.bf16 %v3168_v13, %v3166_v38  ;;  %v11470_v11 = vld [vmem:[%s17231_s4 + $0x60] ss:$8 sps:$4 sm:$0xff]  }
 0x374   : > { %v3015_v54 = vpop.f32.mrf.mxu0  ;;  %v3506_v26 = vpop.f32.mrf.mxu1  ;;  %v3014_v2 = vadd.f32 %v3013_v6, %v13098_v59 }
 0x375   : > { %v3507_v63 = vadd.f32 %v3506_v26, %v13276_v48  ;;  %4239 = vmatprep.mubr.bf16.mxu0 %v3940_v7  ;;  %v3243_v27 = vpack.c.bf16 %v3169_v33, %v3167_v51  ;;  %v3016_v5 = vadd.f32 %v3015_v54, %v13095_v60  ;;  %v3816_v47 = vmax.f32 %v3505_v50, 0.0  ;;  %v11481_v50 = vld [vmem:[%s17231_s4 + $0x44] ss:$8 sps:$4 sm:$0xff]  }
 0x376   : > { %v3017_v22 = vpop.f32.mrf.mxu0  ;;  %v3508_v3 = vpop.f32.mrf.mxu1  ;;  %4240 = vmatmul.mubr.bf16.vlgmr.msra.gmra.mxu0 %v3939_v0  ;;  %v3815_v26 = vmax.f32 %v3503_v12, 0.0 }
 0x377   : > { %v3018_v29 = vadd.f32 %v3017_v22, %v13098_v59  ;;  %v3509_v32 = vadd.f32 %v3508_v3, %v13279_v53  ;;  %5334 = vmatpush1.bf16.msra.mxu0 %v11467_v57  ;;  %3750 = vmatprep.mubr.bf16.mxu1 %v3243_v27  ;;  %v3817_v13 = vmax.f32 %v3507_v63, 0.0  ;;  %v3171_v38 = vmax.f32 %v3016_v5, 0.0  ;;  %v11473_v63 = vld [vmem:[%s17231_s4 + $0x50] ss:$8 sps:$4 sm:$0xff]  }
 0x378   : > { %v3019_v14 = vpop.f32.mrf.mxu0  ;;  %v3512_v20 = vpop.f32.mrf.mxu1  ;;  %3751 = vmatmul.mubr.bf16.gmra.mxu1 %v3242_v44  ;;  %5335 = vmatprep.subr.bf16.mxu0 %v11472_v45  ;;  %v3170_v45 = vmax.f32 %v3014_v2, 0.0 }
 0x379   : > { %v3818_v33 = vmax.f32 %v3509_v32, 0.0  ;;  %v3020_v35 = vadd.f32 %v3019_v14, %v13095_v60  ;;  %v3172_v7 = vmax.f32 %v3018_v29, 0.0  ;;  %v3941_v3 = vpack.c.bf16 %v3817_v13, %v3815_v26 }
 0x37a   : > { %v3023_v51 = vpop.f32.mrf.mxu0  ;;  %v3514_v54 = vpop.f32.mrf.mxu1  ;;  %v3513_v14 = vadd.f32 %v3512_v20, %v13276_v48 }
 0x37b   : > { %v3173_v57 = vmax.f32 %v3020_v35, 0.0  ;;  %v3942_v6 = vpack.c.bf16 %v3818_v33, %v3816_v47  ;;  %5336 = vmatpush1.bf16.msra.mxu0 %v11470_v11  ;;  %v3515_v44 = vadd.f32 %v3514_v54, %v13279_v53  ;;  %v3244_v5 = vpack.c.bf16 %v3172_v7, %v3170_v45  ;;  %v11484_v7 = vld [vmem:[%s17231_s4 + $0x34] ss:$8 sps:$4 sm:$0xff]  }
 0x37c   : > { %v3025_v0 = vpop.f32.mrf.mxu0  ;;  %v3516_v22 = vpop.f32.mrf.mxu1  ;;  %5337 = vmatprep.subr.bf16.mxu0 %v11475_v10  ;;  %v11479_v10 = vld [vmem:[%s17231_s4 + $0x40] ss:$8 sps:$4 sm:$0xff]   ;;  %v3024_v47 = vadd.f32 %v3023_v51, %v13098_v59 }
 0x37d   : > { %v3517_v27 = vadd.f32 %v3516_v22, %v13276_v48  ;;  %4249 = vmatprep.mubr.bf16.mxu0 %v3942_v6  ;;  %v3245_v32 = vpack.c.bf16 %v3173_v57, %v3171_v38  ;;  %v3026_v13 = vadd.f32 %v3025_v0, %v13095_v60  ;;  %v3820_v57 = vmax.f32 %v3515_v44, 0.0  ;;  %v11487_v44 = vld [vmem:[%s17231_s4 + $0x24] ss:$8 sps:$4 sm:$0xff]  }
 0x37e   : > { %v3027_v12 = vpop.f32.mrf.mxu0  ;;  %v3518_v29 = vpop.f32.mrf.mxu1  ;;  %4250 = vmatmul.mubr.bf16.gmra.mxu0 %v3941_v3  ;;  %v3819_v22 = vmax.f32 %v3513_v14, 0.0 }
 0x37f   : > { %v3028_v11 = vadd.f32 %v3027_v12, %v13098_v59  ;;  %v3519_v2 = vadd.f32 %v3518_v29, %v13279_v53  ;;  %3760 = vmatprep.mubr.bf16.mxu1 %v3245_v32  ;;  %5338 = vmatpush1.bf16.msra.mxu0 %v11473_v63  ;;  %v3821_v54 = vmax.f32 %v3517_v27, 0.0  ;;  %v3175_v45 = vmax.f32 %v3026_v13, 0.0  ;;  %v11482_v27 = vld [vmem:[%s17231_s4 + $0x30] ss:$8 sps:$4 sm:$0xff]  }
 0x380   : > { %v3029_v33 = vpop.f32.mrf.mxu0  ;;  %v3522_v35 = vpop.f32.mrf.mxu1  ;;  %3761 = vmatmul.mubr.bf16.gmra.mxu1 %v3244_v5  ;;  %5339 = vmatprep.subr.bf16.mxu0 %v11481_v50  ;;  %v3174_v50 = vmax.f32 %v3024_v47, 0.0 }
 0x381   : > { %v3822_v26 = vmax.f32 %v3519_v2, 0.0  ;;  %v3030_v20 = vadd.f32 %v3029_v33, %v13095_v60  ;;  %v3176_v6 = vmax.f32 %v3028_v11, 0.0  ;;  %v3943_v29 = vpack.c.bf16 %v3821_v54, %v3819_v22 }
 0x382   : > { %v3033_v38 = vpop.f32.mrf.mxu0  ;;  %v3524_v0 = vpop.f32.mrf.mxu1  ;;  %v3523_v33 = vadd.f32 %v3522_v35, %v13276_v48 }
 0x383   : > { %v3177_v63 = vmax.f32 %v3030_v20, 0.0  ;;  %v3944_v51 = vpack.c.bf16 %v3822_v26, %v3820_v57  ;;  %5340 = vmatpush1.bf16.msra.mxu0 %v11479_v10  ;;  %v3525_v5 = vadd.f32 %v3524_v0, %v13279_v53  ;;  %v3246_v13 = vpack.c.bf16 %v3176_v6, %v3174_v50  ;;  %v11490_v6 = vld [vmem:[%s17231_s4 + $0x14] ss:$8 sps:$4 sm:$0xff]  }
 0x384   : > { %v3035_v3 = vpop.f32.mrf.mxu0  ;;  %v3526_v12 = vpop.f32.mrf.mxu1  ;;  %5341 = vmatprep.subr.bf16.mxu0 %v11484_v7  ;;  %v11485_v7 = vld [vmem:[%s17231_s4 + $0x20] ss:$8 sps:$4 sm:$0xff]   ;;  %v3034_v57 = vadd.f32 %v3033_v38, %v13098_v59 }
 0x385   : > { %v3527_v32 = vadd.f32 %v3526_v12, %v13276_v48  ;;  %4259 = vmatprep.mubr.bf16.mxu0 %v3944_v51  ;;  %v3247_v2 = vpack.c.bf16 %v3177_v63, %v3175_v45  ;;  %v3036_v54 = vadd.f32 %v3035_v3, %v13095_v60  ;;  %v3824_v63 = vmax.f32 %v3525_v5, 0.0  ;;  %v11493_v5 = vld [vmem:[%s17231_s4 + $0x4] ss:$8 sps:$4 sm:$0xff]  }
 0x386   : > { %v3037_v14 = vpop.f32.mrf.mxu0  ;;  %v3528_v11 = vpop.f32.mrf.mxu1  ;;  %4260 = vmatmul.mubr.bf16.gmra.mxu0 %v3943_v29  ;;  %v3823_v12 = vmax.f32 %v3523_v33, 0.0 }
 0x387   : > { %v3038_v10 = vadd.f32 %v3037_v14, %v13098_v59  ;;  %v3529_v47 = vadd.f32 %v3528_v11, %v13279_v53  ;;  %3770 = vmatprep.mubr.bf16.mxu1 %v3247_v2  ;;  %5342 = vmatpush1.bf16.msra.mxu0 %v11482_v27  ;;  %v3825_v0 = vmax.f32 %v3527_v32, 0.0  ;;  %v3179_v50 = vmax.f32 %v3036_v54, 0.0  ;;  %v11488_v32 = vld [vmem:[%s17231_s4 + $0x10] ss:$8 sps:$4 sm:$0xff]  }
 0x388   : > { %v3039_v26 = vpop.f32.mrf.mxu0  ;;  %v3532_v20 = vpop.f32.mrf.mxu1  ;;  %3771 = vmatmul.mubr.bf16.gmra.mxu1 %v3246_v13  ;;  %5343 = vmatprep.subr.bf16.mxu0 %v11487_v44  ;;  %v3178_v44 = vmax.f32 %v3034_v57, 0.0 }
 0x389   : > { %v3826_v22 = vmax.f32 %v3529_v47, 0.0  ;;  %v3040_v35 = vadd.f32 %v3039_v26, %v13095_v60  ;;  %v3180_v51 = vmax.f32 %v3038_v10, 0.0  ;;  %v3945_v11 = vpack.c.bf16 %v3825_v0, %v3823_v12 }
 0x38a   : > { %v3043_v45 = vpop.f32.mrf.mxu0  ;;  %v3534_v3 = vpop.f32.mrf.mxu1  ;;  %v3533_v26 = vadd.f32 %v3532_v20, %v13276_v48 }
 0x38b   : > { %v3181_v27 = vmax.f32 %v3040_v35, 0.0  ;;  %v3946_v38 = vpack.c.bf16 %v3826_v22, %v3824_v63  ;;  %5344 = vmatpush1.bf16.msra.mxu0 %v11485_v7  ;;  %v3535_v13 = vadd.f32 %v3534_v3, %v13279_v53  ;;  %v3248_v54 = vpack.c.bf16 %v3180_v51, %v3178_v44  ;;  %v11499_v51 = vld [vmem:[%s17231_s4 + $0xf4] ss:$8 sps:$4 sm:$0xff]  }
 0x38c   : > { %v3045_v29 = vpop.f32.mrf.mxu0  ;;  %v3536_v14 = vpop.f32.mrf.mxu1  ;;  %5345 = vmatprep.subr.bf16.mxu0 %v11490_v6  ;;  %v11491_v6 = vld [vmem:[%s17231_s4] ss:$8 sps:$4 sm:$0xff]   ;;  %v3044_v63 = vadd.f32 %v3043_v45, %v13098_v59 }
 0x38d   : > { %v3537_v2 = vadd.f32 %v3536_v14, %v13276_v48  ;;  %4269 = vmatprep.mubr.bf16.mxu0 %v3946_v38  ;;  %v3249_v47 = vpack.c.bf16 %v3181_v27, %v3179_v50  ;;  %v3046_v0 = vadd.f32 %v3045_v29, %v13095_v60  ;;  %v3828_v27 = vmax.f32 %v3535_v13, 0.0 }
 0x38e   : > { %v3047_v33 = vpop.f32.mrf.mxu0  ;;  %v3538_v10 = vpop.f32.mrf.mxu1  ;;  %4270 = vmatmul.mubr.bf16.gmra.mxu0 %v3945_v11  ;;  %v3827_v14 = vmax.f32 %v3533_v26, 0.0 }
 0x38f   : > { %v3048_v7 = vadd.f32 %v3047_v33, %v13098_v59  ;;  %v3539_v57 = vadd.f32 %v3538_v10, %v13279_v53  ;;  %3780 = vmatprep.mubr.bf16.mxu1 %v3249_v47  ;;  %5346 = vmatpush1.bf16.msra.mxu0 %v11488_v32  ;;  %v3829_v3 = vmax.f32 %v3537_v2, 0.0  ;;  %v3183_v44 = vmax.f32 %v3046_v0, 0.0  ;;  %v11497_v2 = vld [vmem:[%s17231_s4 + $0xf0] ss:$8 sps:$4 sm:$0xff]  }
 0x390   : > { %v3049_v22 = vpop.f32.mrf.mxu0  ;;  %v3542_v35 = vpop.f32.mrf.mxu1  ;;  %3781 = vmatmul.mubr.bf16.gmra.mxu1 %v3248_v54  ;;  %5347 = vmatprep.subr.bf16.mxu0 %v11493_v5  ;;  %v3182_v5 = vmax.f32 %v3044_v63, 0.0  ;;  %v11502_v54 = vld [vmem:[%s17231_s4 + $0xe4] ss:$8 sps:$4 sm:$0xff]  }
 0x391   : > { %v3830_v12 = vmax.f32 %v3539_v57, 0.0  ;;  %v3050_v20 = vadd.f32 %v3049_v22, %v13095_v60  ;;  %v3184_v38 = vmax.f32 %v3048_v7, 0.0  ;;  %v3947_v10 = vpack.c.bf16 %v3829_v3, %v3827_v14 }
 0x392   : > { %v3053_v50 = vpop.f32.mrf.mxu0  ;;  %v3544_v29 = vpop.f32.mrf.mxu1  ;;  %v3543_v26 = vadd.f32 %v3542_v35, %v13276_v48  ;;  %v11500_v35 = vld [vmem:[%s17231_s4 + $0xe0] ss:$8 sps:$4 sm:$0xff]  }
 0x393   : > { %v3185_v32 = vmax.f32 %v3050_v20, 0.0  ;;  %v3948_v45 = vpack.c.bf16 %v3830_v12, %v3828_v27  ;;  %5348 = vmatpush1.bf16.msra.mxu0 %v11491_v6  ;;  %v3545_v47 = vadd.f32 %v3544_v29, %v13279_v53  ;;  %v3250_v22 = vpack.c.bf16 %v3184_v38, %v3182_v5 }
 0x394   : > { %v3055_v11 = vpop.f32.mrf.mxu0  ;;  %v3546_v33 = vpop.f32.mrf.mxu1  ;;  %5349 = vmatprep.subr.bf16.mxu0 %v11499_v51  ;;  %v3054_v27 = vadd.f32 %v3053_v50, %v13098_v59 }
 0x395   : > { %v3547_v13 = vadd.f32 %v3546_v33, %v13276_v48  ;;  %4279 = vmatprep.mubr.bf16.mxu0 %v3948_v45  ;;  %v3251_v0 = vpack.c.bf16 %v3185_v32, %v3183_v44  ;;  %v3056_v6 = vadd.f32 %v3055_v11, %v13095_v60  ;;  %v3832_v29 = vmax.f32 %v3545_v47, 0.0  ;;  %v11505_v32 = vld [vmem:[%s17231_s4 + $0xd4] ss:$8 sps:$4 sm:$0xff]  }
 0x396   : > { %v3057_v7 = vpop.f32.mrf.mxu0  ;;  %v3548_v57 = vpop.f32.mrf.mxu1  ;;  %4280 = vmatmul.mubr.bf16.gmra.mxu0 %v3947_v10  ;;  %v3831_v44 = vmax.f32 %v3543_v26, 0.0 }
 0x397   : > { %v3058_v63 = vadd.f32 %v3057_v7, %v13098_v59  ;;  %v3549_v3 = vadd.f32 %v3548_v57, %v13279_v53  ;;  %v3833_v12 = vmax.f32 %v3547_v13, 0.0  ;;  %3790 = vmatprep.mubr.bf16.mxu1 %v3251_v0  ;;  %5350 = vmatpush2.bf16.msra.mxu0 %v11497_v2  ;;  %v3187_v33 = vmax.f32 %v3056_v6, 0.0  ;;  %v11503_v59 = vld [vmem:[%s17231_s4 + $0xd0] ss:$8 sps:$4 sm:$0xff]  }
 0x398   : > { %v3059_v20 = vpop.f32.mrf.mxu0  ;;  %v3552_v51 = vpop.f32.mrf.mxu1  ;;  %3791 = vmatmul.mubr.bf16.gmra.mxu1 %v3250_v22  ;;  %5351 = vmatprep.subr.bf16.mxu0 %v11502_v54 }
 0x399   : > { %v3834_v14 = vmax.f32 %v3549_v3, 0.0  ;;  %v3060_v38 = vadd.f32 %v3059_v20, %v13095_v60  ;;  %v3188_v45 = vmax.f32 %v3058_v63, 0.0  ;;  %v3949_v10 = vpack.c.bf16 %v3833_v12, %v3831_v44 }
 0x39a   : > { %v3554_v11 = vpop.f32.mrf.mxu1  ;;  %v3186_v60 = vmax.f32 %v3054_v27, 0.0  ;;  %v3553_v57 = vadd.f32 %v3552_v51, %v13276_v48  ;;  %v17233_v20 = vmov 0  }
 0x39b   : > { %v3189_v2 = vmax.f32 %v3060_v38, 0.0  ;;  %v3950_v5 = vpack.c.bf16 %v3834_v14, %v3832_v29  ;;  %5352 = vmatpush2.bf16.msra.mxu0 %v11500_v35  ;;  %v3555_v50 = vadd.f32 %v3554_v11, %v13279_v53 }
 0x39c   : > { %v3556_v13 = vpop.f32.mrf.mxu1  ;;  %5353 = vmatprep.subr.bf16.mxu0 %v11505_v32  ;;  %v3252_v7 = vpack.c.bf16 %v3188_v45, %v3186_v60  ;;  %v3835_v35 = vmax.f32 %v3553_v57, 0.0 }
 0x39d   : > { %v3557_v47 = vadd.f32 %v3556_v13, %v13276_v48  ;;  %4289 = vmatprep.mubr.bf16.mxu0 %v3950_v5  ;;  %v3253_v54 = vpack.c.bf16 %v3189_v2, %v3187_v33  ;;  %v3836_v6 = vmax.f32 %v3555_v50, 0.0  ;;  %v11508_v13 = vld [vmem:[%s17231_s4 + $0xc4] ss:$8 sps:$4 sm:$0xff]  }
 0x39e   : > { %v3558_v26 = vpop.f32.mrf.mxu1  ;;  %4290 = vmatmul.mubr.bf16.gmra.mxu0 %v3949_v10  ;;  %v11506_v10 = vld [vmem:[%s17231_s4 + $0xc0] ss:$8 sps:$4 sm:$0xff]  }
 0x39f   : > { %v3559_v0 = vadd.f32 %v3558_v26, %v13279_v53  ;;  %3800 = vmatprep.mubr.bf16.mxu1 %v3253_v54  ;;  %5354 = vmatpush2.bf16.msra.mxu0 %v11503_v59  ;;  %v3837_v63 = vmax.f32 %v3557_v47, 0.0 }
 0x3a0   : > { %v3562_v22 = vpop.f32.mrf.mxu1  ;;  %3801 = vmatmul.mubr.bf16.gmra.mxu1 %v3252_v7  ;;  %5355 = vmatprep.subr.bf16.mxu0 %v11508_v13 }
 0x3a1   : > { %v3838_v3 = vmax.f32 %v3559_v0, 0.0  ;;  %4852 = vmatprep.mubr.bf16.mxu1 %v17233_v20  ;;  %v3951_v38 = vpack.c.bf16 %v3837_v63, %v3835_v35  ;;  %v3563_v44 = vadd.f32 %v3562_v22, %v13276_v48 }
 0x3a2   : > { %v3564_v12 = vpop.f32.mrf.mxu1 }
 0x3a3   : > { %v3952_v27 = vpack.c.bf16 %v3838_v3, %v3836_v6  ;;  %v3565_v29 = vadd.f32 %v3564_v12, %v13279_v53  ;;  %v3839_v60 = vmax.f32 %v3563_v44, 0.0  ;;  %5356 = vmatpush2.bf16.msra.mxu0 %v11506_v10  ;;  %v11511_v10 = vld [vmem:[%s17231_s4 + $0xb4] ss:$8 sps:$4 sm:$0xff]  }
 0x3a4   : > { %v3566_v14 = vpop.f32.mrf.mxu1  ;;  %5357 = vmatprep.subr.bf16.mxu0 %v11511_v10 }
 0x3a5   : > { %v3567_v51 = vadd.f32 %v3566_v14, %v13276_v48  ;;  %4299 = vmatprep.mubr.bf16.mxu0 %v3952_v27  ;;  %v3840_v33 = vmax.f32 %v3565_v29, 0.0 }
 0x3a6   : > { %v3568_v32 = vpop.f32.mrf.mxu1  ;;  %4300 = vmatmul.mubr.bf16.gmra.mxu0 %v3951_v38 }
 0x3a7   : > { %v3569_v11 = vadd.f32 %v3568_v32, %v13279_v53  ;;  %v3841_v2 = vmax.f32 %v3567_v51, 0.0 }
 0x3a8   : > { %v3572_v45 = vpop.f32.mrf.mxu1  ;;  %10693 = vmatmul.mubr.msk.bf16.vlgmr.msra.gmra.mxu1 %vm1104_vm2, %v12261_v15 }
 0x3a9   : > { %v3842_v5 = vmax.f32 %v3569_v11, 0.0  ;;  %4862 = vmatprep.mubr.bf16.mxu1 %v17233_v20  ;;  %v3953_v54 = vpack.c.bf16 %v3841_v2, %v3839_v60  ;;  %v3573_v0 = vadd.f32 %v3572_v45, %v13276_v48 }
 0x3aa   : > { %v3574_v59 = vpop.f32.mrf.mxu1 }
 0x3ab   : > { %v3954_v50 = vpack.c.bf16 %v3842_v5, %v3840_v33  ;;  %v3575_v26 = vadd.f32 %v3574_v59, %v13279_v53  ;;  %v3843_v35 = vmax.f32 %v3573_v0, 0.0  ;;  %v11509_v5 = vld [vmem:[%s17231_s4 + $0xb0] ss:$8 sps:$4 sm:$0xff]  }
 0x3ac   : > { %v3576_v47 = vpop.f32.mrf.mxu1  ;;  %5358 = vmatpush2.bf16.msra.mxu0 %v11509_v5  ;;  %v11515_v5 = vld [vmem:[%s17145_s15 + $0x70] ss:$8 sps:$4 sm:$0xff]  }
 0x3ad   : > { %v3577_v7 = vadd.f32 %v3576_v47, %v13276_v48  ;;  %4309 = vmatprep.mubr.bf16.mxu0 %v3954_v50  ;;  %v3844_v6 = vmax.f32 %v3575_v26, 0.0 }
 0x3ae   : > { %v3578_v57 = vpop.f32.mrf.mxu1  ;;  %4310 = vmatmul.mubr.bf16.gmra.mxu0 %v3953_v54 }
 0x3af   : > { %v3579_v22 = vadd.f32 %v3578_v57, %v13279_v53  ;;  %v3845_v63 = vmax.f32 %v3577_v7, 0.0 }
 0x3b0   : > { %v3582_v15 = vpop.f32.mrf.mxu1  ;;  %10694 = vmatmul.mubr.msk.bf16.gmra.mxu1 %vm1104_vm2, %v12268_v18 }
 0x3b1   : > { %v3846_v3 = vmax.f32 %v3579_v22, 0.0  ;;  %4872 = vmatprep.mubr.bf16.mxu1 %v17233_v20  ;;  %v3955_v38 = vpack.c.bf16 %v3845_v63, %v3843_v35  ;;  %v3583_v44 = vadd.f32 %v3582_v15, %v13276_v48 }
 0x3b2   : > { %v3584_v12 = vpop.f32.mrf.mxu1 }
 0x3b3   : > { %v3956_v27 = vpack.c.bf16 %v3846_v3, %v3844_v6  ;;  %v3585_v29 = vadd.f32 %v3584_v12, %v13279_v53  ;;  %v3847_v59 = vmax.f32 %v3583_v44, 0.0 }
 0x3b4   : > { %v3586_v14 = vpop.f32.mrf.mxu1 }
 0x3b5   : > { %v3587_v51 = vadd.f32 %v3586_v14, %v13276_v48  ;;  %4319 = vmatprep.mubr.bf16.mxu0 %v3956_v27  ;;  %v3848_v33 = vmax.f32 %v3585_v29, 0.0 }
 0x3b6   : > { %v3588_v32 = vpop.f32.mrf.mxu1  ;;  %4320 = vmatmul.mubr.bf16.gmra.mxu0 %v3955_v38 }
 0x3b7   : > { %v3589_v11 = vadd.f32 %v3588_v32, %v13279_v53  ;;  %v3849_v45 = vmax.f32 %v3587_v51, 0.0 }
 0x3b8   : > { %v3592_v18 = vpop.f32.mrf.mxu1  ;;  %10695 = vmatmul.mubr.msk.bf16.gmra.mxu1 %vm1104_vm2, %v12281_v23 }
 0x3b9   : > { %v3850_v2 = vmax.f32 %v3589_v11, 0.0  ;;  %4882 = vmatprep.mubr.bf16.mxu1 %v17233_v20  ;;  %v3957_v47 = vpack.c.bf16 %v3849_v45, %v3847_v59  ;;  %v3593_v57 = vadd.f32 %v3592_v18, %v13276_v48  ;;  %v11512_v45 = vld [vmem:[%s17231_s4 + $0xa0] ss:$8 sps:$4 sm:$0xff]  }
 0x3ba   : > { %v3594_v13 = vpop.f32.mrf.mxu1 }
 0x3bb   : > { %v3958_v60 = vpack.c.bf16 %v3850_v2, %v3848_v33  ;;  %v3595_v54 = vadd.f32 %v3594_v13, %v13279_v53  ;;  %v3851_v3 = vmax.f32 %v3593_v57, 0.0  ;;  %v11514_v2 = vld [vmem:[%s17231_s4 + $0xa4] ss:$8 sps:$4 sm:$0xff]  }
 0x3bc   : > { %v3596_v50 = vpop.f32.mrf.mxu1  ;;  %5359 = vmatprep.subr.bf16.mxu0 %v11514_v2 }
 0x3bd   : > { %v3597_v26 = vadd.f32 %v3596_v50, %v13276_v48  ;;  %4329 = vmatprep.mubr.bf16.mxu0 %v3958_v60  ;;  %v3852_v22 = vmax.f32 %v3595_v54, 0.0  ;;  %5360 = vmatpush2.bf16.msra.mxu0 %v11512_v45 }
 0x3be   : > { %v3598_v7 = vpop.f32.mrf.mxu1  ;;  %4330 = vmatmul.mubr.bf16.gmra.mxu0 %v3957_v47 }
 0x3bf   : > { %v3599_v0 = vadd.f32 %v3598_v7, %v13279_v53  ;;  %v3853_v15 = vmax.f32 %v3597_v26, 0.0 }
 0x3c0   : > { %v3602_v23 = vpop.f32.mrf.mxu1  ;;  %10696 = vmatmul.mubr.msk.bf16.gmra.mxu1 %vm1104_vm2, %v12300_v30 }
 0x3c1   : > { %v3854_v6 = vmax.f32 %v3599_v0, 0.0  ;;  %4892 = vmatprep.mubr.bf16.mxu1 %v17233_v20  ;;  %v3959_v27 = vpack.c.bf16 %v3853_v15, %v3851_v3  ;;  %v3603_v51 = vadd.f32 %v3602_v23, %v13276_v48 }
 0x3c2   : > { %v3604_v63 = vpop.f32.mrf.mxu1 }
 0x3c3   : > { %v3960_v12 = vpack.c.bf16 %v3854_v6, %v3852_v22  ;;  %v3605_v29 = vadd.f32 %v3604_v63, %v13279_v53  ;;  %v3855_v10 = vmax.f32 %v3603_v51, 0.0 }
 0x3c4   : > { %v3606_v35 = vpop.f32.mrf.mxu1 }
 0x3c5   : > { %v3607_v14 = vadd.f32 %v3606_v35, %v13276_v48  ;;  %4339 = vmatprep.mubr.bf16.mxu0 %v3960_v12  ;;  %v3856_v30 = vmax.f32 %v3605_v29, 0.0 }
 0x3c6   : > { %v3608_v38 = vpop.f32.mrf.mxu1  ;;  %4340 = vmatmul.mubr.bf16.gmra.mxu0 %v3959_v27 }
 0x3c7   : > { %v3609_v32 = vadd.f32 %v3608_v38, %v13279_v53  ;;  %v3857_v11 = vmax.f32 %v3607_v14, 0.0 }
 0x3c8   : > { %v3612_v44 = vpop.f32.mrf.mxu1  ;;  %10697 = vmatmul.mubr.msk.bf16.gmra.mxu1 %vm1104_vm2, %v12325_v39  ;;  %v11517_v39 = vld [vmem:[%s17145_s15 + $0x74] ss:$8 sps:$4 sm:$0xff]  }
 0x3c9   : > { %v3858_v33 = vmax.f32 %v3609_v32, 0.0  ;;  %4902 = vmatprep.mubr.bf16.mxu1 %v17233_v20  ;;  %v3961_v60 = vpack.c.bf16 %v3857_v11, %v3855_v10  ;;  %6222 = vmatprep.subr.bf16.mxu1 %v11517_v39  ;;  %v3613_v26 = vadd.f32 %v3612_v44, %v13276_v48  ;;  %v11518_v11 = vld [vmem:[%s17231_s4 + $0x90] ss:$8 sps:$4 sm:$0xff]  }
 0x3ca   : > { %v3614_v18 = vpop.f32.mrf.mxu1  ;;  %6223 = vmatpush1.bf16.msra.mxu1 %v11515_v5 }
 0x3cb   : > { %v3962_v13 = vpack.c.bf16 %v3858_v33, %v3856_v30  ;;  %v3615_v50 = vadd.f32 %v3614_v18, %v13279_v53  ;;  %v3859_v6 = vmax.f32 %v3613_v26, 0.0  ;;  %v11520_v33 = vld [vmem:[%s17231_s4 + $0x94] ss:$8 sps:$4 sm:$0xff]   ;;  %v11521_v18 = vld [vmem:[%s17145_s15 + $0x60] ss:$8 sps:$4 sm:$0xff]  }
 0x3cc   : > { %v3616_v59 = vpop.f32.mrf.mxu1  ;;  %5361 = vmatprep.subr.bf16.mxu0 %v11520_v33 }
 0x3cd   : > { %v3617_v47 = vadd.f32 %v3616_v59, %v13276_v48  ;;  %4349 = vmatprep.mubr.bf16.mxu0 %v3962_v13  ;;  %v3860_v0 = vmax.f32 %v3615_v50, 0.0  ;;  %5362 = vmatpush2.bf16.msra.mxu0 %v11518_v11 }
 0x3ce   : > { %v3618_v54 = vpop.f32.mrf.mxu1  ;;  %4350 = vmatmul.mubr.bf16.gmra.mxu0 %v3961_v60 }
 0x3cf   : > { %v3619_v7 = vadd.f32 %v3618_v54, %v13279_v53  ;;  %v3861_v23 = vmax.f32 %v3617_v47, 0.0 }
 0x3d0   : > { %v3622_v57 = vpop.f32.mrf.mxu1  ;;  %10698 = vmatmul.mubr.msk.bf16.gmra.mxu1 %vm1104_vm2, %v12344_v46 }
 0x3d1   : > { %v3862_v22 = vmax.f32 %v3619_v7, 0.0  ;;  %4912 = vmatprep.mubr.bf16.mxu1 %v17233_v20  ;;  %v3963_v12 = vpack.c.bf16 %v3861_v23, %v3859_v6  ;;  %v3623_v14 = vadd.f32 %v3622_v57, %v13276_v48 }
 0x3d2   : > { %v3624_v15 = vpop.f32.mrf.mxu1 }
 0x3d3   : > { %v3964_v63 = vpack.c.bf16 %v3862_v22, %v3860_v0  ;;  %v3625_v35 = vadd.f32 %v3624_v15, %v13279_v53  ;;  %v3863_v45 = vmax.f32 %v3623_v14, 0.0 }
 0x3d4   : > { %v3626_v3 = vpop.f32.mrf.mxu1 }
 0x3d5   : > { %v3627_v27 = vadd.f32 %v3626_v3, %v13276_v48  ;;  %4359 = vmatprep.mubr.bf16.mxu0 %v3964_v63  ;;  %v3864_v46 = vmax.f32 %v3625_v35, 0.0 }
 0x3d6   : > { %v3628_v29 = vpop.f32.mrf.mxu1  ;;  %4360 = vmatmul.mubr.bf16.gmra.mxu0 %v3963_v12 }
 0x3d7   : > { %v3629_v38 = vadd.f32 %v3628_v29, %v13279_v53  ;;  %v3865_v32 = vmax.f32 %v3627_v27, 0.0 }
 0x3d8   : > { %v3632_v51 = vpop.f32.mrf.mxu1  ;;  %10699 = vmatmul.mubr.msk.bf16.gmra.mxu1 %vm1104_vm2, %v12369_v55  ;;  %v11523_v55 = vld [vmem:[%s17145_s15 + $0x64] ss:$8 sps:$4 sm:$0xff]  }
 0x3d9   : > { %v3866_v44 = vmax.f32 %v3629_v38, 0.0  ;;  %4922 = vmatprep.mubr.bf16.mxu1 %v17233_v20  ;;  %v3965_v10 = vpack.c.bf16 %v3865_v32, %v3863_v45  ;;  %6224 = vmatprep.subr.bf16.mxu1 %v11523_v55  ;;  %v3633_v60 = vadd.f32 %v3632_v51, %v13276_v48  ;;  %v11524_v51 = vld [vmem:[%s17231_s4 + $0x80] ss:$8 sps:$4 sm:$0xff]   ;;  %v11527_v32 = vld [vmem:[%s17145_s15 + $0x50] ss:$8 sps:$4 sm:$0xff]  }
 0x3da   : > { %v3634_v30 = vpop.f32.mrf.mxu1  ;;  %6225 = vmatpush1.bf16.msra.mxu1 %v11521_v18 }
 0x3db   : > { %v3966_v2 = vpack.c.bf16 %v3866_v44, %v3864_v46  ;;  %v3635_v13 = vadd.f32 %v3634_v30, %v13279_v53  ;;  %v3867_v0 = vmax.f32 %v3633_v60, 0.0  ;;  %v11526_v46 = vld [vmem:[%s17231_s4 + $0x84] ss:$8 sps:$4 sm:$0xff]  }
 0x3dc   : > { %v3636_v5 = vpop.f32.mrf.mxu1  ;;  %5363 = vmatprep.subr.bf16.mxu0 %v11526_v46 }
 0x3dd   : > { %v3637_v39 = vadd.f32 %v3636_v5, %v13276_v48  ;;  %4369 = vmatprep.mubr.bf16.mxu0 %v3966_v2  ;;  %v3868_v54 = vmax.f32 %v3635_v13, 0.0  ;;  %5364 = vmatpush2.bf16.msra.mxu0 %v11524_v51 }
 0x3de   : > { %v3638_v59 = vpop.f32.mrf.mxu1  ;;  %4370 = vmatmul.mubr.bf16.gmra.mxu0 %v3965_v10 }
 0x3df   : > { %v3639_v50 = vadd.f32 %v3638_v59, %v13279_v53  ;;  %v3869_v26 = vmax.f32 %v3637_v39, 0.0 }
 0x3e0   : > { %v3642_v47 = vpop.f32.mrf.mxu1  ;;  %10700 = vmatmul.mubr.msk.bf16.gmra.mxu1 %vm1104_vm2, %v12388_v62 }
 0x3e1   : > { %v3870_v7 = vmax.f32 %v3639_v50, 0.0  ;;  %4932 = vmatprep.mubr.bf16.mxu1 %v17233_v20  ;;  %v3967_v15 = vpack.c.bf16 %v3869_v26, %v3867_v0  ;;  %v3643_v12 = vadd.f32 %v3642_v47, %v13276_v48 }
 0x3e2   : > { %v3644_v57 = vpop.f32.mrf.mxu1 }
 0x3e3   : > { %v3968_v23 = vpack.c.bf16 %v3870_v7, %v3868_v54  ;;  %v3645_v6 = vadd.f32 %v3644_v57, %v13279_v53  ;;  %v3871_v44 = vmax.f32 %v3643_v12, 0.0 }
 0x3e4   : > { %v3646_v22 = vpop.f32.mrf.mxu1 }
 0x3e5   : > { %v3647_v63 = vadd.f32 %v3646_v22, %v13276_v48  ;;  %4379 = vmatprep.mubr.bf16.mxu0 %v3968_v23  ;;  %v3872_v62 = vmax.f32 %v3645_v6, 0.0  ;;  %v11532_v6 = vld [vmem:[%s17145_s15 + $0x44] ss:$8 sps:$4 sm:$0xff]  }
 0x3e6   : > { %v3648_v3 = vpop.f32.mrf.mxu1  ;;  %4380 = vmatmul.mubr.bf16.gmra.mxu0 %v3967_v15 }
 0x3e7   : > { %v3649_v35 = vadd.f32 %v3648_v3, %v13279_v53  ;;  %v3873_v29 = vmax.f32 %v3647_v63, 0.0 }
 0x3e8   : > { %v3652_v27 = vpop.f32.mrf.mxu1  ;;  %10701 = vmatmul.mubr.msk.bf16.gmra.mxu1 %vm1104_vm2, %v12413_v9  ;;  %v11529_v9 = vld [vmem:[%s17145_s15 + $0x54] ss:$8 sps:$4 sm:$0xff]  }
 0x3e9   : > { %v3874_v14 = vmax.f32 %v3649_v35, 0.0  ;;  %4942 = vmatprep.mubr.bf16.mxu1 %v17233_v20  ;;  %v3969_v33 = vpack.c.bf16 %v3873_v29, %v3871_v44  ;;  %6226 = vmatprep.subr.bf16.mxu1 %v11529_v9  ;;  %v3653_v55 = vadd.f32 %v3652_v27, %v13276_v48 }
 0x3ea   : > { %v3654_v38 = vpop.f32.mrf.mxu1  ;;  %6227 = vmatpush1.bf16.msra.mxu1 %v11527_v32 }
 0x3eb   : > { %v3970_v30 = vpack.c.bf16 %v3874_v14, %v3872_v62  ;;  %v3655_v18 = vadd.f32 %v3654_v38, %v13279_v53  ;;  %v3875_v50 = vmax.f32 %v3653_v55, 0.0  ;;  %6228 = vmatprep.subr.bf16.mxu1 %v11532_v6 }
 0x3ec   : > { %v3656_v11 = vpop.f32.mrf.mxu1 }
 0x3ed   : > { %v3657_v45 = vadd.f32 %v3656_v11, %v13276_v48  ;;  %4389 = vmatprep.mubr.bf16.mxu0 %v3970_v30  ;;  %v3876_v13 = vmax.f32 %v3655_v18, 0.0 }
 0x3ee   : > { %v3658_v2 = vpop.f32.mrf.mxu1  ;;  %4390 = vmatmul.mubr.bf16.gmra.mxu0 %v3969_v33 }
 0x3ef   : > { %v3659_v5 = vadd.f32 %v3658_v2, %v13279_v53  ;;  %v3877_v39 = vmax.f32 %v3657_v45, 0.0 }
 0x3f0   : > { %v3662_v10 = vpop.f32.mrf.mxu1  ;;  %10702 = vmatmul.mubr.msk.bf16.gmra.mxu1 %vm1104_vm2, %v12426_v16  ;;  %v11530_v16 = vld [vmem:[%s17145_s15 + $0x40] ss:$8 sps:$4 sm:$0xff]  }
 0x3f1   : > { %v3878_v59 = vmax.f32 %v3659_v5, 0.0  ;;  %4952 = vmatprep.mubr.bf16.mxu1 %v17233_v20  ;;  %v3971_v26 = vpack.c.bf16 %v3877_v39, %v3875_v50  ;;  %v3663_v23 = vadd.f32 %v3662_v10, %v13276_v48  ;;  %6229 = vmatpush1.bf16.msra.mxu1 %v11530_v16  ;;  %v11535_v50 = vld [vmem:[%s17145_s15 + $0x34] ss:$8 sps:$4 sm:$0xff]  }
 0x3f2   : > { %v3664_v60 = vpop.f32.mrf.mxu1  ;;  %6230 = vmatprep.subr.bf16.mxu1 %v11535_v50 }
 0x3f3   : > { %v3972_v47 = vpack.c.bf16 %v3878_v59, %v3876_v13  ;;  %v3665_v7 = vadd.f32 %v3664_v60, %v13279_v53  ;;  %v3879_v27 = vmax.f32 %v3663_v23, 0.0 }
 0x3f4   : > { %v3666_v54 = vpop.f32.mrf.mxu1 }
 0x3f5   : > { %v3667_v57 = vadd.f32 %v3666_v54, %v13276_v48  ;;  %4399 = vmatprep.mubr.bf16.mxu0 %v3972_v47  ;;  %v3880_v63 = vmax.f32 %v3665_v7, 0.0 }
 0x3f6   : > { %v3668_v0 = vpop.f32.mrf.mxu1  ;;  %4400 = vmatmul.mubr.bf16.gmra.mxu0 %v3971_v26 }
 0x3f7   : > { %v3669_v22 = vadd.f32 %v3668_v0, %v13279_v53  ;;  %v3881_v3 = vmax.f32 %v3667_v57, 0.0 }
 0x3f8   : > { %v3672_v15 = vpop.f32.mrf.mxu1  ;;  %10703 = vmatmul.mubr.msk.bf16.gmra.mxu1 %vm1104_vm2, %v12445_v25 }
 0x3f9   : > { %v3882_v12 = vmax.f32 %v3669_v22, 0.0  ;;  %4962 = vmatprep.mubr.bf16.mxu1 %v17233_v20  ;;  %v3973_v14 = vpack.c.bf16 %v3881_v3, %v3879_v27  ;;  %v3673_v32 = vadd.f32 %v3672_v15, %v13276_v48 }
 0x3fa   : > { %v3674_v35 = vpop.f32.mrf.mxu1 }
 0x3fb   : > { %v3974_v62 = vpack.c.bf16 %v3882_v12, %v3880_v63  ;;  %v3675_v38 = vadd.f32 %v3674_v35, %v13279_v53  ;;  %v3883_v18 = vmax.f32 %v3673_v32, 0.0 }
 0x3fc   : > { %v3676_v29 = vpop.f32.mrf.mxu1 }
 0x3fd   : > { %v3677_v51 = vadd.f32 %v3676_v29, %v13276_v48  ;;  %4409 = vmatprep.mubr.bf16.mxu0 %v3974_v62  ;;  %v3884_v30 = vmax.f32 %v3675_v38, 0.0 }
 0x3fe   : > { %v3678_v46 = vpop.f32.mrf.mxu1  ;;  %4410 = vmatmul.mubr.bf16.gmra.mxu0 %v3973_v14 }
 0x3ff   : > { %v3679_v44 = vadd.f32 %v3678_v46, %v13279_v53  ;;  %v3885_v9 = vmax.f32 %v3677_v51, 0.0 }
 0x400   : > { %v3682_v25 = vpop.f32.mrf.mxu1  ;;  %10704 = vmatmul.mubr.msk.bf16.gmra.mxu1 %vm1104_vm2, %v12458_v31  ;;  %v11533_v31 = vld [vmem:[%s17145_s15 + $0x30] ss:$8 sps:$4 sm:$0xff]  }
 0x401   : > { %v3886_v11 = vmax.f32 %v3679_v44, 0.0  ;;  %4972 = vmatprep.mubr.bf16.mxu1 %v17233_v20  ;;  %v3975_v55 = vpack.c.bf16 %v3885_v9, %v3883_v18  ;;  %v3683_v39 = vadd.f32 %v3682_v25, %v13276_v48  ;;  %6231 = vmatpush1.bf16.msra.mxu1 %v11533_v31 }
 0x402   : > { %v3684_v33 = vpop.f32.mrf.mxu1 }
 0x403   : > { %v3976_v45 = vpack.c.bf16 %v3886_v11, %v3884_v30  ;;  %v3685_v5 = vadd.f32 %v3684_v33, %v13279_v53  ;;  %v3887_v57 = vmax.f32 %v3683_v39, 0.0  ;;  %v11538_v11 = vld [vmem:[%s17145_s15 + $0x24] ss:$8 sps:$4 sm:$0xff]  }
 0x404   : > { %v3686_v2 = vpop.f32.mrf.mxu1  ;;  %6232 = vmatprep.subr.bf16.mxu1 %v11538_v11 }
 0x405   : > { %v3687_v10 = vadd.f32 %v3686_v2, %v13276_v48  ;;  %4419 = vmatprep.mubr.bf16.mxu0 %v3976_v45  ;;  %v3888_v47 = vmax.f32 %v3685_v5, 0.0 }
 0x406   : > { %v3688_v13 = vpop.f32.mrf.mxu1  ;;  %4420 = vmatmul.mubr.bf16.gmra.mxu0 %v3975_v55 }
 0x407   : > { %v3689_v59 = vadd.f32 %v3688_v13, %v13279_v53  ;;  %v3889_v54 = vmax.f32 %v3687_v10, 0.0 }
 0x408   : > { %v3692_v60 = vpop.f32.mrf.mxu1  ;;  %10705 = vmatmul.mubr.msk.bf16.gmra.mxu1 %vm1104_vm2, %v12465_v34 }
 0x409   : > { %v3890_v26 = vmax.f32 %v3689_v59, 0.0  ;;  %4982 = vmatprep.mubr.bf16.mxu1 %v17233_v20  ;;  %v3977_v22 = vpack.c.bf16 %v3889_v54, %v3887_v57  ;;  %v3693_v63 = vadd.f32 %v3692_v60, %v13276_v48 }
 0x40a   : > { %v3694_v7 = vpop.f32.mrf.mxu1 }
 0x40b   : > { %v3978_v0 = vpack.c.bf16 %v3890_v26, %v3888_v47  ;;  %v3695_v15 = vadd.f32 %v3694_v7, %v13279_v53  ;;  %v3891_v29 = vmax.f32 %v3693_v63, 0.0 }
 0x40c   : > { %v3696_v23 = vpop.f32.mrf.mxu1 }
 0x40d   : > { %v3697_v16 = vadd.f32 %v3696_v23, %v13276_v48  ;;  %4429 = vmatprep.mubr.bf16.mxu0 %v3978_v0  ;;  %v3892_v12 = vmax.f32 %v3695_v15, 0.0 }
 0x40e   : > { %v3698_v6 = vpop.f32.mrf.mxu1  ;;  %4430 = vmatmul.mubr.bf16.gmra.mxu0 %v3977_v22 }
 0x40f   : > { %v3699_v3 = vadd.f32 %v3698_v6, %v13279_v53  ;;  %v3893_v35 = vmax.f32 %v3697_v16, 0.0 }
 0x410   : > { %v3702_v34 = vpop.f32.mrf.mxu1  ;;  %10706 = vmatmul.mubr.msk.bf16.gmra.mxu1 %vm1104_vm2, %v12478_v40  ;;  %v11536_v40 = vld [vmem:[%s17145_s15 + $0x20] ss:$8 sps:$4 sm:$0xff]  }
 0x411   : > { %v3894_v27 = vmax.f32 %v3699_v3, 0.0  ;;  %4992 = vmatprep.mubr.bf16.mxu1 %v17233_v20  ;;  %v3979_v51 = vpack.c.bf16 %v3893_v35, %v3891_v29  ;;  %v3703_v25 = vadd.f32 %v3702_v34, %v13276_v48  ;;  %6233 = vmatpush1.bf16.msra.mxu1 %v11536_v40 }
 0x412   : > { %v3704_v62 = vpop.f32.mrf.mxu1 }
 0x413   : > { %v3980_v14 = vpack.c.bf16 %v3894_v27, %v3892_v12  ;;  %v3705_v46 = vadd.f32 %v3704_v62, %v13279_v53  ;;  %v3895_v55 = vmax.f32 %v3703_v25, 0.0  ;;  %v11541_v12 = vld [vmem:[%s17145_s15 + $0x14] ss:$8 sps:$4 sm:$0xff]  }
 0x414   : > { %v3706_v38 = vpop.f32.mrf.mxu1  ;;  %6234 = vmatprep.subr.bf16.mxu1 %v11541_v12 }
 0x415   : > { %v3707_v32 = vadd.f32 %v3706_v38, %v13276_v48  ;;  %4439 = vmatprep.mubr.bf16.mxu0 %v3980_v14  ;;  %v3896_v33 = vmax.f32 %v3705_v46, 0.0 }
 0x416   : > { %v3708_v44 = vpop.f32.mrf.mxu1  ;;  %4440 = vmatmul.mubr.bf16.gmra.mxu0 %v3979_v51 }
 0x417   : > { %v3709_v30 = vadd.f32 %v3708_v44, %v13279_v53  ;;  %v3897_v18 = vmax.f32 %v3707_v32, 0.0 }
 0x418   : > { %v3712_v9 = vpop.f32.mrf.mxu1  ;;  %10707 = vmatmul.mubr.msk.bf16.gmra.mxu1 %vm1104_vm2, %v12485_v43 }
 0x419   : > { %v3898_v45 = vmax.f32 %v3709_v30, 0.0  ;;  %5002 = vmatprep.mubr.bf16.mxu1 %v17233_v20  ;;  %v3981_v13 = vpack.c.bf16 %v3897_v18, %v3895_v55  ;;  %v3713_v31 = vadd.f32 %v3712_v9, %v13276_v48 }
 0x41a   : > { %v3714_v2 = vpop.f32.mrf.mxu1 }
 0x41b   : > { %v3982_v5 = vpack.c.bf16 %v3898_v45, %v3896_v33  ;;  %v3715_v39 = vadd.f32 %v3714_v2, %v13279_v53  ;;  %v3899_v57 = vmax.f32 %v3713_v31, 0.0 }
 0x41c   : > { %v3716_v10 = vpop.f32.mrf.mxu1 }
 0x41d   : > { %v3717_v59 = vadd.f32 %v3716_v10, %v13276_v48  ;;  %4449 = vmatprep.mubr.bf16.mxu0 %v3982_v5  ;;  %v3900_v47 = vmax.f32 %v3715_v39, 0.0 }
 0x41e   : > { %v3718_v60 = vpop.f32.mrf.mxu1  ;;  %4450 = vmatmul.mubr.bf16.gmra.mxu0 %v3981_v13 }
 0x41f   : > { %v3719_v50 = vadd.f32 %v3718_v60, %v13279_v53  ;;  %v3901_v54 = vmax.f32 %v3717_v59, 0.0 }
 0x420   : > { %v3722_v43 = vpop.f32.mrf.mxu1  ;;  %10708 = vmatmul.mubr.msk.bf16.gmra.mxu1 %vm1104_vm2, %v12498_v49  ;;  %v11539_v49 = vld [vmem:[%s17145_s15 + $0x10] ss:$8 sps:$4 sm:$0xff]  }
 0x421   : > { %v3902_v26 = vmax.f32 %v3719_v50, 0.0  ;;  %5012 = vmatprep.mubr.bf16.mxu1 %v17233_v20  ;;  %v3983_v22 = vpack.c.bf16 %v3901_v54, %v3899_v57  ;;  %v3723_v63 = vadd.f32 %v3722_v43, %v13276_v48  ;;  %6235 = vmatpush1.bf16.msra.mxu1 %v11539_v49  ;;  %v11544_v50 = vld [vmem:[%s17145_s15 + $0x4] ss:$8 sps:$4 sm:$0xff]  }
 0x422   : > { %v3724_v7 = vpop.f32.mrf.mxu1  ;;  %6236 = vmatprep.subr.bf16.mxu1 %v11544_v50 }
 0x423   : > { %v3984_v0 = vpack.c.bf16 %v3902_v26, %v3900_v47  ;;  %v3725_v15 = vadd.f32 %v3724_v7, %v13279_v53  ;;  %v3903_v14 = vmax.f32 %v3723_v63, 0.0 }
 0x424   : > { %v3726_v23 = vpop.f32.mrf.mxu1 }
 0x425   : > { %v3727_v16 = vadd.f32 %v3726_v23, %v13276_v48  ;;  %4459 = vmatprep.mubr.bf16.mxu0 %v3984_v0  ;;  %v3904_v35 = vmax.f32 %v3725_v15, 0.0 }
 0x426   : > { %v3728_v6 = vpop.f32.mrf.mxu1  ;;  %4460 = vmatmul.mubr.bf16.gmra.mxu0 %v3983_v22 }
 0x427   : > { %v3729_v3 = vadd.f32 %v3728_v6, %v13279_v53  ;;  %v3905_v27 = vmax.f32 %v3727_v16, 0.0 }
 0x428   : > { %v3732_v34 = vpop.f32.mrf.mxu1  ;;  %10709 = vmatmul.mubr.msk.bf16.gmra.mxu1 %vm1104_vm2, %v12505_v52 }
 0x429   : > { %v3906_v62 = vmax.f32 %v3729_v3, 0.0  ;;  %5022 = vmatprep.mubr.bf16.mxu1 %v17233_v20  ;;  %v3985_v46 = vpack.c.bf16 %v3905_v27, %v3903_v14  ;;  %v3733_v30 = vadd.f32 %v3732_v34, %v13276_v48 }
 0x42a   : > { %v3734_v29 = vpop.f32.mrf.mxu1 }
 0x42b   : > { %v3986_v38 = vpack.c.bf16 %v3906_v62, %v3904_v35  ;;  %v3735_v32 = vadd.f32 %v3734_v29, %v13279_v53  ;;  %v3907_v45 = vmax.f32 %v3733_v30, 0.0 }
 0x42c   : > { %v3736_v51 = vpop.f32.mrf.mxu1 }
 0x42d   : > { %v3737_v44 = vadd.f32 %v3736_v51, %v13276_v48  ;;  %4469 = vmatprep.mubr.bf16.mxu0 %v3986_v38  ;;  %v3908_v40 = vmax.f32 %v3735_v32, 0.0 }
 0x42e   : > { %v3738_v25 = vpop.f32.mrf.mxu1  ;;  %4470 = vmatmul.mubr.bf16.gmra.mxu0 %v3985_v46 }
 0x42f   : > { %v3739_v9 = vadd.f32 %v3738_v25, %v13279_v53  ;;  %v3909_v11 = vmax.f32 %v3737_v44, 0.0 }
 0x430   : > { %v3742_v52 = vpop.f32.mrf.mxu1  ;;  %10710 = vmatmul.mubr.msk.bf16.gmra.mxu1 %vm1104_vm2, %v12518_v58  ;;  %v11542_v58 = vld [vmem:[%s17145_s15] ss:$8 sps:$4 sm:$0xff]  }
 0x431   : > { %v3910_v33 = vmax.f32 %v3739_v9, 0.0  ;;  %5032 = vmatprep.mubr.bf16.mxu1 %v17233_v20  ;;  %v3987_v5 = vpack.c.bf16 %v3909_v11, %v3907_v45  ;;  %v3743_v59 = vadd.f32 %v3742_v52, %v13276_v48  ;;  %6237 = vmatpush1.bf16.msra.mxu1 %v11542_v58  ;;  %v11547_v45 = vld [vmem:[%s17145_s15 + $0xf4] ss:$8 sps:$4 sm:$0xff]  }
 0x432   : > { %v3744_v18 = vpop.f32.mrf.mxu1  ;;  %6238 = vmatprep.subr.bf16.mxu1 %v11547_v45 }
 0x433   : > { %v3988_v2 = vpack.c.bf16 %v3910_v33, %v3908_v40  ;;  %v3745_v10 = vadd.f32 %v3744_v18, %v13279_v53  ;;  %v3911_v57 = vmax.f32 %v3743_v59, 0.0  ;;  %v11545_v18 = vld [vmem:[%s17145_s15 + $0xf0] ss:$8 sps:$4 sm:$0xff]  }
 0x434   : > { %v3746_v55 = vpop.f32.mrf.mxu1 }
 0x435   : > { %v3747_v13 = vadd.f32 %v3746_v55, %v13276_v48  ;;  %4479 = vmatprep.mubr.bf16.mxu0 %v3988_v2  ;;  %v3912_v43 = vmax.f32 %v3745_v10, 0.0  ;;  %6239 = vmatpush2.bf16.msra.mxu1 %v11545_v18 }
 0x436   : > { %v3748_v39 = vpop.f32.mrf.mxu1  ;;  %v13605_v31 = vpop.f32.mrf.mxu0  ;;  %4480 = vmatmul.mubr.bf16.gmra.mxu0 %v3987_v5 }
 0x437   : > { %v3749_v60 = vadd.f32 %v3748_v39, %v13279_v53  ;;  %v3913_v47 = vmax.f32 %v3747_v13, 0.0 }
 0x438   : > { %v3752_v26 = vpop.f32.mrf.mxu1  ;;  %v13613_v7 = vpop.f32.mrf.mxu0  ;;  %10711 = vmatmul.mubr.msk.bf16.gmra.mxu1 %vm1104_vm2, %v12525_v61 }
 0x439   : > { %v3914_v54 = vmax.f32 %v3749_v60, 0.0  ;;  %5042 = vmatprep.mubr.bf16.mxu1 %v17233_v20  ;;  %v3989_v15 = vpack.c.bf16 %v3913_v47, %v3911_v57  ;;  %v3753_v49 = vadd.f32 %v3752_v26, %v13276_v48 }
 0x43a   : > { %v3754_v0 = vpop.f32.mrf.mxu1  ;;  %v13618_v23 = vpop.f32.mrf.mxu0 }
 0x43b   : > { %v3990_v22 = vpack.c.bf16 %v3914_v54, %v3912_v43  ;;  %v3755_v3 = vadd.f32 %v3754_v0, %v13279_v53  ;;  %v3915_v46 = vmax.f32 %v3753_v49, 0.0 }
 0x43c   : > { %v3756_v16 = vpop.f32.mrf.mxu1  ;;  %v13620_v6 = vpop.f32.mrf.mxu0 }
 0x43d   : > { %4489 = vmatprep.mubr.bf16.mxu0 %v3990_v22  ;;  %v3757_v63 = vadd.f32 %v3756_v16, %v13276_v48  ;;  %v3916_v14 = vmax.f32 %v3755_v3, 0.0 }
 0x43e   : > { %v3758_v34 = vpop.f32.mrf.mxu1  ;;  %v13624_v61 = vpop.f32.mrf.mxu0  ;;  %4490 = vmatmul.mubr.bf16.gmra.mxu0 %v3989_v15 }
 0x43f   : > { %v3759_v12 = vadd.f32 %v3758_v34, %v13279_v53  ;;  %v3917_v62 = vmax.f32 %v3757_v63, 0.0 }
 0x440   : > { %v3762_v35 = vpop.f32.mrf.mxu1  ;;  %v13628_v27 = vpop.f32.mrf.mxu0  ;;  %10712 = vmatmul.mubr.msk.bf16.gmra.mxu1 %vm1104_vm2, %v12538_v4 }
 0x441   : > { %v3918_v29 = vmax.f32 %v3759_v12, 0.0  ;;  %5052 = vmatprep.mubr.bf16.mxu1 %v17233_v20  ;;  %v3991_v30 = vpack.c.bf16 %v3917_v62, %v3915_v46  ;;  %v3763_v11 = vadd.f32 %v3762_v35, %v13276_v48 }
 0x442   : > { %v3764_v38 = vpop.f32.mrf.mxu1  ;;  %v13633_v51 = vpop.f32.mrf.mxu0 }
 0x443   : > { %v3992_v25 = vpack.c.bf16 %v3918_v29, %v3916_v14  ;;  %v3765_v52 = vadd.f32 %v3764_v38, %v13279_v53  ;;  %v3919_v60 = vmax.f32 %v3763_v11, 0.0 }
 0x444   : > { %v3766_v32 = vpop.f32.mrf.mxu1  ;;  %v13635_v44 = vpop.f32.mrf.mxu0 }
 0x445   : > { %v3767_v9 = vadd.f32 %v3766_v32, %v13276_v48  ;;  %4499 = vmatprep.mubr.bf16.mxu0 %v3992_v25  ;;  %v3920_v13 = vmax.f32 %v3765_v52, 0.0  ;;  %v11548_v52 = vld [vmem:[%s17145_s15 + $0xe0] ss:$8 sps:$4 sm:$0xff]  }
 0x446   : > { %v3768_v4 = vpop.f32.mrf.mxu1  ;;  %v13639_v40 = vpop.f32.mrf.mxu0  ;;  %4500 = vmatmul.mubr.bf16.gmra.mxu0 %v3991_v30 }
 0x447   : > { %v3769_v33 = vadd.f32 %v3768_v4, %v13279_v53  ;;  %v3921_v5 = vmax.f32 %v3767_v9, 0.0  ;;  %v11550_v4 = vld [vmem:[%s17145_s15 + $0xe4] ss:$8 sps:$4 sm:$0xff]  }
 0x448   : > { %v3772_v2 = vpop.f32.mrf.mxu1  ;;  %v13649_v55 = vpop.f32.mrf.mxu0  ;;  %10713 = vmatmul.mubr.msk.bf16.gmra.mxu1 %vm1104_vm2, %v12545_v8  ;;  %6240 = vmatprep.subr.bf16.mxu1 %v11550_v4 }
 0x449   : > { %v3922_v10 = vmax.f32 %v3769_v33, 0.0  ;;  %5062 = vmatprep.mubr.bf16.mxu1 %v17233_v20  ;;  %v3993_v47 = vpack.c.bf16 %v3921_v5, %v3919_v60  ;;  %v3773_v0 = vadd.f32 %v3772_v2, %v13276_v48  ;;  %6241 = vmatpush2.bf16.msra.mxu1 %v11548_v52 }
 0x44a   : > { %v3774_v39 = vpop.f32.mrf.mxu1  ;;  %v13654_v59 = vpop.f32.mrf.mxu0 }
 0x44b   : > { %v3994_v43 = vpack.c.bf16 %v3922_v10, %v3920_v13  ;;  %v3775_v8 = vadd.f32 %v3774_v39, %v13279_v53  ;;  %v3923_v35 = vmax.f32 %v3773_v0, 0.0 }
 0x44c   : > { %v3776_v58 = vpop.f32.mrf.mxu1  ;;  %v13656_v50 = vpop.f32.mrf.mxu0 }
 0x44d   : > { %v3777_v54 = vadd.f32 %v3776_v58, %v13276_v48  ;;  %4509 = vmatprep.mubr.bf16.mxu0 %v3994_v43  ;;  %v3924_v34 = vmax.f32 %v3775_v8, 0.0 }
 0x44e   : > { %v3778_v26 = vpop.f32.mrf.mxu1  ;;  %v13660_v57 = vpop.f32.mrf.mxu0  ;;  %4510 = vmatmul.mubr.bf16.gmra.mxu0 %v3993_v47 }
 0x44f   : > { %v3779_v22 = vadd.f32 %v3778_v26, %v13279_v53  ;;  %v3925_v63 = vmax.f32 %v3777_v54, 0.0 }
 0x450   : > { %v3782_v15 = vpop.f32.mrf.mxu1  ;;  %v13664_v16 = vpop.f32.mrf.mxu0  ;;  %10714 = vmatmul.mubr.msk.bf16.gmra.mxu1 %vm1104_vm2, %v12558_v17 }
 0x451   : > { %v3926_v3 = vmax.f32 %v3779_v22, 0.0  ;;  %5072 = vmatprep.mubr.bf16.mxu1 %v17233_v20  ;;  %v3995_v38 = vpack.c.bf16 %v3925_v63, %v3923_v35  ;;  %v3783_v30 = vadd.f32 %v3782_v15, %v13276_v48 }
 0x452   : > { %v3784_v49 = vpop.f32.mrf.mxu1  ;;  %v13669_v12 = vpop.f32.mrf.mxu0 }
 0x453   : > { %v3996_v14 = vpack.c.bf16 %v3926_v3, %v3924_v34  ;;  %v3785_v32 = vadd.f32 %v3784_v49, %v13279_v53  ;;  %v3927_v13 = vmax.f32 %v3783_v30, 0.0 }
 0x454   : > { %v3786_v62 = vpop.f32.mrf.mxu1  ;;  %v13671_v29 = vpop.f32.mrf.mxu0 }
 0x455   : > { %v3787_v46 = vadd.f32 %v3786_v62, %v13276_v48  ;;  %4519 = vmatprep.mubr.bf16.mxu0 %v3996_v14  ;;  %v3928_v2 = vmax.f32 %v3785_v32, 0.0  ;;  %v4035_v62 = vld [vmem:[%s17234_s30] sm:$0x3]  ;;  %s17370_s30 = sld [smem:[#allocation112_spill]] }
 0x456   : > { %v3788_v17 = vpop.f32.mrf.mxu1  ;;  %v13675_v25 = vpop.f32.mrf.mxu0  ;;  %4520 = vmatmul.mubr.bf16.gmra.mxu0 %v3995_v38  ;;  %v13711_v38 = vrot.slane %v4035_v62, %v12588_v37 }
 0x457   : > { %v3789_v9 = vadd.f32 %v3788_v17, %v13279_v53  ;;  %v3929_v18 = vmax.f32 %v3787_v46, 0.0 }
 0x458   : > { %v3792_v11 = vpop.f32.mrf.mxu1  ;;  %v13685_v33 = vpop.f32.mrf.mxu0  ;;  %10715 = vmatmul.mubr.msk.bf16.gmra.mxu1 %vm1104_vm2, %v12565_v21  ;;  %v4248_v52 = vadd.f32 %v13620_v6, %v13711_v38  ;;  %v4244_v6 = vadd.f32 %v13613_v7, %v13711_v38 }
 0x459   : > { %v3930_v45 = vmax.f32 %v3789_v9, 0.0  ;;  %5082 = vmatprep.mubr.bf16.mxu1 %v17233_v20  ;;  %v3997_v43 = vpack.c.bf16 %v3929_v18, %v3927_v13  ;;  %v3793_v26 = vadd.f32 %v3792_v11, %v13276_v48 }
 0x45a   : > { %v3794_v5 = vpop.f32.mrf.mxu1  ;;  %v13690_v10 = vpop.f32.mrf.mxu0 }
 0x45b   : > { %v3998_v58 = vpack.c.bf16 %v3930_v45, %v3928_v2  ;;  %v3795_v21 = vadd.f32 %v3794_v5, %v13279_v53  ;;  %v3931_v14 = vmax.f32 %v3793_v26, 0.0  ;;  %v11551_v2 = vld [vmem:[%s17145_s15 + $0xd0] ss:$8 sps:$4 sm:$0xff]   ;;  %v11553_v5 = vld [vmem:[%s17145_s15 + $0xd4] ss:$8 sps:$4 sm:$0xff]   ;;  %s15570_s2 = scalar_lea.vmem %s17370_s30, %s17369_s9  ;;  %s10516_s30 = sshll.u32 %s17185_s28, 9 }
 0x45c   : > { %v3796_v39 = vpop.f32.mrf.mxu1  ;;  %v13692_v60 = vpop.f32.mrf.mxu0  ;;  %6242 = vmatprep.subr.bf16.mxu1 %v11553_v5  ;;  %s17599_s28 = smov %s17598_s8 }
 0x45d   : > { %v3797_v47 = vadd.f32 %v3796_v39, %v13276_v48  ;;  %4529 = vmatprep.mubr.bf16.mxu0 %v3998_v58  ;;  %v3932_v34 = vmax.f32 %v3795_v21, 0.0  ;;  %v4563_v58 = vmax.f32 %v4248_v52, 0.0  ;;  %6243 = vmatpush2.bf16.msra.mxu1 %v11551_v2 }
 0x45e   : > { %v3798_v54 = vpop.f32.mrf.mxu1  ;;  %v13696_v8 = vpop.f32.mrf.mxu0  ;;  %4530 = vmatmul.mubr.bf16.gmra.mxu0 %v3997_v43 }
 0x45f   : > { %v3799_v0 = vadd.f32 %v3798_v54, %v13279_v53  ;;  %v3933_v63 = vmax.f32 %v3797_v47, 0.0  ;;  %v13739_v47 = vrot.slane %v4035_v62, %v12596_v42  ;;  %v4561_v54 = vmax.f32 %v4244_v6, 0.0 }
 0x460   : > { %v3802_v22 = vpop.f32.mrf.mxu1  ;;  %v13700_v15 = vpop.f32.mrf.mxu0  ;;  %10716 = vmatmul.mubr.msk.bf16.gmra.mxu1 %vm1104_vm2, %v12578_v28 }
 0x461   : > { %v3934_v3 = vmax.f32 %v3799_v0, 0.0  ;;  %5092 = vmatprep.mubr.bf16.mxu1 %v17233_v20  ;;  %v3999_v17 = vpack.c.bf16 %v3933_v63, %v3931_v14  ;;  %v3803_v18 = vadd.f32 %v3802_v22, %v13276_v48  ;;  %v4258_v22 = vadd.f32 %v13635_v44, %v13711_v38 }
 0x462   : > { %v3804_v49 = vpop.f32.mrf.mxu1  ;;  %v13705_v35 = vpop.f32.mrf.mxu0  ;;  %v4252_v52 = vadd.f32 %v13624_v61, %v13739_v47 }
 0x463   : > { %v4000_v28 = vpack.c.bf16 %v3934_v3, %v3932_v34  ;;  %v3805_v30 = vadd.f32 %v3804_v49, %v13279_v53  ;;  %v3935_v21 = vmax.f32 %v3803_v18, 0.0  ;;  %v4689_v3 = vpack.c.bf16 %v4563_v58, %v4561_v54  ;;  %v11556_v18 = vld [vmem:[%s17145_s15 + $0xc4] ss:$8 sps:$4 sm:$0xff]  }
 0x464   : > { %v3806_v46 = vpop.f32.mrf.mxu1  ;;  %v13713_v32 = vpop.f32.mrf.mxu0  ;;  %v4242_v34 = vadd.f32 %v13605_v31, %v13739_v47  ;;  %v4254_v49 = vadd.f32 %v13628_v27, %v13711_v38  ;;  %v4567_v44 = vmax.f32 %v4258_v22, 0.0  ;;  %v4256_v27 = vadd.f32 %v13633_v51, %v13739_v47  ;;  %6244 = vmatprep.subr.bf16.mxu1 %v11556_v18 }
 0x465   : > { %v3807_v9 = vadd.f32 %v3806_v46, %v13276_v48  ;;  %4539 = vmatprep.mubr.bf16.mxu0 %v4000_v28  ;;  %v3936_v48 = vmax.f32 %v3805_v30, 0.0  ;;  %v4268_v30 = vadd.f32 %v13656_v50, %v13711_v38  ;;  %v4264_v51 = vadd.f32 %v13649_v55, %v13711_v38 }
 0x466   : > { %v3808_v4 = vpop.f32.mrf.mxu1  ;;  %v13719_v11 = vpop.f32.mrf.mxu0  ;;  %4540 = vmatmul.mubr.bf16.gmra.mxu0 %v3999_v17  ;;  %v4560_v46 = vmax.f32 %v4242_v34, 0.0  ;;  %v4565_v28 = vmax.f32 %v4254_v49, 0.0  ;;  %v4564_v5 = vmax.f32 %v4252_v52, 0.0  ;;  %v4266_v55 = vadd.f32 %v13654_v59, %v13739_v47 }
 0x467   : > { %v3809_v45 = vadd.f32 %v3808_v4, %v13279_v53  ;;  %v3937_v39 = vmax.f32 %v3807_v9, 0.0  ;;  %v11554_v4 = vld [vmem:[%s17145_s15 + $0xc0] ss:$8 sps:$4 sm:$0xff]   ;;  %v4571_v61 = vmax.f32 %v4268_v30, 0.0  ;;  %v4569_v6 = vmax.f32 %v4264_v51, 0.0 }
 0x468   : > { %v13731_v13 = vpop.f32.mrf.mxu0  ;;  %10717 = vmatmul.mubr.msk.bf16.gmra.mxu1 %vm1104_vm2, %v12586_v36  ;;  %v4246_v36 = vadd.f32 %v13618_v23, %v13739_v47  ;;  %v4570_v59 = vmax.f32 %v4266_v55, 0.0  ;;  %v4276_v49 = vadd.f32 %v13669_v12, %v13739_v47  ;;  %v11559_v12 = vld [vmem:[%s17145_s15 + $0xb4] ss:$8 sps:$4 sm:$0xff]  }
 0x469   : > { %v3938_v53 = vmax.f32 %v3809_v45, 0.0  ;;  %5102 = vmatprep.mubr.bf16.mxu1 %v17233_v20  ;;  %v4001_v0 = vpack.c.bf16 %v3937_v39, %v3935_v21  ;;  %v4566_v45 = vmax.f32 %v4256_v27, 0.0  ;;  %6245 = vmatpush2.bf16.msra.mxu1 %v11554_v4  ;;  %v4693_v58 = vpack.c.bf16 %v4571_v61, %v4569_v6 }
 0x46a   : > { %v13736_v43 = vpop.f32.mrf.mxu0  ;;  %v4562_v23 = vmax.f32 %v4246_v36, 0.0  ;;  %v4262_v21 = vadd.f32 %v13639_v40, %v13739_v47  ;;  %v13801_v36 = vpop.f32.mrf.mxu1  ;;  %6246 = vmatprep.subr.bf16.mxu1 %v11559_v12  ;;  %v4298_v6 = vadd.f32 %v13713_v32, %v13711_v38 }
 0x46b   : > { %v4002_v7 = vpack.c.bf16 %v3938_v53, %v3936_v48  ;;  %v4690_v39 = vpack.c.bf16 %v4566_v45, %v4564_v5  ;;  %v4278_v53 = vadd.f32 %v13671_v29, %v13711_v38 }
 0x46c   : > { %v13741_v26 = vpop.f32.mrf.mxu0  ;;  %v4688_v31 = vpack.c.bf16 %v4562_v23, %v4560_v46  ;;  %v4568_v22 = vmax.f32 %v4262_v21, 0.0  ;;  %v13806_v40 = vpop.f32.mrf.mxu1  ;;  %v4294_v21 = vadd.f32 %v13700_v15, %v13711_v38 }
 0x46d   : > { %4549 = vmatprep.mubr.bf16.mxu0 %v4002_v7  ;;  %v4274_v7 = vadd.f32 %v13664_v16, %v13711_v38  ;;  %v4575_v29 = vmax.f32 %v4278_v53, 0.0  ;;  %v4282_v53 = vadd.f32 %v13675_v25, %v13739_v47 }
 0x46e   : > { %v13747_v63 = vpop.f32.mrf.mxu0  ;;  %4550 = vmatmul.mubr.bf16.gmra.mxu0 %v4001_v0  ;;  %v4692_v16 = vpack.c.bf16 %v4570_v59, %v4568_v22  ;;  %v13812_v23 = vpop.f32.mrf.mxu1  ;;  %v4583_v59 = vmax.f32 %v4298_v6, 0.0 }
 0x46f   : > { %5365 = vmatprep.mubr.bf16.mxu0 %v4689_v3  ;;  %v4573_v3 = vmax.f32 %v4274_v7, 0.0  ;;  %v4576_v25 = vmax.f32 %v4282_v53, 0.0 }
 0x470   : > { %v13753_v62 = vpop.f32.mrf.mxu0  ;;  %10718 = vmatmul.mubr.msk.bf16.gmra.mxu1 %vm1104_vm2, %v12612_v56  ;;  %v4691_v56 = vpack.c.bf16 %v4567_v44, %v4565_v28  ;;  %v4272_v28 = vadd.f32 %v13660_v57, %v13739_v47  ;;  %v13826_v27 = vpop.f32.mrf.mxu1  ;;  %v4574_v57 = vmax.f32 %v4276_v49, 0.0  ;;  %v4296_v49 = vadd.f32 %v13705_v35, %v13739_v47  ;;  %v11560_v35 = vld [vmem:[%s17147_s17 + $0x70] ss:$8 sps:$4 sm:$0xff]  }
 0x471   : > { %5112 = vmatprep.mubr.bf16.mxu1 %v17233_v20  ;;  %v4695_v46 = vpack.c.bf16 %v4575_v29, %v4573_v3  ;;  %v4581_v3 = vmax.f32 %v4294_v21, 0.0 }
 0x472   : > { %v13758_v14 = vpop.f32.mrf.mxu0  ;;  %v4572_v18 = vmax.f32 %v4272_v28, 0.0 }
 0x473   : > { %v4699_v28 = vpack.c.bf16 %v4583_v59, %v4581_v3  ;;  %v4306_v59 = vadd.f32 %v13736_v43, %v13739_v47  ;;  %v17236_v43 = vld [vmem:[#allocation15_spill] sm:$0xff] }
 0x474   : > { %v13760_v17 = vpop.f32.mrf.mxu0  ;;  %v4694_v61 = vpack.c.bf16 %v4574_v57, %v4572_v18  ;;  %v4582_v18 = vmax.f32 %v4296_v49, 0.0 }
 0x475   : > { %v4318_v3 = vadd.f32 %v13760_v17, %v13711_v38 }
 0x476   : > { %v13766_v9 = vpop.f32.mrf.mxu0  ;;  %5366 = vmatmul.mubr.bf16.vlgmr.msra.gmra.mxu0 %v4688_v31  ;;  %v11557_v31 = vld [vmem:[%s17145_s15 + $0xb0] ss:$8 sps:$4 sm:$0xff]  }
 0x477   : > { %5375 = vmatprep.mubr.bf16.mxu0 %v4691_v56  ;;  %v13834_v56 = vpop.f32.mrf.mxu1  ;;  %6247 = vmatpush2.bf16.msra.mxu1 %v11557_v31  ;;  %v4292_v31 = vadd.f32 %v13696_v8, %v13739_v47  ;;  %v11563_v8 = vld [vmem:[%s17145_s15 + $0xa0] ss:$8 sps:$4 sm:$0xff]  }
 0x478   : > { %v13778_v50 = vpop.f32.mrf.mxu0  ;;  %10719 = vmatmul.mubr.msk.bf16.gmra.mxu1 %vm1104_vm2, %v12623_v24 }
 0x479   : > { %5122 = vmatprep.mubr.bf16.mxu1 %v17233_v20  ;;  %v13839_v51 = vpop.f32.mrf.mxu1  ;;  %v4580_v6 = vmax.f32 %v4292_v31, 0.0  ;;  %v4314_v31 = vadd.f32 %v13753_v62, %v13711_v38  ;;  %v4316_v62 = vadd.f32 %v13758_v14, %v13739_v47  ;;  %v11566_v14 = vld [vmem:[%s17147_s17 + $0x60] ss:$8 sps:$4 sm:$0xff]  }
 0x47a   : > { %v13783_v2 = vpop.f32.mrf.mxu0 }
 0x47b   : > { %v13845_v5 = vpop.f32.mrf.mxu1 }
 0x47c   : > { %v13785_v48 = vpop.f32.mrf.mxu0 }
 0x47e   : > { %v13791_v24 = vpop.f32.mrf.mxu0  ;;  %5376 = vmatmul.mubr.bf16.gmra.mxu0 %v4690_v39 }
 0x47f   : > { %5385 = vmatprep.mubr.bf16.mxu0 %v4693_v58  ;;  %v13853_v58 = vpop.f32.mrf.mxu1 }
 0x480   : > { %v13797_v54 = vpop.f32.mrf.mxu0  ;;  %10720 = vmatmul.mubr.msk.bf16.gmra.mxu1 %vm1104_vm2, %v12640_v1  ;;  %v4288_v1 = vadd.f32 %v13692_v60, %v13711_v38  ;;  %v4284_v60 = vadd.f32 %v13685_v33, %v13711_v38 }
 0x481   : > { %5132 = vmatprep.mubr.bf16.mxu1 %v17233_v20  ;;  %v13861_v32 = vpop.f32.mrf.mxu1 }
 0x482   : > { %v13804_v0 = vpop.f32.mrf.mxu0  ;;  %v4579_v52 = vmax.f32 %v4288_v1, 0.0  ;;  %v4577_v33 = vmax.f32 %v4284_v60, 0.0  ;;  %v4304_v60 = vadd.f32 %v13731_v13, %v13711_v38  ;;  %v11565_v13 = vld [vmem:[%s17145_s15 + $0xa4] ss:$8 sps:$4 sm:$0xff]  }
 0x483   : > { %v13866_v22 = vpop.f32.mrf.mxu1  ;;  %6248 = vmatprep.subr.bf16.mxu1 %v11565_v13 }
 0x484   : > { %v13808_v34 = vpop.f32.mrf.mxu0  ;;  %v4697_v55 = vpack.c.bf16 %v4579_v52, %v4577_v33  ;;  %v17235_v52 = vld [vmem:[#allocation14_spill] sm:$0xff]  ;;  %v4585_v53 = vmax.f32 %v4304_v60, 0.0  ;;  %6249 = vmatpush2.bf16.msra.mxu1 %v11563_v8 }
 0x485   : > { %v13872_v1 = vpop.f32.mrf.mxu1 }
 0x486   : > { %v13816_v44 = vpop.f32.mrf.mxu0  ;;  %5386 = vmatmul.mubr.bf16.gmra.mxu0 %v4692_v16 }
 0x487   : > { %5395 = vmatprep.mubr.bf16.mxu0 %v4695_v46  ;;  %v13880_v12 = vpop.f32.mrf.mxu1 }
 0x488   : > { %v13830_v30 = vpop.f32.mrf.mxu0  ;;  %10721 = vmatmul.mubr.msk.bf16.gmra.mxu1 %vm1104_vm2, %v12651_v41  ;;  %v4286_v41 = vadd.f32 %v13690_v10, %v13739_v47 }
 0x489   : > { %5142 = vmatprep.mubr.bf16.mxu1 %v17233_v20  ;;  %v13900_v33 = vpop.f32.mrf.mxu1 }
 0x48a   : > { %v13837_v4 = vpop.f32.mrf.mxu0  ;;  %v4578_v10 = vmax.f32 %v4286_v41, 0.0 }
 0x48c   : > { %v13841_v45 = vpop.f32.mrf.mxu0  ;;  %v4696_v15 = vpack.c.bf16 %v4578_v10, %v4576_v25  ;;  %v4698_v10 = vpack.c.bf16 %v4582_v18, %v4580_v6  ;;  %v4589_v18 = vmax.f32 %v4314_v31, 0.0 }
 0x48e   : > { %v13849_v39 = vpop.f32.mrf.mxu0  ;;  %5396 = vmatmul.mubr.bf16.gmra.mxu0 %v4694_v61 }
 0x48f   : > { %5405 = vmatprep.mubr.bf16.mxu0 %v4697_v55  ;;  %v13905_v55 = vpop.f32.mrf.mxu1 }
 0x490   : > { %v13857_v7 = vpop.f32.mrf.mxu0  ;;  %10722 = vmatmul.mubr.msk.bf16.gmra.mxu1 %vm1104_vm2, %v12668_v19  ;;  %v4308_v19 = vadd.f32 %v13741_v26, %v13711_v38  ;;  %v11562_v26 = vld [vmem:[%s17147_s17 + $0x74] ss:$8 sps:$4 sm:$0xff]  }
 0x491   : > { %5152 = vmatprep.mubr.bf16.mxu1 %v17233_v20  ;;  %6971 = vmatprep.subr.bf16.mxu0 %v11562_v26  ;;  %v13911_v25 = vpop.f32.mrf.mxu1  ;;  %v4591_v26 = vmax.f32 %v4318_v3, 0.0  ;;  %v4312_v3 = vadd.f32 %v13747_v63, %v13739_v47  ;;  %v11569_v63 = vld [vmem:[%s17145_s15 + $0x90] ss:$8 sps:$4 sm:$0xff]  }
 0x492   : > { %v13864_v29 = vpop.f32.mrf.mxu0  ;;  %v4587_v61 = vmax.f32 %v4308_v19, 0.0  ;;  %6972 = vmatpush1.bf16.msra.mxu0 %v11560_v35  ;;  %v4302_v19 = vadd.f32 %v13719_v11, %v13739_v47  ;;  %v4586_v35 = vmax.f32 %v4306_v59, 0.0 }
 0x493   : > { %v4703_v59 = vpack.c.bf16 %v4591_v26, %v4589_v18  ;;  %v4588_v18 = vmax.f32 %v4312_v3, 0.0 }
 0x494   : > { %v13868_v16 = vpop.f32.mrf.mxu0  ;;  %v4701_v49 = vpack.c.bf16 %v4587_v61, %v4585_v53  ;;  %v4328_v53 = vadd.f32 %v13785_v48, %v13711_v38  ;;  %v11568_v48 = vld [vmem:[%s17147_s17 + $0x64] ss:$8 sps:$4 sm:$0xff]  }
 0x495   : > { %6973 = vmatprep.subr.bf16.mxu0 %v11568_v48  ;;  %v4334_v48 = vadd.f32 %v13797_v54, %v13711_v38 }
 0x496   : > { %v13876_v46 = vpop.f32.mrf.mxu0  ;;  %5406 = vmatmul.mubr.bf16.gmra.mxu0 %v4696_v15  ;;  %v4595_v26 = vmax.f32 %v4328_v53, 0.0  ;;  %v4338_v53 = vadd.f32 %v13808_v34, %v13711_v38 }
 0x497   : > { %5415 = vmatprep.mubr.bf16.mxu0 %v4699_v28  ;;  %v13919_v28 = vpop.f32.mrf.mxu1  ;;  %6974 = vmatpush1.bf16.msra.mxu0 %v11566_v14  ;;  %v4322_v14 = vadd.f32 %v13766_v9, %v13739_v47 }
 0x498   : > { %v13884_v57 = vpop.f32.mrf.mxu0  ;;  %10723 = vmatmul.mubr.msk.bf16.gmra.mxu1 %vm1104_vm2, %v17235_v52  ;;  %v4584_v52 = vmax.f32 %v4302_v19, 0.0  ;;  %v4324_v19 = vadd.f32 %v13778_v50, %v13711_v38  ;;  %v11571_v50 = vld [vmem:[%s17145_s15 + $0x94] ss:$8 sps:$4 sm:$0xff]  }
 0x499   : > { %5162 = vmatprep.mubr.bf16.mxu1 %v17233_v20  ;;  %v13927_v17 = vpop.f32.mrf.mxu1  ;;  %6250 = vmatprep.subr.bf16.mxu1 %v11571_v50  ;;  %v4599_v50 = vmax.f32 %v4338_v53, 0.0 }
 0x49a   : > { %v13903_v41 = vpop.f32.mrf.mxu0  ;;  %17237 = vst [vmem:[#allocation14_spill] sm:$0xff] %v13927_v17  ;;  %v4700_v61 = vpack.c.bf16 %v4586_v35, %v4584_v52  ;;  %6251 = vmatpush2.bf16.msra.mxu1 %v11569_v63 }
 0x49b   : > { %v13931_v11 = vpop.f32.mrf.mxu1 }
 0x49c   : > { %v13907_v21 = vpop.f32.mrf.mxu0 }
 0x49d   : > { %v13937_v6 = vpop.f32.mrf.mxu1 }
 0x49e   : > { %v13915_v15 = vpop.f32.mrf.mxu0  ;;  %5416 = vmatmul.mubr.bf16.gmra.mxu0 %v4698_v10  ;;  %17238 = vst [vmem:[#allocation15_spill] sm:$0xff] %v13937_v6  ;;  %v4326_v6 = vadd.f32 %v13783_v2, %v13739_v47 }
 0x49f   : > { %5425 = vmatprep.mubr.bf16.mxu0 %v4701_v49  ;;  %v13945_v49 = vpop.f32.mrf.mxu1 }
 0x4a0   : > { %v13923_v60 = vpop.f32.mrf.mxu0  ;;  %10724 = vmatmul.mubr.msk.bf16.gmra.mxu1 %vm1104_vm2, %v17236_v43  ;;  %17239 = vst [vmem:[#allocation16_spill] sm:$0xff] %v13945_v49  ;;  %v4590_v43 = vmax.f32 %v4316_v62, 0.0  ;;  %v4594_v2 = vmax.f32 %v4326_v6, 0.0  ;;  %v4348_v6 = vadd.f32 %v13841_v45, %v13711_v38  ;;  %v11574_v45 = vld [vmem:[%s17147_s17 + $0x54] ss:$8 sps:$4 sm:$0xff]  }
 0x4a1   : > { %v13963_v35 = vpop.f32.mrf.mxu1  ;;  %6975 = vmatprep.subr.bf16.mxu0 %v11574_v45 }
 0x4a2   : > { %v13929_v8 = vpop.f32.mrf.mxu0  ;;  %17240 = vst [vmem:[#allocation17_spill] sm:$0xff] %v13963_v35  ;;  %v4702_v62 = vpack.c.bf16 %v4590_v43, %v4588_v18  ;;  %v4592_v18 = vmax.f32 %v4322_v14, 0.0  ;;  %v4332_v14 = vadd.f32 %v13791_v24, %v13739_v47  ;;  %v11575_v24 = vld [vmem:[%s17145_s15 + $0x80] ss:$8 sps:$4 sm:$0xff]  }
 0x4a4   : > { %v13933_v13 = vpop.f32.mrf.mxu0 }
 0x4a6   : > { %v13941_v10 = vpop.f32.mrf.mxu0  ;;  %5426 = vmatmul.mubr.bf16.gmra.mxu0 %v4700_v61  ;;  %v13967_v61 = vpop.f32.mrf.mxu1 }
 0x4a7   : > { %5435 = vmatprep.mubr.bf16.mxu0 %v4703_v59  ;;  %17241 = vst [vmem:[#allocation18_spill] sm:$0xff] %v13967_v61  ;;  %v4593_v59 = vmax.f32 %v4324_v19, 0.0 }
 0x4a8   : > { %v13949_v31 = vpop.f32.mrf.mxu0  ;;  %v13973_v17 = vpop.f32.mrf.mxu1 }
 0x4a9   : > { %17242 = vst [vmem:[#allocation19_spill] sm:$0xff] %v13973_v17  ;;  %v4705_v3 = vpack.c.bf16 %v4595_v26, %v4593_v59  ;;  %v4597_v59 = vmax.f32 %v4334_v48, 0.0  ;;  %v4344_v48 = vadd.f32 %v13830_v30, %v13711_v38  ;;  %v11577_v30 = vld [vmem:[%s17145_s15 + $0x84] ss:$8 sps:$4 sm:$0xff]   ;;  %v4346_v17 = vadd.f32 %v13837_v4, %v13739_v47 }
 0x4aa   : > { %v13965_v52 = vpop.f32.mrf.mxu0  ;;  %v13981_v19 = vpop.f32.mrf.mxu1  ;;  %6252 = vmatprep.subr.bf16.mxu1 %v11577_v30 }
 0x4ab   : > { %17243 = vst [vmem:[#allocation20_spill] sm:$0xff] %v13981_v19  ;;  %v4336_v19 = vadd.f32 %v13804_v0, %v13739_v47  ;;  %v4707_v53 = vpack.c.bf16 %v4599_v50, %v4597_v59  ;;  %v11572_v0 = vld [vmem:[%s17147_s17 + $0x50] ss:$8 sps:$4 sm:$0xff]   ;;  %v4603_v59 = vmax.f32 %v4348_v6, 0.0  ;;  %6253 = vmatpush2.bf16.msra.mxu1 %v11575_v24  ;;  %v4358_v6 = vadd.f32 %v13868_v16, %v13711_v38 }
 0x4ac   : > { %v13969_v49 = vpop.f32.mrf.mxu0  ;;  %v13987_v43 = vpop.f32.mrf.mxu1  ;;  %6976 = vmatpush1.bf16.msra.mxu0 %v11572_v0  ;;  %7651 = vmatprep.subr.bf16.mxu1 %v17233_v20  ;;  %v4354_v24 = vadd.f32 %v13857_v7, %v13711_v38 }
 0x4ad   : > { %17244 = vst [vmem:[#allocation21_spill] sm:$0xff] %v13987_v43  ;;  %v4598_v50 = vmax.f32 %v4336_v19, 0.0 }
 0x4ae   : > { %v13977_v35 = vpop.f32.mrf.mxu0  ;;  %5436 = vmatmul.mubr.bf16.gmra.mxu0 %v4702_v62  ;;  %v13991_v26 = vpop.f32.mrf.mxu1  ;;  %v4704_v62 = vpack.c.bf16 %v4594_v2, %v4592_v18 }
 0x4af   : > { %5445 = vmatprep.mubr.bf16.mxu0 %v4705_v3  ;;  %17245 = vst [vmem:[#allocation22_spill] sm:$0xff] %v13991_v26 }
 0x4b0   : > { %v13985_v63 = vpop.f32.mrf.mxu0  ;;  %v13997_v54 = vpop.f32.mrf.mxu1 }
 0x4b1   : > { %17246 = vst [vmem:[#allocation23_spill] sm:$0xff] %v13997_v54  ;;  %v4601_v54 = vmax.f32 %v4344_v48, 0.0  ;;  %v4342_v48 = vadd.f32 %v13816_v44, %v13739_v47 }
 0x4b2   : > { %v13989_v34 = vpop.f32.mrf.mxu0  ;;  %v14005_v43 = vpop.f32.mrf.mxu1 }
 0x4b3   : > { %17247 = vst [vmem:[#allocation24_spill] sm:$0xff] %v14005_v43  ;;  %v4709_v0 = vpack.c.bf16 %v4603_v59, %v4601_v54  ;;  %v4605_v59 = vmax.f32 %v4354_v24, 0.0 }
 0x4b4   : > { %v13993_v9 = vpop.f32.mrf.mxu0  ;;  %v14023_v18 = vpop.f32.mrf.mxu1 }
 0x4b5   : > { %17248 = vst [vmem:[#allocation25_spill] sm:$0xff] %v14023_v18 }
 0x4b6   : > { %v14001_v3 = vpop.f32.mrf.mxu0  ;;  %5446 = vmatmul.mubr.bf16.gmra.mxu0 %v4704_v62  ;;  %v14027_v43 = vpop.f32.mrf.mxu1 }
 0x4b7   : > { %5455 = vmatprep.mubr.bf16.mxu0 %v4707_v53  ;;  %v4596_v53 = vmax.f32 %v4332_v14, 0.0 }
 0x4b8   : > { %v14009_v2 = vpop.f32.mrf.mxu0  ;;  %v14033_v61 = vpop.f32.mrf.mxu1 }
 0x4b9   : > { %v4706_v19 = vpack.c.bf16 %v4598_v50, %v4596_v53  ;;  %17249 = vst [vmem:[#allocation26_spill] sm:$0xff] %v14033_v61  ;;  %v4602_v50 = vmax.f32 %v4346_v17, 0.0  ;;  %v4607_v53 = vmax.f32 %v4358_v6, 0.0  ;;  %v4600_v61 = vmax.f32 %v4342_v48, 0.0 }
 0x4ba   : > { %v14025_v62 = vpop.f32.mrf.mxu0  ;;  %v14042_v45 = vpop.f32.mrf.mxu1  ;;  %v4368_v17 = vadd.f32 %v13907_v21, %v13711_v38  ;;  %v4352_v48 = vadd.f32 %v13849_v39, %v13739_v47  ;;  %v11580_v39 = vld [vmem:[%s17147_s17 + $0x44] ss:$8 sps:$4 sm:$0xff]  }
 0x4bb   : > { %17250 = vst [vmem:[#allocation27_spill] sm:$0xff] %v14042_v45  ;;  %v4356_v45 = vadd.f32 %v13864_v29, %v13739_v47  ;;  %v4711_v6 = vpack.c.bf16 %v4607_v53, %v4605_v59  ;;  %v11578_v53 = vld [vmem:[%s17147_s17 + $0x40] ss:$8 sps:$4 sm:$0xff]   ;;  %6977 = vmatprep.subr.bf16.mxu0 %v11580_v39 }
 0x4bc   : > { %v14029_v26 = vpop.f32.mrf.mxu0  ;;  %v14048_v30 = vpop.f32.mrf.mxu1  ;;  %v4604_v59 = vmax.f32 %v4352_v48, 0.0  ;;  %6978 = vmatpush1.bf16.msra.mxu0 %v11578_v53  ;;  %v4362_v48 = vadd.f32 %v13876_v46, %v13739_v47 }
 0x4bd   : > { %17251 = vst [vmem:[#allocation28_spill] sm:$0xff] %v14048_v30  ;;  %v4606_v29 = vmax.f32 %v4356_v45, 0.0 }
 0x4be   : > { %v14038_v14 = vpop.f32.mrf.mxu0  ;;  %5456 = vmatmul.mubr.bf16.gmra.mxu0 %v4706_v19  ;;  %v14052_v54 = vpop.f32.mrf.mxu1  ;;  %v4708_v19 = vpack.c.bf16 %v4602_v50, %v4600_v61  ;;  %v4364_v61 = vadd.f32 %v13884_v57, %v13711_v38 }
 0x4bf   : > { %5465 = vmatprep.mubr.bf16.mxu0 %v4709_v0  ;;  %17252 = vst [vmem:[#allocation29_spill] sm:$0xff] %v14052_v54  ;;  %v4710_v45 = vpack.c.bf16 %v4606_v29, %v4604_v59  ;;  %v4374_v29 = vadd.f32 %v13923_v60, %v13711_v38 }
 0x4c0   : > { %v14046_v4 = vpop.f32.mrf.mxu0  ;;  %v14058_v7 = vpop.f32.mrf.mxu1  ;;  %v4609_v57 = vmax.f32 %v4364_v61, 0.0 }
 0x4c1   : > { %17253 = vst [vmem:[#allocation30_spill] sm:$0xff] %v14058_v7  ;;  %v4611_v7 = vmax.f32 %v4368_v17, 0.0  ;;  %v4366_v17 = vadd.f32 %v13903_v41, %v13739_v47 }
 0x4c2   : > { %v14050_v16 = vpop.f32.mrf.mxu0  ;;  %v14066_v30 = vpop.f32.mrf.mxu1 }
 0x4c3   : > { %17254 = vst [vmem:[#allocation31_spill] sm:$0xff] %v14066_v30  ;;  %v4378_v30 = vadd.f32 %v13933_v13, %v13711_v38  ;;  %v4713_v18 = vpack.c.bf16 %v4611_v7, %v4609_v57  ;;  %v4610_v53 = vmax.f32 %v4366_v17, 0.0  ;;  %v4613_v57 = vmax.f32 %v4374_v29, 0.0 }
 0x4c4   : > { %v14054_v44 = vpop.f32.mrf.mxu0  ;;  %v14072_v50 = vpop.f32.mrf.mxu1 }
 0x4c5   : > { %17255 = vst [vmem:[#allocation32_spill] sm:$0xff] %v14072_v50  ;;  %v4615_v59 = vmax.f32 %v4378_v30, 0.0 }
 0x4c6   : > { %v14062_v0 = vpop.f32.mrf.mxu0  ;;  %5466 = vmatmul.mubr.bf16.gmra.mxu0 %v4708_v19  ;;  %v14082_v19 = vpop.f32.mrf.mxu1 }
 0x4c7   : > { %5475 = vmatprep.mubr.bf16.mxu0 %v4711_v6  ;;  %17256 = vst [vmem:[#allocation33_spill] sm:$0xff] %v14082_v19  ;;  %v4715_v30 = vpack.c.bf16 %v4615_v59, %v4613_v57  ;;  %v11581_v59 = vld [vmem:[%s17147_s17 + $0x30] ss:$8 sps:$4 sm:$0xff]  }
 0x4c8   : > { %v14070_v24 = vpop.f32.mrf.mxu0  ;;  %v14088_v50 = vpop.f32.mrf.mxu1 }
 0x4c9   : > { %17257 = vst [vmem:[#allocation34_spill] sm:$0xff] %v14088_v50  ;;  %v4608_v50 = vmax.f32 %v4362_v48, 0.0  ;;  %v4372_v48 = vadd.f32 %v13915_v15, %v13739_v47  ;;  %v11583_v15 = vld [vmem:[%s17147_s17 + $0x34] ss:$8 sps:$4 sm:$0xff]  }
 0x4ca   : > { %v14074_v21 = vpop.f32.mrf.mxu0  ;;  %v14096_v61 = vpop.f32.mrf.mxu1  ;;  %6979 = vmatprep.subr.bf16.mxu0 %v11583_v15 }
 0x4cb   : > { %17258 = vst [vmem:[#allocation35_spill] sm:$0xff] %v14096_v61  ;;  %v4376_v61 = vadd.f32 %v13929_v8, %v13739_v47  ;;  %v4612_v57 = vmax.f32 %v4372_v48, 0.0  ;;  %6980 = vmatpush1.bf16.msra.mxu0 %v11581_v59  ;;  %v4382_v48 = vadd.f32 %v13941_v10, %v13739_v47 }
 0x4cc   : > { %v14084_v6 = vpop.f32.mrf.mxu0  ;;  %v14102_v39 = vpop.f32.mrf.mxu1 }
 0x4cd   : > { %17259 = vst [vmem:[#allocation36_spill] sm:$0xff] %v14102_v39  ;;  %v4614_v8 = vmax.f32 %v4376_v61, 0.0 }
 0x4ce   : > { %v14092_v54 = vpop.f32.mrf.mxu0  ;;  %5476 = vmatmul.mubr.bf16.gmra.mxu0 %v4710_v45  ;;  %v14106_v7 = vpop.f32.mrf.mxu1  ;;  %v4712_v45 = vpack.c.bf16 %v4610_v53, %v4608_v50  ;;  %v4384_v50 = vadd.f32 %v13949_v31, %v13711_v38 }
 0x4cf   : > { %5485 = vmatprep.mubr.bf16.mxu0 %v4713_v18  ;;  %17260 = vst [vmem:[#allocation37_spill] sm:$0xff] %v14106_v7  ;;  %v4388_v18 = vadd.f32 %v13969_v49, %v13711_v38  ;;  %v4714_v61 = vpack.c.bf16 %v4614_v8, %v4612_v57  ;;  %v4394_v8 = vadd.f32 %v13985_v63, %v13711_v38 }
 0x4d0   : > { %v14100_v41 = vpop.f32.mrf.mxu0  ;;  %v14112_v60 = vpop.f32.mrf.mxu1  ;;  %v4617_v31 = vmax.f32 %v4384_v50, 0.0 }
 0x4d1   : > { %17261 = vst [vmem:[#allocation38_spill] sm:$0xff] %v14112_v60  ;;  %v4619_v60 = vmax.f32 %v4388_v18, 0.0  ;;  %v4386_v18 = vadd.f32 %v13965_v52, %v13739_v47 }
 0x4d2   : > { %v14104_v13 = vpop.f32.mrf.mxu0  ;;  %v14120_v39 = vpop.f32.mrf.mxu1 }
 0x4d3   : > { %17262 = vst [vmem:[#allocation39_spill] sm:$0xff] %v14120_v39  ;;  %v4398_v39 = vadd.f32 %v13993_v9, %v13711_v38  ;;  %v4717_v19 = vpack.c.bf16 %v4619_v60, %v4617_v31  ;;  %v4618_v59 = vmax.f32 %v4386_v18, 0.0  ;;  %v4621_v31 = vmax.f32 %v4394_v8, 0.0 }
 0x4d4   : > { %v14108_v46 = vpop.f32.mrf.mxu0  ;;  %v14126_v53 = vpop.f32.mrf.mxu1 }
 0x4d5   : > { %17263 = vst [vmem:[#allocation40_spill] sm:$0xff] %v14126_v53  ;;  %v4623_v57 = vmax.f32 %v4398_v39, 0.0 }
 0x4d6   : > { %v14116_v17 = vpop.f32.mrf.mxu0  ;;  %5486 = vmatmul.mubr.bf16.gmra.mxu0 %v4712_v45  ;;  %v14136_v45 = vpop.f32.mrf.mxu1 }
 0x4d7   : > { %5495 = vmatprep.mubr.bf16.mxu0 %v4715_v30  ;;  %17264 = vst [vmem:[#allocation41_spill] sm:$0xff] %v14136_v45  ;;  %v4719_v39 = vpack.c.bf16 %v4623_v57, %v4621_v31  ;;  %v11584_v57 = vld [vmem:[%s17147_s17 + $0x20] ss:$8 sps:$4 sm:$0xff]  }
 0x4d8   : > { %v14124_v29 = vpop.f32.mrf.mxu0  ;;  %v14142_v53 = vpop.f32.mrf.mxu1 }
 0x4d9   : > { %17265 = vst [vmem:[#allocation42_spill] sm:$0xff] %v14142_v53  ;;  %v4616_v53 = vmax.f32 %v4382_v48, 0.0  ;;  %v4392_v48 = vadd.f32 %v13977_v35, %v13739_v47  ;;  %v11586_v35 = vld [vmem:[%s17147_s17 + $0x24] ss:$8 sps:$4 sm:$0xff]  }
 0x4da   : > { %v14128_v49 = vpop.f32.mrf.mxu0  ;;  %v14150_v50 = vpop.f32.mrf.mxu1  ;;  %6981 = vmatprep.subr.bf16.mxu0 %v11586_v35 }
 0x4db   : > { %17266 = vst [vmem:[#allocation43_spill] sm:$0xff] %v14150_v50  ;;  %v4396_v50 = vadd.f32 %v13989_v34, %v13739_v47  ;;  %v4620_v31 = vmax.f32 %v4392_v48, 0.0  ;;  %6982 = vmatpush1.bf16.msra.mxu0 %v11584_v57  ;;  %v4402_v48 = vadd.f32 %v14001_v3, %v13739_v47 }
 0x4dc   : > { %v14138_v30 = vpop.f32.mrf.mxu0  ;;  %v14156_v15 = vpop.f32.mrf.mxu1 }
 0x4dd   : > { %17267 = vst [vmem:[#allocation44_spill] sm:$0xff] %v14156_v15  ;;  %v4622_v34 = vmax.f32 %v4396_v50, 0.0 }
 0x4de   : > { %v14146_v7 = vpop.f32.mrf.mxu0  ;;  %5496 = vmatmul.mubr.bf16.gmra.mxu0 %v4714_v61  ;;  %v14160_v60 = vpop.f32.mrf.mxu1  ;;  %v4716_v61 = vpack.c.bf16 %v4618_v59, %v4616_v53  ;;  %v4404_v53 = vadd.f32 %v14009_v2, %v13711_v38 }
 0x4df   : > { %5505 = vmatprep.mubr.bf16.mxu0 %v4717_v19  ;;  %17268 = vst [vmem:[#allocation45_spill] sm:$0xff] %v14160_v60  ;;  %v4408_v19 = vadd.f32 %v14029_v26, %v13711_v38  ;;  %v4718_v50 = vpack.c.bf16 %v4622_v34, %v4620_v31  ;;  %v4414_v34 = vadd.f32 %v14046_v4, %v13711_v38 }
 0x4e0   : > { %v14154_v52 = vpop.f32.mrf.mxu0  ;;  %v14166_v63 = vpop.f32.mrf.mxu1  ;;  %v4625_v2 = vmax.f32 %v4404_v53, 0.0 }
 0x4e1   : > { %17269 = vst [vmem:[#allocation46_spill] sm:$0xff] %v14166_v63  ;;  %v4627_v63 = vmax.f32 %v4408_v19, 0.0  ;;  %v4406_v19 = vadd.f32 %v14025_v62, %v13739_v47 }
 0x4e2   : > { %v14158_v9 = vpop.f32.mrf.mxu0  ;;  %v14174_v15 = vpop.f32.mrf.mxu1 }
 0x4e3   : > { %17270 = vst [vmem:[#allocation47_spill] sm:$0xff] %v14174_v15  ;;  %v4418_v15 = vadd.f32 %v14054_v44, %v13711_v38  ;;  %v4721_v45 = vpack.c.bf16 %v4627_v63, %v4625_v2  ;;  %v4626_v57 = vmax.f32 %v4406_v19, 0.0  ;;  %v4629_v2 = vmax.f32 %v4414_v34, 0.0 }
 0x4e4   : > { %v14162_v10 = vpop.f32.mrf.mxu0  ;;  %v14180_v59 = vpop.f32.mrf.mxu1 }
 0x4e5   : > { %17271 = vst [vmem:[#allocation48_spill] sm:$0xff] %v14180_v59  ;;  %v4631_v31 = vmax.f32 %v4418_v15, 0.0 }
 0x4e6   : > { %v14170_v18 = vpop.f32.mrf.mxu0  ;;  %5506 = vmatmul.mubr.bf16.gmra.mxu0 %v4716_v61  ;;  %v14190_v61 = vpop.f32.mrf.mxu1 }
 0x4e7   : > { %5515 = vmatprep.mubr.bf16.mxu0 %v4719_v39  ;;  %17272 = vst [vmem:[#allocation49_spill] sm:$0xff] %v14190_v61  ;;  %v4723_v15 = vpack.c.bf16 %v4631_v31, %v4629_v2  ;;  %v11587_v31 = vld [vmem:[%s17147_s17 + $0x10] ss:$8 sps:$4 sm:$0xff]  }
 0x4e8   : > { %v14178_v8 = vpop.f32.mrf.mxu0  ;;  %v14196_v59 = vpop.f32.mrf.mxu1 }
 0x4e9   : > { %17273 = vst [vmem:[#allocation50_spill] sm:$0xff] %v14196_v59  ;;  %v4624_v59 = vmax.f32 %v4402_v48, 0.0  ;;  %v4412_v48 = vadd.f32 %v14038_v14, %v13739_v47  ;;  %v11589_v14 = vld [vmem:[%s17147_s17 + $0x14] ss:$8 sps:$4 sm:$0xff]  }
 0x4ea   : > { %v14182_v26 = vpop.f32.mrf.mxu0  ;;  %v14204_v53 = vpop.f32.mrf.mxu1  ;;  %6983 = vmatprep.subr.bf16.mxu0 %v11589_v14 }
 0x4eb   : > { %17274 = vst [vmem:[#allocation51_spill] sm:$0xff] %v14204_v53  ;;  %v4416_v53 = vadd.f32 %v14050_v16, %v13739_v47  ;;  %v4628_v2 = vmax.f32 %v4412_v48, 0.0  ;;  %6984 = vmatpush1.bf16.msra.mxu0 %v11587_v31  ;;  %v4422_v48 = vadd.f32 %v14062_v0, %v13739_v47  ;;  %v4436_v0 = vadd.f32 %v14104_v13, %v13739_v47 }
 0x4ec   : > { %v14192_v39 = vpop.f32.mrf.mxu0  ;;  %v14210_v35 = vpop.f32.mrf.mxu1 }
 0x4ed   : > { %17275 = vst [vmem:[#allocation52_spill] sm:$0xff] %v14210_v35  ;;  %v4630_v16 = vmax.f32 %v4416_v53, 0.0  ;;  %v4426_v53 = vadd.f32 %v14074_v21, %v13739_v47 }
 0x4ee   : > { %v14200_v60 = vpop.f32.mrf.mxu0  ;;  %5516 = vmatmul.mubr.bf16.gmra.mxu0 %v4718_v50  ;;  %v14214_v63 = vpop.f32.mrf.mxu1  ;;  %v4720_v50 = vpack.c.bf16 %v4626_v57, %v4624_v59  ;;  %v4424_v59 = vadd.f32 %v14070_v24, %v13711_v38 }
 0x4ef   : > { %5525 = vmatprep.mubr.bf16.mxu0 %v4721_v45  ;;  %17276 = vst [vmem:[#allocation53_spill] sm:$0xff] %v14214_v63  ;;  %v4428_v45 = vadd.f32 %v14084_v6, %v13711_v38  ;;  %v4634_v21 = vmax.f32 %v4426_v53, 0.0  ;;  %v4444_v53 = vadd.f32 %v14124_v29, %v13711_v38 }
 0x4f0   : > { %v14208_v62 = vpop.f32.mrf.mxu0  ;;  %v14220_v4 = vpop.f32.mrf.mxu1 }
 0x4f1   : > { %17277 = vst [vmem:[#allocation54_spill] sm:$0xff] %v14220_v4  ;;  %v4635_v4 = vmax.f32 %v4428_v45, 0.0 }
 0x4f2   : > { %v14212_v44 = vpop.f32.mrf.mxu0  ;;  %v14228_v35 = vpop.f32.mrf.mxu1 }
 0x4f3   : > { %17278 = vst [vmem:[#allocation55_spill] sm:$0xff] %v14228_v35 }
 0x4f4   : > { %v14216_v3 = vpop.f32.mrf.mxu0  ;;  %v14234_v57 = vpop.f32.mrf.mxu1 }
 0x4f5   : > { %17279 = vst [vmem:[#allocation56_spill] sm:$0xff] %v14234_v57  ;;  %v4438_v57 = vadd.f32 %v14108_v46, %v13711_v38  ;;  %v4632_v46 = vmax.f32 %v4422_v48, 0.0  ;;  %v4638_v48 = vmax.f32 %v4436_v0, 0.0 }
 0x4f6   : > { %v14224_v19 = vpop.f32.mrf.mxu0  ;;  %5526 = vmatmul.mubr.bf16.gmra.mxu0 %v4720_v50  ;;  %v4633_v50 = vmax.f32 %v4424_v59, 0.0  ;;  %v14248_v45 = vpop.f32.mrf.mxu1  ;;  %v4434_v59 = vadd.f32 %v14100_v41, %v13711_v38  ;;  %v4448_v41 = vadd.f32 %v14138_v30, %v13711_v38  ;;  %v11590_v30 = vld [vmem:[%s17147_s17] ss:$8 sps:$4 sm:$0xff]  }
 0x4f7   : > { %5535 = vmatprep.mubr.bf16.mxu0 %v4723_v15  ;;  %v4722_v15 = vpack.c.bf16 %v4630_v16, %v4628_v2  ;;  %17280 = vst [vmem:[#allocation57_spill] sm:$0xff] %v14248_v45  ;;  %v4639_v14 = vmax.f32 %v4438_v57, 0.0 }
 0x4f8   : > { %v14232_v34 = vpop.f32.mrf.mxu0  ;;  %v4725_v63 = vpack.c.bf16 %v4635_v4, %v4633_v50  ;;  %v14260_v31 = vpop.f32.mrf.mxu1  ;;  %v4637_v45 = vmax.f32 %v4434_v59, 0.0  ;;  %v4724_v4 = vpack.c.bf16 %v4634_v21, %v4632_v46  ;;  %v4643_v21 = vmax.f32 %v4448_v41, 0.0 }
 0x4f9   : > { %17281 = vst [vmem:[#allocation58_spill] sm:$0xff] %v14260_v31  ;;  %v4641_v46 = vmax.f32 %v4444_v53, 0.0  ;;  %v4454_v53 = vadd.f32 %v14154_v52, %v13711_v38  ;;  %v4468_v52 = vadd.f32 %v14192_v39, %v13711_v38  ;;  %v11593_v39 = vld [vmem:[%s17147_s17 + $0xf0] ss:$8 sps:$4 sm:$0xff]  }
 0x4fa   : > { %v14236_v6 = vpop.f32.mrf.mxu0  ;;  %v14268_v50 = vpop.f32.mrf.mxu1 }
 0x4fb   : > { %17282 = vst [vmem:[#allocation59_spill] sm:$0xff] %v14268_v50 }
 0x4fc   : > { %v14244_v24 = vpop.f32.mrf.mxu0  ;;  %v14280_v13 = vpop.f32.mrf.mxu1 }
 0x4fd   : > { %17283 = vst [vmem:[#allocation60_spill] sm:$0xff] %v14280_v13  ;;  %v4729_v13 = vpack.c.bf16 %v4643_v21, %v4641_v46 }
 0x4fe   : > { %v14252_v35 = vpop.f32.mrf.mxu0  ;;  %5536 = vmatmul.mubr.bf16.gmra.mxu0 %v4722_v15  ;;  %v4432_v15 = vadd.f32 %v14092_v54, %v13739_v47  ;;  %v11592_v54 = vld [vmem:[%s17147_s17 + $0x4] ss:$8 sps:$4 sm:$0xff]   ;;  %v14294_v41 = vpop.f32.mrf.mxu1 }
 0x4ff   : > { %5545 = vmatprep.mubr.bf16.mxu0 %v4725_v63  ;;  %v4727_v63 = vpack.c.bf16 %v4639_v14, %v4637_v45  ;;  %6985 = vmatprep.subr.bf16.mxu0 %v11592_v54  ;;  %17284 = vst [vmem:[#allocation61_spill] sm:$0xff] %v14294_v41 }
 0x500   : > { %v14258_v16 = vpop.f32.mrf.mxu0  ;;  %v4636_v45 = vmax.f32 %v4432_v15, 0.0  ;;  %6986 = vmatpush1.bf16.msra.mxu0 %v11590_v30  ;;  %v4442_v15 = vadd.f32 %v14116_v17, %v13739_v47  ;;  %v14306_v54 = vpop.f32.mrf.mxu1  ;;  %v4456_v17 = vadd.f32 %v14158_v9, %v13739_v47 }
 0x501   : > { %17285 = vst [vmem:[#allocation62_spill] sm:$0xff] %v14306_v54 }
 0x502   : > { %v14262_v2 = vpop.f32.mrf.mxu0  ;;  %v4726_v29 = vpack.c.bf16 %v4638_v48, %v4636_v45  ;;  %v4640_v45 = vmax.f32 %v4442_v15, 0.0  ;;  %v4464_v15 = vadd.f32 %v14178_v8, %v13711_v38 }
 0x504   : > { %v14264_v61 = vpop.f32.mrf.mxu0 }
 0x506   : > { %v14274_v57 = vpop.f32.mrf.mxu0  ;;  %5546 = vmatmul.mubr.bf16.gmra.mxu0 %v4724_v4  ;;  %v4446_v4 = vadd.f32 %v14128_v49, %v13739_v47 }
 0x507   : > { %5555 = vmatprep.mubr.bf16.mxu0 %v4727_v63  ;;  %v4458_v63 = vadd.f32 %v14162_v10, %v13711_v38  ;;  %v4645_v10 = vmax.f32 %v4454_v53, 0.0  ;;  %v4646_v53 = vmax.f32 %v4456_v17, 0.0  ;;  %v4466_v17 = vadd.f32 %v14182_v26, %v13739_v47 }
 0x508   : > { %v14278_v59 = vpop.f32.mrf.mxu0  ;;  %v4642_v49 = vmax.f32 %v4446_v4, 0.0  ;;  %v4452_v4 = vadd.f32 %v14146_v7, %v13739_v47  ;;  %v11595_v7 = vld [vmem:[%s17147_s17 + $0xf4] ss:$8 sps:$4 sm:$0xff]  }
 0x509   : > { %v4647_v30 = vmax.f32 %v4458_v63, 0.0  ;;  %6987 = vmatprep.subr.bf16.mxu0 %v11595_v7  ;;  %v4650_v26 = vmax.f32 %v4466_v17, 0.0  ;;  %v4472_v17 = vadd.f32 %v14200_v60, %v13739_v47  ;;  %v11598_v60 = vld [vmem:[%s17147_s17 + $0xe4] ss:$8 sps:$4 sm:$0xff]  }
 0x50a   : > { %v14288_v14 = vpop.f32.mrf.mxu0  ;;  %v4728_v21 = vpack.c.bf16 %v4642_v49, %v4640_v45  ;;  %v4651_v45 = vmax.f32 %v4468_v52, 0.0  ;;  %6988 = vmatpush2.bf16.msra.mxu0 %v11593_v39 }
 0x50b   : > { %6989 = vmatprep.subr.bf16.mxu0 %v11598_v60 }
 0x50c   : > { %v14292_v0 = vpop.f32.mrf.mxu0 }
 0x50e   : > { %v14300_v50 = vpop.f32.mrf.mxu0  ;;  %5556 = vmatmul.mubr.bf16.gmra.mxu0 %v4726_v29  ;;  %v14314_v29 = vpop.f32.mrf.mxu1 }
 0x50f   : > { %5565 = vmatprep.mubr.bf16.mxu0 %v4729_v13  ;;  %17286 = vst [vmem:[#allocation63_spill] sm:$0xff] %v14314_v29  ;;  %v4731_v13 = vpack.c.bf16 %v4647_v30, %v4645_v10  ;;  %v4644_v30 = vmax.f32 %v4452_v4, 0.0  ;;  %v4462_v4 = vadd.f32 %v14170_v18, %v13739_v47  ;;  %v4476_v18 = vadd.f32 %v14212_v44, %v13739_v47 }
 0x510   : > { %v14304_v48 = vpop.f32.mrf.mxu0  ;;  %v14326_v49 = vpop.f32.mrf.mxu1 }
 0x511   : > { %17287 = vst [vmem:[#allocation64_spill] sm:$0xff] %v14326_v49  ;;  %v4730_v8 = vpack.c.bf16 %v4646_v53, %v4644_v30  ;;  %v4478_v49 = vadd.f32 %v14216_v3, %v13711_v38  ;;  %v4648_v30 = vmax.f32 %v4462_v4, 0.0  ;;  %v4484_v4 = vadd.f32 %v14232_v34, %v13711_v38 }
 0x512   : > { %v14308_v41 = vpop.f32.mrf.mxu0  ;;  %v14340_v52 = vpop.f32.mrf.mxu1 }
 0x513   : > { %17288 = vst [vmem:[#allocation65_spill] sm:$0xff] %v14340_v52  ;;  %v4655_v39 = vmax.f32 %v4478_v49, 0.0 }
 0x514   : > { %v14312_v46 = vpop.f32.mrf.mxu0  ;;  %v14352_v7 = vpop.f32.mrf.mxu1 }
 0x515   : > { %17289 = vst [vmem:[#allocation66_spill] sm:$0xff] %v14352_v7 }
 0x516   : > { %v14320_v63 = vpop.f32.mrf.mxu0  ;;  %5566 = vmatmul.mubr.bf16.gmra.mxu0 %v4728_v21  ;;  %v4649_v21 = vmax.f32 %v4464_v15, 0.0  ;;  %v4474_v15 = vadd.f32 %v14208_v62, %v13711_v38  ;;  %v4488_v62 = vadd.f32 %v14244_v24, %v13711_v38  ;;  %v11596_v24 = vld [vmem:[%s17147_s17 + $0xe0] ss:$8 sps:$4 sm:$0xff]  }
 0x517   : > { %5575 = vmatprep.mubr.bf16.mxu0 %v4731_v13  ;;  %6990 = vmatpush2.bf16.msra.mxu0 %v11596_v24 }
 0x518   : > { %v14324_v9 = vpop.f32.mrf.mxu0  ;;  %v4733_v29 = vpack.c.bf16 %v4651_v45, %v4649_v21  ;;  %v4653_v3 = vmax.f32 %v4474_v15, 0.0  ;;  %v4732_v45 = vpack.c.bf16 %v4650_v26, %v4648_v30  ;;  %v4654_v15 = vmax.f32 %v4476_v18, 0.0 }
 0x519   : > { %v4659_v30 = vmax.f32 %v4488_v62, 0.0  ;;  %v4486_v18 = vadd.f32 %v14236_v6, %v13739_v47 }
 0x51a   : > { %v14334_v10 = vpop.f32.mrf.mxu0 }
 0x51b   : > { %v4658_v6 = vmax.f32 %v4486_v18, 0.0  ;;  %v4492_v18 = vadd.f32 %v14252_v35, %v13739_v47  ;;  %v11599_v35 = vld [vmem:[%s17147_s17 + $0xd0] ss:$8 sps:$4 sm:$0xff]  }
 0x51c   : > { %v14338_v13 = vpop.f32.mrf.mxu0 }
 0x51e   : > { %v14346_v54 = vpop.f32.mrf.mxu0  ;;  %5576 = vmatmul.mubr.bf16.gmra.mxu0 %v4730_v8  ;;  %v14360_v8 = vpop.f32.mrf.mxu1 }
 0x51f   : > { %5585 = vmatprep.mubr.bf16.mxu0 %v4733_v29  ;;  %17290 = vst [vmem:[#allocation67_spill] sm:$0xff] %v14360_v8  ;;  %v4735_v29 = vpack.c.bf16 %v4655_v39, %v4653_v3  ;;  %v4652_v39 = vmax.f32 %v4472_v17, 0.0  ;;  %v4482_v17 = vadd.f32 %v14224_v19, %v13739_v47  ;;  %v4496_v19 = vadd.f32 %v14262_v2, %v13739_v47  ;;  %v5686_v2 = vld [vmem:[%s17144_s14] sm:$0x3] }
 0x520   : > { %v14350_v53 = vpop.f32.mrf.mxu0  ;;  %v14372_v26 = vpop.f32.mrf.mxu1 }
 0x521   : > { %17291 = vst [vmem:[#allocation68_spill] sm:$0xff] %v14372_v26  ;;  %v4734_v34 = vpack.c.bf16 %v4654_v15, %v4652_v39  ;;  %v4498_v26 = vadd.f32 %v14264_v61, %v13711_v38  ;;  %v4656_v39 = vmax.f32 %v4482_v17, 0.0 }
 0x522   : > { %v14354_v52 = vpop.f32.mrf.mxu0  ;;  %v14386_v62 = vpop.f32.mrf.mxu1 }
 0x523   : > { %17292 = vst [vmem:[#allocation69_spill] sm:$0xff] %v14386_v62  ;;  %v4663_v24 = vmax.f32 %v4498_v26, 0.0  ;;  %v4504_v26 = vadd.f32 %v14278_v59, %v13711_v38  ;;  %v11601_v59 = vld [vmem:[%s17147_s17 + $0xd4] ss:$8 sps:$4 sm:$0xff]  }
 0x524   : > { %v14358_v21 = vpop.f32.mrf.mxu0  ;;  %v14398_v60 = vpop.f32.mrf.mxu1  ;;  %6991 = vmatprep.subr.bf16.mxu0 %v11601_v59 }
 0x525   : > { %17293 = vst [vmem:[#allocation70_spill] sm:$0xff] %v14398_v60  ;;  %6992 = vmatpush2.bf16.msra.mxu0 %v11599_v35 }
 0x526   : > { %v14366_v49 = vpop.f32.mrf.mxu0  ;;  %5586 = vmatmul.mubr.bf16.gmra.mxu0 %v4732_v45  ;;  %v4657_v45 = vmax.f32 %v4484_v4, 0.0  ;;  %v4494_v4 = vadd.f32 %v14258_v16, %v13711_v38  ;;  %v14408_v16 = vpop.f32.mrf.mxu1 }
 0x527   : > { %5595 = vmatprep.mubr.bf16.mxu0 %v4735_v29  ;;  %17294 = vst [vmem:[#allocation71_spill] sm:$0xff] %v14408_v16 }
 0x528   : > { %v14370_v44 = vpop.f32.mrf.mxu0  ;;  %v4737_v8 = vpack.c.bf16 %v4659_v30, %v4657_v45  ;;  %v4661_v61 = vmax.f32 %v4494_v4, 0.0  ;;  %v4736_v30 = vpack.c.bf16 %v4658_v6, %v4656_v39  ;;  %v4508_v45 = vadd.f32 %v14292_v0, %v13711_v38  ;;  %v14417_v39 = vpop.f32.mrf.mxu1 }
 0x529   : > { %v4662_v4 = vmax.f32 %v4496_v19, 0.0  ;;  %17295 = vst [vmem:[#allocation72_spill] sm:$0xff] %v14417_v39 }
 0x52a   : > { %v14380_v3 = vpop.f32.mrf.mxu0  ;;  %v4667_v0 = vmax.f32 %v4508_v45, 0.0  ;;  %v14431_v45 = vrot.slane %v5686_v2, %v12596_v42  ;;  %v14436_v31 = vpop.f32.mrf.mxu1 }
 0x52c   : > { %v14384_v29 = vpop.f32.mrf.mxu0  ;;  %v14449_v35 = vpop.f32.mrf.mxu1 }
 0x52e   : > { %v14392_v7 = vpop.f32.mrf.mxu0  ;;  %5596 = vmatmul.mubr.bf16.gmra.mxu0 %v4734_v34 }
 0x52f   : > { %5605 = vmatprep.mubr.bf16.mxu0 %v4737_v8  ;;  %v4739_v8 = vpack.c.bf16 %v4663_v24, %v4661_v61  ;;  %v14421_v61 = vrot.slane %v5686_v2, %v12588_v37  ;;  %v4506_v37 = vadd.f32 %v14288_v14, %v13739_v47 }
 0x530   : > { %v14396_v15 = vpop.f32.mrf.mxu0 }
 0x532   : > { %v14400_v62 = vpop.f32.mrf.mxu0 }
 0x534   : > { %v14406_v34 = vpop.f32.mrf.mxu0 }
 0x536   : > { %v5367_v17 = vpop.f32.mrf.mxu0  ;;  %5606 = vmatmul.mubr.bf16.gmra.mxu0 %v4736_v30  ;;  %v4660_v30 = vmax.f32 %v4492_v18, 0.0  ;;  %v4518_v18 = vadd.f32 %v14312_v46, %v13711_v38  ;;  %v4666_v46 = vmax.f32 %v4506_v37, 0.0  ;;  %v4516_v37 = vadd.f32 %v14308_v41, %v13739_v47 }
 0x537   : > { %5615 = vmatprep.mubr.bf16.mxu0 %v4739_v8  ;;  %v4665_v8 = vmax.f32 %v4504_v26, 0.0  ;;  %v5368_v19 = vadd.f32 %v5367_v17, %v13801_v36  ;;  %v4524_v41 = vadd.f32 %v14324_v9, %v13711_v38  ;;  %v11602_v9 = vld [vmem:[%s17147_s17 + $0xc0] ss:$8 sps:$4 sm:$0xff]  }
 0x538   : > { %v5369_v6 = vpop.f32.mrf.mxu0  ;;  %v4671_v59 = vmax.f32 %v4518_v18, 0.0  ;;  %v4528_v18 = vadd.f32 %v14338_v13, %v13711_v38 }
 0x539   : > { %v5370_v24 = vadd.f32 %v5369_v6, %v13806_v40  ;;  %v4738_v6 = vpack.c.bf16 %v4662_v4, %v4660_v30  ;;  %v4741_v60 = vpack.c.bf16 %v4667_v0, %v4665_v8  ;;  %v5698_v2 = vadd.f32 %v14431_v45, %v5368_v19 }
 0x53a   : > { %v5371_v39 = vpop.f32.mrf.mxu0  ;;  %v4514_v4 = vadd.f32 %v14304_v48, %v13711_v38 }
 0x53b   : > { %v5372_v40 = vadd.f32 %v5371_v39, %v13812_v23  ;;  %v5699_v36 = vadd.f32 %v14421_v61, %v5370_v24  ;;  %v4502_v23 = vadd.f32 %v14274_v57, %v13739_v47  ;;  %v5826_v8 = vmax.f32 %v5698_v2, 0.0 }
 0x53c   : > { %v5373_v16 = vpop.f32.mrf.mxu0  ;;  %v4512_v2 = vadd.f32 %v14300_v50, %v13739_v47 }
 0x53d   : > { %v5700_v26 = vadd.f32 %v14431_v45, %v5372_v40  ;;  %v5374_v17 = vadd.f32 %v5373_v16, %v13826_v27  ;;  %v5827_v27 = vmax.f32 %v5699_v36, 0.0  ;;  %v4664_v30 = vmax.f32 %v4502_v23, 0.0 }
 0x53e   : > { %v5377_v14 = vpop.f32.mrf.mxu0  ;;  %5616 = vmatmul.mubr.bf16.gmra.mxu0 %v4738_v6  ;;  %v4669_v6 = vmax.f32 %v4514_v4, 0.0 }
 0x53f   : > { %v5701_v0 = vadd.f32 %v14421_v61, %v5374_v17  ;;  %5625 = vmatprep.mubr.bf16.mxu0 %v4741_v60  ;;  %v5828_v39 = vmax.f32 %v5700_v26, 0.0  ;;  %v5378_v19 = vadd.f32 %v5377_v14, %v13834_v56  ;;  %v4740_v60 = vpack.c.bf16 %v4666_v46, %v4664_v30 }
 0x540   : > { %v5379_v24 = vpop.f32.mrf.mxu0  ;;  %v4670_v46 = vmax.f32 %v4516_v37, 0.0  ;;  %v4668_v30 = vmax.f32 %v4512_v2, 0.0  ;;  %v4534_v2 = vadd.f32 %v14350_v53, %v13711_v38 }
 0x541   : > { %v5829_v16 = vmax.f32 %v5701_v0, 0.0  ;;  %v5380_v57 = vadd.f32 %v5379_v24, %v13839_v51  ;;  %v5954_v36 = vpack.c.bf16 %v5828_v39, %v5826_v8  ;;  %v14458_v0 = vpop.f32.mrf.mxu1  ;;  %v5702_v13 = vadd.f32 %v14431_v45, %v5378_v19 }
 0x542   : > { %v5381_v40 = vpop.f32.mrf.mxu0  ;;  %v4675_v39 = vmax.f32 %v4528_v18, 0.0  ;;  %v4673_v8 = vmax.f32 %v4524_v41, 0.0 }
 0x543   : > { %v5382_v48 = vadd.f32 %v5381_v40, %v13845_v5  ;;  %v5955_v17 = vpack.c.bf16 %v5829_v16, %v5827_v27  ;;  %v5703_v51 = vadd.f32 %v14421_v61, %v5380_v57  ;;  %v4743_v5 = vpack.c.bf16 %v4671_v59, %v4669_v6  ;;  %v14469_v27 = vpop.f32.mrf.mxu1  ;;  %v11604_v57 = vld [vmem:[%s17147_s17 + $0xc4] ss:$8 sps:$4 sm:$0xff]  }
 0x544   : > { %v5383_v26 = vpop.f32.mrf.mxu0  ;;  %v5830_v19 = vmax.f32 %v5702_v13, 0.0  ;;  %6993 = vmatprep.subr.bf16.mxu0 %v11604_v57 }
 0x545   : > { %v5704_v56 = vadd.f32 %v14431_v45, %v5382_v48  ;;  %v5384_v23 = vadd.f32 %v5383_v26, %v13853_v58  ;;  %6254 = vmatprep.mubr.bf16.mxu1 %v5955_v17  ;;  %v5831_v59 = vmax.f32 %v5703_v51, 0.0  ;;  %v14482_v26 = vpop.f32.mrf.mxu1  ;;  %6994 = vmatpush2.bf16.msra.mxu0 %v11602_v9  ;;  %v4538_v51 = vadd.f32 %v14358_v21, %v13711_v38 }
 0x546   : > { %v5387_v14 = vpop.f32.mrf.mxu0  ;;  %5626 = vmatmul.mubr.bf16.gmra.mxu0 %v4740_v60  ;;  %6255 = vmatmul.mubr.bf16.vlgmr.msra.gmra.mxu1 %v5954_v36  ;;  %v4742_v60 = vpack.c.bf16 %v4670_v46, %v4668_v30  ;;  %v4745_v36 = vpack.c.bf16 %v4675_v39, %v4673_v8  ;;  %v4536_v30 = vadd.f32 %v14354_v52, %v13739_v47 }
 0x547   : > { %v5705_v4 = vadd.f32 %v14421_v61, %v5384_v23  ;;  %5635 = vmatprep.mubr.bf16.mxu0 %v4743_v5  ;;  %v5832_v24 = vmax.f32 %v5704_v56, 0.0  ;;  %v5388_v40 = vadd.f32 %v5387_v14, %v13861_v32  ;;  %v4522_v23 = vadd.f32 %v14320_v63, %v13739_v47 }
 0x548   : > { %v5389_v58 = vpop.f32.mrf.mxu0  ;;  %v4548_v8 = vadd.f32 %v14384_v29, %v13711_v38  ;;  %v4544_v52 = vadd.f32 %v14370_v44, %v13711_v38  ;;  %v11605_v44 = vld [vmem:[%s17147_s17 + $0xb0] ss:$8 sps:$4 sm:$0xff]  }
 0x549   : > { %v5833_v16 = vmax.f32 %v5705_v4, 0.0  ;;  %v5390_v50 = vadd.f32 %v5389_v58, %v13866_v22  ;;  %v4526_v22 = vadd.f32 %v14334_v10, %v13739_v47  ;;  %v5956_v37 = vpack.c.bf16 %v5832_v24, %v5830_v19  ;;  %v14495_v4 = vpop.f32.mrf.mxu1 }
 0x54a   : > { %v5391_v6 = vpop.f32.mrf.mxu0  ;;  %v5706_v10 = vadd.f32 %v14431_v45, %v5388_v40  ;;  %v4672_v24 = vmax.f32 %v4522_v23, 0.0 }
 0x54b   : > { %v5392_v48 = vadd.f32 %v5391_v6, %v13872_v1  ;;  %v5957_v17 = vpack.c.bf16 %v5833_v16, %v5831_v59  ;;  %v5707_v32 = vadd.f32 %v14421_v61, %v5390_v50  ;;  %v4674_v41 = vmax.f32 %v4526_v22, 0.0  ;;  %v14504_v6 = vpop.f32.mrf.mxu1 }
 0x54c   : > { %v5393_v18 = vpop.f32.mrf.mxu0  ;;  %v5834_v58 = vmax.f32 %v5706_v10, 0.0  ;;  %v4677_v50 = vmax.f32 %v4534_v2, 0.0  ;;  %v4681_v10 = vmax.f32 %v4544_v52, 0.0  ;;  %v17296_v2 = vld [vmem:[#allocation14_spill] sm:$0xff] }
 0x54d   : > { %v5708_v56 = vadd.f32 %v14431_v45, %v5392_v48  ;;  %v5394_v1 = vadd.f32 %v5393_v18, %v13880_v12  ;;  %6264 = vmatprep.mubr.bf16.mxu1 %v5957_v17  ;;  %v4679_v12 = vmax.f32 %v4538_v51, 0.0  ;;  %v5835_v46 = vmax.f32 %v5707_v32, 0.0  ;;  %v14515_v51 = vpop.f32.mrf.mxu1 }
 0x54e   : > { %v5397_v5 = vpop.f32.mrf.mxu0  ;;  %5636 = vmatmul.mubr.bf16.gmra.mxu0 %v4742_v60  ;;  %6265 = vmatmul.mubr.bf16.gmra.mxu1 %v5956_v37  ;;  %v4744_v57 = vpack.c.bf16 %v4674_v41, %v4672_v24  ;;  %v4532_v17 = vadd.f32 %v14346_v54, %v13739_v47  ;;  %v4678_v37 = vmax.f32 %v4536_v30, 0.0  ;;  %v4683_v18 = vmax.f32 %v4548_v8, 0.0 }
 0x54f   : > { %v5709_v21 = vadd.f32 %v14421_v61, %v5394_v1  ;;  %5645 = vmatprep.mubr.bf16.mxu0 %v4745_v36  ;;  %v5836_v13 = vmax.f32 %v5708_v56, 0.0  ;;  %v5398_v59 = vadd.f32 %v5397_v5, %v13900_v33  ;;  %v11607_v1 = vld [vmem:[%s17147_s17 + $0xb4] ss:$8 sps:$4 sm:$0xff]   ;;  %v4554_v8 = vadd.f32 %v14396_v15, %v13711_v38 }
 0x550   : > { %v5399_v14 = vpop.f32.mrf.mxu0  ;;  %v4676_v23 = vmax.f32 %v4532_v17, 0.0  ;;  %6995 = vmatprep.subr.bf16.mxu0 %v11607_v1  ;;  %v4749_v24 = vpack.c.bf16 %v4683_v18, %v4681_v10 }
 0x551   : > { %v5837_v39 = vmax.f32 %v5709_v21, 0.0  ;;  %v5400_v63 = vadd.f32 %v5399_v14, %v13905_v55  ;;  %v5958_v19 = vpack.c.bf16 %v5836_v13, %v5834_v58  ;;  %v5710_v29 = vadd.f32 %v14431_v45, %v5398_v59  ;;  %v17297_v13 = vld [vmem:[#allocation15_spill] sm:$0xff]  ;;  %v14528_v58 = vpop.f32.mrf.mxu1  ;;  %6996 = vmatpush2.bf16.msra.mxu0 %v11605_v44 }
 0x552   : > { %v5401_v16 = vpop.f32.mrf.mxu0  ;;  %v4558_v59 = vadd.f32 %v14406_v34, %v13711_v38  ;;  %v17301_v38 = vld [vmem:[#allocation19_spill] sm:$0xff] }
 0x553   : > { %v5402_v53 = vadd.f32 %v5401_v16, %v13911_v25  ;;  %v5959_v9 = vpack.c.bf16 %v5837_v39, %v5835_v46  ;;  %v5711_v55 = vadd.f32 %v14421_v61, %v5400_v63  ;;  %v4747_v25 = vpack.c.bf16 %v4679_v12, %v4677_v50 }
 0x554   : > { %v5403_v40 = vpop.f32.mrf.mxu0  ;;  %v5838_v5 = vmax.f32 %v5710_v29, 0.0  ;;  %v4746_v46 = vpack.c.bf16 %v4678_v37, %v4676_v23 }
 0x555   : > { %v5712_v33 = vadd.f32 %v14431_v45, %v5402_v53  ;;  %v5404_v48 = vadd.f32 %v5403_v40, %v13919_v28  ;;  %6274 = vmatprep.mubr.bf16.mxu1 %v5959_v9  ;;  %v5839_v32 = vmax.f32 %v5711_v55, 0.0  ;;  %v17298_v53 = vld [vmem:[#allocation16_spill] sm:$0xff] }
 0x556   : > { %v5407_v60 = vpop.f32.mrf.mxu0  ;;  %5646 = vmatmul.mubr.bf16.gmra.mxu0 %v4744_v57  ;;  %6275 = vmatmul.mubr.bf16.gmra.mxu1 %v5958_v19  ;;  %v4542_v57 = vadd.f32 %v14366_v49, %v13739_v47  ;;  %v17299_v49 = vld [vmem:[#allocation18_spill] sm:$0xff] }
 0x557   : > { %v5713_v22 = vadd.f32 %v14421_v61, %v5404_v48  ;;  %5655 = vmatprep.mubr.bf16.mxu0 %v4747_v25  ;;  %v5840_v36 = vmax.f32 %v5712_v33, 0.0  ;;  %v5408_v21 = vadd.f32 %v5407_v60, %v17296_v2  ;;  %v14541_v33 = vpop.f32.mrf.mxu1  ;;  %v4687_v48 = vmax.f32 %v4558_v59, 0.0  ;;  %v17303_v59 = vld [vmem:[#allocation22_spill] sm:$0xff] }
 0x558   : > { %v5409_v28 = vpop.f32.mrf.mxu0  ;;  %v4680_v29 = vmax.f32 %v4542_v57, 0.0  ;;  %v17304_v57 = vld [vmem:[#allocation21_spill] sm:$0xff] }
 0x559   : > { %v5841_v56 = vmax.f32 %v5713_v22, 0.0  ;;  %v5410_v54 = vadd.f32 %v5409_v28, %v13931_v11  ;;  %v4546_v11 = vadd.f32 %v14380_v3, %v13739_v47  ;;  %v5960_v39 = vpack.c.bf16 %v5840_v36, %v5838_v5  ;;  %v17300_v22 = vld [vmem:[#allocation17_spill] sm:$0xff]  ;;  %v14549_v23 = vpop.f32.mrf.mxu1  ;;  %v17302_v5 = vld [vmem:[#allocation20_spill] sm:$0xff] }
 0x55a   : > { %v5411_v41 = vpop.f32.mrf.mxu0  ;;  %v5714_v3 = vadd.f32 %v14431_v45, %v5408_v21  ;;  %v4685_v36 = vmax.f32 %v4554_v8, 0.0  ;;  %v17305_v8 = vld [vmem:[#allocation23_spill] sm:$0xff] }
 0x55b   : > { %v5412_v14 = vadd.f32 %v5411_v41, %v17297_v13  ;;  %v5961_v12 = vpack.c.bf16 %v5841_v56, %v5839_v32  ;;  %v5715_v16 = vadd.f32 %v14421_v61, %v5410_v54  ;;  %v4682_v19 = vmax.f32 %v4546_v11, 0.0 }
 0x55c   : > { %v5413_v63 = vpop.f32.mrf.mxu0  ;;  %v5842_v60 = vmax.f32 %v5714_v3, 0.0  ;;  %v4556_v56 = vadd.f32 %v14400_v62, %v13739_v47  ;;  %v4751_v21 = vpack.c.bf16 %v4687_v48, %v4685_v36  ;;  %v4552_v41 = vadd.f32 %v14392_v7, %v13739_v47  ;;  %v11608_v47 = vld [vmem:[%s17149_s19 + $0x38] sm:$0xff]   ;;  %v11609_v7 = vld [vmem:[%s17147_s17 + $0xa0] ss:$8 sps:$4 sm:$0xff]  }
 0x55d   : > { %v5716_v50 = vadd.f32 %v14431_v45, %v5412_v14  ;;  %v5414_v9 = vadd.f32 %v5413_v63, %v17298_v53  ;;  %6284 = vmatprep.mubr.bf16.mxu1 %v5961_v12  ;;  %v5843_v25 = vmax.f32 %v5715_v16, 0.0  ;;  %v4748_v32 = vpack.c.bf16 %v4682_v19, %v4680_v29  ;;  %v14557_v63 = vpop.f32.mrf.mxu1  ;;  %7652 = vmatpush1.bf16.msra.mxu1 %v11608_v47 }
 0x55e   : > { %v5417_v30 = vpop.f32.mrf.mxu0  ;;  %5656 = vmatmul.mubr.bf16.gmra.mxu0 %v4746_v46  ;;  %6285 = vmatmul.mubr.bf16.gmra.mxu1 %v5960_v39  ;;  %v4686_v12 = vmax.f32 %v4556_v56, 0.0  ;;  %v4684_v53 = vmax.f32 %v4552_v41, 0.0 }
 0x55f   : > { %v5717_v34 = vadd.f32 %v14421_v61, %v5414_v9  ;;  %5665 = vmatprep.mubr.bf16.mxu0 %v4749_v24  ;;  %v5844_v40 = vmax.f32 %v5716_v50, 0.0  ;;  %v5418_v37 = vadd.f32 %v5417_v30, %v17300_v22  ;;  %v11611_v50 = vld [vmem:[%s17147_s17 + $0xa4] ss:$8 sps:$4 sm:$0xff]   ;;  %7653 = vmatprep.subr.bf16.mxu1 %v17233_v20 }
 0x560   : > { %v5419_v55 = vpop.f32.mrf.mxu0  ;;  %6997 = vmatprep.subr.bf16.mxu0 %v11611_v50  ;;  %v17310_v50 = vld [vmem:[#allocation29_spill] sm:$0xff] }
 0x561   : > { %v5845_v17 = vmax.f32 %v5717_v34, 0.0  ;;  %v5420_v52 = vadd.f32 %v5419_v55, %v17299_v49  ;;  %v5962_v54 = vpack.c.bf16 %v5844_v40, %v5842_v60  ;;  %v5718_v13 = vadd.f32 %v14431_v45, %v5418_v37  ;;  %6998 = vmatpush2.bf16.msra.mxu0 %v11609_v7 }
 0x562   : > { %v5421_v18 = vpop.f32.mrf.mxu0  ;;  %v4750_v40 = vpack.c.bf16 %v4686_v12, %v4684_v53  ;;  %v17309_v12 = vld [vmem:[#allocation27_spill] sm:$0xff] }
 0x563   : > { %v5422_v15 = vadd.f32 %v5421_v18, %v17301_v38  ;;  %v5963_v28 = vpack.c.bf16 %v5845_v17, %v5843_v25  ;;  %v5719_v44 = vadd.f32 %v14421_v61, %v5420_v52  ;;  %v5846_v9 = vmax.f32 %v5718_v13, 0.0  ;;  %v14571_v25 = vpop.f32.mrf.mxu1  ;;  %v17306_v52 = vld [vmem:[#allocation24_spill] sm:$0xff] }
 0x564   : > { %v5423_v1 = vpop.f32.mrf.mxu0 }
 0x565   : > { %v5720_v10 = vadd.f32 %v14431_v45, %v5422_v15  ;;  %v5424_v2 = vadd.f32 %v5423_v1, %v17302_v5  ;;  %6294 = vmatprep.mubr.bf16.mxu1 %v5963_v28  ;;  %v5847_v46 = vmax.f32 %v5719_v44, 0.0  ;;  %v14579_v38 = vpop.f32.mrf.mxu1 }
 0x566   : > { %v5427_v14 = vpop.f32.mrf.mxu0  ;;  %5666 = vmatmul.mubr.bf16.gmra.mxu0 %v4748_v32  ;;  %6295 = vmatmul.mubr.bf16.gmra.mxu1 %v5962_v54  ;;  %v17307_v54 = vld [vmem:[#allocation25_spill] sm:$0xff] }
 0x567   : > { %v5721_v62 = vadd.f32 %v14421_v61, %v5424_v2  ;;  %5675 = vmatprep.mubr.bf16.mxu0 %v4751_v21  ;;  %v5848_v11 = vmax.f32 %v5720_v10, 0.0  ;;  %v5428_v3 = vadd.f32 %v5427_v14, %v17304_v57  ;;  %v17308_v10 = vld [vmem:[#allocation26_spill] sm:$0xff]  ;;  %v14585_v14 = vpop.f32.mrf.mxu1  ;;  %v11613_v57 = vld [vmem:[%s17147_s17 + $0x90] ss:$8 sps:$4 sm:$0xff]  }
 0x568   : > { %v5429_v39 = vpop.f32.mrf.mxu0 }
 0x569   : > { %v5849_v24 = vmax.f32 %v5721_v62, 0.0  ;;  %v5430_v16 = vadd.f32 %v5429_v39, %v17303_v59  ;;  %v5964_v55 = vpack.c.bf16 %v5848_v11, %v5846_v9  ;;  %v5722_v60 = vadd.f32 %v14431_v45, %v5428_v3  ;;  %v14591_v47 = vpop.f32.mrf.mxu1  ;;  %v11612_v9 = vld [vmem:[%s17149_s19 + $0x30] sm:$0xff]  }
 0x56a   : > { %v5431_v30 = vpop.f32.mrf.mxu0  ;;  %v11615_v3 = vld [vmem:[%s17147_s17 + $0x94] ss:$8 sps:$4 sm:$0xff]   ;;  %7654 = vmatpush1.bf16.msra.mxu1 %v11612_v9 }
 0x56b   : > { %v5432_v34 = vadd.f32 %v5431_v30, %v17305_v8  ;;  %v5965_v19 = vpack.c.bf16 %v5849_v24, %v5847_v46  ;;  %v5723_v17 = vadd.f32 %v14421_v61, %v5430_v16  ;;  %v5850_v56 = vmax.f32 %v5722_v60, 0.0  ;;  %v17311_v8 = vld [vmem:[#allocation28_spill] sm:$0xff]  ;;  %6999 = vmatprep.subr.bf16.mxu0 %v11615_v3  ;;  %7655 = vmatprep.subr.bf16.mxu1 %v17233_v20 }
 0x56c   : > { %v5433_v48 = vpop.f32.mrf.mxu0  ;;  %7000 = vmatpush2.bf16.msra.mxu0 %v11613_v57 }
 0x56d   : > { %v5724_v49 = vadd.f32 %v14431_v45, %v5432_v34  ;;  %v5434_v29 = vadd.f32 %v5433_v48, %v17306_v52  ;;  %6304 = vmatprep.mubr.bf16.mxu1 %v5965_v19  ;;  %v5851_v15 = vmax.f32 %v5723_v17, 0.0  ;;  %v14605_v52 = vpop.f32.mrf.mxu1 }
 0x56e   : > { %v5437_v22 = vpop.f32.mrf.mxu0  ;;  %5676 = vmatmul.mubr.bf16.gmra.mxu0 %v4750_v40  ;;  %6305 = vmatmul.mubr.bf16.gmra.mxu1 %v5964_v55  ;;  %v17312_v40 = vld [vmem:[#allocation30_spill] sm:$0xff] }
 0x56f   : > { %v5725_v37 = vadd.f32 %v14421_v61, %v5434_v29  ;;  %v5852_v18 = vmax.f32 %v5724_v49, 0.0  ;;  %v5438_v44 = vadd.f32 %v5437_v22, %v17307_v54  ;;  %v17313_v22 = vld [vmem:[#allocation31_spill] sm:$0xff] }
 0x570   : > { %v5439_v36 = vpop.f32.mrf.mxu0 }
 0x571   : > { %v5853_v28 = vmax.f32 %v5725_v37, 0.0  ;;  %v5440_v32 = vadd.f32 %v5439_v36, %v14027_v43  ;;  %v5966_v21 = vpack.c.bf16 %v5852_v18, %v5850_v56  ;;  %v5726_v43 = vadd.f32 %v14431_v45, %v5438_v44  ;;  %v14613_v56 = vpop.f32.mrf.mxu1 }
 0x572   : > { %v5441_v1 = vpop.f32.mrf.mxu0 }
 0x573   : > { %v5442_v5 = vadd.f32 %v5441_v1, %v17308_v10  ;;  %v5967_v2 = vpack.c.bf16 %v5853_v28, %v5851_v15  ;;  %v5727_v41 = vadd.f32 %v14421_v61, %v5440_v32  ;;  %v5854_v30 = vmax.f32 %v5726_v43, 0.0  ;;  %v17314_v1 = vld [vmem:[#allocation33_spill] sm:$0xff] }
 0x574   : > { %v5443_v13 = vpop.f32.mrf.mxu0 }
 0x575   : > { %v5728_v62 = vadd.f32 %v14431_v45, %v5442_v5  ;;  %v5444_v46 = vadd.f32 %v5443_v13, %v17309_v12  ;;  %6314 = vmatprep.mubr.bf16.mxu1 %v5967_v2  ;;  %v5855_v24 = vmax.f32 %v5727_v41, 0.0  ;;  %v17315_v2 = vld [vmem:[#allocation32_spill] sm:$0xff]  ;;  %v17316_v13 = vld [vmem:[#allocation34_spill] sm:$0xff] }
 0x576   : > { %v5447_v11 = vpop.f32.mrf.mxu0  ;;  %6315 = vmatmul.mubr.bf16.gmra.mxu1 %v5966_v21 }
 0x577   : > { %v5729_v39 = vadd.f32 %v14421_v61, %v5444_v46  ;;  %v5856_v59 = vmax.f32 %v5728_v62, 0.0  ;;  %v5448_v34 = vadd.f32 %v5447_v11, %v17311_v8 }
 0x578   : > { %v5449_v16 = vpop.f32.mrf.mxu0 }
 0x579   : > { %v5857_v7 = vmax.f32 %v5729_v39, 0.0  ;;  %v5450_v53 = vadd.f32 %v5449_v16, %v17310_v50  ;;  %v5968_v17 = vpack.c.bf16 %v5856_v59, %v5854_v30  ;;  %v5730_v18 = vadd.f32 %v14431_v45, %v5448_v34  ;;  %v14619_v39 = vpop.f32.mrf.mxu1  ;;  %v17317_v59 = vld [vmem:[#allocation35_spill] sm:$0xff]  ;;  %v17318_v34 = vld [vmem:[#allocation37_spill] sm:$0xff] }
 0x57a   : > { %v5451_v19 = vpop.f32.mrf.mxu0 }
 0x57b   : > { %v5452_v55 = vadd.f32 %v5451_v19, %v17312_v40  ;;  %v5969_v48 = vpack.c.bf16 %v5857_v7, %v5855_v24  ;;  %v5731_v29 = vadd.f32 %v14421_v61, %v5450_v53  ;;  %v5858_v5 = vmax.f32 %v5730_v18, 0.0  ;;  %v14625_v30 = vpop.f32.mrf.mxu1  ;;  %v11616_v40 = vld [vmem:[%s17149_s19 + $0x28] sm:$0xff]  }
 0x57c   : > { %v5453_v49 = vpop.f32.mrf.mxu0  ;;  %7656 = vmatpush1.bf16.msra.mxu1 %v11616_v40 }
 0x57d   : > { %v5732_v60 = vadd.f32 %v14431_v45, %v5452_v55  ;;  %v5454_v37 = vadd.f32 %v5453_v49, %v17313_v22  ;;  %6324 = vmatprep.mubr.bf16.mxu1 %v5969_v48  ;;  %v5859_v54 = vmax.f32 %v5731_v29, 0.0  ;;  %v11617_v55 = vld [vmem:[%s17147_s17 + $0x80] ss:$8 sps:$4 sm:$0xff]   ;;  %v11619_v48 = vld [vmem:[%s17147_s17 + $0x84] ss:$8 sps:$4 sm:$0xff]   ;;  %v17319_v49 = vld [vmem:[#allocation36_spill] sm:$0xff]  ;;  %7657 = vmatprep.subr.bf16.mxu1 %v17233_v20 }
 0x57e   : > { %v5457_v36 = vpop.f32.mrf.mxu0  ;;  %6325 = vmatmul.mubr.bf16.gmra.mxu1 %v5968_v17  ;;  %v17320_v22 = vld [vmem:[#allocation38_spill] sm:$0xff]  ;;  %7001 = vmatprep.subr.bf16.mxu0 %v11619_v48 }
 0x57f   : > { %v5733_v15 = vadd.f32 %v14421_v61, %v5454_v37  ;;  %v5860_v28 = vmax.f32 %v5732_v60, 0.0  ;;  %v5458_v21 = vadd.f32 %v5457_v36, %v17315_v2  ;;  %7002 = vmatpush2.bf16.msra.mxu0 %v11617_v55 }
 0x580   : > { %v5459_v32 = vpop.f32.mrf.mxu0 }
 0x581   : > { %v5861_v44 = vmax.f32 %v5733_v15, 0.0  ;;  %v5460_v10 = vadd.f32 %v5459_v32, %v17314_v1  ;;  %v5970_v46 = vpack.c.bf16 %v5860_v28, %v5858_v5  ;;  %v5734_v7 = vadd.f32 %v14431_v45, %v5458_v21  ;;  %v14639_v28 = vpop.f32.mrf.mxu1 }
 0x582   : > { %v5461_v41 = vpop.f32.mrf.mxu0 }
 0x583   : > { %v5462_v62 = vadd.f32 %v5461_v41, %v17316_v13  ;;  %v5971_v12 = vpack.c.bf16 %v5861_v44, %v5859_v54  ;;  %v5735_v43 = vadd.f32 %v14421_v61, %v5460_v10  ;;  %v5862_v17 = vmax.f32 %v5734_v7, 0.0  ;;  %v17321_v44 = vld [vmem:[#allocation39_spill] sm:$0xff]  ;;  %v14647_v13 = vpop.f32.mrf.mxu1  ;;  %v17324_v7 = vld [vmem:[#allocation42_spill] sm:$0xff] }
 0x584   : > { %v5463_v11 = vpop.f32.mrf.mxu0 }
 0x585   : > { %v5736_v24 = vadd.f32 %v14431_v45, %v5462_v62  ;;  %v5464_v16 = vadd.f32 %v5463_v11, %v17317_v59  ;;  %6334 = vmatprep.mubr.bf16.mxu1 %v5971_v12  ;;  %v5863_v9 = vmax.f32 %v5735_v43, 0.0 }
 0x586   : > { %v5467_v50 = vpop.f32.mrf.mxu0  ;;  %6335 = vmatmul.mubr.bf16.gmra.mxu1 %v5970_v46  ;;  %v17322_v46 = vld [vmem:[#allocation41_spill] sm:$0xff] }
 0x587   : > { %v5737_v53 = vadd.f32 %v14421_v61, %v5464_v16  ;;  %v5864_v57 = vmax.f32 %v5736_v24, 0.0  ;;  %v5468_v29 = vadd.f32 %v5467_v50, %v17319_v49  ;;  %v17323_v24 = vld [vmem:[#allocation40_spill] sm:$0xff] }
 0x588   : > { %v5469_v3 = vpop.f32.mrf.mxu0 }
 0x589   : > { %v5865_v8 = vmax.f32 %v5737_v53, 0.0  ;;  %v5470_v19 = vadd.f32 %v5469_v3, %v17318_v34  ;;  %v5972_v36 = vpack.c.bf16 %v5864_v57, %v5862_v17  ;;  %v5738_v10 = vadd.f32 %v14431_v45, %v5468_v29  ;;  %v14652_v3 = vpop.f32.mrf.mxu1 }
 0x58a   : > { %v5471_v60 = vpop.f32.mrf.mxu0 }
 0x58b   : > { %v5472_v37 = vadd.f32 %v5471_v60, %v17320_v22  ;;  %v5973_v18 = vpack.c.bf16 %v5865_v8, %v5863_v9  ;;  %v5739_v32 = vadd.f32 %v14421_v61, %v5470_v19  ;;  %v5866_v11 = vmax.f32 %v5738_v10, 0.0  ;;  %v17325_v19 = vld [vmem:[#allocation43_spill] sm:$0xff]  ;;  %v14659_v60 = vpop.f32.mrf.mxu1  ;;  %v17328_v10 = vld [vmem:[#allocation46_spill] sm:$0xff] }
 0x58c   : > { %v5473_v15 = vpop.f32.mrf.mxu0 }
 0x58d   : > { %v5740_v54 = vadd.f32 %v14431_v45, %v5472_v37  ;;  %v5474_v1 = vadd.f32 %v5473_v15, %v17321_v44  ;;  %6344 = vmatprep.mubr.bf16.mxu1 %v5973_v18  ;;  %v5867_v62 = vmax.f32 %v5739_v32, 0.0  ;;  %v17326_v18 = vld [vmem:[#allocation45_spill] sm:$0xff] }
 0x58e   : > { %v5477_v5 = vpop.f32.mrf.mxu0  ;;  %6345 = vmatmul.mubr.bf16.gmra.mxu1 %v5972_v36  ;;  %v11620_v15 = vld [vmem:[%s17149_s19 + $0x20] sm:$0xff]  }
 0x58f   : > { %v5741_v2 = vadd.f32 %v14421_v61, %v5474_v1  ;;  %v5868_v21 = vmax.f32 %v5740_v54, 0.0  ;;  %v5478_v59 = vadd.f32 %v5477_v5, %v17323_v24  ;;  %v17327_v54 = vld [vmem:[#allocation44_spill] sm:$0xff]  ;;  %7658 = vmatpush1.bf16.msra.mxu1 %v11620_v15 }
 0x590   : > { %v5479_v41 = vpop.f32.mrf.mxu0  ;;  %7659 = vmatprep.subr.bf16.mxu1 %v17233_v20 }
 0x591   : > { %v5869_v12 = vmax.f32 %v5741_v2, 0.0  ;;  %v5480_v43 = vadd.f32 %v5479_v41, %v17322_v46  ;;  %v5974_v9 = vpack.c.bf16 %v5868_v21, %v5866_v11  ;;  %v5742_v55 = vadd.f32 %v14431_v45, %v5478_v59 }
 0x592   : > { %v5481_v16 = vpop.f32.mrf.mxu0 }
 0x593   : > { %v5482_v50 = vadd.f32 %v5481_v16, %v17324_v7  ;;  %v5975_v53 = vpack.c.bf16 %v5869_v12, %v5867_v62  ;;  %v5743_v8 = vadd.f32 %v14421_v61, %v5480_v43  ;;  %v5870_v32 = vmax.f32 %v5742_v55, 0.0  ;;  %v14667_v62 = vpop.f32.mrf.mxu1  ;;  %v17329_v43 = vld [vmem:[#allocation47_spill] sm:$0xff] }
 0x594   : > { %v5483_v57 = vpop.f32.mrf.mxu0 }
 0x595   : > { %v5744_v34 = vadd.f32 %v14431_v45, %v5482_v50  ;;  %v5484_v40 = vadd.f32 %v5483_v57, %v17325_v19  ;;  %6354 = vmatprep.mubr.bf16.mxu1 %v5975_v53  ;;  %v5871_v22 = vmax.f32 %v5743_v8, 0.0  ;;  %v14675_v53 = vpop.f32.mrf.mxu1  ;;  %v17330_v8 = vld [vmem:[#allocation49_spill] sm:$0xff] }
 0x596   : > { %v5487_v48 = vpop.f32.mrf.mxu0  ;;  %6355 = vmatmul.mubr.bf16.gmra.mxu1 %v5974_v9 }
 0x597   : > { %v5745_v17 = vadd.f32 %v14421_v61, %v5484_v40  ;;  %v5872_v49 = vmax.f32 %v5744_v34, 0.0  ;;  %v5488_v44 = vadd.f32 %v5487_v48, %v17327_v54  ;;  %v17331_v40 = vld [vmem:[#allocation48_spill] sm:$0xff] }
 0x598   : > { %v5489_v29 = vpop.f32.mrf.mxu0 }
 0x599   : > { %v5873_v37 = vmax.f32 %v5745_v17, 0.0  ;;  %v5490_v36 = vadd.f32 %v5489_v29, %v17326_v18  ;;  %v5976_v21 = vpack.c.bf16 %v5872_v49, %v5870_v32  ;;  %v5746_v24 = vadd.f32 %v14431_v45, %v5488_v44  ;;  %v17332_v17 = vld [vmem:[#allocation50_spill] sm:$0xff]  ;;  %v14680_v18 = vpop.f32.mrf.mxu1  ;;  %v17333_v32 = vld [vmem:[#allocation51_spill] sm:$0xff] }
 0x59a   : > { %v5491_v1 = vpop.f32.mrf.mxu0 }
 0x59b   : > { %v5492_v5 = vadd.f32 %v5491_v1, %v17328_v10  ;;  %v5977_v2 = vpack.c.bf16 %v5873_v37, %v5871_v22  ;;  %v5747_v12 = vadd.f32 %v14421_v61, %v5490_v36  ;;  %v5874_v19 = vmax.f32 %v5746_v24, 0.0 }
 0x59c   : > { %v5493_v41 = vpop.f32.mrf.mxu0 }
 0x59d   : > { %v5748_v46 = vadd.f32 %v14431_v45, %v5492_v5  ;;  %v5494_v11 = vadd.f32 %v5493_v41, %v17329_v43  ;;  %6364 = vmatprep.mubr.bf16.mxu1 %v5977_v2  ;;  %v5875_v9 = vmax.f32 %v5747_v12, 0.0 }
 0x59e   : > { %v5497_v59 = vpop.f32.mrf.mxu0  ;;  %6365 = vmatmul.mubr.bf16.gmra.mxu1 %v5976_v21  ;;  %v14687_v21 = vpop.f32.mrf.mxu1 }
 0x59f   : > { %v5749_v16 = vadd.f32 %v14421_v61, %v5494_v11  ;;  %v5876_v7 = vmax.f32 %v5748_v46, 0.0  ;;  %v5498_v55 = vadd.f32 %v5497_v59, %v17331_v40  ;;  %v17334_v46 = vld [vmem:[#allocation53_spill] sm:$0xff]  ;;  %v11621_v11 = vld [vmem:[%s17149_s19 + $0x18] sm:$0xff]  }
 0x5a0   : > { %v5499_v50 = vpop.f32.mrf.mxu0  ;;  %v17335_v59 = vld [vmem:[#allocation52_spill] sm:$0xff]  ;;  %7660 = vmatpush1.bf16.msra.mxu1 %v11621_v11 }
 0x5a1   : > { %v5877_v57 = vmax.f32 %v5749_v16, 0.0  ;;  %v5500_v34 = vadd.f32 %v5499_v50, %v17330_v8  ;;  %v5978_v22 = vpack.c.bf16 %v5876_v7, %v5874_v19  ;;  %v5750_v44 = vadd.f32 %v14431_v45, %v5498_v55  ;;  %v17336_v50 = vld [vmem:[#allocation54_spill] sm:$0xff]  ;;  %v14695_v19 = vpop.f32.mrf.mxu1  ;;  %7661 = vmatprep.subr.bf16.mxu1 %v17233_v20 }
 0x5a2   : > { %v5501_v48 = vpop.f32.mrf.mxu0 }
 0x5a3   : > { %v5502_v49 = vadd.f32 %v5501_v48, %v17332_v17  ;;  %v5979_v29 = vpack.c.bf16 %v5877_v57, %v5875_v9  ;;  %v5751_v36 = vadd.f32 %v14421_v61, %v5500_v34  ;;  %v5878_v24 = vmax.f32 %v5750_v44, 0.0  ;;  %v17337_v48 = vld [vmem:[#allocation55_spill] sm:$0xff]  ;;  %v17338_v44 = vld [vmem:[#allocation57_spill] sm:$0xff] }
 0x5a4   : > { %v5503_v37 = vpop.f32.mrf.mxu0 }
 0x5a5   : > { %v5752_v15 = vadd.f32 %v14431_v45, %v5502_v49  ;;  %v5504_v54 = vadd.f32 %v5503_v37, %v17333_v32  ;;  %6374 = vmatprep.mubr.bf16.mxu1 %v5979_v29  ;;  %v5879_v41 = vmax.f32 %v5751_v36, 0.0 }
 0x5a6   : > { %v5507_v1 = vpop.f32.mrf.mxu0  ;;  %6375 = vmatmul.mubr.bf16.gmra.mxu1 %v5978_v22 }
 0x5a7   : > { %v5753_v10 = vadd.f32 %v14421_v61, %v5504_v54  ;;  %v5880_v5 = vmax.f32 %v5752_v15, 0.0  ;;  %v5508_v16 = vadd.f32 %v5507_v1, %v17335_v59  ;;  %v14703_v15 = vpop.f32.mrf.mxu1 }
 0x5a8   : > { %v5509_v2 = vpop.f32.mrf.mxu0 }
 0x5a9   : > { %v5881_v12 = vmax.f32 %v5753_v10, 0.0  ;;  %v5510_v43 = vadd.f32 %v5509_v2, %v17334_v46  ;;  %v5980_v8 = vpack.c.bf16 %v5880_v5, %v5878_v24  ;;  %v5754_v49 = vadd.f32 %v14431_v45, %v5508_v16  ;;  %v17339_v5 = vld [vmem:[#allocation56_spill] sm:$0xff]  ;;  %v14708_v59 = vpop.f32.mrf.mxu1 }
 0x5aa   : > { %v5511_v7 = vpop.f32.mrf.mxu0 }
 0x5ab   : > { %v5512_v9 = vadd.f32 %v5511_v7, %v17336_v50  ;;  %v5981_v57 = vpack.c.bf16 %v5881_v12, %v5879_v41  ;;  %v5755_v40 = vadd.f32 %v14421_v61, %v5510_v43  ;;  %v5882_v10 = vmax.f32 %v5754_v49, 0.0  ;;  %v17340_v12 = vld [vmem:[#allocation58_spill] sm:$0xff]  ;;  %v17341_v50 = vld [vmem:[#allocation59_spill] sm:$0xff] }
 0x5ac   : > { %v5513_v34 = vpop.f32.mrf.mxu0 }
 0x5ad   : > { %v5756_v55 = vadd.f32 %v14431_v45, %v5512_v9  ;;  %v5514_v17 = vadd.f32 %v5513_v34, %v17337_v48  ;;  %6384 = vmatprep.mubr.bf16.mxu1 %v5981_v57  ;;  %v5883_v32 = vmax.f32 %v5755_v40, 0.0  ;;  %v14715_v48 = vpop.f32.mrf.mxu1 }
 0x5ae   : > { %v5517_v29 = vpop.f32.mrf.mxu0  ;;  %6385 = vmatmul.mubr.bf16.gmra.mxu1 %v5980_v8 }
 0x5af   : > { %v5757_v22 = vadd.f32 %v14421_v61, %v5514_v17  ;;  %v5884_v37 = vmax.f32 %v5756_v55, 0.0  ;;  %v5518_v2 = vadd.f32 %v5517_v29, %v17339_v5  ;;  %v17342_v29 = vld [vmem:[#allocation61_spill] sm:$0xff] }
 0x5b0   : > { %v5519_v36 = vpop.f32.mrf.mxu0 }
 0x5b1   : > { %v5885_v54 = vmax.f32 %v5757_v22, 0.0  ;;  %v5520_v1 = vadd.f32 %v5519_v36, %v17338_v44  ;;  %v5982_v11 = vpack.c.bf16 %v5884_v37, %v5882_v10  ;;  %v5758_v57 = vadd.f32 %v14431_v45, %v5518_v2  ;;  %v11622_v37 = vld [vmem:[%s17149_s19 + $0x10] sm:$0xff]  }
 0x5b2   : > { %v5521_v41 = vpop.f32.mrf.mxu0  ;;  %7662 = vmatpush1.bf16.msra.mxu1 %v11622_v37 }
 0x5b3   : > { %v5522_v46 = vadd.f32 %v5521_v41, %v17340_v12  ;;  %v5983_v43 = vpack.c.bf16 %v5885_v54, %v5883_v32  ;;  %v5759_v16 = vadd.f32 %v14421_v61, %v5520_v1  ;;  %v5886_v36 = vmax.f32 %v5758_v57, 0.0  ;;  %v17343_v32 = vld [vmem:[#allocation60_spill] sm:$0xff]  ;;  %v17344_v1 = vld [vmem:[#allocation62_spill] sm:$0xff]  ;;  %v14723_v12 = vpop.f32.mrf.mxu1  ;;  %7663 = vmatprep.subr.bf16.mxu1 %v17233_v20 }
 0x5b4   : > { %v5523_v24 = vpop.f32.mrf.mxu0 }
 0x5b5   : > { %v5760_v7 = vadd.f32 %v14431_v45, %v5522_v46  ;;  %v5524_v9 = vadd.f32 %v5523_v24, %v17341_v50  ;;  %6394 = vmatprep.mubr.bf16.mxu1 %v5983_v43  ;;  %v5887_v17 = vmax.f32 %v5759_v16, 0.0 }
 0x5b6   : > { %v5527_v8 = vpop.f32.mrf.mxu0  ;;  %6395 = vmatmul.mubr.bf16.gmra.mxu1 %v5982_v11  ;;  %v17345_v11 = vld [vmem:[#allocation63_spill] sm:$0xff] }
 0x5b7   : > { %v5761_v34 = vadd.f32 %v14421_v61, %v5524_v9  ;;  %v5888_v40 = vmax.f32 %v5760_v7, 0.0  ;;  %v5528_v54 = vadd.f32 %v5527_v8, %v17343_v32  ;;  %v14731_v8 = vpop.f32.mrf.mxu1 }
 0x5b8   : > { %v5529_v55 = vpop.f32.mrf.mxu0 }
 0x5b9   : > { %v5889_v49 = vmax.f32 %v5761_v34, 0.0  ;;  %v5530_v22 = vadd.f32 %v5529_v55, %v17342_v29  ;;  %v5984_v2 = vpack.c.bf16 %v5888_v40, %v5886_v36  ;;  %v5762_v16 = vadd.f32 %v14431_v45, %v5528_v54  ;;  %v17346_v55 = vld [vmem:[#allocation65_spill] sm:$0xff]  ;;  %v17347_v29 = vld [vmem:[#allocation64_spill] sm:$0xff]  ;;  %v17348_v36 = vld [vmem:[#allocation66_spill] sm:$0xff] }
 0x5ba   : > { %v5531_v44 = vpop.f32.mrf.mxu0 }
 0x5bb   : > { %v5532_v10 = vadd.f32 %v5531_v44, %v17344_v1  ;;  %v5985_v5 = vpack.c.bf16 %v5889_v49, %v5887_v17  ;;  %v5763_v46 = vadd.f32 %v14421_v61, %v5530_v22  ;;  %v5890_v49 = vmax.f32 %v5762_v16, 0.0  ;;  %v11623_v16 = vld [vmem:[%s17149_s19 + $0x8] sm:$0xff]  }
 0x5bc   : > { %v5533_v41 = vpop.f32.mrf.mxu0  ;;  %7664 = vmatpush1.bf16.msra.mxu1 %v11623_v16 }
 0x5bd   : > { %v5764_v43 = vadd.f32 %v14431_v45, %v5532_v10  ;;  %v5534_v24 = vadd.f32 %v5533_v41, %v17345_v11  ;;  %6404 = vmatprep.mubr.bf16.mxu1 %v5985_v5  ;;  %v5891_v34 = vmax.f32 %v5763_v46, 0.0  ;;  %v14736_v10 = vpop.f32.mrf.mxu1  ;;  %v17349_v41 = vld [vmem:[#allocation67_spill] sm:$0xff]  ;;  %7665 = vmatprep.subr.bf16.mxu1 %v17233_v20 }
 0x5be   : > { %v5537_v7 = vpop.f32.mrf.mxu0  ;;  %6405 = vmatmul.mubr.bf16.gmra.mxu1 %v5984_v2 }
 0x5bf   : > { %v5765_v50 = vadd.f32 %v14421_v61, %v5534_v24  ;;  %v5892_v9 = vmax.f32 %v5764_v43, 0.0  ;;  %v5538_v22 = vadd.f32 %v5537_v7, %v17347_v29 }
 0x5c0   : > { %v5539_v57 = vpop.f32.mrf.mxu0 }
 0x5c1   : > { %v5893_v40 = vmax.f32 %v5765_v50, 0.0  ;;  %v5540_v17 = vadd.f32 %v5539_v57, %v17346_v55  ;;  %v5986_v54 = vpack.c.bf16 %v5892_v9, %v5890_v49  ;;  %v5766_v43 = vadd.f32 %v14431_v45, %v5538_v22  ;;  %v14746_v9 = vpop.f32.mrf.mxu1  ;;  %v17351_v49 = vld [vmem:[#allocation68_spill] sm:$0xff] }
 0x5c2   : > { %v5541_v37 = vpop.f32.mrf.mxu0 }
 0x5c3   : > { %v5542_v32 = vadd.f32 %v5541_v37, %v17348_v36  ;;  %v5987_v44 = vpack.c.bf16 %v5893_v40, %v5891_v34  ;;  %v5767_v5 = vadd.f32 %v14421_v61, %v5540_v17  ;;  %v17350_v40 = vld [vmem:[#allocation69_spill] sm:$0xff]  ;;  %v5894_v17 = vmax.f32 %v5766_v43, 0.0  ;;  %v17352_v37 = vld [vmem:[#allocation70_spill] sm:$0xff] }
 0x5c4   : > { %v5543_v1 = vpop.f32.mrf.mxu0 }
 0x5c5   : > { %v5768_v2 = vadd.f32 %v14431_v45, %v5542_v32  ;;  %v5544_v46 = vadd.f32 %v5543_v1, %v17349_v41  ;;  %6414 = vmatprep.mubr.bf16.mxu1 %v5987_v44  ;;  %v5895_v57 = vmax.f32 %v5767_v5, 0.0  ;;  %v14752_v1 = vpop.f32.mrf.mxu1  ;;  %v17353_v41 = vld [vmem:[#allocation71_spill] sm:$0xff] }
 0x5c6   : > { %v5547_v11 = vpop.f32.mrf.mxu0  ;;  %6415 = vmatmul.mubr.bf16.gmra.mxu1 %v5986_v54 }
 0x5c7   : > { %v5769_v24 = vadd.f32 %v14421_v61, %v5544_v46  ;;  %v5896_v7 = vmax.f32 %v5768_v2, 0.0  ;;  %v5548_v29 = vadd.f32 %v5547_v11, %v17351_v49 }
 0x5c8   : > { %v5549_v50 = vpop.f32.mrf.mxu0 }
 0x5c9   : > { %v5897_v34 = vmax.f32 %v5769_v24, 0.0  ;;  %v5550_v55 = vadd.f32 %v5549_v50, %v17350_v40  ;;  %v5988_v44 = vpack.c.bf16 %v5896_v7, %v5894_v17  ;;  %v5770_v43 = vadd.f32 %v14431_v45, %v5548_v29  ;;  %v17354_v17 = vld [vmem:[#allocation72_spill] sm:$0xff] }
 0x5ca   : > { %v5551_v22 = vpop.f32.mrf.mxu0 }
 0x5cb   : > { %v5552_v36 = vadd.f32 %v5551_v22, %v17352_v37  ;;  %v5989_v32 = vpack.c.bf16 %v5897_v34, %v5895_v57  ;;  %v5771_v2 = vadd.f32 %v14421_v61, %v5550_v55  ;;  %v14759_v57 = vpop.f32.mrf.mxu1  ;;  %v5898_v55 = vmax.f32 %v5770_v43, 0.0 }
 0x5cc   : > { %v5553_v54 = vpop.f32.mrf.mxu0 }
 0x5cd   : > { %v5772_v5 = vadd.f32 %v14431_v45, %v5552_v36  ;;  %v5554_v46 = vadd.f32 %v5553_v54, %v17353_v41  ;;  %6424 = vmatprep.mubr.bf16.mxu1 %v5989_v32  ;;  %v5899_v7 = vmax.f32 %v5771_v2, 0.0 }
 0x5ce   : > { %v5557_v11 = vpop.f32.mrf.mxu0  ;;  %6425 = vmatmul.mubr.bf16.gmra.mxu1 %v5988_v44  ;;  %v14764_v44 = vpop.f32.mrf.mxu1 }
 0x5cf   : > { %v5773_v24 = vadd.f32 %v14421_v61, %v5554_v46  ;;  %v5900_v16 = vmax.f32 %v5772_v5, 0.0  ;;  %v5558_v49 = vadd.f32 %v5557_v11, %v17354_v17 }
 0x5d0   : > { %v5559_v50 = vpop.f32.mrf.mxu0 }
 0x5d1   : > { %v5901_v34 = vmax.f32 %v5773_v24, 0.0  ;;  %v5560_v40 = vadd.f32 %v5559_v50, %v14436_v31  ;;  %v5990_v29 = vpack.c.bf16 %v5900_v16, %v5898_v55  ;;  %v5774_v31 = vadd.f32 %v14431_v45, %v5558_v49  ;;  %v14774_v24 = vpop.f32.mrf.mxu1 }
 0x5d2   : > { %v5561_v22 = vpop.f32.mrf.mxu0 }
 0x5d3   : > { %v5562_v37 = vadd.f32 %v5561_v22, %v14449_v35  ;;  %v5991_v36 = vpack.c.bf16 %v5901_v34, %v5899_v7  ;;  %v5775_v54 = vadd.f32 %v14421_v61, %v5560_v40  ;;  %v11624_v35 = vld [vmem:[%s17149_s19] sm:$0xff]  }
 0x5d4   : > { %v5563_v32 = vpop.f32.mrf.mxu0  ;;  %7666 = vmatpush1.bf16.msra.mxu1 %v11624_v35 }
 0x5d5   : > { %v5776_v5 = vadd.f32 %v14431_v45, %v5562_v37  ;;  %v5564_v2 = vadd.f32 %v5563_v32, %v14458_v0  ;;  %6434 = vmatprep.mubr.bf16.mxu1 %v5991_v36  ;;  %v5903_v16 = vmax.f32 %v5775_v54, 0.0  ;;  %v5902_v0 = vmax.f32 %v5774_v31, 0.0  ;;  %7667 = vmatprep.subr.bf16.mxu1 %v17233_v20  ;;  %v14780_v37 = vpop.f32.mrf.mxu1 }
 0x5d6   : > { %v5567_v41 = vpop.f32.mrf.mxu0  ;;  %6435 = vmatmul.mubr.bf16.gmra.mxu1 %v5990_v29 }
 0x5d7   : > { %v5777_v46 = vadd.f32 %v14421_v61, %v5564_v2  ;;  %v5904_v43 = vmax.f32 %v5776_v5, 0.0  ;;  %v5568_v34 = vadd.f32 %v5567_v41, %v14469_v27  ;;  %v14787_v2 = vpop.f32.mrf.mxu1 }
 0x5d8   : > { %v5569_v11 = vpop.f32.mrf.mxu0 }
 0x5d9   : > { %v5905_v50 = vmax.f32 %v5777_v46, 0.0  ;;  %v5570_v7 = vadd.f32 %v5569_v11, %v14482_v26  ;;  %v5992_v49 = vpack.c.bf16 %v5904_v43, %v5902_v0  ;;  %v5778_v32 = vadd.f32 %v14431_v45, %v5568_v34  ;;  %v14792_v0 = vpop.f32.mrf.mxu1 }
 0x5da   : > { %v5571_v40 = vpop.f32.mrf.mxu0 }
 0x5db   : > { %v5572_v55 = vadd.f32 %v5571_v40, %v14495_v4  ;;  %v5993_v17 = vpack.c.bf16 %v5905_v50, %v5903_v16  ;;  %v5779_v36 = vadd.f32 %v14421_v61, %v5570_v7  ;;  %v5906_v35 = vmax.f32 %v5778_v32, 0.0 }
 0x5dc   : > { %v5573_v22 = vpop.f32.mrf.mxu0 }
 0x5dd   : > { %v5780_v29 = vadd.f32 %v14431_v45, %v5572_v55  ;;  %v5574_v26 = vadd.f32 %v5573_v22, %v14504_v6  ;;  %6444 = vmatprep.mubr.bf16.mxu1 %v5993_v17  ;;  %v5907_v31 = vmax.f32 %v5779_v36, 0.0  ;;  %v14802_v36 = vpop.f32.mrf.mxu1 }
 0x5de   : > { %v5577_v27 = vpop.f32.mrf.mxu0  ;;  %6445 = vmatmul.mubr.bf16.gmra.mxu1 %v5992_v49 }
 0x5df   : > { %v5781_v54 = vadd.f32 %v14421_v61, %v5574_v26  ;;  %v5908_v5 = vmax.f32 %v5780_v29, 0.0  ;;  %v5578_v43 = vadd.f32 %v5577_v27, %v14515_v51 }
 0x5e0   : > { %v5579_v4 = vpop.f32.mrf.mxu0 }
 0x5e1   : > { %v5909_v41 = vmax.f32 %v5781_v54, 0.0  ;;  %v5580_v46 = vadd.f32 %v5579_v4, %v14528_v58  ;;  %v5994_v50 = vpack.c.bf16 %v5908_v5, %v5906_v35  ;;  %v5782_v58 = vadd.f32 %v14431_v45, %v5578_v43 }
 0x5e2   : > { %v5581_v11 = vpop.f32.mrf.mxu0 }
 0x5e3   : > { %v5582_v6 = vadd.f32 %v5581_v11, %v14541_v33  ;;  %v5995_v16 = vpack.c.bf16 %v5909_v41, %v5907_v31  ;;  %v5783_v34 = vadd.f32 %v14421_v61, %v5580_v46  ;;  %v11625_v33 = vld [vmem:[%s17149_s19 + $0x78] sm:$0xff]   ;;  %v14808_v46 = vpop.f32.mrf.mxu1 }
 0x5e4   : > { %v5583_v7 = vpop.f32.mrf.mxu0  ;;  %7668 = vmatpush2.bf16.msra.mxu1 %v11625_v33 }
 0x5e5   : > { %v5784_v40 = vadd.f32 %v14431_v45, %v5582_v6  ;;  %v5584_v55 = vadd.f32 %v5583_v7, %v14549_v23  ;;  %6454 = vmatprep.mubr.bf16.mxu1 %v5995_v16  ;;  %v5911_v29 = vmax.f32 %v5783_v34, 0.0  ;;  %v5910_v23 = vmax.f32 %v5782_v58, 0.0  ;;  %7669 = vmatprep.subr.bf16.mxu1 %v17233_v20 }
 0x5e6   : > { %v5587_v17 = vpop.f32.mrf.mxu0  ;;  %6455 = vmatmul.mubr.bf16.gmra.mxu1 %v5994_v50  ;;  %v14815_v50 = vpop.f32.mrf.mxu1 }
 0x5e7   : > { %v5785_v51 = vadd.f32 %v14421_v61, %v5584_v55  ;;  %v5912_v49 = vmax.f32 %v5784_v40, 0.0  ;;  %v5588_v27 = vadd.f32 %v5587_v17, %v14557_v63 }
 0x5e8   : > { %v5589_v22 = vpop.f32.mrf.mxu0 }
 0x5e9   : > { %v5913_v26 = vmax.f32 %v5785_v51, 0.0  ;;  %v5590_v32 = vadd.f32 %v5589_v22, %v14571_v25  ;;  %v5996_v31 = vpack.c.bf16 %v5912_v49, %v5910_v23  ;;  %v5786_v11 = vadd.f32 %v14431_v45, %v5588_v27  ;;  %v14820_v22 = vpop.f32.mrf.mxu1 }
 0x5ea   : > { %v5591_v54 = vpop.f32.mrf.mxu0 }
 0x5eb   : > { %v5592_v5 = vadd.f32 %v5591_v54, %v14579_v38  ;;  %v5997_v4 = vpack.c.bf16 %v5913_v26, %v5911_v29  ;;  %v5787_v35 = vadd.f32 %v14421_v61, %v5590_v32  ;;  %v5914_v55 = vmax.f32 %v5786_v11, 0.0  ;;  %v14830_v54 = vpop.f32.mrf.mxu1 }
 0x5ec   : > { %v5593_v41 = vpop.f32.mrf.mxu0 }
 0x5ed   : > { %v5788_v43 = vadd.f32 %v14431_v45, %v5592_v5  ;;  %v5594_v25 = vadd.f32 %v5593_v41, %v14585_v14  ;;  %6464 = vmatprep.mubr.bf16.mxu1 %v5997_v4  ;;  %v5915_v7 = vmax.f32 %v5787_v35, 0.0 }
 0x5ee   : > { %v5597_v63 = vpop.f32.mrf.mxu0  ;;  %6465 = vmatmul.mubr.bf16.gmra.mxu1 %v5996_v31 }
 0x5ef   : > { %v5789_v6 = vadd.f32 %v14421_v61, %v5594_v25  ;;  %v5916_v16 = vmax.f32 %v5788_v43, 0.0  ;;  %v5598_v58 = vadd.f32 %v5597_v63, %v14591_v47 }
 0x5f0   : > { %v5599_v38 = vpop.f32.mrf.mxu0 }
 0x5f1   : > { %v5917_v34 = vmax.f32 %v5789_v6, 0.0  ;;  %v5600_v40 = vadd.f32 %v5599_v38, %v14605_v52  ;;  %v5998_v33 = vpack.c.bf16 %v5916_v16, %v5914_v55  ;;  %v5790_v52 = vadd.f32 %v14431_v45, %v5598_v58  ;;  %v14836_v6 = vpop.f32.mrf.mxu1 }
 0x5f2   : > { %v5601_v17 = vpop.f32.mrf.mxu0 }
 0x5f3   : > { %v5602_v14 = vadd.f32 %v5601_v17, %v14613_v56  ;;  %v5999_v51 = vpack.c.bf16 %v5917_v34, %v5915_v7  ;;  %v5791_v29 = vadd.f32 %v14421_v61, %v5600_v40  ;;  %v11626_v56 = vld [vmem:[%s17149_s19 + $0x70] sm:$0xff]  }
 0x5f4   : > { %v5603_v49 = vpop.f32.mrf.mxu0  ;;  %7670 = vmatpush2.bf16.msra.mxu1 %v11626_v56 }
 0x5f5   : > { %v5792_v26 = vadd.f32 %v14431_v45, %v5602_v14  ;;  %v5604_v32 = vadd.f32 %v5603_v49, %v14619_v39  ;;  %6474 = vmatprep.mubr.bf16.mxu1 %v5999_v51  ;;  %v5919_v4 = vmax.f32 %v5791_v29, 0.0  ;;  %v5918_v39 = vmax.f32 %v5790_v52, 0.0  ;;  %7671 = vmatprep.subr.bf16.mxu1 %v17233_v20 }
 0x5f6   : > { %v5607_v23 = vpop.f32.mrf.mxu0  ;;  %6475 = vmatmul.mubr.bf16.gmra.mxu1 %v5998_v33 }
 0x5f7   : > { %v5793_v47 = vadd.f32 %v14421_v61, %v5604_v32  ;;  %v5920_v27 = vmax.f32 %v5792_v26, 0.0  ;;  %v5608_v35 = vadd.f32 %v5607_v23, %v14625_v30 }
 0x5f8   : > { %v5609_v5 = vpop.f32.mrf.mxu0 }
 0x5f9   : > { %v5921_v31 = vmax.f32 %v5793_v47, 0.0  ;;  %v5610_v41 = vadd.f32 %v5609_v5, %v14639_v28  ;;  %v6000_v63 = vpack.c.bf16 %v5920_v27, %v5918_v39  ;;  %v5794_v34 = vadd.f32 %v14431_v45, %v5608_v35  ;;  %v17355_v35 = vld [vmem:[#allocation13_spill] sm:$0xff] }
 0x5fa   : > { %v5611_v43 = vpop.f32.mrf.mxu0 }
 0x5fb   : > { %v5612_v25 = vadd.f32 %v5611_v43, %v14647_v13  ;;  %v6001_v11 = vpack.c.bf16 %v5921_v31, %v5919_v4  ;;  %v5795_v38 = vadd.f32 %v14421_v61, %v5610_v41  ;;  %v14843_v13 = vpop.f32.mrf.mxu1  ;;  %v5922_v33 = vmax.f32 %v5794_v34, 0.0  ;;  %v11627_v31 = vld [vmem:[%s17149_s19 + $0x68] sm:$0xff]  }
 0x5fc   : > { %v5613_v16 = vpop.f32.mrf.mxu0  ;;  %7672 = vmatpush2.bf16.msra.mxu1 %v11627_v31 }
 0x5fd   : > { %v5796_v7 = vadd.f32 %v14431_v45, %v5612_v25  ;;  %v5614_v28 = vadd.f32 %v5613_v16, %v14652_v3  ;;  %6484 = vmatprep.mubr.bf16.mxu1 %v6001_v11  ;;  %v5923_v17 = vmax.f32 %v5795_v38, 0.0  ;;  %v14848_v52 = vpop.f32.mrf.mxu1  ;;  %7673 = vmatprep.subr.bf16.mxu1 %v17233_v20 }
 0x5fe   : > { %v5617_v30 = vpop.f32.mrf.mxu0  ;;  %6485 = vmatmul.mubr.bf16.gmra.mxu1 %v6000_v63 }
 0x5ff   : > { %v5797_v40 = vadd.f32 %v14421_v61, %v5614_v28  ;;  %v5924_v55 = vmax.f32 %v5796_v7, 0.0  ;;  %v5618_v49 = vadd.f32 %v5617_v30, %v14659_v60  ;;  %v6050_v60 = vld [vmem:[%s17146_s16] sm:$0x3] }
 0x600   : > { %v5619_v58 = vpop.f32.mrf.mxu0  ;;  %v14865_v63 = vrot.slane %v6050_v60, %v12596_v42 }
 0x601   : > { %v5925_v14 = vmax.f32 %v5797_v40, 0.0  ;;  %v5620_v51 = vadd.f32 %v5619_v58, %v14667_v62  ;;  %v6002_v32 = vpack.c.bf16 %v5924_v55, %v5922_v33  ;;  %v5798_v62 = vadd.f32 %v14431_v45, %v5618_v49 }
 0x602   : > { %v5621_v29 = vpop.f32.mrf.mxu0 }
 0x603   : > { %v5622_v3 = vadd.f32 %v5621_v29, %v14675_v53  ;;  %v6003_v26 = vpack.c.bf16 %v5925_v14, %v5923_v17  ;;  %v5799_v47 = vadd.f32 %v14421_v61, %v5620_v51  ;;  %v5926_v16 = vmax.f32 %v5798_v62, 0.0 }
 0x604   : > { %v5623_v23 = vpop.f32.mrf.mxu0 }
 0x605   : > { %v5800_v56 = vadd.f32 %v14431_v45, %v5622_v3  ;;  %v5624_v27 = vadd.f32 %v5623_v23, %v14680_v18  ;;  %6494 = vmatprep.mubr.bf16.mxu1 %v6003_v26  ;;  %v14862_v18 = vrot.slane %v6050_v60, %v17355_v35  ;;  %v5927_v25 = vmax.f32 %v5799_v47, 0.0 }
 0x606   : > { %v5627_v5 = vpop.f32.mrf.mxu0  ;;  %v6256_v53 = vpop.f32.mrf.mxu1  ;;  %6495 = vmatmul.mubr.bf16.gmra.mxu1 %v6002_v32 }
 0x607   : > { %v5801_v4 = vadd.f32 %v14421_v61, %v5624_v27  ;;  %v5928_v41 = vmax.f32 %v5800_v56, 0.0  ;;  %v5628_v34 = vadd.f32 %v5627_v5, %v14687_v21  ;;  %v6257_v33 = vadd.f32 %v6256_v53, %v14865_v63 }
 0x608   : > { %v5629_v39 = vpop.f32.mrf.mxu0  ;;  %v6258_v43 = vpop.f32.mrf.mxu1 }
 0x609   : > { %v5929_v11 = vmax.f32 %v5801_v4, 0.0  ;;  %v5630_v38 = vadd.f32 %v5629_v39, %v14695_v19  ;;  %v6004_v58 = vpack.c.bf16 %v5928_v41, %v5926_v16  ;;  %v6259_v17 = vadd.f32 %v6258_v43, %v14862_v18 }
 0x60a   : > { %v5631_v7 = vpop.f32.mrf.mxu0  ;;  %v6260_v28 = vpop.f32.mrf.mxu1  ;;  %v5802_v26 = vadd.f32 %v14431_v45, %v5628_v34  ;;  %v6575_v5 = vmax.f32 %v6257_v33, 0.0 }
 0x60b   : > { %v5632_v30 = vadd.f32 %v5631_v7, %v14703_v15  ;;  %v6261_v40 = vadd.f32 %v6260_v28, %v14865_v63  ;;  %v6005_v55 = vpack.c.bf16 %v5929_v11, %v5927_v25  ;;  %v5803_v21 = vadd.f32 %v14421_v61, %v5630_v38 }
 0x60c   : > { %v5633_v14 = vpop.f32.mrf.mxu0  ;;  %v6262_v51 = vpop.f32.mrf.mxu1  ;;  %v6576_v56 = vmax.f32 %v6259_v17, 0.0  ;;  %v5930_v25 = vmax.f32 %v5802_v26, 0.0 }
 0x60d   : > { %v5804_v19 = vadd.f32 %v14431_v45, %v5632_v30  ;;  %v5634_v49 = vadd.f32 %v5633_v14, %v14708_v59  ;;  %v6263_v29 = vadd.f32 %v6262_v51, %v14862_v18  ;;  %6504 = vmatprep.mubr.bf16.mxu1 %v6005_v55  ;;  %v6577_v32 = vmax.f32 %v6261_v40, 0.0 }
 0x60e   : > { %v5637_v15 = vpop.f32.mrf.mxu0  ;;  %v6266_v3 = vpop.f32.mrf.mxu1  ;;  %6505 = vmatmul.mubr.bf16.gmra.mxu1 %v6004_v58  ;;  %v5931_v53 = vmax.f32 %v5803_v21, 0.0 }
 0x60f   : > { %v5805_v23 = vadd.f32 %v14421_v61, %v5634_v49  ;;  %v6578_v47 = vmax.f32 %v6263_v29, 0.0  ;;  %v5932_v60 = vmax.f32 %v5804_v19, 0.0  ;;  %v5638_v4 = vadd.f32 %v5637_v15, %v14715_v48  ;;  %v11628_v49 = vld [vmem:[%s17149_s19 + $0x60] sm:$0xff]   ;;  %v11631_v29 = vld [vmem:[%s17151_s21 + $0x74] ss:$8 sps:$4 sm:$0xff]  }
 0x610   : > { %v5639_v27 = vpop.f32.mrf.mxu0  ;;  %v6268_v62 = vpop.f32.mrf.mxu1  ;;  %v6703_v11 = vpack.c.bf16 %v6577_v32, %v6575_v5  ;;  %v6267_v48 = vadd.f32 %v6266_v3, %v14865_v63  ;;  %7674 = vmatpush2.bf16.msra.mxu1 %v11628_v49  ;;  %8144 = vmatprep.subr.bf16.mxu0 %v11631_v29 }
 0x611   : > { %v5933_v59 = vmax.f32 %v5805_v23, 0.0  ;;  %v5640_v31 = vadd.f32 %v5639_v27, %v14723_v12  ;;  %v6704_v43 = vpack.c.bf16 %v6578_v47, %v6576_v56  ;;  %v6269_v7 = vadd.f32 %v6268_v62, %v14862_v18  ;;  %7675 = vmatprep.subr.bf16.mxu1 %v17233_v20 }
 0x612   : > { %v5641_v41 = vpop.f32.mrf.mxu0  ;;  %v6270_v39 = vpop.f32.mrf.mxu1  ;;  %v6006_v40 = vpack.c.bf16 %v5932_v60, %v5930_v25  ;;  %v5806_v58 = vadd.f32 %v14431_v45, %v5638_v4  ;;  %v6579_v32 = vmax.f32 %v6267_v48, 0.0 }
 0x613   : > { %v5642_v16 = vadd.f32 %v5641_v41, %v14731_v8  ;;  %v6271_v38 = vadd.f32 %v6270_v39, %v14865_v63  ;;  %7003 = vmatprep.mubr.bf16.mxu0 %v6704_v43  ;;  %v6007_v30 = vpack.c.bf16 %v5933_v59, %v5931_v53  ;;  %v5807_v8 = vadd.f32 %v14421_v61, %v5640_v31 }
 0x614   : > { %v5643_v28 = vpop.f32.mrf.mxu0  ;;  %v6272_v34 = vpop.f32.mrf.mxu1  ;;  %7004 = vmatmul.mubr.bf16.vlgmr.msra.gmra.mxu0 %v6703_v11  ;;  %v6580_v21 = vmax.f32 %v6269_v7, 0.0  ;;  %v5934_v56 = vmax.f32 %v5806_v58, 0.0 }
 0x615   : > { %v5808_v12 = vadd.f32 %v14431_v45, %v5642_v16  ;;  %v5644_v55 = vadd.f32 %v5643_v28, %v14736_v10  ;;  %v6273_v17 = vadd.f32 %v6272_v34, %v14862_v18  ;;  %6514 = vmatprep.mubr.bf16.mxu1 %v6007_v30  ;;  %v6581_v33 = vmax.f32 %v6271_v38, 0.0  ;;  %v11629_v10 = vld [vmem:[%s17151_s21 + $0x70] ss:$8 sps:$4 sm:$0xff]  }
 0x616   : > { %v5647_v14 = vpop.f32.mrf.mxu0  ;;  %v6276_v51 = vpop.f32.mrf.mxu1  ;;  %6515 = vmatmul.mubr.bf16.gmra.mxu1 %v6006_v40  ;;  %v5935_v27 = vmax.f32 %v5807_v8, 0.0  ;;  %8145 = vmatpush1.bf16.msra.mxu0 %v11629_v10 }
 0x617   : > { %v5809_v19 = vadd.f32 %v14421_v61, %v5644_v55  ;;  %v6582_v15 = vmax.f32 %v6273_v17, 0.0  ;;  %v5936_v23 = vmax.f32 %v5808_v12, 0.0  ;;  %v6705_v53 = vpack.c.bf16 %v6581_v33, %v6579_v32 }
 0x618   : > { %v5649_v3 = vpop.f32.mrf.mxu0  ;;  %v6278_v26 = vpop.f32.mrf.mxu1  ;;  %v5648_v4 = vadd.f32 %v5647_v14, %v14746_v9  ;;  %v6277_v16 = vadd.f32 %v6276_v51, %v14865_v63 }
 0x619   : > { %v5937_v47 = vmax.f32 %v5809_v19, 0.0  ;;  %v5650_v62 = vadd.f32 %v5649_v3, %v14752_v1  ;;  %v6706_v59 = vpack.c.bf16 %v6582_v15, %v6580_v21  ;;  %v6279_v39 = vadd.f32 %v6278_v26, %v14862_v18 }
 0x61a   : > { %v5651_v5 = vpop.f32.mrf.mxu0  ;;  %v6280_v60 = vpop.f32.mrf.mxu1  ;;  %v6008_v1 = vpack.c.bf16 %v5936_v23, %v5934_v56  ;;  %v5810_v30 = vadd.f32 %v14431_v45, %v5648_v4  ;;  %v6583_v17 = vmax.f32 %v6277_v16, 0.0 }
 0x61b   : > { %v5652_v31 = vadd.f32 %v5651_v5, %v14759_v57  ;;  %v6281_v41 = vadd.f32 %v6280_v60, %v14865_v63  ;;  %7013 = vmatprep.mubr.bf16.mxu0 %v6706_v59  ;;  %v6009_v11 = vpack.c.bf16 %v5937_v47, %v5935_v27  ;;  %v5811_v9 = vadd.f32 %v14421_v61, %v5650_v62 }
 0x61c   : > { %v5653_v43 = vpop.f32.mrf.mxu0  ;;  %v6282_v25 = vpop.f32.mrf.mxu1  ;;  %7014 = vmatmul.mubr.bf16.gmra.mxu0 %v6705_v53  ;;  %v6584_v12 = vmax.f32 %v6279_v39, 0.0  ;;  %v5938_v21 = vmax.f32 %v5810_v30, 0.0  ;;  %v11635_v39 = vld [vmem:[%s17151_s21 + $0x64] ss:$8 sps:$4 sm:$0xff]  }
 0x61d   : > { %v5812_v38 = vadd.f32 %v14431_v45, %v5652_v31  ;;  %v5654_v7 = vadd.f32 %v5653_v43, %v14764_v44  ;;  %v6283_v57 = vadd.f32 %v6282_v25, %v14862_v18  ;;  %6524 = vmatprep.mubr.bf16.mxu1 %v6009_v11  ;;  %v6585_v40 = vmax.f32 %v6281_v41, 0.0  ;;  %v11632_v41 = vld [vmem:[%s17149_s19 + $0x58] sm:$0xff]   ;;  %8146 = vmatprep.subr.bf16.mxu0 %v11635_v39 }
 0x61e   : > { %v5657_v28 = vpop.f32.mrf.mxu0  ;;  %v6286_v34 = vpop.f32.mrf.mxu1  ;;  %6525 = vmatmul.mubr.bf16.gmra.mxu1 %v6008_v1  ;;  %v5939_v51 = vmax.f32 %v5811_v9, 0.0 }
 0x61f   : > { %v5813_v48 = vadd.f32 %v14421_v61, %v5654_v7  ;;  %v6586_v55 = vmax.f32 %v6283_v57, 0.0  ;;  %v5940_v44 = vmax.f32 %v5812_v38, 0.0  ;;  %v5658_v33 = vadd.f32 %v5657_v28, %v14774_v24  ;;  %7676 = vmatpush2.bf16.msra.mxu1 %v11632_v41 }
 0x620   : > { %v5659_v58 = vpop.f32.mrf.mxu0  ;;  %v6288_v8 = vpop.f32.mrf.mxu1  ;;  %v6707_v15 = vpack.c.bf16 %v6585_v40, %v6583_v17  ;;  %v6287_v24 = vadd.f32 %v6286_v34, %v14865_v63  ;;  %7677 = vmatprep.subr.bf16.mxu1 %v17233_v20 }
 0x621   : > { %v5941_v14 = vmax.f32 %v5813_v48, 0.0  ;;  %v5660_v19 = vadd.f32 %v5659_v58, %v14780_v37  ;;  %v6708_v29 = vpack.c.bf16 %v6586_v55, %v6584_v12  ;;  %v6289_v32 = vadd.f32 %v6288_v8, %v14862_v18 }
 0x622   : > { %v5661_v49 = vpop.f32.mrf.mxu0  ;;  %v6290_v10 = vpop.f32.mrf.mxu1  ;;  %v6010_v27 = vpack.c.bf16 %v5940_v44, %v5938_v21  ;;  %v5814_v5 = vadd.f32 %v14431_v45, %v5658_v33  ;;  %v6587_v16 = vmax.f32 %v6287_v24, 0.0 }
 0x623   : > { %v5662_v3 = vadd.f32 %v5661_v49, %v14787_v2  ;;  %v6291_v26 = vadd.f32 %v6290_v10, %v14865_v63  ;;  %7023 = vmatprep.mubr.bf16.mxu0 %v6708_v29  ;;  %v6011_v56 = vpack.c.bf16 %v5941_v14, %v5939_v51  ;;  %v5815_v2 = vadd.f32 %v14421_v61, %v5660_v19 }
 0x624   : > { %v5663_v23 = vpop.f32.mrf.mxu0  ;;  %v6292_v47 = vpop.f32.mrf.mxu1  ;;  %7024 = vmatmul.mubr.bf16.gmra.mxu0 %v6707_v15  ;;  %v6588_v43 = vmax.f32 %v6289_v32, 0.0  ;;  %v5942_v9 = vmax.f32 %v5814_v5, 0.0 }
 0x625   : > { %v5816_v37 = vadd.f32 %v14431_v45, %v5662_v3  ;;  %v5664_v62 = vadd.f32 %v5663_v23, %v14792_v0  ;;  %v6293_v60 = vadd.f32 %v6292_v47, %v14862_v18  ;;  %6534 = vmatprep.mubr.bf16.mxu1 %v6011_v56  ;;  %v6589_v4 = vmax.f32 %v6291_v26, 0.0  ;;  %v11633_v0 = vld [vmem:[%s17151_s21 + $0x60] ss:$8 sps:$4 sm:$0xff]  }
 0x626   : > { %v5667_v59 = vpop.f32.mrf.mxu0  ;;  %v6296_v53 = vpop.f32.mrf.mxu1  ;;  %6535 = vmatmul.mubr.bf16.gmra.mxu1 %v6010_v27  ;;  %v5943_v57 = vmax.f32 %v5815_v2, 0.0  ;;  %8147 = vmatpush1.bf16.msra.mxu0 %v11633_v0 }
 0x627   : > { %v5817_v31 = vadd.f32 %v14421_v61, %v5664_v62  ;;  %v6590_v25 = vmax.f32 %v6293_v60, 0.0  ;;  %v5944_v38 = vmax.f32 %v5816_v37, 0.0  ;;  %v6709_v48 = vpack.c.bf16 %v6589_v4, %v6587_v16 }
 0x628   : > { %v5669_v11 = vpop.f32.mrf.mxu0  ;;  %v6298_v1 = vpop.f32.mrf.mxu1  ;;  %v5668_v12 = vadd.f32 %v5667_v59, %v14802_v36  ;;  %v6297_v51 = vadd.f32 %v6296_v53, %v14865_v63 }
 0x629   : > { %v5945_v7 = vmax.f32 %v5817_v31, 0.0  ;;  %v5670_v28 = vadd.f32 %v5669_v11, %v14808_v46  ;;  %v6710_v40 = vpack.c.bf16 %v6590_v25, %v6588_v43  ;;  %v6299_v8 = vadd.f32 %v6298_v1, %v14862_v18 }
 0x62a   : > { %v5671_v34 = vpop.f32.mrf.mxu0  ;;  %v6300_v30 = vpop.f32.mrf.mxu1  ;;  %v6012_v46 = vpack.c.bf16 %v5944_v38, %v5942_v9  ;;  %v5818_v29 = vadd.f32 %v14431_v45, %v5668_v12  ;;  %v6591_v47 = vmax.f32 %v6297_v51, 0.0  ;;  %v11636_v9 = vld [vmem:[%s17149_s19 + $0x50] sm:$0xff]  }
 0x62b   : > { %v5672_v55 = vadd.f32 %v5671_v34, %v14815_v50  ;;  %v6301_v58 = vadd.f32 %v6300_v30, %v14865_v63  ;;  %7033 = vmatprep.mubr.bf16.mxu0 %v6710_v40  ;;  %v6013_v14 = vpack.c.bf16 %v5945_v7, %v5943_v57  ;;  %v5819_v36 = vadd.f32 %v14421_v61, %v5670_v28  ;;  %v11637_v57 = vld [vmem:[%s17151_s21 + $0x50] ss:$8 sps:$4 sm:$0xff]  }
 0x62c   : > { %v5673_v17 = vpop.f32.mrf.mxu0  ;;  %v6302_v44 = vpop.f32.mrf.mxu1  ;;  %7034 = vmatmul.mubr.bf16.gmra.mxu0 %v6709_v48  ;;  %v6592_v3 = vmax.f32 %v6299_v8, 0.0  ;;  %v5946_v60 = vmax.f32 %v5818_v29, 0.0  ;;  %7678 = vmatpush2.bf16.msra.mxu1 %v11636_v9 }
 0x62d   : > { %v5820_v33 = vadd.f32 %v14431_v45, %v5672_v55  ;;  %v5674_v19 = vadd.f32 %v5673_v17, %v14820_v22  ;;  %v6303_v50 = vadd.f32 %v6302_v44, %v14862_v18  ;;  %6544 = vmatprep.mubr.bf16.mxu1 %v6013_v14  ;;  %v6593_v21 = vmax.f32 %v6301_v58, 0.0  ;;  %7679 = vmatprep.subr.bf16.mxu1 %v17233_v20 }
 0x62e   : > { %v5677_v49 = vpop.f32.mrf.mxu0  ;;  %v6306_v10 = vpop.f32.mrf.mxu1  ;;  %6545 = vmatmul.mubr.bf16.gmra.mxu1 %v6012_v46  ;;  %v5947_v24 = vmax.f32 %v5819_v36, 0.0 }
 0x62f   : > { %v5821_v15 = vadd.f32 %v14421_v61, %v5674_v19  ;;  %v6594_v26 = vmax.f32 %v6303_v50, 0.0  ;;  %v5948_v22 = vmax.f32 %v5820_v33, 0.0  ;;  %v5678_v37 = vadd.f32 %v5677_v49, %v14830_v54 }
 0x630   : > { %v5679_v32 = vpop.f32.mrf.mxu0  ;;  %v6308_v23 = vpop.f32.mrf.mxu1  ;;  %v6711_v59 = vpack.c.bf16 %v6593_v21, %v6591_v47  ;;  %v6307_v31 = vadd.f32 %v6306_v10, %v14865_v63 }
 0x631   : > { %v5949_v56 = vmax.f32 %v5821_v15, 0.0  ;;  %v5680_v27 = vadd.f32 %v5679_v32, %v14836_v6  ;;  %v6712_v2 = vpack.c.bf16 %v6594_v26, %v6592_v3  ;;  %v6309_v41 = vadd.f32 %v6308_v23, %v14862_v18 }
 0x632   : > { %v5681_v62 = vpop.f32.mrf.mxu0  ;;  %v6310_v5 = vpop.f32.mrf.mxu1  ;;  %v6014_v43 = vpack.c.bf16 %v5948_v22, %v5946_v60  ;;  %v6595_v30 = vmax.f32 %v6307_v31, 0.0  ;;  %v11643_v60 = vld [vmem:[%s17151_s21 + $0x44] ss:$8 sps:$4 sm:$0xff]  }
 0x633   : > { %v5682_v53 = vadd.f32 %v5681_v62, %v14843_v13  ;;  %v6311_v4 = vadd.f32 %v6310_v5, %v14865_v63  ;;  %7043 = vmatprep.mubr.bf16.mxu0 %v6712_v2  ;;  %v6015_v6 = vpack.c.bf16 %v5949_v56, %v5947_v24  ;;  %v5823_v54 = vadd.f32 %v14421_v61, %v5680_v27  ;;  %v11640_v5 = vld [vmem:[%s17149_s19 + $0x48] sm:$0xff]  }
 0x634   : > { %v5683_v0 = vpop.f32.mrf.mxu0  ;;  %v6312_v39 = vpop.f32.mrf.mxu1  ;;  %7044 = vmatmul.mubr.bf16.gmra.mxu0 %v6711_v59  ;;  %v5822_v13 = vadd.f32 %v14431_v45, %v5678_v37  ;;  %v11641_v2 = vld [vmem:[%s17151_s21 + $0x40] ss:$8 sps:$4 sm:$0xff]   ;;  %7680 = vmatpush2.bf16.msra.mxu1 %v11640_v5 }
 0x635   : > { %v5824_v25 = vadd.f32 %v14431_v45, %v5682_v53  ;;  %v5684_v11 = vadd.f32 %v5683_v0, %v14848_v52  ;;  %v6313_v1 = vadd.f32 %v6312_v39, %v14862_v18  ;;  %6554 = vmatprep.mubr.bf16.mxu1 %v6015_v6  ;;  %v6597_v38 = vmax.f32 %v6311_v4, 0.0  ;;  %v11639_v45 = vld [vmem:[%s17151_s21 + $0x54] ss:$8 sps:$4 sm:$0xff]   ;;  %7681 = vmatprep.subr.bf16.mxu1 %v17233_v20  ;;  %v11648_v5 = vld [vmem:[%s17154_s24 + $0x8] ss:$0 sps:$4 sm:$0x77]  }
 0x636   : > { %v6316_v16 = vpop.f32.mrf.mxu1  ;;  %6555 = vmatmul.mubr.bf16.gmra.mxu1 %v6014_v43  ;;  %v6596_v52 = vmax.f32 %v6309_v41, 0.0  ;;  %v5951_v40 = vmax.f32 %v5823_v54, 0.0  ;;  %8148 = vmatprep.subr.bf16.mxu0 %v11639_v45  ;;  %v5950_v12 = vmax.f32 %v5822_v13, 0.0 }
 0x637   : > { %v5825_v7 = vadd.f32 %v14421_v61, %v5684_v11  ;;  %v6598_v28 = vmax.f32 %v6313_v1, 0.0  ;;  %v5952_v48 = vmax.f32 %v5824_v25, 0.0  ;;  %8149 = vmatpush1.bf16.msra.mxu0 %v11637_v57  ;;  %v6713_v8 = vpack.c.bf16 %v6597_v38, %v6595_v30 }
 0x638   : > { %v6318_v34 = vpop.f32.mrf.mxu1  ;;  %v6317_v33 = vadd.f32 %v6316_v16, %v14865_v63  ;;  %8150 = vmatprep.subr.bf16.mxu0 %v11643_v60 }
 0x639   : > { %v5953_v61 = vmax.f32 %v5825_v7, 0.0  ;;  %v6714_v58 = vpack.c.bf16 %v6598_v28, %v6596_v52  ;;  %v6319_v17 = vadd.f32 %v6318_v34, %v14862_v18  ;;  %v6016_v51 = vpack.c.bf16 %v5952_v48, %v5950_v12 }
 0x63a   : > { %v6320_v55 = vpop.f32.mrf.mxu1  ;;  %v6599_v21 = vmax.f32 %v6317_v33, 0.0 }
 0x63b   : > { %v6321_v44 = vadd.f32 %v6320_v55, %v14865_v63  ;;  %v6017_v14 = vpack.c.bf16 %v5953_v61, %v5951_v40  ;;  %7053 = vmatprep.mubr.bf16.mxu0 %v6714_v58  ;;  %v6600_v50 = vmax.f32 %v6319_v17, 0.0  ;;  %8151 = vmatpush1.bf16.msra.mxu0 %v11641_v2  ;;  %v11644_v55 = vld [vmem:[%s17149_s19 + $0x40] sm:$0xff]   ;;  %v11647_v17 = vld [vmem:[%s17151_s21 + $0x34] ss:$8 sps:$4 sm:$0xff]  }
 0x63c   : > { %v6322_v46 = vpop.f32.mrf.mxu1  ;;  %7054 = vmatmul.mubr.bf16.gmra.mxu0 %v6713_v8  ;;  %v11645_v8 = vld [vmem:[%s17151_s21 + $0x30] ss:$8 sps:$4 sm:$0xff]   ;;  %7682 = vmatpush2.bf16.msra.mxu1 %v11644_v55 }
 0x63d   : > { %v6323_v19 = vadd.f32 %v6322_v46, %v14862_v18  ;;  %6564 = vmatprep.mubr.bf16.mxu1 %v6017_v14  ;;  %v6601_v49 = vmax.f32 %v6321_v44, 0.0  ;;  %8152 = vmatprep.subr.bf16.mxu0 %v11647_v17 }
 0x63e   : > { %v6326_v36 = vpop.f32.mrf.mxu1  ;;  %6565 = vmatmul.mubr.bf16.gmra.mxu1 %v6016_v51 }
 0x63f   : > { %v6602_v10 = vmax.f32 %v6323_v19, 0.0  ;;  %v6715_v32 = vpack.c.bf16 %v6601_v49, %v6599_v21  ;;  %v6327_v22 = vadd.f32 %v6326_v36, %v14865_v63  ;;  %8153 = vmatpush1.bf16.msra.mxu0 %v11645_v8 }
 0x640   : > { %v6328_v29 = vpop.f32.mrf.mxu1 }
 0x641   : > { %v6716_v15 = vpack.c.bf16 %v6602_v10, %v6600_v50  ;;  %v6329_v3 = vadd.f32 %v6328_v29, %v14862_v18  ;;  %v6603_v53 = vmax.f32 %v6327_v22, 0.0 }
 0x642   : > { %v6330_v26 = vpop.f32.mrf.mxu1 }
 0x643   : > { %v6331_v23 = vadd.f32 %v6330_v26, %v14865_v63  ;;  %7063 = vmatprep.mubr.bf16.mxu0 %v6716_v15  ;;  %v6604_v27 = vmax.f32 %v6329_v3, 0.0 }
 0x644   : > { %v6332_v47 = vpop.f32.mrf.mxu1  ;;  %7064 = vmatmul.mubr.bf16.gmra.mxu0 %v6715_v32 }
 0x645   : > { %v6333_v56 = vadd.f32 %v6332_v47, %v14862_v18  ;;  %v6605_v24 = vmax.f32 %v6331_v23, 0.0 }
 0x646   : > { %v6336_v37 = vpop.f32.mrf.mxu1 }
 0x647   : > { %v6606_v62 = vmax.f32 %v6333_v56, 0.0  ;;  %v6717_v41 = vpack.c.bf16 %v6605_v24, %v6603_v53  ;;  %v6337_v43 = vadd.f32 %v6336_v37, %v14865_v63  ;;  %v17356_v53 = vmov 65535  }
 0x648   : > { %v6338_v59 = vpop.f32.mrf.mxu1 }
 0x649   : > { %v6718_v4 = vpack.c.bf16 %v6606_v62, %v6604_v27  ;;  %v6339_v0 = vadd.f32 %v6338_v59, %v14862_v18  ;;  %v6607_v38 = vmax.f32 %v6337_v43, 0.0 }
 0x64a   : > { %v6340_v31 = vpop.f32.mrf.mxu1 }
 0x64b   : > { %v6341_v39 = vadd.f32 %v6340_v31, %v14865_v63  ;;  %7073 = vmatprep.mubr.bf16.mxu0 %v6718_v4  ;;  %v6608_v11 = vmax.f32 %v6339_v0, 0.0  ;;  %v8703_v4 = vsel %vm8702_vm3, 4294967295, %v17356_v53  ;;  %v11651_v0 = vld [vmem:[%s17151_s21 + $0x24] ss:$8 sps:$4 sm:$0xff]  }
 0x64c   : > { %v6342_v6 = vpop.f32.mrf.mxu1  ;;  %7074 = vmatmul.mubr.bf16.gmra.mxu0 %v6717_v41  ;;  %v8704_v41 = vsel %vm1201_vm0, %v8703_v4, 0  ;;  %8154 = vmatprep.subr.bf16.mxu0 %v11651_v0  ;;  %v11669_v53 = vld [vmem:[%s17151_s21 + $0xc4] ss:$8 sps:$4 sm:$0xff]  }
 0x64d   : > { %v6343_v54 = vadd.f32 %v6342_v6, %v14862_v18  ;;  %v6609_v13 = vmax.f32 %v6341_v39, 0.0  ;;  %v15021_v43 = vand.u32 %v11648_v5, %v8704_v41  ;;  %v11667_v41 = vld [vmem:[%s17151_s21 + $0xc0] ss:$8 sps:$4 sm:$0xff]  }
 0x64e   : > { %v6346_v25 = vpop.f32.mrf.mxu1 }
 0x64f   : > { %v6610_v1 = vmax.f32 %v6343_v54, 0.0  ;;  %v6719_v57 = vpack.c.bf16 %v6609_v13, %v6607_v38  ;;  %v6347_v34 = vadd.f32 %v6346_v25, %v14865_v63  ;;  %v11649_v54 = vld [vmem:[%s17151_s21 + $0x20] ss:$8 sps:$4 sm:$0xff]   ;;  %11074 = vmatprep.subr.bf16.mxu1 %v15021_v43  ;;  %v11654_v38 = vld [vmem:[%s17151_s21 + $0x14] ss:$8 sps:$4 sm:$0xff]  }
 0x650   : > { %v6348_v16 = vpop.f32.mrf.mxu1  ;;  %8155 = vmatpush1.bf16.msra.mxu0 %v11649_v54 }
 0x651   : > { %v6720_v7 = vpack.c.bf16 %v6610_v1, %v6608_v11  ;;  %v6349_v45 = vadd.f32 %v6348_v16, %v14862_v18  ;;  %v6611_v44 = vmax.f32 %v6347_v34, 0.0  ;;  %8156 = vmatprep.subr.bf16.mxu0 %v11654_v38 }
 0x652   : > { %v6350_v9 = vpop.f32.mrf.mxu1 }
 0x653   : > { %v6351_v52 = vadd.f32 %v6350_v9, %v14865_v63  ;;  %7083 = vmatprep.mubr.bf16.mxu0 %v6720_v7  ;;  %v6612_v48 = vmax.f32 %v6349_v45, 0.0 }
 0x654   : > { %v6352_v28 = vpop.f32.mrf.mxu1  ;;  %7084 = vmatmul.mubr.bf16.gmra.mxu0 %v6719_v57  ;;  %v11652_v57 = vld [vmem:[%s17151_s21 + $0x10] ss:$8 sps:$4 sm:$0xff]  }
 0x655   : > { %v6353_v30 = vadd.f32 %v6352_v28, %v14862_v18  ;;  %v6613_v61 = vmax.f32 %v6351_v52, 0.0  ;;  %8157 = vmatpush1.bf16.msra.mxu0 %v11652_v57 }
 0x656   : > { %v6356_v40 = vpop.f32.mrf.mxu1 }
 0x657   : > { %v6614_v12 = vmax.f32 %v6353_v30, 0.0  ;;  %v6721_v51 = vpack.c.bf16 %v6613_v61, %v6611_v44  ;;  %v6357_v50 = vadd.f32 %v6356_v40, %v14865_v63  ;;  %v11657_v40 = vld [vmem:[%s17151_s21 + $0x4] ss:$8 sps:$4 sm:$0xff]  }
 0x658   : > { %v6358_v58 = vpop.f32.mrf.mxu1  ;;  %8158 = vmatprep.subr.bf16.mxu0 %v11657_v40 }
 0x659   : > { %v6722_v14 = vpack.c.bf16 %v6614_v12, %v6612_v48  ;;  %v6359_v33 = vadd.f32 %v6358_v58, %v14862_v18  ;;  %v6615_v26 = vmax.f32 %v6357_v50, 0.0  ;;  %v11655_v12 = vld [vmem:[%s17151_s21] ss:$8 sps:$4 sm:$0xff]  }
 0x65a   : > { %v6360_v46 = vpop.f32.mrf.mxu1  ;;  %8159 = vmatpush1.bf16.msra.mxu0 %v11655_v12 }
 0x65b   : > { %v6361_v19 = vadd.f32 %v6360_v46, %v14865_v63  ;;  %7093 = vmatprep.mubr.bf16.mxu0 %v6722_v14  ;;  %v6616_v29 = vmax.f32 %v6359_v33, 0.0  ;;  %v11660_v14 = vld [vmem:[%s17151_s21 + $0xf4] ss:$8 sps:$4 sm:$0xff]   ;;  %v11658_v33 = vld [vmem:[%s17151_s21 + $0xf0] ss:$8 sps:$4 sm:$0xff]  }
 0x65c   : > { %v6362_v36 = vpop.f32.mrf.mxu1  ;;  %7094 = vmatmul.mubr.bf16.gmra.mxu0 %v6721_v51  ;;  %8160 = vmatprep.subr.bf16.mxu0 %v11660_v14 }
 0x65d   : > { %v6363_v49 = vadd.f32 %v6362_v36, %v14862_v18  ;;  %v6617_v21 = vmax.f32 %v6361_v19, 0.0 }
 0x65e   : > { %v6366_v10 = vpop.f32.mrf.mxu1  ;;  %8161 = vmatpush2.bf16.msra.mxu0 %v11658_v33 }
 0x65f   : > { %v6618_v15 = vmax.f32 %v6363_v49, 0.0  ;;  %v6723_v47 = vpack.c.bf16 %v6617_v21, %v6615_v26  ;;  %v6367_v24 = vadd.f32 %v6366_v10, %v14865_v63 }
 0x660   : > { %v6368_v3 = vpop.f32.mrf.mxu1 }
 0x661   : > { %v6724_v32 = vpack.c.bf16 %v6618_v15, %v6616_v29  ;;  %v6369_v22 = vadd.f32 %v6368_v3, %v14862_v18  ;;  %v6619_v39 = vmax.f32 %v6367_v24, 0.0  ;;  %v11663_v29 = vld [vmem:[%s17151_s21 + $0xe4] ss:$8 sps:$4 sm:$0xff]   ;;  %v11661_v3 = vld [vmem:[%s17151_s21 + $0xe0] ss:$8 sps:$4 sm:$0xff]  }
 0x662   : > { %v6370_v23 = vpop.f32.mrf.mxu1  ;;  %8162 = vmatprep.subr.bf16.mxu0 %v11663_v29 }
 0x663   : > { %v6371_v56 = vadd.f32 %v6370_v23, %v14865_v63  ;;  %7103 = vmatprep.mubr.bf16.mxu0 %v6724_v32  ;;  %v6620_v2 = vmax.f32 %v6369_v22, 0.0  ;;  %8163 = vmatpush2.bf16.msra.mxu0 %v11661_v3 }
 0x664   : > { %v6372_v27 = vpop.f32.mrf.mxu1  ;;  %7104 = vmatmul.mubr.bf16.gmra.mxu0 %v6723_v47 }
 0x665   : > { %v6373_v37 = vadd.f32 %v6372_v27, %v14862_v18  ;;  %v6621_v60 = vmax.f32 %v6371_v56, 0.0  ;;  %v11666_v56 = vld [vmem:[%s17151_s21 + $0xd4] ss:$8 sps:$4 sm:$0xff]  }
 0x666   : > { %v6376_v62 = vpop.f32.mrf.mxu1  ;;  %8164 = vmatprep.subr.bf16.mxu0 %v11666_v56 }
 0x667   : > { %v6622_v59 = vmax.f32 %v6373_v37, 0.0  ;;  %v6725_v11 = vpack.c.bf16 %v6621_v60, %v6619_v39  ;;  %v6377_v7 = vadd.f32 %v6376_v62, %v14865_v63  ;;  %v11664_v37 = vld [vmem:[%s17151_s21 + $0xd0] ss:$8 sps:$4 sm:$0xff]  }
 0x668   : > { %v6378_v31 = vpop.f32.mrf.mxu1  ;;  %8165 = vmatpush2.bf16.msra.mxu0 %v11664_v37 }
 0x669   : > { %v6726_v6 = vpack.c.bf16 %v6622_v59, %v6620_v2  ;;  %v6379_v13 = vadd.f32 %v6378_v31, %v14862_v18  ;;  %v6623_v48 = vmax.f32 %v6377_v7, 0.0  ;;  %8166 = vmatprep.subr.bf16.mxu0 %v11669_v53 }
 0x66a   : > { %v6380_v25 = vpop.f32.mrf.mxu1 }
 0x66b   : > { %v6381_v1 = vadd.f32 %v6380_v25, %v14865_v63  ;;  %7113 = vmatprep.mubr.bf16.mxu0 %v6726_v6  ;;  %v6624_v52 = vmax.f32 %v6379_v13, 0.0 }
 0x66c   : > { %v6382_v16 = vpop.f32.mrf.mxu1  ;;  %7114 = vmatmul.mubr.bf16.gmra.mxu0 %v6725_v11  ;;  %v11672_v11 = vld [vmem:[%s17151_s21 + $0xb4] ss:$8 sps:$4 sm:$0xff]  }
 0x66d   : > { %v6383_v9 = vadd.f32 %v6382_v16, %v14862_v18  ;;  %v6625_v28 = vmax.f32 %v6381_v1, 0.0  ;;  %8167 = vmatpush2.bf16.msra.mxu0 %v11667_v41  ;;  %v11670_v16 = vld [vmem:[%s17151_s21 + $0xb0] ss:$8 sps:$4 sm:$0xff]  }
 0x66e   : > { %v6386_v45 = vpop.f32.mrf.mxu1  ;;  %8168 = vmatprep.subr.bf16.mxu0 %v11672_v11 }
 0x66f   : > { %v6626_v34 = vmax.f32 %v6383_v9, 0.0  ;;  %v6727_v58 = vpack.c.bf16 %v6625_v28, %v6623_v48  ;;  %v6387_v46 = vadd.f32 %v6386_v45, %v14865_v63 }
 0x670   : > { %v6388_v30 = vpop.f32.mrf.mxu1 }
 0x671   : > { %v6728_v61 = vpack.c.bf16 %v6626_v34, %v6624_v52  ;;  %v6389_v8 = vadd.f32 %v6388_v30, %v14862_v18  ;;  %v6627_v21 = vmax.f32 %v6387_v46, 0.0  ;;  %8169 = vmatpush2.bf16.msra.mxu0 %v11670_v16  ;;  %v11675_v52 = vld [vmem:[%s17151_s21 + $0xa4] ss:$8 sps:$4 sm:$0xff]   ;;  %v11673_v30 = vld [vmem:[%s17151_s21 + $0xa0] ss:$8 sps:$4 sm:$0xff]  }
 0x672   : > { %v6390_v55 = vpop.f32.mrf.mxu1  ;;  %8170 = vmatprep.subr.bf16.mxu0 %v11675_v52 }
 0x673   : > { %v6391_v17 = vadd.f32 %v6390_v55, %v14865_v63  ;;  %7123 = vmatprep.mubr.bf16.mxu0 %v6728_v61  ;;  %v6628_v36 = vmax.f32 %v6389_v8, 0.0 }
 0x674   : > { %v6392_v44 = vpop.f32.mrf.mxu1  ;;  %7124 = vmatmul.mubr.bf16.gmra.mxu0 %v6727_v58  ;;  %v11678_v58 = vld [vmem:[%s17151_s21 + $0x94] ss:$8 sps:$4 sm:$0xff]  }
 0x675   : > { %v6393_v51 = vadd.f32 %v6392_v44, %v14862_v18  ;;  %v6629_v50 = vmax.f32 %v6391_v17, 0.0  ;;  %8171 = vmatpush2.bf16.msra.mxu0 %v11673_v30  ;;  %v11676_v44 = vld [vmem:[%s17151_s21 + $0x90] ss:$8 sps:$4 sm:$0xff]  }
 0x676   : > { %v6396_v19 = vpop.f32.mrf.mxu1  ;;  %8172 = vmatprep.subr.bf16.mxu0 %v11678_v58 }
 0x677   : > { %v6630_v49 = vmax.f32 %v6393_v51, 0.0  ;;  %v6729_v32 = vpack.c.bf16 %v6629_v50, %v6627_v21  ;;  %v6397_v27 = vadd.f32 %v6396_v19, %v14865_v63 }
 0x678   : > { %v6398_v10 = vpop.f32.mrf.mxu1 }
 0x679   : > { %v6730_v15 = vpack.c.bf16 %v6630_v49, %v6628_v36  ;;  %v6399_v23 = vadd.f32 %v6398_v10, %v14862_v18  ;;  %v6631_v4 = vmax.f32 %v6397_v27, 0.0  ;;  %8173 = vmatpush2.bf16.msra.mxu0 %v11676_v44  ;;  %v11681_v36 = vld [vmem:[%s17151_s21 + $0x84] ss:$8 sps:$4 sm:$0xff]   ;;  %v11679_v10 = vld [vmem:[%s17151_s21 + $0x80] ss:$8 sps:$4 sm:$0xff]  }
 0x67a   : > { %v6400_v26 = vpop.f32.mrf.mxu1  ;;  %8174 = vmatprep.subr.bf16.mxu0 %v11681_v36 }
 0x67b   : > { %v6401_v47 = vadd.f32 %v6400_v26, %v14865_v63  ;;  %7133 = vmatprep.mubr.bf16.mxu0 %v6730_v15  ;;  %v6632_v5 = vmax.f32 %v6399_v23, 0.0 }
 0x67c   : > { %v6402_v22 = vpop.f32.mrf.mxu1  ;;  %7134 = vmatmul.mubr.bf16.gmra.mxu0 %v6729_v32 }
 0x67d   : > { %v6403_v24 = vadd.f32 %v6402_v22, %v14862_v18  ;;  %v6633_v2 = vmax.f32 %v6401_v47, 0.0  ;;  %8175 = vmatpush2.bf16.msra.mxu0 %v11679_v10 }
 0x67e   : > { %v6406_v62 = vpop.f32.mrf.mxu1 }
 0x67f   : > { %v6634_v60 = vmax.f32 %v6403_v24, 0.0  ;;  %v6731_v39 = vpack.c.bf16 %v6633_v2, %v6631_v4  ;;  %v6407_v13 = vadd.f32 %v6406_v62, %v14865_v63 }
 0x680   : > { %v6408_v59 = vpop.f32.mrf.mxu1 }
 0x681   : > { %v6732_v31 = vpack.c.bf16 %v6634_v60, %v6632_v5  ;;  %v6409_v6 = vadd.f32 %v6408_v59, %v14862_v18  ;;  %v6635_v28 = vmax.f32 %v6407_v13, 0.0 }
 0x682   : > { %v6410_v0 = vpop.f32.mrf.mxu1 }
 0x683   : > { %v6411_v54 = vadd.f32 %v6410_v0, %v14865_v63  ;;  %7143 = vmatprep.mubr.bf16.mxu0 %v6732_v31  ;;  %v6636_v7 = vmax.f32 %v6409_v6, 0.0 }
 0x684   : > { %v6412_v25 = vpop.f32.mrf.mxu1  ;;  %7144 = vmatmul.mubr.bf16.gmra.mxu0 %v6731_v39 }
 0x685   : > { %v6413_v1 = vadd.f32 %v6412_v25, %v14862_v18  ;;  %v6637_v9 = vmax.f32 %v6411_v54, 0.0 }
 0x686   : > { %v6416_v38 = vpop.f32.mrf.mxu1 }
 0x687   : > { %v6638_v57 = vmax.f32 %v6413_v1, 0.0  ;;  %v6733_v48 = vpack.c.bf16 %v6637_v9, %v6635_v28  ;;  %v6417_v8 = vadd.f32 %v6416_v38, %v14865_v63 }
 0x688   : > { %v6418_v45 = vpop.f32.mrf.mxu1 }
 0x689   : > { %v6734_v34 = vpack.c.bf16 %v6638_v57, %v6636_v7  ;;  %v6419_v61 = vadd.f32 %v6418_v45, %v14862_v18  ;;  %v6639_v50 = vmax.f32 %v6417_v8, 0.0 }
 0x68a   : > { %v6420_v40 = vpop.f32.mrf.mxu1 }
 0x68b   : > { %v6421_v12 = vadd.f32 %v6420_v40, %v14865_v63  ;;  %7153 = vmatprep.mubr.bf16.mxu0 %v6734_v34  ;;  %v6640_v46 = vmax.f32 %v6419_v61, 0.0 }
 0x68c   : > { %v6422_v55 = vpop.f32.mrf.mxu1  ;;  %7154 = vmatmul.mubr.bf16.gmra.mxu0 %v6733_v48 }
 0x68d   : > { %v6423_v17 = vadd.f32 %v6422_v55, %v14862_v18  ;;  %v6641_v51 = vmax.f32 %v6421_v12, 0.0 }
 0x68e   : > { %v6426_v14 = vpop.f32.mrf.mxu1 }
 0x68f   : > { %v6642_v33 = vmax.f32 %v6423_v17, 0.0  ;;  %v6735_v21 = vpack.c.bf16 %v6641_v51, %v6639_v50  ;;  %v6427_v32 = vadd.f32 %v6426_v14, %v14865_v63 }
 0x690   : > { %v6428_v19 = vpop.f32.mrf.mxu1 }
 0x691   : > { %v6736_v49 = vpack.c.bf16 %v6642_v33, %v6640_v46  ;;  %v6429_v15 = vadd.f32 %v6428_v19, %v14862_v18  ;;  %v6643_v37 = vmax.f32 %v6427_v32, 0.0 }
 0x692   : > { %v6430_v29 = vpop.f32.mrf.mxu1 }
 0x693   : > { %v6431_v3 = vadd.f32 %v6430_v29, %v14865_v63  ;;  %7163 = vmatprep.mubr.bf16.mxu0 %v6736_v49  ;;  %v6644_v22 = vmax.f32 %v6429_v15, 0.0 }
 0x694   : > { %v6432_v26 = vpop.f32.mrf.mxu1  ;;  %7164 = vmatmul.mubr.bf16.gmra.mxu0 %v6735_v21 }
 0x695   : > { %v6433_v23 = vadd.f32 %v6432_v26, %v14862_v18  ;;  %v6645_v56 = vmax.f32 %v6431_v3, 0.0 }
 0x696   : > { %v6436_v47 = vpop.f32.mrf.mxu1 }
 0x697   : > { %v6646_v27 = vmax.f32 %v6433_v23, 0.0  ;;  %v6737_v2 = vpack.c.bf16 %v6645_v56, %v6643_v37  ;;  %v6437_v4 = vadd.f32 %v6436_v47, %v14865_v63 }
 0x698   : > { %v6438_v24 = vpop.f32.mrf.mxu1 }
 0x699   : > { %v6738_v62 = vpack.c.bf16 %v6646_v27, %v6644_v22  ;;  %v6439_v60 = vadd.f32 %v6438_v24, %v14862_v18  ;;  %v6647_v25 = vmax.f32 %v6437_v4, 0.0 }
 0x69a   : > { %v6440_v5 = vpop.f32.mrf.mxu1 }
 0x69b   : > { %v6441_v59 = vadd.f32 %v6440_v5, %v14865_v63  ;;  %7173 = vmatprep.mubr.bf16.mxu0 %v6738_v62  ;;  %v6648_v0 = vmax.f32 %v6439_v60, 0.0 }
 0x69c   : > { %v6442_v53 = vpop.f32.mrf.mxu1  ;;  %7174 = vmatmul.mubr.bf16.gmra.mxu0 %v6737_v2 }
 0x69d   : > { %v6443_v31 = vadd.f32 %v6442_v53, %v14862_v18  ;;  %v6649_v39 = vmax.f32 %v6441_v59, 0.0 }
 0x69e   : > { %v6446_v41 = vpop.f32.mrf.mxu1 }
 0x69f   : > { %v6650_v6 = vmax.f32 %v6443_v31, 0.0  ;;  %v6739_v1 = vpack.c.bf16 %v6649_v39, %v6647_v25  ;;  %v6447_v9 = vadd.f32 %v6446_v41, %v14865_v63 }
 0x6a0   : > { %v6448_v54 = vpop.f32.mrf.mxu1 }
 0x6a1   : > { %v6740_v11 = vpack.c.bf16 %v6650_v6, %v6648_v0  ;;  %v6449_v16 = vadd.f32 %v6448_v54, %v14862_v18  ;;  %v6651_v40 = vmax.f32 %v6447_v9, 0.0 }
 0x6a2   : > { %v6450_v13 = vpop.f32.mrf.mxu1 }
 0x6a3   : > { %v6451_v38 = vadd.f32 %v6450_v13, %v14865_v63  ;;  %7183 = vmatprep.mubr.bf16.mxu0 %v6740_v11  ;;  %v6652_v52 = vmax.f32 %v6449_v16, 0.0 }
 0x6a4   : > { %v6452_v7 = vpop.f32.mrf.mxu1  ;;  %7184 = vmatmul.mubr.bf16.gmra.mxu0 %v6739_v1 }
 0x6a5   : > { %v6453_v57 = vadd.f32 %v6452_v7, %v14862_v18  ;;  %v6653_v28 = vmax.f32 %v6451_v38, 0.0 }
 0x6a6   : > { %v6456_v45 = vpop.f32.mrf.mxu1 }
 0x6a7   : > { %v6654_v34 = vmax.f32 %v6453_v57, 0.0  ;;  %v6741_v12 = vpack.c.bf16 %v6653_v28, %v6651_v40  ;;  %v6457_v17 = vadd.f32 %v6456_v45, %v14865_v63 }
 0x6a8   : > { %v6458_v30 = vpop.f32.mrf.mxu1 }
 0x6a9   : > { %v6742_v48 = vpack.c.bf16 %v6654_v34, %v6652_v52  ;;  %v6459_v55 = vadd.f32 %v6458_v30, %v14862_v18  ;;  %v6655_v36 = vmax.f32 %v6457_v17, 0.0 }
 0x6aa   : > { %v6460_v61 = vpop.f32.mrf.mxu1 }
 0x6ab   : > { %v6461_v58 = vadd.f32 %v6460_v61, %v14865_v63  ;;  %7193 = vmatprep.mubr.bf16.mxu0 %v6742_v48  ;;  %v6656_v46 = vmax.f32 %v6459_v55, 0.0 }
 0x6ac   : > { %v6462_v8 = vpop.f32.mrf.mxu1  ;;  %7194 = vmatmul.mubr.bf16.gmra.mxu0 %v6741_v12 }
 0x6ad   : > { %v6463_v44 = vadd.f32 %v6462_v8, %v14862_v18  ;;  %v6657_v51 = vmax.f32 %v6461_v58, 0.0 }
 0x6ae   : > { %v6466_v14 = vpop.f32.mrf.mxu1 }
 0x6af   : > { %v6658_v33 = vmax.f32 %v6463_v44, 0.0  ;;  %v6743_v10 = vpack.c.bf16 %v6657_v51, %v6655_v36  ;;  %v6467_v3 = vadd.f32 %v6466_v14, %v14865_v63 }
 0x6b0   : > { %v6468_v19 = vpop.f32.mrf.mxu1 }
 0x6b1   : > { %v6744_v50 = vpack.c.bf16 %v6658_v33, %v6656_v46  ;;  %v6469_v29 = vadd.f32 %v6468_v19, %v14862_v18  ;;  %v6659_v27 = vmax.f32 %v6467_v3, 0.0  ;;  %v6799_v3 = vld [vmem:[%s17148_s18] sm:$0x3] }
 0x6b2   : > { %v6470_v49 = vpop.f32.mrf.mxu1 }
 0x6b3   : > { %v6471_v21 = vadd.f32 %v6470_v49, %v14865_v63  ;;  %7203 = vmatprep.mubr.bf16.mxu0 %v6744_v50  ;;  %v6660_v23 = vmax.f32 %v6469_v29, 0.0 }
 0x6b4   : > { %v6472_v15 = vpop.f32.mrf.mxu1  ;;  %7204 = vmatmul.mubr.bf16.gmra.mxu0 %v6743_v10 }
 0x6b5   : > { %v6473_v26 = vadd.f32 %v6472_v15, %v14862_v18  ;;  %v6661_v47 = vmax.f32 %v6471_v21, 0.0 }
 0x6b6   : > { %v6476_v32 = vpop.f32.mrf.mxu1 }
 0x6b7   : > { %v6662_v22 = vmax.f32 %v6473_v26, 0.0  ;;  %v6745_v62 = vpack.c.bf16 %v6661_v47, %v6659_v27  ;;  %v6477_v59 = vadd.f32 %v6476_v32, %v14865_v63 }
 0x6b8   : > { %v6478_v56 = vpop.f32.mrf.mxu1 }
 0x6b9   : > { %v6746_v24 = vpack.c.bf16 %v6662_v22, %v6660_v23  ;;  %v6479_v5 = vadd.f32 %v6478_v56, %v14862_v18  ;;  %v6663_v6 = vmax.f32 %v6477_v59, 0.0  ;;  %v15147_v56 = vrot.slane %v6799_v3, %v17355_v35 }
 0x6ba   : > { %v6480_v37 = vpop.f32.mrf.mxu1 }
 0x6bb   : > { %v6481_v2 = vadd.f32 %v6480_v37, %v14865_v63  ;;  %7213 = vmatprep.mubr.bf16.mxu0 %v6746_v24  ;;  %v6664_v31 = vmax.f32 %v6479_v5, 0.0  ;;  %v15150_v24 = vrot.slane %v6799_v3, %v12596_v42 }
 0x6bc   : > { %v6482_v60 = vpop.f32.mrf.mxu1  ;;  %7214 = vmatmul.mubr.bf16.gmra.mxu0 %v6745_v62 }
 0x6bd   : > { %v6483_v53 = vadd.f32 %v6482_v60, %v14862_v18  ;;  %v6665_v41 = vmax.f32 %v6481_v2, 0.0 }
 0x6be   : > { %v6486_v4 = vpop.f32.mrf.mxu1 }
 0x6bf   : > { %v6666_v0 = vmax.f32 %v6483_v53, 0.0  ;;  %v6747_v11 = vpack.c.bf16 %v6665_v41, %v6663_v6  ;;  %v6487_v38 = vadd.f32 %v6486_v4, %v14865_v63 }
 0x6c0   : > { %v6488_v39 = vpop.f32.mrf.mxu1 }
 0x6c1   : > { %v6748_v54 = vpack.c.bf16 %v6666_v0, %v6664_v31  ;;  %v6489_v13 = vadd.f32 %v6488_v39, %v14862_v18  ;;  %v6667_v34 = vmax.f32 %v6487_v38, 0.0 }
 0x6c2   : > { %v6490_v25 = vpop.f32.mrf.mxu1 }
 0x6c3   : > { %v6491_v1 = vadd.f32 %v6490_v25, %v14865_v63  ;;  %7223 = vmatprep.mubr.bf16.mxu0 %v6748_v54  ;;  %v6668_v57 = vmax.f32 %v6489_v13, 0.0 }
 0x6c4   : > { %v6492_v16 = vpop.f32.mrf.mxu1  ;;  %7224 = vmatmul.mubr.bf16.gmra.mxu0 %v6747_v11 }
 0x6c5   : > { %v6493_v7 = vadd.f32 %v6492_v16, %v14862_v18  ;;  %v6669_v45 = vmax.f32 %v6491_v1, 0.0 }
 0x6c6   : > { %v6496_v9 = vpop.f32.mrf.mxu1 }
 0x6c7   : > { %v6670_v52 = vmax.f32 %v6493_v7, 0.0  ;;  %v6749_v48 = vpack.c.bf16 %v6669_v45, %v6667_v34  ;;  %v6497_v58 = vadd.f32 %v6496_v9, %v14865_v63 }
 0x6c8   : > { %v6498_v28 = vpop.f32.mrf.mxu1 }
 0x6c9   : > { %v6750_v30 = vpack.c.bf16 %v6670_v52, %v6668_v57  ;;  %v6499_v61 = vadd.f32 %v6498_v28, %v14862_v18  ;;  %v6671_v33 = vmax.f32 %v6497_v58, 0.0 }
 0x6ca   : > { %v6500_v40 = vpop.f32.mrf.mxu1 }
 0x6cb   : > { %v6501_v12 = vadd.f32 %v6500_v40, %v14865_v63  ;;  %7233 = vmatprep.mubr.bf16.mxu0 %v6750_v30  ;;  %v6672_v44 = vmax.f32 %v6499_v61, 0.0 }
 0x6cc   : > { %v6502_v55 = vpop.f32.mrf.mxu1  ;;  %7234 = vmatmul.mubr.bf16.gmra.mxu0 %v6749_v48 }
 0x6cd   : > { %v6503_v8 = vadd.f32 %v6502_v55, %v14862_v18  ;;  %v6673_v14 = vmax.f32 %v6501_v12, 0.0 }
 0x6ce   : > { %v6506_v17 = vpop.f32.mrf.mxu1 }
 0x6cf   : > { %v6674_v46 = vmax.f32 %v6503_v8, 0.0  ;;  %v6751_v50 = vpack.c.bf16 %v6673_v14, %v6671_v33  ;;  %v6507_v21 = vadd.f32 %v6506_v17, %v14865_v63 }
 0x6d0   : > { %v6508_v51 = vpop.f32.mrf.mxu1 }
 0x6d1   : > { %v6752_v19 = vpack.c.bf16 %v6674_v46, %v6672_v44  ;;  %v6509_v49 = vadd.f32 %v6508_v51, %v14862_v18  ;;  %v6675_v37 = vmax.f32 %v6507_v21, 0.0  ;;  %v11682_v21 = vld [vmem:[%s17154_s24] sm:$0xff]  }
 0x6d2   : > { %v6510_v36 = vpop.f32.mrf.mxu1 }
 0x6d3   : > { %v6511_v10 = vadd.f32 %v6510_v36, %v14865_v63  ;;  %7243 = vmatprep.mubr.bf16.mxu0 %v6752_v19  ;;  %v6676_v32 = vmax.f32 %v6509_v49, 0.0 }
 0x6d4   : > { %v6512_v29 = vpop.f32.mrf.mxu1  ;;  %v7005_v26 = vpop.f32.mrf.mxu0  ;;  %7244 = vmatmul.mubr.bf16.gmra.mxu0 %v6751_v50 }
 0x6d5   : > { %v6513_v15 = vadd.f32 %v6512_v29, %v14862_v18  ;;  %v6677_v23 = vmax.f32 %v6511_v10, 0.0  ;;  %v7006_v41 = vadd.f32 %v7005_v26, %v15150_v24 }
 0x6d6   : > { %v6516_v22 = vpop.f32.mrf.mxu1  ;;  %v7007_v27 = vpop.f32.mrf.mxu0 }
 0x6d7   : > { %v6678_v47 = vmax.f32 %v6513_v15, 0.0  ;;  %v6753_v59 = vpack.c.bf16 %v6677_v23, %v6675_v37  ;;  %v7008_v53 = vadd.f32 %v7007_v27, %v15147_v56  ;;  %v6517_v11 = vadd.f32 %v6516_v22, %v14865_v63 }
 0x6d8   : > { %v6518_v62 = vpop.f32.mrf.mxu1  ;;  %v7009_v5 = vpop.f32.mrf.mxu0  ;;  %v7324_v57 = vmax.f32 %v7006_v41, 0.0 }
 0x6d9   : > { %v6754_v2 = vpack.c.bf16 %v6678_v47, %v6676_v32  ;;  %v7010_v60 = vadd.f32 %v7009_v5, %v15150_v24  ;;  %v6519_v6 = vadd.f32 %v6518_v62, %v14862_v18  ;;  %v7325_v38 = vmax.f32 %v7008_v53, 0.0 }
 0x6da   : > { %v6520_v4 = vpop.f32.mrf.mxu1  ;;  %v7011_v31 = vpop.f32.mrf.mxu0  ;;  %v6679_v48 = vmax.f32 %v6517_v11, 0.0 }
 0x6db   : > { %7253 = vmatprep.mubr.bf16.mxu0 %v6754_v2  ;;  %v6521_v0 = vadd.f32 %v6520_v4, %v14865_v63  ;;  %v7012_v39 = vadd.f32 %v7011_v31, %v15147_v56  ;;  %v7326_v13 = vmax.f32 %v7010_v60, 0.0  ;;  %v6680_v28 = vmax.f32 %v6519_v6, 0.0 }
 0x6dc   : > { %v6522_v54 = vpop.f32.mrf.mxu1  ;;  %v7015_v25 = vpop.f32.mrf.mxu0  ;;  %7254 = vmatmul.mubr.bf16.gmra.mxu0 %v6753_v59 }
 0x6dd   : > { %v7327_v1 = vmax.f32 %v7012_v39, 0.0  ;;  %v6523_v16 = vadd.f32 %v6522_v54, %v14862_v18  ;;  %v6681_v45 = vmax.f32 %v6521_v0, 0.0  ;;  %v15162_v61 = vpack.c.bf16 %v7326_v13, %v7324_v57 }
 0x6de   : > { %v6526_v7 = vpop.f32.mrf.mxu1  ;;  %v7017_v9 = vpop.f32.mrf.mxu0  ;;  %v7016_v14 = vadd.f32 %v7015_v25, %v15150_v24 }
 0x6df   : > { %v6682_v52 = vmax.f32 %v6523_v16, 0.0  ;;  %v15160_v40 = vpack.c.bf16 %v7327_v1, %v7325_v38  ;;  %v7018_v55 = vadd.f32 %v7017_v9, %v15147_v56  ;;  %v6755_v44 = vpack.c.bf16 %v6681_v45, %v6679_v48 }
 0x6e0   : > { %v6528_v34 = vpop.f32.mrf.mxu1  ;;  %v7019_v30 = vpop.f32.mrf.mxu0  ;;  %v6527_v50 = vadd.f32 %v6526_v7, %v14865_v63  ;;  %v7328_v32 = vmax.f32 %v7016_v14, 0.0 }
 0x6e1   : > { %v7020_v12 = vadd.f32 %v7019_v30, %v15150_v24  ;;  %7683 = vmatprep.mubr.bf16.mxu1 %v15160_v40  ;;  %v6756_v17 = vpack.c.bf16 %v6682_v52, %v6680_v28  ;;  %v6529_v33 = vadd.f32 %v6528_v34, %v14862_v18  ;;  %v7329_v15 = vmax.f32 %v7018_v55, 0.0 }
 0x6e2   : > { %v6530_v58 = vpop.f32.mrf.mxu1  ;;  %v7021_v8 = vpop.f32.mrf.mxu0  ;;  %7684 = vmatmul.mubr.bf16.vlgmr.msra.gmra.mxu1 %v15162_v61  ;;  %v6683_v62 = vmax.f32 %v6527_v50, 0.0 }
 0x6e3   : > { %v6531_v46 = vadd.f32 %v6530_v58, %v14865_v63  ;;  %v7022_v51 = vadd.f32 %v7021_v8, %v15147_v56  ;;  %11075 = vmatpush3.bf16.msra.mxu1 %v15021_v43  ;;  %7263 = vmatprep.mubr.bf16.mxu0 %v6756_v17  ;;  %v7330_v49 = vmax.f32 %v7020_v12, 0.0  ;;  %v6684_v47 = vmax.f32 %v6529_v33, 0.0 }
 0x6e4   : > { %v6532_v19 = vpop.f32.mrf.mxu1  ;;  %v7025_v36 = vpop.f32.mrf.mxu0  ;;  %7264 = vmatmul.mubr.bf16.gmra.mxu0 %v6755_v44  ;;  %11076 = vmatprep.subr.bf16.mxu1 %v11682_v21 }
 0x6e5   : > { %v7331_v10 = vmax.f32 %v7022_v51, 0.0  ;;  %v6533_v29 = vadd.f32 %v6532_v19, %v14862_v18  ;;  %v6685_v23 = vmax.f32 %v6531_v46, 0.0  ;;  %v15180_v5 = vpack.c.bf16 %v7330_v49, %v7328_v32 }
 0x6e6   : > { %v6536_v3 = vpop.f32.mrf.mxu1  ;;  %v7027_v26 = vpop.f32.mrf.mxu0  ;;  %v7026_v41 = vadd.f32 %v7025_v36, %v15150_v24 }
 0x6e7   : > { %v6686_v43 = vmax.f32 %v6533_v29, 0.0  ;;  %v15178_v37 = vpack.c.bf16 %v7331_v10, %v7329_v15  ;;  %11077 = vmatpush3.bf16.msra.mxu1 %v11682_v21  ;;  %v7028_v60 = vadd.f32 %v7027_v26, %v15147_v56  ;;  %v6757_v31 = vpack.c.bf16 %v6685_v23, %v6683_v62 }
 0x6e8   : > { %v6538_v22 = vpop.f32.mrf.mxu1  ;;  %v7029_v27 = vpop.f32.mrf.mxu0  ;;  %9093 = vmatprep.subr.bf16.mxu1 %v17233_v20  ;;  %v6537_v11 = vadd.f32 %v6536_v3, %v14865_v63  ;;  %v7332_v57 = vmax.f32 %v7026_v41, 0.0 }
 0x6e9   : > { %v7030_v2 = vadd.f32 %v7029_v27, %v15150_v24  ;;  %7691 = vmatprep.mubr.bf16.mxu1 %v15178_v37  ;;  %v6758_v4 = vpack.c.bf16 %v6686_v43, %v6684_v47  ;;  %v6539_v6 = vadd.f32 %v6538_v22, %v14862_v18  ;;  %v7333_v38 = vmax.f32 %v7028_v60, 0.0 }
 0x6ea   : > { %v6540_v59 = vpop.f32.mrf.mxu1  ;;  %v7031_v53 = vpop.f32.mrf.mxu0  ;;  %7692 = vmatmul.mubr.bf16.gmra.mxu1 %v15180_v5  ;;  %v6687_v12 = vmax.f32 %v6537_v11, 0.0 }
 0x6eb   : > { %v6541_v0 = vadd.f32 %v6540_v59, %v14865_v63  ;;  %v7032_v39 = vadd.f32 %v7031_v53, %v15147_v56  ;;  %7273 = vmatprep.mubr.bf16.mxu0 %v6758_v4  ;;  %v7334_v13 = vmax.f32 %v7030_v2, 0.0  ;;  %v6688_v28 = vmax.f32 %v6539_v6, 0.0 }
 0x6ec   : > { %v6542_v54 = vpop.f32.mrf.mxu1  ;;  %v7035_v25 = vpop.f32.mrf.mxu0  ;;  %7274 = vmatmul.mubr.bf16.gmra.mxu0 %v6757_v31 }
 0x6ed   : > { %v7335_v1 = vmax.f32 %v7032_v39, 0.0  ;;  %v6543_v16 = vadd.f32 %v6542_v54, %v14862_v18  ;;  %v6689_v45 = vmax.f32 %v6541_v0, 0.0  ;;  %v15195_v55 = vpack.c.bf16 %v7334_v13, %v7332_v57 }
 0x6ee   : > { %v6546_v7 = vpop.f32.mrf.mxu1  ;;  %v7037_v9 = vpop.f32.mrf.mxu0  ;;  %v7036_v51 = vadd.f32 %v7035_v25, %v15150_v24 }
 0x6ef   : > { %v6690_v52 = vmax.f32 %v6543_v16, 0.0  ;;  %v15193_v48 = vpack.c.bf16 %v7335_v1, %v7333_v38  ;;  %v7038_v8 = vadd.f32 %v7037_v9, %v15147_v56  ;;  %v6759_v46 = vpack.c.bf16 %v6689_v45, %v6687_v12 }
 0x6f0   : > { %v6548_v34 = vpop.f32.mrf.mxu1  ;;  %v7039_v30 = vpop.f32.mrf.mxu0  ;;  %v6547_v10 = vadd.f32 %v6546_v7, %v14865_v63  ;;  %v7336_v23 = vmax.f32 %v7036_v51, 0.0 }
 0x6f1   : > { %v7040_v58 = vadd.f32 %v7039_v30, %v15150_v24  ;;  %7699 = vmatprep.mubr.bf16.mxu1 %v15193_v48  ;;  %v6760_v14 = vpack.c.bf16 %v6690_v52, %v6688_v28  ;;  %v6549_v36 = vadd.f32 %v6548_v34, %v14862_v18  ;;  %v7337_v3 = vmax.f32 %v7038_v8, 0.0 }
 0x6f2   : > { %v6550_v17 = vpop.f32.mrf.mxu1  ;;  %v7041_v44 = vpop.f32.mrf.mxu0  ;;  %7700 = vmatmul.mubr.bf16.gmra.mxu1 %v15195_v55  ;;  %v6691_v60 = vmax.f32 %v6547_v10, 0.0 }
 0x6f3   : > { %v6551_v33 = vadd.f32 %v6550_v17, %v14865_v63  ;;  %v7042_v19 = vadd.f32 %v7041_v44, %v15147_v56  ;;  %7283 = vmatprep.mubr.bf16.mxu0 %v6760_v14  ;;  %v7338_v29 = vmax.f32 %v7040_v58, 0.0  ;;  %v6692_v22 = vmax.f32 %v6549_v36, 0.0 }
 0x6f4   : > { %v6552_v50 = vpop.f32.mrf.mxu1  ;;  %v7045_v49 = vpop.f32.mrf.mxu0  ;;  %7284 = vmatmul.mubr.bf16.gmra.mxu0 %v6759_v46 }
 0x6f5   : > { %v7339_v21 = vmax.f32 %v7042_v19, 0.0  ;;  %v6553_v15 = vadd.f32 %v6552_v50, %v14862_v18  ;;  %v6693_v43 = vmax.f32 %v6551_v33, 0.0  ;;  %v15209_v59 = vpack.c.bf16 %v7338_v29, %v7336_v23 }
 0x6f6   : > { %v6556_v26 = vpop.f32.mrf.mxu1  ;;  %v7047_v32 = vpop.f32.mrf.mxu0  ;;  %v7046_v6 = vadd.f32 %v7045_v49, %v15150_v24 }
 0x6f7   : > { %v6694_v47 = vmax.f32 %v6553_v15, 0.0  ;;  %v15207_v2 = vpack.c.bf16 %v7339_v21, %v7337_v3  ;;  %v7048_v4 = vadd.f32 %v7047_v32, %v15147_v56  ;;  %v6761_v39 = vpack.c.bf16 %v6693_v43, %v6691_v60 }
 0x6f8   : > { %v6558_v27 = vpop.f32.mrf.mxu1  ;;  %v7049_v62 = vpop.f32.mrf.mxu0  ;;  %v6557_v16 = vadd.f32 %v6556_v26, %v14865_v63  ;;  %v7340_v28 = vmax.f32 %v7046_v6, 0.0 }
 0x6f9   : > { %v7050_v53 = vadd.f32 %v7049_v62, %v15150_v24  ;;  %7707 = vmatprep.mubr.bf16.mxu1 %v15207_v2  ;;  %v6762_v0 = vpack.c.bf16 %v6694_v47, %v6692_v22  ;;  %v6559_v11 = vadd.f32 %v6558_v27, %v14862_v18  ;;  %v7341_v57 = vmax.f32 %v7048_v4, 0.0 }
 0x6fa   : > { %v6560_v31 = vpop.f32.mrf.mxu1  ;;  %v7051_v41 = vpop.f32.mrf.mxu0  ;;  %7708 = vmatmul.mubr.bf16.gmra.mxu1 %v15209_v59  ;;  %v6695_v44 = vmax.f32 %v6557_v16, 0.0 }
 0x6fb   : > { %v6561_v54 = vadd.f32 %v6560_v31, %v14865_v63  ;;  %v7052_v25 = vadd.f32 %v7051_v41, %v15147_v56  ;;  %7293 = vmatprep.mubr.bf16.mxu0 %v6762_v0  ;;  %v7342_v38 = vmax.f32 %v7050_v53, 0.0  ;;  %v6696_v12 = vmax.f32 %v6559_v11, 0.0 }
 0x6fc   : > { %v6562_v13 = vpop.f32.mrf.mxu1  ;;  %v7055_v1 = vpop.f32.mrf.mxu0  ;;  %7294 = vmatmul.mubr.bf16.gmra.mxu0 %v6761_v39 }
 0x6fd   : > { %v7343_v7 = vmax.f32 %v7052_v25, 0.0  ;;  %v6563_v9 = vadd.f32 %v6562_v13, %v14862_v18  ;;  %v6697_v34 = vmax.f32 %v6561_v54, 0.0  ;;  %v15223_v14 = vpack.c.bf16 %v7342_v38, %v7340_v28 }
 0x6fe   : > { %v6566_v45 = vpop.f32.mrf.mxu1  ;;  %v7057_v52 = vpop.f32.mrf.mxu0  ;;  %v7056_v33 = vadd.f32 %v7055_v1, %v15150_v24 }
 0x6ff   : > { %v6698_v30 = vmax.f32 %v6563_v9, 0.0  ;;  %v15221_v17 = vpack.c.bf16 %v7343_v7, %v7341_v57  ;;  %v7058_v46 = vadd.f32 %v7057_v52, %v15147_v56  ;;  %v6763_v49 = vpack.c.bf16 %v6697_v34, %v6695_v44 }
 0x700   : > { %v6568_v58 = vpop.f32.mrf.mxu1  ;;  %v7059_v8 = vpop.f32.mrf.mxu0  ;;  %v6567_v15 = vadd.f32 %v6566_v45, %v14865_v63  ;;  %v7344_v22 = vmax.f32 %v7056_v33, 0.0 }
 0x701   : > { %v7060_v51 = vadd.f32 %v7059_v8, %v15150_v24  ;;  %7715 = vmatprep.mubr.bf16.mxu1 %v15221_v17  ;;  %v6764_v50 = vpack.c.bf16 %v6698_v30, %v6696_v12  ;;  %v6569_v10 = vadd.f32 %v6568_v58, %v14862_v18  ;;  %v7345_v32 = vmax.f32 %v7058_v46, 0.0 }
 0x702   : > { %v6570_v19 = vpop.f32.mrf.mxu1  ;;  %v7061_v36 = vpop.f32.mrf.mxu0  ;;  %7716 = vmatmul.mubr.bf16.gmra.mxu1 %v15223_v14  ;;  %v6699_v31 = vmax.f32 %v6567_v15, 0.0 }
 0x703   : > { %v6571_v29 = vadd.f32 %v6570_v19, %v14865_v63  ;;  %v7062_v21 = vadd.f32 %v7061_v36, %v15147_v56  ;;  %7303 = vmatprep.mubr.bf16.mxu0 %v6764_v50  ;;  %v7346_v23 = vmax.f32 %v7060_v51, 0.0  ;;  %v6700_v62 = vmax.f32 %v6569_v10, 0.0 }
 0x704   : > { %v6572_v3 = vpop.f32.mrf.mxu1  ;;  %v7065_v26 = vpop.f32.mrf.mxu0  ;;  %7304 = vmatmul.mubr.bf16.gmra.mxu0 %v6763_v49 }
 0x705   : > { %v7347_v43 = vmax.f32 %v7062_v21, 0.0  ;;  %v6573_v47 = vadd.f32 %v6572_v3, %v14862_v18  ;;  %v6701_v60 = vmax.f32 %v6571_v29, 0.0  ;;  %v15237_v0 = vpack.c.bf16 %v7346_v23, %v7344_v22 }
 0x706   : > { %v7067_v27 = vpop.f32.mrf.mxu0  ;;  %v7066_v25 = vadd.f32 %v7065_v26, %v15150_v24 }
 0x707   : > { %v6702_v53 = vmax.f32 %v6573_v47, 0.0  ;;  %v15235_v4 = vpack.c.bf16 %v7347_v43, %v7345_v32  ;;  %v7068_v63 = vadd.f32 %v7067_v27, %v15147_v56  ;;  %v6765_v54 = vpack.c.bf16 %v6701_v60, %v6699_v31 }
 0x708   : > { %v7069_v41 = vpop.f32.mrf.mxu0  ;;  %v7348_v9 = vmax.f32 %v7066_v25, 0.0 }
 0x709   : > { %v7070_v39 = vadd.f32 %v7069_v41, %v15150_v24  ;;  %7723 = vmatprep.mubr.bf16.mxu1 %v15235_v4  ;;  %v6766_v6 = vpack.c.bf16 %v6702_v53, %v6700_v62  ;;  %v7349_v1 = vmax.f32 %v7068_v63, 0.0 }
 0x70a   : > { %v7071_v18 = vpop.f32.mrf.mxu0  ;;  %7724 = vmatmul.mubr.bf16.gmra.mxu1 %v15237_v0 }
 0x70b   : > { %v7072_v11 = vadd.f32 %v7071_v18, %v15147_v56  ;;  %7313 = vmatprep.mubr.bf16.mxu0 %v6766_v6  ;;  %v7350_v16 = vmax.f32 %v7070_v39, 0.0 }
 0x70c   : > { %v7075_v13 = vpop.f32.mrf.mxu0  ;;  %7314 = vmatmul.mubr.bf16.gmra.mxu0 %v6765_v54 }
 0x70d   : > { %v7351_v38 = vmax.f32 %v7072_v11, 0.0  ;;  %8176 = vmatprep.mubr.bf16.mxu0 %v15160_v40  ;;  %v15248_v52 = vpack.c.bf16 %v7350_v16, %v7348_v9  ;;  %v7076_v12 = vadd.f32 %v7075_v13, %v15150_v24 }
 0x70e   : > { %v7077_v7 = vpop.f32.mrf.mxu0 }
 0x70f   : > { %v15246_v57 = vpack.c.bf16 %v7351_v38, %v7349_v1  ;;  %v7078_v28 = vadd.f32 %v7077_v7, %v15147_v56  ;;  %v7352_v33 = vmax.f32 %v7076_v12, 0.0 }
 0x710   : > { %v7079_v45 = vpop.f32.mrf.mxu0 }
 0x711   : > { %v7080_v34 = vadd.f32 %v7079_v45, %v15150_v24  ;;  %7731 = vmatprep.mubr.bf16.mxu1 %v15246_v57  ;;  %v7353_v8 = vmax.f32 %v7078_v28, 0.0 }
 0x712   : > { %v7081_v30 = vpop.f32.mrf.mxu0  ;;  %7732 = vmatmul.mubr.bf16.gmra.mxu1 %v15248_v52 }
 0x713   : > { %v7082_v58 = vadd.f32 %v7081_v30, %v15147_v56  ;;  %v7354_v44 = vmax.f32 %v7080_v34, 0.0 }
 0x714   : > { %v7085_v40 = vpop.f32.mrf.mxu0  ;;  %8177 = vmatmul.mubr.bf16.vlgmr.msra.gmra.mxu0 %v15162_v61 }
 0x715   : > { %v7355_v46 = vmax.f32 %v7082_v58, 0.0  ;;  %8186 = vmatprep.mubr.bf16.mxu0 %v15178_v37  ;;  %v15260_v50 = vpack.c.bf16 %v7354_v44, %v7352_v33  ;;  %v7086_v21 = vadd.f32 %v7085_v40, %v15150_v24 }
 0x716   : > { %v7087_v51 = vpop.f32.mrf.mxu0 }
 0x717   : > { %v15258_v19 = vpack.c.bf16 %v7355_v46, %v7353_v8  ;;  %v7088_v49 = vadd.f32 %v7087_v51, %v15147_v56  ;;  %v7356_v23 = vmax.f32 %v7086_v21, 0.0 }
 0x718   : > { %v7089_v36 = vpop.f32.mrf.mxu0 }
 0x719   : > { %v7090_v10 = vadd.f32 %v7089_v36, %v15150_v24  ;;  %7739 = vmatprep.mubr.bf16.mxu1 %v15258_v19  ;;  %v7357_v15 = vmax.f32 %v7088_v49, 0.0 }
 0x71a   : > { %v7091_v29 = vpop.f32.mrf.mxu0  ;;  %7740 = vmatmul.mubr.bf16.gmra.mxu1 %v15260_v50 }
 0x71b   : > { %v7092_v61 = vadd.f32 %v7091_v29, %v15147_v56  ;;  %v7358_v3 = vmax.f32 %v7090_v10, 0.0 }
 0x71c   : > { %v7095_v37 = vpop.f32.mrf.mxu0  ;;  %8187 = vmatmul.mubr.bf16.gmra.mxu0 %v15180_v5 }
 0x71d   : > { %v7359_v26 = vmax.f32 %v7092_v61, 0.0  ;;  %8196 = vmatprep.mubr.bf16.mxu0 %v15193_v48  ;;  %v15272_v22 = vpack.c.bf16 %v7358_v3, %v7356_v23  ;;  %v7096_v53 = vadd.f32 %v7095_v37, %v15150_v24 }
 0x71e   : > { %v7097_v32 = vpop.f32.mrf.mxu0 }
 0x71f   : > { %v15270_v43 = vpack.c.bf16 %v7359_v26, %v7357_v15  ;;  %v7098_v27 = vadd.f32 %v7097_v32, %v15147_v56  ;;  %v7360_v6 = vmax.f32 %v7096_v53, 0.0 }
 0x720   : > { %v7099_v47 = vpop.f32.mrf.mxu0 }
 0x721   : > { %v7100_v62 = vadd.f32 %v7099_v47, %v15150_v24  ;;  %7747 = vmatprep.mubr.bf16.mxu1 %v15270_v43  ;;  %v7361_v31 = vmax.f32 %v7098_v27, 0.0 }
 0x722   : > { %v7101_v60 = vpop.f32.mrf.mxu0  ;;  %7748 = vmatmul.mubr.bf16.gmra.mxu1 %v15272_v22 }
 0x723   : > { %v7102_v5 = vadd.f32 %v7101_v60, %v15147_v56  ;;  %v7362_v41 = vmax.f32 %v7100_v62, 0.0 }
 0x724   : > { %v7105_v48 = vpop.f32.mrf.mxu0  ;;  %8197 = vmatmul.mubr.bf16.gmra.mxu0 %v15195_v55 }
 0x725   : > { %v7363_v63 = vmax.f32 %v7102_v5, 0.0  ;;  %8206 = vmatprep.mubr.bf16.mxu0 %v15207_v2  ;;  %v15284_v25 = vpack.c.bf16 %v7362_v41, %v7360_v6  ;;  %v7106_v16 = vadd.f32 %v7105_v48, %v15150_v24 }
 0x726   : > { %v7107_v39 = vpop.f32.mrf.mxu0 }
 0x727   : > { %v15282_v18 = vpack.c.bf16 %v7363_v63, %v7361_v31  ;;  %v7108_v11 = vadd.f32 %v7107_v39, %v15147_v56  ;;  %v7364_v28 = vmax.f32 %v7106_v16, 0.0 }
 0x728   : > { %v7109_v54 = vpop.f32.mrf.mxu0 }
 0x729   : > { %v7110_v13 = vadd.f32 %v7109_v54, %v15150_v24  ;;  %7755 = vmatprep.mubr.bf16.mxu1 %v15282_v18  ;;  %v7365_v38 = vmax.f32 %v7108_v11, 0.0 }
 0x72a   : > { %v7111_v1 = vpop.f32.mrf.mxu0  ;;  %7756 = vmatmul.mubr.bf16.gmra.mxu1 %v15284_v25 }
 0x72b   : > { %v7112_v55 = vadd.f32 %v7111_v1, %v15147_v56  ;;  %v7366_v7 = vmax.f32 %v7110_v13, 0.0 }
 0x72c   : > { %v7115_v2 = vpop.f32.mrf.mxu0  ;;  %8207 = vmatmul.mubr.bf16.gmra.mxu0 %v15209_v59 }
 0x72d   : > { %v7367_v9 = vmax.f32 %v7112_v55, 0.0  ;;  %8216 = vmatprep.mubr.bf16.mxu0 %v15221_v17  ;;  %v15296_v12 = vpack.c.bf16 %v7366_v7, %v7364_v28  ;;  %v7116_v44 = vadd.f32 %v7115_v2, %v15150_v24 }
 0x72e   : > { %v7117_v45 = vpop.f32.mrf.mxu0 }
 0x72f   : > { %v15294_v34 = vpack.c.bf16 %v7367_v9, %v7365_v38  ;;  %v7118_v58 = vadd.f32 %v7117_v45, %v15147_v56  ;;  %v7368_v49 = vmax.f32 %v7116_v44, 0.0 }
 0x730   : > { %v7119_v30 = vpop.f32.mrf.mxu0 }
 0x731   : > { %v7120_v40 = vadd.f32 %v7119_v30, %v15150_v24  ;;  %7763 = vmatprep.mubr.bf16.mxu1 %v15294_v34  ;;  %v7369_v46 = vmax.f32 %v7118_v58, 0.0 }
 0x732   : > { %v7121_v8 = vpop.f32.mrf.mxu0  ;;  %7764 = vmatmul.mubr.bf16.gmra.mxu1 %v15296_v12 }
 0x733   : > { %v7122_v59 = vadd.f32 %v7121_v8, %v15147_v56  ;;  %v7370_v51 = vmax.f32 %v7120_v40, 0.0 }
 0x734   : > { %v7125_v17 = vpop.f32.mrf.mxu0  ;;  %8217 = vmatmul.mubr.bf16.gmra.mxu0 %v15223_v14 }
 0x735   : > { %v7371_v33 = vmax.f32 %v7122_v59, 0.0  ;;  %8226 = vmatprep.mubr.bf16.mxu0 %v15235_v4  ;;  %v15308_v21 = vpack.c.bf16 %v7370_v51, %v7368_v49  ;;  %v7126_v3 = vadd.f32 %v7125_v17, %v15150_v24 }
 0x736   : > { %v7127_v36 = vpop.f32.mrf.mxu0 }
 0x737   : > { %v15306_v10 = vpack.c.bf16 %v7371_v33, %v7369_v46  ;;  %v7128_v61 = vadd.f32 %v7127_v36, %v15147_v56  ;;  %v7372_v27 = vmax.f32 %v7126_v3, 0.0 }
 0x738   : > { %v7129_v29 = vpop.f32.mrf.mxu0 }
 0x739   : > { %v7130_v37 = vadd.f32 %v7129_v29, %v15150_v24  ;;  %7771 = vmatprep.mubr.bf16.mxu1 %v15306_v10  ;;  %v7373_v26 = vmax.f32 %v7128_v61, 0.0 }
 0x73a   : > { %v7131_v15 = vpop.f32.mrf.mxu0  ;;  %7772 = vmatmul.mubr.bf16.gmra.mxu1 %v15308_v21 }
 0x73b   : > { %v7132_v14 = vadd.f32 %v7131_v15, %v15147_v56  ;;  %v7374_v32 = vmax.f32 %v7130_v37, 0.0 }
 0x73c   : > { %v7135_v4 = vpop.f32.mrf.mxu0  ;;  %8227 = vmatmul.mubr.bf16.gmra.mxu0 %v15237_v0 }
 0x73d   : > { %v7375_v23 = vmax.f32 %v7132_v14, 0.0  ;;  %8236 = vmatprep.mubr.bf16.mxu0 %v15246_v57  ;;  %v15320_v53 = vpack.c.bf16 %v7374_v32, %v7372_v27  ;;  %v7136_v41 = vadd.f32 %v7135_v4, %v15150_v24 }
 0x73e   : > { %v7137_v47 = vpop.f32.mrf.mxu0 }
 0x73f   : > { %v15318_v62 = vpack.c.bf16 %v7375_v23, %v7373_v26  ;;  %v7138_v5 = vadd.f32 %v7137_v47, %v15147_v56  ;;  %v7376_v11 = vmax.f32 %v7136_v41, 0.0 }
 0x740   : > { %v7139_v60 = vpop.f32.mrf.mxu0 }
 0x741   : > { %v7140_v48 = vadd.f32 %v7139_v60, %v15150_v24  ;;  %7779 = vmatprep.mubr.bf16.mxu1 %v15318_v62  ;;  %v7377_v63 = vmax.f32 %v7138_v5, 0.0 }
 0x742   : > { %v7141_v31 = vpop.f32.mrf.mxu0  ;;  %7780 = vmatmul.mubr.bf16.gmra.mxu1 %v15320_v53 }
 0x743   : > { %v7142_v0 = vadd.f32 %v7141_v31, %v15147_v56  ;;  %v7378_v39 = vmax.f32 %v7140_v48, 0.0 }
 0x744   : > { %v7145_v57 = vpop.f32.mrf.mxu0  ;;  %8237 = vmatmul.mubr.bf16.gmra.mxu0 %v15248_v52 }
 0x745   : > { %v7379_v6 = vmax.f32 %v7142_v0, 0.0  ;;  %8246 = vmatprep.mubr.bf16.mxu0 %v15258_v19  ;;  %v15332_v16 = vpack.c.bf16 %v7378_v39, %v7376_v11  ;;  %v7146_v7 = vadd.f32 %v7145_v57, %v15150_v24 }
 0x746   : > { %v7147_v54 = vpop.f32.mrf.mxu0 }
 0x747   : > { %v15330_v13 = vpack.c.bf16 %v7379_v6, %v7377_v63  ;;  %v7148_v55 = vadd.f32 %v7147_v54, %v15147_v56  ;;  %v7380_v58 = vmax.f32 %v7146_v7, 0.0 }
 0x748   : > { %v7149_v1 = vpop.f32.mrf.mxu0 }
 0x749   : > { %v7150_v2 = vadd.f32 %v7149_v1, %v15150_v24  ;;  %7787 = vmatprep.mubr.bf16.mxu1 %v15330_v13  ;;  %v7381_v9 = vmax.f32 %v7148_v55, 0.0 }
 0x74a   : > { %v7151_v38 = vpop.f32.mrf.mxu0  ;;  %7788 = vmatmul.mubr.bf16.gmra.mxu1 %v15332_v16 }
 0x74b   : > { %v7152_v52 = vadd.f32 %v7151_v38, %v15147_v56  ;;  %v7382_v45 = vmax.f32 %v7150_v2, 0.0 }
 0x74c   : > { %v7155_v19 = vpop.f32.mrf.mxu0  ;;  %8247 = vmatmul.mubr.bf16.gmra.mxu0 %v15260_v50 }
 0x74d   : > { %v7383_v28 = vmax.f32 %v7152_v52, 0.0  ;;  %8256 = vmatprep.mubr.bf16.mxu0 %v15270_v43  ;;  %v15344_v44 = vpack.c.bf16 %v7382_v45, %v7380_v58  ;;  %v7156_v51 = vadd.f32 %v7155_v19, %v15150_v24 }
 0x74e   : > { %v7157_v30 = vpop.f32.mrf.mxu0 }
 0x74f   : > { %v15342_v40 = vpack.c.bf16 %v7383_v28, %v7381_v9  ;;  %v7158_v59 = vadd.f32 %v7157_v30, %v15147_v56  ;;  %v7384_v61 = vmax.f32 %v7156_v51, 0.0 }
 0x750   : > { %v7159_v8 = vpop.f32.mrf.mxu0 }
 0x751   : > { %v7160_v17 = vadd.f32 %v7159_v8, %v15150_v24  ;;  %7795 = vmatprep.mubr.bf16.mxu1 %v15342_v40  ;;  %v7385_v33 = vmax.f32 %v7158_v59, 0.0 }
 0x752   : > { %v7161_v46 = vpop.f32.mrf.mxu0  ;;  %7796 = vmatmul.mubr.bf16.gmra.mxu1 %v15344_v44 }
 0x753   : > { %v7162_v50 = vadd.f32 %v7161_v46, %v15147_v56  ;;  %v7386_v36 = vmax.f32 %v7160_v17, 0.0 }
 0x754   : > { %v7165_v43 = vpop.f32.mrf.mxu0  ;;  %8257 = vmatmul.mubr.bf16.gmra.mxu0 %v15272_v22 }
 0x755   : > { %v7387_v49 = vmax.f32 %v7162_v50, 0.0  ;;  %8266 = vmatprep.mubr.bf16.mxu0 %v15282_v18  ;;  %v15356_v3 = vpack.c.bf16 %v7386_v36, %v7384_v61  ;;  %v7166_v32 = vadd.f32 %v7165_v43, %v15150_v24 }
 0x756   : > { %v7167_v29 = vpop.f32.mrf.mxu0 }
 0x757   : > { %v15354_v37 = vpack.c.bf16 %v7387_v49, %v7385_v33  ;;  %v7168_v14 = vadd.f32 %v7167_v29, %v15147_v56  ;;  %v7388_v5 = vmax.f32 %v7166_v32, 0.0 }
 0x758   : > { %v7169_v15 = vpop.f32.mrf.mxu0 }
 0x759   : > { %v7170_v4 = vadd.f32 %v7169_v15, %v15150_v24  ;;  %7803 = vmatprep.mubr.bf16.mxu1 %v15354_v37  ;;  %v7389_v23 = vmax.f32 %v7168_v14, 0.0 }
 0x75a   : > { %v7171_v26 = vpop.f32.mrf.mxu0  ;;  %7804 = vmatmul.mubr.bf16.gmra.mxu1 %v15356_v3 }
 0x75b   : > { %v7172_v22 = vadd.f32 %v7171_v26, %v15147_v56  ;;  %v7390_v47 = vmax.f32 %v7170_v4, 0.0 }
 0x75c   : > { %v7175_v18 = vpop.f32.mrf.mxu0  ;;  %8267 = vmatmul.mubr.bf16.gmra.mxu0 %v15284_v25 }
 0x75d   : > { %v7391_v27 = vmax.f32 %v7172_v22, 0.0  ;;  %8276 = vmatprep.mubr.bf16.mxu0 %v15294_v34  ;;  %v15368_v41 = vpack.c.bf16 %v7390_v47, %v7388_v5  ;;  %v7176_v39 = vadd.f32 %v7175_v18, %v15150_v24 }
 0x75e   : > { %v7177_v60 = vpop.f32.mrf.mxu0 }
 0x75f   : > { %v15366_v48 = vpack.c.bf16 %v7391_v27, %v7389_v23  ;;  %v7178_v0 = vadd.f32 %v7177_v60, %v15147_v56  ;;  %v7392_v55 = vmax.f32 %v7176_v39, 0.0 }
 0x760   : > { %v7179_v31 = vpop.f32.mrf.mxu0 }
 0x761   : > { %v7180_v57 = vadd.f32 %v7179_v31, %v15150_v24  ;;  %7811 = vmatprep.mubr.bf16.mxu1 %v15366_v48  ;;  %v7393_v6 = vmax.f32 %v7178_v0, 0.0 }
 0x762   : > { %v7181_v63 = vpop.f32.mrf.mxu0  ;;  %7812 = vmatmul.mubr.bf16.gmra.mxu1 %v15368_v41 }
 0x763   : > { %v7182_v25 = vadd.f32 %v7181_v63, %v15147_v56  ;;  %v7394_v54 = vmax.f32 %v7180_v57, 0.0 }
 0x764   : > { %v7185_v34 = vpop.f32.mrf.mxu0  ;;  %8277 = vmatmul.mubr.bf16.gmra.mxu0 %v15296_v12 }
 0x765   : > { %v7395_v11 = vmax.f32 %v7182_v25, 0.0  ;;  %8286 = vmatprep.mubr.bf16.mxu0 %v15306_v10  ;;  %v15380_v7 = vpack.c.bf16 %v7394_v54, %v7392_v55  ;;  %v7186_v45 = vadd.f32 %v7185_v34, %v15150_v24 }
 0x766   : > { %v7187_v1 = vpop.f32.mrf.mxu0 }
 0x767   : > { %v15378_v2 = vpack.c.bf16 %v7395_v11, %v7393_v6  ;;  %v7188_v52 = vadd.f32 %v7187_v1, %v15147_v56  ;;  %v7396_v59 = vmax.f32 %v7186_v45, 0.0 }
 0x768   : > { %v7189_v38 = vpop.f32.mrf.mxu0 }
 0x769   : > { %v7190_v19 = vadd.f32 %v7189_v38, %v15150_v24  ;;  %7819 = vmatprep.mubr.bf16.mxu1 %v15378_v2  ;;  %v7397_v28 = vmax.f32 %v7188_v52, 0.0 }
 0x76a   : > { %v7191_v9 = vpop.f32.mrf.mxu0  ;;  %7820 = vmatmul.mubr.bf16.gmra.mxu1 %v15380_v7 }
 0x76b   : > { %v7192_v12 = vadd.f32 %v7191_v9, %v15147_v56  ;;  %v7398_v30 = vmax.f32 %v7190_v19, 0.0 }
 0x76c   : > { %v7195_v10 = vpop.f32.mrf.mxu0  ;;  %8287 = vmatmul.mubr.bf16.gmra.mxu0 %v15308_v21 }
 0x76d   : > { %v7399_v58 = vmax.f32 %v7192_v12, 0.0  ;;  %8296 = vmatprep.mubr.bf16.mxu0 %v15318_v62  ;;  %v15392_v51 = vpack.c.bf16 %v7398_v30, %v7396_v59  ;;  %v7196_v36 = vadd.f32 %v7195_v10, %v15150_v24 }
 0x76e   : > { %v7197_v8 = vpop.f32.mrf.mxu0 }
 0x76f   : > { %v15390_v17 = vpack.c.bf16 %v7399_v58, %v7397_v28  ;;  %v7198_v50 = vadd.f32 %v7197_v8, %v15147_v56  ;;  %v7400_v14 = vmax.f32 %v7196_v36, 0.0 }
 0x770   : > { %v7199_v46 = vpop.f32.mrf.mxu0 }
 0x771   : > { %v7200_v43 = vadd.f32 %v7199_v46, %v15150_v24  ;;  %7827 = vmatprep.mubr.bf16.mxu1 %v15390_v17  ;;  %v7401_v49 = vmax.f32 %v7198_v50, 0.0 }
 0x772   : > { %v7201_v33 = vpop.f32.mrf.mxu0  ;;  %7828 = vmatmul.mubr.bf16.gmra.mxu1 %v15392_v51 }
 0x773   : > { %v7202_v21 = vadd.f32 %v7201_v33, %v15147_v56  ;;  %v7402_v29 = vmax.f32 %v7200_v43, 0.0 }
 0x774   : > { %v7205_v62 = vpop.f32.mrf.mxu0  ;;  %8297 = vmatmul.mubr.bf16.gmra.mxu0 %v15320_v53 }
 0x775   : > { %v7403_v61 = vmax.f32 %v7202_v21, 0.0  ;;  %8306 = vmatprep.mubr.bf16.mxu0 %v15330_v13  ;;  %v15404_v32 = vpack.c.bf16 %v7402_v29, %v7400_v14  ;;  %v7206_v47 = vadd.f32 %v7205_v62, %v15150_v24 }
 0x776   : > { %v7207_v15 = vpop.f32.mrf.mxu0 }
 0x777   : > { %v15402_v4 = vpack.c.bf16 %v7403_v61, %v7401_v49  ;;  %v7208_v22 = vadd.f32 %v7207_v15, %v15147_v56  ;;  %v7404_v0 = vmax.f32 %v7206_v47, 0.0 }
 0x778   : > { %v7209_v26 = vpop.f32.mrf.mxu0 }
 0x779   : > { %v7210_v18 = vadd.f32 %v7209_v26, %v15150_v24  ;;  %7835 = vmatprep.mubr.bf16.mxu1 %v15402_v4  ;;  %v7405_v27 = vmax.f32 %v7208_v22, 0.0 }
 0x77a   : > { %v7211_v23 = vpop.f32.mrf.mxu0  ;;  %7836 = vmatmul.mubr.bf16.gmra.mxu1 %v15404_v32 }
 0x77b   : > { %v7212_v53 = vadd.f32 %v7211_v23, %v15147_v56  ;;  %v7406_v60 = vmax.f32 %v7210_v18, 0.0 }
 0x77c   : > { %v7215_v13 = vpop.f32.mrf.mxu0  ;;  %8307 = vmatmul.mubr.bf16.gmra.mxu0 %v15332_v16 }
 0x77d   : > { %v7407_v5 = vmax.f32 %v7212_v53, 0.0  ;;  %8316 = vmatprep.mubr.bf16.mxu0 %v15342_v40  ;;  %v15416_v39 = vpack.c.bf16 %v7406_v60, %v7404_v0  ;;  %v7216_v54 = vadd.f32 %v7215_v13, %v15150_v24 }
 0x77e   : > { %v7217_v31 = vpop.f32.mrf.mxu0 }
 0x77f   : > { %v15414_v57 = vpack.c.bf16 %v7407_v5, %v7405_v27  ;;  %v7218_v25 = vadd.f32 %v7217_v31, %v15147_v56  ;;  %v7408_v52 = vmax.f32 %v7216_v54, 0.0 }
 0x780   : > { %v7219_v63 = vpop.f32.mrf.mxu0 }
 0x781   : > { %v7220_v34 = vadd.f32 %v7219_v63, %v15150_v24  ;;  %7843 = vmatprep.mubr.bf16.mxu1 %v15414_v57  ;;  %v7409_v11 = vmax.f32 %v7218_v25, 0.0 }
 0x782   : > { %v7221_v6 = vpop.f32.mrf.mxu0  ;;  %7844 = vmatmul.mubr.bf16.gmra.mxu1 %v15416_v39 }
 0x783   : > { %v7222_v16 = vadd.f32 %v7221_v6, %v15147_v56  ;;  %v7410_v1 = vmax.f32 %v7220_v34, 0.0 }
 0x784   : > { %v7225_v40 = vpop.f32.mrf.mxu0  ;;  %8317 = vmatmul.mubr.bf16.gmra.mxu0 %v15344_v44 }
 0x785   : > { %v7411_v55 = vmax.f32 %v7222_v16, 0.0  ;;  %8326 = vmatprep.mubr.bf16.mxu0 %v15354_v37  ;;  %v15428_v45 = vpack.c.bf16 %v7410_v1, %v7408_v52  ;;  %v7226_v30 = vadd.f32 %v7225_v40, %v15150_v24 }
 0x786   : > { %v7227_v38 = vpop.f32.mrf.mxu0 }
 0x787   : > { %v15426_v19 = vpack.c.bf16 %v7411_v55, %v7409_v11  ;;  %v7228_v12 = vadd.f32 %v7227_v38, %v15147_v56  ;;  %v7412_v50 = vmax.f32 %v7226_v30, 0.0 }
 0x788   : > { %v7229_v9 = vpop.f32.mrf.mxu0 }
 0x789   : > { %v7230_v10 = vadd.f32 %v7229_v9, %v15150_v24  ;;  %7851 = vmatprep.mubr.bf16.mxu1 %v15426_v19  ;;  %v7413_v58 = vmax.f32 %v7228_v12, 0.0 }
 0x78a   : > { %v7231_v28 = vpop.f32.mrf.mxu0  ;;  %7852 = vmatmul.mubr.bf16.gmra.mxu1 %v15428_v45 }
 0x78b   : > { %v7232_v44 = vadd.f32 %v7231_v28, %v15147_v56  ;;  %v7414_v8 = vmax.f32 %v7230_v10, 0.0 }
 0x78c   : > { %v7235_v37 = vpop.f32.mrf.mxu0  ;;  %8327 = vmatmul.mubr.bf16.gmra.mxu0 %v15356_v3 }
 0x78d   : > { %v7415_v59 = vmax.f32 %v7232_v44, 0.0  ;;  %8336 = vmatprep.mubr.bf16.mxu0 %v15366_v48  ;;  %v15440_v36 = vpack.c.bf16 %v7414_v8, %v7412_v50  ;;  %v7236_v29 = vadd.f32 %v7235_v37, %v15150_v24 }
 0x78e   : > { %v7237_v46 = vpop.f32.mrf.mxu0 }
 0x78f   : > { %v15438_v43 = vpack.c.bf16 %v7415_v59, %v7413_v58  ;;  %v7238_v21 = vadd.f32 %v7237_v46, %v15147_v56  ;;  %v7416_v22 = vmax.f32 %v7236_v29, 0.0 }
 0x790   : > { %v7239_v33 = vpop.f32.mrf.mxu0 }
 0x791   : > { %v7240_v62 = vadd.f32 %v7239_v33, %v15150_v24  ;;  %7859 = vmatprep.mubr.bf16.mxu1 %v15438_v43  ;;  %v7417_v61 = vmax.f32 %v7238_v21, 0.0 }
 0x792   : > { %v7241_v49 = vpop.f32.mrf.mxu0  ;;  %7860 = vmatmul.mubr.bf16.gmra.mxu1 %v15440_v36 }
 0x793   : > { %v7242_v3 = vadd.f32 %v7241_v49, %v15147_v56  ;;  %v7418_v15 = vmax.f32 %v7240_v62, 0.0 }
 0x794   : > { %v7245_v48 = vpop.f32.mrf.mxu0  ;;  %8337 = vmatmul.mubr.bf16.gmra.mxu0 %v15368_v41 }
 0x795   : > { %v7419_v14 = vmax.f32 %v7242_v3, 0.0  ;;  %8346 = vmatprep.mubr.bf16.mxu0 %v15378_v2  ;;  %v15452_v47 = vpack.c.bf16 %v7418_v15, %v7416_v22  ;;  %v7246_v60 = vadd.f32 %v7245_v48, %v15150_v24 }
 0x796   : > { %v7247_v26 = vpop.f32.mrf.mxu0 }
 0x797   : > { %v15450_v18 = vpack.c.bf16 %v7419_v14, %v7417_v61  ;;  %v7248_v53 = vadd.f32 %v7247_v26, %v15147_v56  ;;  %v7420_v25 = vmax.f32 %v7246_v60, 0.0 }
 0x798   : > { %v7249_v23 = vpop.f32.mrf.mxu0 }
 0x799   : > { %v7250_v13 = vadd.f32 %v7249_v23, %v15150_v24  ;;  %7867 = vmatprep.mubr.bf16.mxu1 %v15450_v18  ;;  %v7421_v5 = vmax.f32 %v7248_v53, 0.0 }
 0x79a   : > { %v7251_v27 = vpop.f32.mrf.mxu0  ;;  %7868 = vmatmul.mubr.bf16.gmra.mxu1 %v15452_v47 }
 0x79b   : > { %v7252_v41 = vadd.f32 %v7251_v27, %v15147_v56  ;;  %v7422_v31 = vmax.f32 %v7250_v13, 0.0 }
 0x79c   : > { %v7255_v2 = vpop.f32.mrf.mxu0  ;;  %8347 = vmatmul.mubr.bf16.gmra.mxu0 %v15380_v7 }
 0x79d   : > { %v7423_v0 = vmax.f32 %v7252_v41, 0.0  ;;  %8356 = vmatprep.mubr.bf16.mxu0 %v15390_v17  ;;  %v15464_v54 = vpack.c.bf16 %v7422_v31, %v7420_v25  ;;  %v7256_v1 = vadd.f32 %v7255_v2, %v15150_v24 }
 0x79e   : > { %v7257_v63 = vpop.f32.mrf.mxu0 }
 0x79f   : > { %v15462_v34 = vpack.c.bf16 %v7423_v0, %v7421_v5  ;;  %v7258_v16 = vadd.f32 %v7257_v63, %v15147_v56  ;;  %v7424_v10 = vmax.f32 %v7256_v1, 0.0 }
 0x7a0   : > { %v7259_v6 = vpop.f32.mrf.mxu0 }
 0x7a1   : > { %v7260_v40 = vadd.f32 %v7259_v6, %v15150_v24  ;;  %7875 = vmatprep.mubr.bf16.mxu1 %v15462_v34  ;;  %v7425_v17 = vmax.f32 %v7258_v16, 0.0 }
 0x7a2   : > { %v7261_v11 = vpop.f32.mrf.mxu0  ;;  %v15471_v55 = vpop.f32.mrf.mxu1  ;;  %7876 = vmatmul.mubr.bf16.gmra.mxu1 %v15464_v54 }
 0x7a3   : > { %v7262_v7 = vadd.f32 %v7261_v11, %v15147_v56  ;;  %17357 = vst [vmem:[#allocation14_spill] sm:$0xff] %v15471_v55  ;;  %v7426_v38 = vmax.f32 %v7260_v40, 0.0 }
 0x7a4   : > { %v7265_v9 = vpop.f32.mrf.mxu0  ;;  %v7687_v12 = vpop.f32.mrf.mxu1  ;;  %8357 = vmatmul.mubr.bf16.gmra.mxu0 %v15392_v51 }
 0x7a5   : > { %v7427_v52 = vmax.f32 %v7262_v7, 0.0  ;;  %8366 = vmatprep.mubr.bf16.mxu0 %v15402_v4  ;;  %v15480_v37 = vpack.c.bf16 %v7426_v38, %v7424_v10  ;;  %v7266_v51 = vadd.f32 %v7265_v9, %v15150_v24 }
 0x7a6   : > { %v7267_v28 = vpop.f32.mrf.mxu0  ;;  %v15476_v30 = vpop.f32.mrf.mxu1 }
 0x7a7   : > { %17358 = vst [vmem:[#allocation15_spill] sm:$0xff] %v15476_v30  ;;  %v15478_v44 = vpack.c.bf16 %v7427_v52, %v7425_v17  ;;  %v7268_v59 = vadd.f32 %v7267_v28, %v15147_v56  ;;  %v7428_v48 = vmax.f32 %v7266_v51, 0.0 }
 0x7a8   : > { %v7269_v58 = vpop.f32.mrf.mxu0  ;;  %v7690_v8 = vpop.f32.mrf.mxu1 }
 0x7a9   : > { %7883 = vmatprep.mubr.bf16.mxu1 %v15478_v44  ;;  %v7270_v46 = vadd.f32 %v7269_v58, %v15150_v24  ;;  %v7429_v29 = vmax.f32 %v7268_v59, 0.0 }
 0x7aa   : > { %v7271_v50 = vpop.f32.mrf.mxu0  ;;  %v15486_v4 = vpop.f32.mrf.mxu1  ;;  %7884 = vmatmul.mubr.bf16.gmra.mxu1 %v15480_v37 }
 0x7ab   : > { %17359 = vst [vmem:[#allocation16_spill] sm:$0xff] %v15486_v4  ;;  %v7272_v33 = vadd.f32 %v7271_v50, %v15147_v56  ;;  %v7430_v21 = vmax.f32 %v7270_v46, 0.0 }
 0x7ac   : > { %v7275_v62 = vpop.f32.mrf.mxu0  ;;  %v7695_v49 = vpop.f32.mrf.mxu1  ;;  %8367 = vmatmul.mubr.bf16.gmra.mxu0 %v15404_v32 }
 0x7ad   : > { %v7431_v3 = vmax.f32 %v7272_v33, 0.0  ;;  %8376 = vmatprep.mubr.bf16.mxu0 %v15414_v57  ;;  %v15496_v26 = vpack.c.bf16 %v7430_v21, %v7428_v48  ;;  %v7276_v32 = vadd.f32 %v7275_v62, %v15150_v24 }
 0x7ae   : > { %v7277_v61 = vpop.f32.mrf.mxu0  ;;  %v15492_v15 = vpop.f32.mrf.mxu1 }
 0x7af   : > { %17360 = vst [vmem:[#allocation18_spill] sm:$0xff] %v15492_v15  ;;  %v15494_v14 = vpack.c.bf16 %v7431_v3, %v7429_v29  ;;  %v7278_v53 = vadd.f32 %v7277_v61, %v15147_v56  ;;  %v7432_v63 = vmax.f32 %v7276_v32, 0.0 }
 0x7b0   : > { %v7279_v22 = vpop.f32.mrf.mxu0  ;;  %v7698_v23 = vpop.f32.mrf.mxu1 }
 0x7b1   : > { %v7280_v13 = vadd.f32 %v7279_v22, %v15150_v24  ;;  %7891 = vmatprep.mubr.bf16.mxu1 %v15494_v14  ;;  %v7433_v31 = vmax.f32 %v7278_v53, 0.0 }
 0x7b2   : > { %v7281_v27 = vpop.f32.mrf.mxu0  ;;  %v15502_v57 = vpop.f32.mrf.mxu1  ;;  %7892 = vmatmul.mubr.bf16.gmra.mxu1 %v15496_v26 }
 0x7b3   : > { %17361 = vst [vmem:[#allocation17_spill] sm:$0xff] %v15502_v57  ;;  %v7282_v60 = vadd.f32 %v7281_v27, %v15147_v56  ;;  %v7434_v41 = vmax.f32 %v7280_v13, 0.0 }
 0x7b4   : > { %v7285_v2 = vpop.f32.mrf.mxu0  ;;  %v7703_v5 = vpop.f32.mrf.mxu1  ;;  %8377 = vmatmul.mubr.bf16.gmra.mxu0 %v15416_v39 }
 0x7b5   : > { %v7435_v0 = vmax.f32 %v7282_v60, 0.0  ;;  %8386 = vmatprep.mubr.bf16.mxu0 %v15426_v19  ;;  %v15512_v40 = vpack.c.bf16 %v7434_v41, %v7432_v63  ;;  %v7286_v39 = vadd.f32 %v7285_v2, %v15150_v24 }
 0x7b6   : > { %v7287_v25 = vpop.f32.mrf.mxu0  ;;  %v15508_v6 = vpop.f32.mrf.mxu1 }
 0x7b7   : > { %17362 = vst [vmem:[#allocation19_spill] sm:$0xff] %v15508_v6  ;;  %v15510_v16 = vpack.c.bf16 %v7435_v0, %v7433_v31  ;;  %v7288_v7 = vadd.f32 %v7287_v25, %v15147_v56  ;;  %v7436_v8 = vmax.f32 %v7286_v39, 0.0  ;;  %v1009_v6 = vld [vmem:[%s15570_s2 + $0x158] sm:$0xff] }
 0x7b8   : > { %v7289_v11 = vpop.f32.mrf.mxu0  ;;  %v7706_v1 = vpop.f32.mrf.mxu1 }
 0x7b9   : > { %v7290_v17 = vadd.f32 %v7289_v11, %v15150_v24  ;;  %7899 = vmatprep.mubr.bf16.mxu1 %v15510_v16  ;;  %v7437_v28 = vmax.f32 %v7288_v7, 0.0 }
 0x7ba   : > { %v7291_v38 = vpop.f32.mrf.mxu0  ;;  %v15518_v19 = vpop.f32.mrf.mxu1  ;;  %7900 = vmatmul.mubr.bf16.gmra.mxu1 %v15512_v40 }
 0x7bb   : > { %17363 = vst [vmem:[#allocation20_spill] sm:$0xff] %v15518_v19  ;;  %v7292_v52 = vadd.f32 %v7291_v38, %v15147_v56  ;;  %v7438_v9 = vmax.f32 %v7290_v17, 0.0 }
 0x7bc   : > { %v7295_v12 = vpop.f32.mrf.mxu0  ;;  %v7711_v10 = vpop.f32.mrf.mxu1  ;;  %8387 = vmatmul.mubr.bf16.gmra.mxu0 %v15428_v45 }
 0x7bd   : > { %v7439_v58 = vmax.f32 %v7292_v52, 0.0  ;;  %8396 = vmatprep.mubr.bf16.mxu0 %v15438_v43  ;;  %v15528_v50 = vpack.c.bf16 %v7438_v9, %v7436_v8  ;;  %v7296_v45 = vadd.f32 %v7295_v12, %v15150_v24 }
 0x7be   : > { %v7297_v59 = vpop.f32.mrf.mxu0  ;;  %v15524_v46 = vpop.f32.mrf.mxu1 }
 0x7bf   : > { %17364 = vst [vmem:[#allocation22_spill] sm:$0xff] %v15524_v46  ;;  %v15526_v51 = vpack.c.bf16 %v7439_v58, %v7437_v28  ;;  %v7298_v62 = vadd.f32 %v7297_v59, %v15147_v56  ;;  %v7440_v13 = vmax.f32 %v7296_v45, 0.0 }
 0x7c0   : > { %v7299_v33 = vpop.f32.mrf.mxu0  ;;  %v7714_v21 = vpop.f32.mrf.mxu1 }
 0x7c1   : > { %v7300_v49 = vadd.f32 %v7299_v33, %v15150_v24  ;;  %7907 = vmatprep.mubr.bf16.mxu1 %v15526_v51  ;;  %v7441_v23 = vmax.f32 %v7298_v62, 0.0  ;;  %v7972_v21 = vld [vmem:[%s17152_s22] sm:$0x3] }
 0x7c2   : > { %v7301_v29 = vpop.f32.mrf.mxu0  ;;  %v15534_v43 = vpop.f32.mrf.mxu1  ;;  %7908 = vmatmul.mubr.bf16.gmra.mxu1 %v15528_v50 }
 0x7c3   : > { %17365 = vst [vmem:[#allocation21_spill] sm:$0xff] %v15534_v43  ;;  %v7302_v3 = vadd.f32 %v7301_v29, %v15147_v56  ;;  %v7442_v48 = vmax.f32 %v7300_v49, 0.0 }
 0x7c4   : > { %v7305_v61 = vpop.f32.mrf.mxu0  ;;  %v7719_v22 = vpop.f32.mrf.mxu1  ;;  %8397 = vmatmul.mubr.bf16.gmra.mxu0 %v15440_v36 }
 0x7c5   : > { %v7443_v53 = vmax.f32 %v7302_v3, 0.0  ;;  %8406 = vmatprep.mubr.bf16.mxu0 %v15450_v18  ;;  %v15544_v41 = vpack.c.bf16 %v7442_v48, %v7440_v13  ;;  %v7306_v36 = vadd.f32 %v7305_v61, %v15150_v24  ;;  %v966_v3 = vld [vmem:[%s15570_s2] sm:$0xff]  ;;  %v967_v48 = vld [vmem:[%s15570_s2 + $0x8] sm:$0xff]  ;;  %v15584_v22 = vrot.slane %v7972_v21, %v12596_v42 }
 0x7c6   : > { %v7307_v32 = vpop.f32.mrf.mxu0  ;;  %v15540_v27 = vpop.f32.mrf.mxu1 }
 0x7c7   : > { %17366 = vst [vmem:[#allocation23_spill] sm:$0xff] %v15540_v27  ;;  %v15542_v60 = vpack.c.bf16 %v7443_v53, %v7441_v23  ;;  %v7308_v31 = vadd.f32 %v7307_v32, %v15147_v56  ;;  %v7444_v38 = vmax.f32 %v7306_v36, 0.0 }
 0x7c8   : > { %v7309_v2 = vpop.f32.mrf.mxu0  ;;  %v7722_v5 = vpop.f32.mrf.mxu1 }
 0x7c9   : > { %v7310_v0 = vadd.f32 %v7309_v2, %v15150_v24  ;;  %7915 = vmatprep.mubr.bf16.mxu1 %v15542_v60  ;;  %v7445_v17 = vmax.f32 %v7308_v31, 0.0 }
 0x7ca   : > { %v7311_v63 = vpop.f32.mrf.mxu0  ;;  %v15550_v18 = vpop.f32.mrf.mxu1  ;;  %7916 = vmatmul.mubr.bf16.gmra.mxu1 %v15544_v41 }
 0x7cb   : > { %17367 = vst [vmem:[#allocation24_spill] sm:$0xff] %v15550_v18  ;;  %v7312_v25 = vadd.f32 %v7311_v63, %v15147_v56  ;;  %v7446_v11 = vmax.f32 %v7310_v0, 0.0 }
 0x7cc   : > { %v7315_v1 = vpop.f32.mrf.mxu0  ;;  %v7727_v7 = vpop.f32.mrf.mxu1  ;;  %8407 = vmatmul.mubr.bf16.gmra.mxu0 %v15452_v47 }
 0x7cd   : > { %v7447_v39 = vmax.f32 %v7312_v25, 0.0  ;;  %8416 = vmatprep.mubr.bf16.mxu0 %v15462_v34  ;;  %v15560_v10 = vpack.c.bf16 %v7446_v11, %v7444_v38  ;;  %v7316_v47 = vadd.f32 %v7315_v1, %v15150_v24  ;;  %v968_v11 = vld [vmem:[%s15570_s2 + $0x10] sm:$0xff]  ;;  %v969_v1 = vld [vmem:[%s15570_s2 + $0x18] sm:$0xff]  ;;  %v971_v38 = vld [vmem:[%s15570_s2 + $0x28] sm:$0xff] }
 0x7ce   : > { %v7317_v52 = vpop.f32.mrf.mxu0  ;;  %v15556_v9 = vpop.f32.mrf.mxu1 }
 0x7cf   : > { %17368 = vst [vmem:[#allocation25_spill] sm:$0xff] %v15556_v9  ;;  %v15558_v12 = vpack.c.bf16 %v7447_v39, %v7445_v17  ;;  %v7318_v8 = vadd.f32 %v7317_v52, %v15147_v56  ;;  %v7448_v23 = vmax.f32 %v7316_v47, 0.0  ;;  %v970_v39 = vld [vmem:[%s15570_s2 + $0x20] sm:$0xff] }
 0x7d0   : > { %v7319_v28 = vpop.f32.mrf.mxu0  ;;  %v7730_v58 = vpop.f32.mrf.mxu1  ;;  %v1032_v47 = vpack.c.bf16 %v971_v38, %v970_v39 }
 0x7d1   : > { %v7320_v59 = vadd.f32 %v7319_v28, %v15150_v24  ;;  %7923 = vmatprep.mubr.bf16.mxu1 %v15558_v12  ;;  %v7449_v61 = vmax.f32 %v7318_v8, 0.0  ;;  %v1031_v8 = vpack.c.bf16 %v969_v1, %v968_v11 }
 0x7d2   : > { %v7321_v34 = vpop.f32.mrf.mxu0  ;;  %v15573_v33 = vpop.f32.mrf.mxu1  ;;  %7924 = vmatmul.mubr.bf16.gmra.mxu1 %v15560_v10 }
 0x7d3   : > { %17371 = vst [vmem:[#allocation26_spill] sm:$0xff] %v15573_v33  ;;  %v7322_v62 = vadd.f32 %v7321_v34, %v15147_v56  ;;  %v7450_v49 = vmax.f32 %v7320_v59, 0.0  ;;  %v15590_v56 = vrot.slane %v7972_v21, %v17355_v35  ;;  %v11683_v59 = vld [vmem:[%s17153_s23 + $0x38] sm:$0xff]  }
 0x7d4   : > { %v7735_v45 = vpop.f32.mrf.mxu1  ;;  %v8178_v29 = vpop.f32.mrf.mxu0  ;;  %8417 = vmatmul.mubr.bf16.gmra.mxu0 %v15464_v54  ;;  %v1030_v54 = vpack.c.bf16 %v967_v48, %v966_v3  ;;  %v972_v48 = vld [vmem:[%s15570_s2 + $0x30] sm:$0xff] }
 0x7d5   : > { %v7451_v24 = vmax.f32 %v7322_v62, 0.0  ;;  %8426 = vmatprep.mubr.bf16.mxu0 %v15478_v44  ;;  %v15594_v2 = vpack.c.bf16 %v7450_v49, %v7448_v23  ;;  %v15597_v42 = vadd.f32 %v8178_v29, %v15584_v22  ;;  %v987_v29 = vld [vmem:[%s15570_s2 + $0xa8] sm:$0xff] }
 0x7d6   : > { %v15587_v53 = vpop.f32.mrf.mxu1  ;;  %v8180_v13 = vpop.f32.mrf.mxu0 }
 0x7d7   : > { %17372 = vst [vmem:[#allocation27_spill] sm:$0xff] %v15587_v53  ;;  %v15592_v32 = vpack.c.bf16 %v7451_v24, %v7449_v61  ;;  %v15607_v36 = vadd.f32 %v8180_v13, %v15590_v56  ;;  %v973_v61 = vld [vmem:[%s15570_s2 + $0x38] sm:$0xff]  ;;  %v11684_v24 = vld [vmem:[%s17153_s23 + $0x30] sm:$0xff]  }
 0x7d8   : > { %v7738_v5 = vpop.f32.mrf.mxu1  ;;  %v8182_v31 = vpop.f32.mrf.mxu0  ;;  %v1033_v1 = vpack.c.bf16 %v973_v61, %v972_v48  ;;  %v11686_v48 = vld [vmem:[%s17153_s23 + $0x20] sm:$0xff]  }
 0x7d9   : > { %v15600_v44 = vadd.f32 %v8182_v31, %v15584_v22  ;;  %7931 = vmatprep.mubr.bf16.mxu1 %v15592_v32  ;;  %v975_v5 = vld [vmem:[%s15570_s2 + $0x48] sm:$0xff] }
 0x7da   : > { %v15603_v35 = vpop.f32.mrf.mxu1  ;;  %7932 = vmatmul.mubr.bf16.gmra.mxu1 %v15594_v2  ;;  %v8184_v0 = vpop.f32.mrf.mxu0 }
 0x7db   : > { %17373 = vst [vmem:[#allocation29_spill] sm:$0xff] %v15603_v35  ;;  %v15612_v25 = vadd.f32 %v8184_v0, %v15590_v56  ;;  %11078 = vmatprep.mubr.msk.bf16.mxu1 %vm8605_vm4, %v1030_v54  ;;  %v974_v54 = vld [vmem:[%s15570_s2 + $0x40] sm:$0xff] }
 0x7dc   : > { %v7743_v7 = vpop.f32.mrf.mxu1  ;;  %v8188_v17 = vpop.f32.mrf.mxu0  ;;  %8427 = vmatmul.mubr.bf16.gmra.mxu0 %v15480_v37 }
 0x7dd   : > { %8436 = vmatprep.mubr.bf16.mxu0 %v15494_v14  ;;  %v15629_v21 = vadd.f32 %v8188_v17, %v15584_v22  ;;  %v1034_v7 = vpack.c.bf16 %v975_v5, %v974_v54 }
 0x7de   : > { %v15623_v28 = vpop.f32.mrf.mxu1  ;;  %v8190_v58 = vpop.f32.mrf.mxu0 }
 0x7df   : > { %17374 = vst [vmem:[#allocation28_spill] sm:$0xff] %v15623_v28  ;;  %v15638_v45 = vadd.f32 %v8190_v58, %v15590_v56 }
 0x7e0   : > { %v7746_v34 = vpop.f32.mrf.mxu1  ;;  %v8192_v37 = vpop.f32.mrf.mxu0 }
 0x7e1   : > { %v15632_v62 = vadd.f32 %v8192_v37, %v15584_v22  ;;  %v976_v37 = vld [vmem:[%s15570_s2 + $0x50] sm:$0xff] }
 0x7e2   : > { %v15634_v14 = vpop.f32.mrf.mxu1  ;;  %v8194_v49 = vpop.f32.mrf.mxu0  ;;  %11079 = vmatmul.mubr.msk.bf16.vlgmr.msra.gmra.mxu1 %vm8605_vm4, %v1031_v8 }
 0x7e3   : > { %17375 = vst [vmem:[#allocation30_spill] sm:$0xff] %v15634_v14  ;;  %v15643_v3 = vadd.f32 %v8194_v49, %v15590_v56  ;;  %9094 = vmatpush1.bf16.msra.mxu1 %v11683_v59  ;;  %11082 = vmatprep.mubr.msk.bf16.mxu1 %vm8605_vm4, %v1032_v47  ;;  %v977_v49 = vld [vmem:[%s15570_s2 + $0x58] sm:$0xff] }
 0x7e4   : > { %v7751_v23 = vpop.f32.mrf.mxu1  ;;  %v8198_v13 = vpop.f32.mrf.mxu0  ;;  %8437 = vmatmul.mubr.bf16.gmra.mxu0 %v15496_v26  ;;  %9095 = vmatprep.subr.bf16.mxu1 %v17233_v20  ;;  %v11685_v26 = vld [vmem:[%s17153_s23 + $0x28] sm:$0xff]  }
 0x7e5   : > { %8446 = vmatprep.mubr.bf16.mxu0 %v15510_v16  ;;  %v15665_v38 = vadd.f32 %v8198_v13, %v15584_v22  ;;  %v978_v23 = vld [vmem:[%s15570_s2 + $0x60] sm:$0xff]  ;;  %v979_v13 = vld [vmem:[%s15570_s2 + $0x68] sm:$0xff] }
 0x7e6   : > { %v15658_v0 = vpop.f32.mrf.mxu1  ;;  %v8200_v11 = vpop.f32.mrf.mxu0 }
 0x7e7   : > { %17376 = vst [vmem:[#allocation31_spill] sm:$0xff] %v15658_v0  ;;  %9096 = vmatpush1.bf16.msra.mxu1 %v11684_v24  ;;  %v15674_v59 = vadd.f32 %v8200_v11, %v15590_v56 }
 0x7e8   : > { %v7754_v17 = vpop.f32.mrf.mxu1  ;;  %v8202_v39 = vpop.f32.mrf.mxu0  ;;  %9097 = vmatprep.subr.bf16.mxu1 %v17233_v20 }
 0x7e9   : > { %v15668_v16 = vadd.f32 %v8202_v39, %v15584_v22 }
 0x7ea   : > { %v15670_v58 = vpop.f32.mrf.mxu1  ;;  %v8204_v8 = vpop.f32.mrf.mxu0  ;;  %11083 = vmatmul.mubr.msk.bf16.gmra.mxu1 %vm8605_vm4, %v1033_v1  ;;  %v1035_v1 = vpack.c.bf16 %v977_v49, %v976_v37 }
 0x7eb   : > { %17377 = vst [vmem:[#allocation33_spill] sm:$0xff] %v15670_v58  ;;  %v15679_v34 = vadd.f32 %v8204_v8, %v15590_v56  ;;  %11086 = vmatprep.mubr.msk.bf16.mxu1 %vm8605_vm4, %v1034_v7  ;;  %9098 = vmatpush1.bf16.msra.mxu1 %v11685_v26  ;;  %v1036_v7 = vpack.c.bf16 %v979_v13, %v978_v23  ;;  %v981_v23 = vld [vmem:[%s15570_s2 + $0x78] sm:$0xff]  ;;  %v11688_v13 = vld [vmem:[%s17153_s23 + $0x10] sm:$0xff]  }
 0x7ec   : > { %v7759_v61 = vpop.f32.mrf.mxu1  ;;  %v8208_v24 = vpop.f32.mrf.mxu0  ;;  %8447 = vmatmul.mubr.bf16.gmra.mxu0 %v15512_v40  ;;  %9099 = vmatprep.subr.bf16.mxu1 %v17233_v20  ;;  %v11687_v40 = vld [vmem:[%s17153_s23 + $0x18] sm:$0xff]  }
 0x7ed   : > { %8456 = vmatprep.mubr.bf16.mxu0 %v15526_v51  ;;  %v15701_v39 = vadd.f32 %v8208_v24, %v15584_v22  ;;  %v980_v24 = vld [vmem:[%s15570_s2 + $0x70] sm:$0xff] }
 0x7ee   : > { %v15694_v5 = vpop.f32.mrf.mxu1  ;;  %v8210_v11 = vpop.f32.mrf.mxu0 }
 0x7ef   : > { %17378 = vst [vmem:[#allocation32_spill] sm:$0xff] %v15694_v5  ;;  %9100 = vmatpush1.bf16.msra.mxu1 %v11686_v48  ;;  %v15710_v49 = vadd.f32 %v8210_v11, %v15590_v56  ;;  %v982_v11 = vld [vmem:[%s15570_s2 + $0x80] sm:$0xff] }
 0x7f0   : > { %v7762_v26 = vpop.f32.mrf.mxu1  ;;  %v8212_v17 = vpop.f32.mrf.mxu0  ;;  %9101 = vmatprep.subr.bf16.mxu1 %v17233_v20 }
 0x7f1   : > { %v15704_v51 = vadd.f32 %v8212_v17, %v15584_v22  ;;  %v983_v17 = vld [vmem:[%s15570_s2 + $0x88] sm:$0xff] }
 0x7f2   : > { %v15706_v8 = vpop.f32.mrf.mxu1  ;;  %v8214_v37 = vpop.f32.mrf.mxu0  ;;  %11087 = vmatmul.mubr.msk.bf16.gmra.mxu1 %vm8605_vm4, %v1035_v1  ;;  %v1038_v48 = vpack.c.bf16 %v983_v17, %v982_v11  ;;  %v986_v17 = vld [vmem:[%s15570_s2 + $0xa0] sm:$0xff] }
 0x7f3   : > { %17379 = vst [vmem:[#allocation34_spill] sm:$0xff] %v15706_v8  ;;  %v15715_v61 = vadd.f32 %v8214_v37, %v15590_v56  ;;  %11090 = vmatprep.mubr.msk.bf16.mxu1 %vm8605_vm4, %v1036_v7  ;;  %9102 = vmatpush1.bf16.msra.mxu1 %v11687_v40  ;;  %v1040_v31 = vpack.c.bf16 %v987_v29, %v986_v17  ;;  %v988_v29 = vld [vmem:[%s15570_s2 + $0xb0] sm:$0xff] }
 0x7f4   : > { %v7767_v26 = vpop.f32.mrf.mxu1  ;;  %v15723_v1 = vpop.f32.mrf.mxu0  ;;  %8457 = vmatmul.mubr.bf16.gmra.mxu0 %v15528_v50  ;;  %9103 = vmatprep.subr.bf16.mxu1 %v17233_v20  ;;  %v11689_v50 = vld [vmem:[%s17153_s23 + $0x8] sm:$0xff]  }
 0x7f5   : > { %8466 = vmatprep.mubr.bf16.mxu0 %v15542_v60  ;;  %v1037_v26 = vpack.c.bf16 %v981_v23, %v980_v24  ;;  %v984_v24 = vld [vmem:[%s15570_s2 + $0x90] sm:$0xff]  ;;  %v985_v23 = vld [vmem:[%s15570_s2 + $0x98] sm:$0xff] }
 0x7f6   : > { %v15732_v40 = vpop.f32.mrf.mxu1  ;;  %v15734_v37 = vpop.f32.mrf.mxu0 }
 0x7f7   : > { %17380 = vst [vmem:[#allocation35_spill] sm:$0xff] %v15732_v40  ;;  %9104 = vmatpush1.bf16.msra.mxu1 %v11688_v13  ;;  %v11690_v13 = vld [vmem:[%s17153_s23] sm:$0xff]  }
 0x7f8   : > { %v7770_v47 = vpop.f32.mrf.mxu1  ;;  %v15739_v54 = vpop.f32.mrf.mxu0  ;;  %9105 = vmatprep.subr.bf16.mxu1 %v17233_v20 }
 0x7fa   : > { %v15742_v7 = vpop.f32.mrf.mxu1  ;;  %v15744_v60 = vpop.f32.mrf.mxu0  ;;  %11091 = vmatmul.mubr.msk.bf16.gmra.mxu1 %vm8605_vm4, %v1037_v26 }
 0x7fb   : > { %17381 = vst [vmem:[#allocation37_spill] sm:$0xff] %v15742_v7  ;;  %11094 = vmatprep.mubr.msk.bf16.mxu1 %vm8605_vm4, %v1038_v48  ;;  %9106 = vmatpush1.bf16.msra.mxu1 %v11689_v50  ;;  %v1039_v50 = vpack.c.bf16 %v985_v23, %v984_v24  ;;  %v989_v24 = vld [vmem:[%s15570_s2 + $0xb8] sm:$0xff]  ;;  %v11692_v23 = vld [vmem:[%s17153_s23 + $0x70] sm:$0xff]  }
 0x7fc   : > { %v7775_v47 = vpop.f32.mrf.mxu1  ;;  %v15753_v11 = vpop.f32.mrf.mxu0  ;;  %8467 = vmatmul.mubr.bf16.gmra.mxu0 %v15544_v41  ;;  %9107 = vmatprep.subr.bf16.mxu1 %v17233_v20  ;;  %v11691_v41 = vld [vmem:[%s17153_s23 + $0x78] sm:$0xff]  }
 0x7fd   : > { %8476 = vmatprep.mubr.bf16.mxu0 %v15558_v12 }
 0x7fe   : > { %v15760_v48 = vpop.f32.mrf.mxu1  ;;  %v15762_v26 = vpop.f32.mrf.mxu0 }
 0x7ff   : > { %17382 = vst [vmem:[#allocation36_spill] sm:$0xff] %v15760_v48  ;;  %9108 = vmatpush1.bf16.msra.mxu1 %v11690_v13 }
 0x800   : > { %v7778_v47 = vpop.f32.mrf.mxu1  ;;  %v15767_v63 = vpop.f32.mrf.mxu0  ;;  %9109 = vmatprep.subr.bf16.mxu1 %v17233_v20 }
 0x801   : > { %v990_v47 = vld [vmem:[%s15570_s2 + $0xc0] sm:$0xff] }
 0x802   : > { %v15770_v52 = vpop.f32.mrf.mxu1  ;;  %v15772_v12 = vpop.f32.mrf.mxu0  ;;  %11095 = vmatmul.mubr.msk.bf16.gmra.mxu1 %vm8605_vm4, %v1039_v50 }
 0x803   : > { %17383 = vst [vmem:[#allocation38_spill] sm:$0xff] %v15770_v52  ;;  %11098 = vmatprep.mubr.msk.bf16.mxu1 %vm8605_vm4, %v1040_v31  ;;  %9110 = vmatpush2.bf16.msra.mxu1 %v11691_v41  ;;  %v991_v52 = vld [vmem:[%s15570_s2 + $0xc8] sm:$0xff]  ;;  %v1041_v41 = vpack.c.bf16 %v989_v24, %v988_v29  ;;  %v993_v29 = vld [vmem:[%s15570_s2 + $0xd8] sm:$0xff]  ;;  %v11694_v24 = vld [vmem:[%s17153_s23 + $0x60] sm:$0xff]  }
 0x804   : > { %v7783_v13 = vpop.f32.mrf.mxu1  ;;  %v15781_v17 = vpop.f32.mrf.mxu0  ;;  %8477 = vmatmul.mubr.bf16.gmra.mxu0 %v15560_v10  ;;  %9111 = vmatprep.subr.bf16.mxu1 %v17233_v20  ;;  %v1042_v40 = vpack.c.bf16 %v991_v52, %v990_v47  ;;  %v11693_v10 = vld [vmem:[%s17153_s23 + $0x68] sm:$0xff]   ;;  %v992_v52 = vld [vmem:[%s15570_s2 + $0xd0] sm:$0xff] }
 0x805   : > { %8486 = vmatprep.mubr.bf16.mxu0 %v15592_v32 }
 0x806   : > { %v15788_v31 = vpop.f32.mrf.mxu1  ;;  %v15790_v50 = vpop.f32.mrf.mxu0 }
 0x807   : > { %17384 = vst [vmem:[#allocation39_spill] sm:$0xff] %v15788_v31  ;;  %9112 = vmatpush2.bf16.msra.mxu1 %v11692_v23  ;;  %v995_v31 = vld [vmem:[%s15570_s2 + $0xe8] sm:$0xff] }
 0x808   : > { %v7786_v13 = vpop.f32.mrf.mxu1  ;;  %v15795_v48 = vpop.f32.mrf.mxu0  ;;  %9113 = vmatprep.subr.bf16.mxu1 %v17233_v20 }
 0x809   : > { %v994_v13 = vld [vmem:[%s15570_s2 + $0xe0] sm:$0xff] }
 0x80a   : > { %v15798_v8 = vpop.f32.mrf.mxu1  ;;  %v15800_v32 = vpop.f32.mrf.mxu0  ;;  %11099 = vmatmul.mubr.msk.bf16.gmra.mxu1 %vm8605_vm4, %v1041_v41 }
 0x80b   : > { %17385 = vst [vmem:[#allocation41_spill] sm:$0xff] %v15798_v8  ;;  %11102 = vmatprep.mubr.msk.bf16.mxu1 %vm8605_vm4, %v1042_v40  ;;  %9114 = vmatpush2.bf16.msra.mxu1 %v11693_v10  ;;  %v1043_v10 = vpack.c.bf16 %v993_v29, %v992_v52  ;;  %v1044_v8 = vpack.c.bf16 %v995_v31, %v994_v13  ;;  %v996_v31 = vld [vmem:[%s15570_s2 + $0xf0] sm:$0xff]  ;;  %v997_v52 = vld [vmem:[%s15570_s2 + $0xf8] sm:$0xff] }
 0x80c   : > { %v7791_v23 = vpop.f32.mrf.mxu1  ;;  %v15809_v47 = vpop.f32.mrf.mxu0  ;;  %8487 = vmatmul.mubr.bf16.gmra.mxu0 %v15594_v2  ;;  %9115 = vmatprep.subr.bf16.mxu1 %v17233_v20  ;;  %v11696_v29 = vld [vmem:[%s17153_s23 + $0x50] sm:$0xff]  }
 0x80d   : > { %v11695_v23 = vld [vmem:[%s17153_s23 + $0x58] sm:$0xff]  }
 0x80e   : > { %v15815_v41 = vpop.f32.mrf.mxu1  ;;  %v15817_v40 = vpop.f32.mrf.mxu0 }
 0x80f   : > { %17386 = vst [vmem:[#allocation40_spill] sm:$0xff] %v15815_v41  ;;  %9116 = vmatpush2.bf16.msra.mxu1 %v11694_v24  ;;  %v999_v41 = vld [vmem:[%s15570_s2 + $0x108] sm:$0xff] }
 0x810   : > { %v7794_v2 = vpop.f32.mrf.mxu1  ;;  %v15822_v7 = vpop.f32.mrf.mxu0  ;;  %9117 = vmatprep.subr.bf16.mxu1 %v17233_v20 }
 0x811   : > { %v998_v2 = vld [vmem:[%s15570_s2 + $0x100] sm:$0xff] }
 0x812   : > { %v15825_v0 = vpop.f32.mrf.mxu1  ;;  %v15827_v5 = vpop.f32.mrf.mxu0  ;;  %11103 = vmatmul.mubr.msk.bf16.gmra.mxu1 %vm8605_vm4, %v1043_v10  ;;  %v1046_v14 = vpack.c.bf16 %v999_v41, %v998_v2  ;;  %v1000_v41 = vld [vmem:[%s15570_s2 + $0x110] sm:$0xff] }
 0x813   : > { %17387 = vst [vmem:[#allocation42_spill] sm:$0xff] %v15825_v0  ;;  %11106 = vmatprep.mubr.msk.bf16.mxu1 %vm8605_vm4, %v1044_v8  ;;  %9118 = vmatpush2.bf16.msra.mxu1 %v11695_v23  ;;  %v1045_v8 = vpack.c.bf16 %v997_v52, %v996_v31  ;;  %v11697_v23 = vld [vmem:[%s17153_s23 + $0x48] sm:$0xff]   ;;  %v1001_v31 = vld [vmem:[%s15570_s2 + $0x118] sm:$0xff]  ;;  %v11698_v52 = vld [vmem:[%s17153_s23 + $0x40] sm:$0xff]  }
 0x814   : > { %v7799_v24 = vpop.f32.mrf.mxu1  ;;  %v15836_v13 = vpop.f32.mrf.mxu0  ;;  %9119 = vmatprep.subr.bf16.mxu1 %v17233_v20 }
 0x816   : > { %v15841_v0 = vpop.f32.mrf.mxu1  ;;  %v15843_v10 = vpop.f32.mrf.mxu0 }
 0x817   : > { %17388 = vst [vmem:[#allocation43_spill] sm:$0xff] %v15841_v0  ;;  %9120 = vmatpush2.bf16.msra.mxu1 %v11696_v29  ;;  %v1003_v0 = vld [vmem:[%s15570_s2 + $0x128] sm:$0xff] }
 0x818   : > { %v7802_v24 = vpop.f32.mrf.mxu1  ;;  %v15848_v58 = vpop.f32.mrf.mxu0  ;;  %9121 = vmatprep.subr.bf16.mxu1 %v17233_v20 }
 0x819   : > { %v1002_v24 = vld [vmem:[%s15570_s2 + $0x120] sm:$0xff] }
 0x81a   : > { %v15851_v53 = vpop.f32.mrf.mxu1  ;;  %v15853_v28 = vpop.f32.mrf.mxu0  ;;  %11107 = vmatmul.mubr.msk.bf16.gmra.mxu1 %vm8605_vm4, %v1045_v8 }
 0x81b   : > { %17389 = vst [vmem:[#allocation45_spill] sm:$0xff] %v15851_v53  ;;  %11110 = vmatprep.mubr.msk.bf16.mxu1 %vm8605_vm4, %v1046_v14  ;;  %9122 = vmatpush2.bf16.msra.mxu1 %v11697_v23  ;;  %v1047_v23 = vpack.c.bf16 %v1001_v31, %v1000_v41  ;;  %v1048_v53 = vpack.c.bf16 %v1003_v0, %v1002_v24  ;;  %v1006_v0 = vld [vmem:[%s15570_s2 + $0x140] sm:$0xff] }
 0x81c   : > { %v7807_v29 = vpop.f32.mrf.mxu1  ;;  %v15862_v2 = vpop.f32.mrf.mxu0  ;;  %9123 = vmatprep.subr.bf16.mxu1 %v17233_v20  ;;  %v1004_v20 = vld [vmem:[%s15570_s2 + $0x130] sm:$0xff] }
 0x81e   : > { %v15867_v8 = vpop.f32.mrf.mxu1  ;;  %v15869_v14 = vpop.f32.mrf.mxu0 }
 0x81f   : > { %17390 = vst [vmem:[#allocation44_spill] sm:$0xff] %v15867_v8  ;;  %9124 = vmatpush2.bf16.msra.mxu1 %v11698_v52  ;;  %v1005_v8 = vld [vmem:[%s15570_s2 + $0x138] sm:$0xff] }
 0x820   : > { %v7810_v33 = vpop.f32.mrf.mxu1  ;;  %v15871_v35 = vpop.f32.mrf.mxu0  ;;  %v1049_v52 = vpack.c.bf16 %v1005_v8, %v1004_v20  ;;  %v1011_v8 = vld [vmem:[%s15570_s2 + $0x168] sm:$0xff] }
 0x821   : > { %v1007_v33 = vld [vmem:[%s15570_s2 + $0x148] sm:$0xff] }
 0x822   : > { %v15873_v29 = vpop.f32.mrf.mxu1  ;;  %v15875_v27 = vpop.f32.mrf.mxu0  ;;  %11111 = vmatmul.mubr.msk.bf16.gmra.mxu1 %vm8605_vm4, %v1047_v23  ;;  %v1050_v24 = vpack.c.bf16 %v1007_v33, %v1006_v0 }
 0x823   : > { %17391 = vst [vmem:[#allocation46_spill] sm:$0xff] %v15873_v29  ;;  %11114 = vmatprep.mubr.msk.bf16.mxu1 %vm8605_vm4, %v1048_v53 }
 0x824   : > { %v7815_v9 = vpop.f32.mrf.mxu1  ;;  %v15881_v43 = vpop.f32.mrf.mxu0 }
 0x825   : > { %v1008_v9 = vld [vmem:[%s15570_s2 + $0x150] sm:$0xff] }
 0x826   : > { %v15885_v41 = vpop.f32.mrf.mxu1  ;;  %v15887_v31 = vpop.f32.mrf.mxu0  ;;  %v1051_v33 = vpack.c.bf16 %v1009_v6, %v1008_v9  ;;  %v1012_v6 = vld [vmem:[%s15570_s2 + $0x170] sm:$0xff] }
 0x827   : > { %17392 = vst [vmem:[#allocation47_spill] sm:$0xff] %v15885_v41  ;;  %v1010_v41 = vld [vmem:[%s15570_s2 + $0x160] sm:$0xff] }
 0x828   : > { %v7818_v23 = vpop.f32.mrf.mxu1  ;;  %v15889_v29 = vpop.f32.mrf.mxu0 }
 0x829   : > { %v1052_v23 = vpack.c.bf16 %v1011_v8, %v1010_v41  ;;  %v1013_v41 = vld [vmem:[%s15570_s2 + $0x178] sm:$0xff] }
 0x82a   : > { %v15891_v53 = vpop.f32.mrf.mxu1  ;;  %v15893_v18 = vpop.f32.mrf.mxu0  ;;  %11115 = vmatmul.mubr.msk.bf16.gmra.mxu1 %vm8605_vm4, %v1049_v52  ;;  %v11699_v52 = vld [vmem:[%s17156_s26 + $0x38] sm:$0xff]   ;;  %v1053_v15 = vpack.c.bf16 %v1013_v41, %v1012_v6  ;;  %v1018_v6 = vld [vmem:[%s15570_s2 + $0x1a0] sm:$0xff] }
 0x82b   : > { %17393 = vst [vmem:[#allocation49_spill] sm:$0xff] %v15891_v53  ;;  %11118 = vmatprep.mubr.msk.bf16.mxu1 %vm8605_vm4, %v1050_v24  ;;  %11142 = vmatprep.subr.bf16.mxu0 %v11699_v52 }
 0x82c   : > { %v7823_v46 = vpop.f32.mrf.mxu1  ;;  %v15899_v57 = vpop.f32.mrf.mxu0  ;;  %11143 = vmatpush3.bf16.msra.mxu0 %v11699_v52 }
 0x82d   : > { %17394 = vst [vmem:[#allocation48_spill] sm:$0xff] %v15899_v57 }
 0x82e   : > { %v15903_v20 = vpop.f32.mrf.mxu1  ;;  %v15905_v0 = vpop.f32.mrf.mxu0 }
 0x82f   : > { %17395 = vst [vmem:[#allocation50_spill] sm:$0xff] %v15903_v20  ;;  %v1015_v20 = vld [vmem:[%s15570_s2 + $0x188] sm:$0xff] }
 0x830   : > { %v7826_v24 = vpop.f32.mrf.mxu1  ;;  %v15910_v46 = vpop.f32.mrf.mxu0 }
 0x831   : > { %17396 = vst [vmem:[#allocation51_spill] sm:$0xff] %v15910_v46  ;;  %v1014_v24 = vld [vmem:[%s15570_s2 + $0x180] sm:$0xff] }
 0x832   : > { %v15912_v53 = vpop.f32.mrf.mxu1  ;;  %v15914_v19 = vpop.f32.mrf.mxu0  ;;  %11119 = vmatmul.mubr.msk.bf16.gmra.mxu1 %vm8605_vm4, %v1051_v33  ;;  %v1054_v33 = vpack.c.bf16 %v1015_v20, %v1014_v24  ;;  %v1019_v20 = vld [vmem:[%s15570_s2 + $0x1a8] sm:$0xff] }
 0x833   : > { %17397 = vst [vmem:[#allocation53_spill] sm:$0xff] %v15912_v53  ;;  %11122 = vmatprep.mubr.msk.bf16.mxu1 %vm8605_vm4, %v1052_v23 }
 0x834   : > { %v7831_v9 = vpop.f32.mrf.mxu1  ;;  %v15920_v8 = vpop.f32.mrf.mxu0 }
 0x835   : > { %17398 = vst [vmem:[#allocation52_spill] sm:$0xff] %v15920_v8  ;;  %v1016_v9 = vld [vmem:[%s15570_s2 + $0x190] sm:$0xff]  ;;  %v1017_v8 = vld [vmem:[%s15570_s2 + $0x198] sm:$0xff] }
 0x836   : > { %v15924_v30 = vpop.f32.mrf.mxu1  ;;  %v15926_v53 = vpop.f32.mrf.mxu0 }
 0x837   : > { %17399 = vst [vmem:[#allocation54_spill] sm:$0xff] %v15924_v30  ;;  %17400 = vst [vmem:[#allocation55_spill] sm:$0xff] %v15926_v53 }
 0x838   : > { %v7834_v52 = vpop.f32.mrf.mxu1  ;;  %v15928_v55 = vpop.f32.mrf.mxu0 }
 0x839   : > { %17401 = vst [vmem:[#allocation57_spill] sm:$0xff] %v15928_v55  ;;  %v1055_v52 = vpack.c.bf16 %v1017_v8, %v1016_v9  ;;  %v1022_v8 = vld [vmem:[%s15570_s2 + $0x1c0] sm:$0xff]  ;;  %v1023_v9 = vld [vmem:[%s15570_s2 + $0x1c8] sm:$0xff] }
 0x83a   : > { %v15930_v23 = vpop.f32.mrf.mxu1  ;;  %v15932_v4 = vpop.f32.mrf.mxu0  ;;  %11123 = vmatmul.mubr.msk.bf16.gmra.mxu1 %vm8605_vm4, %v1053_v15 }
 0x83b   : > { %17402 = vst [vmem:[#allocation56_spill] sm:$0xff] %v15930_v23  ;;  %17403 = vst [vmem:[#allocation58_spill] sm:$0xff] %v15932_v4  ;;  %11126 = vmatprep.mubr.msk.bf16.mxu1 %vm8605_vm4, %v1054_v33  ;;  %v1056_v23 = vpack.c.bf16 %v1019_v20, %v1018_v6 }
 0x83c   : > { %v7839_v30 = vpop.f32.mrf.mxu1  ;;  %v15938_v57 = vpop.f32.mrf.mxu0 }
 0x83d   : > { %17404 = vst [vmem:[#allocation59_spill] sm:$0xff] %v15938_v57  ;;  %v1020_v30 = vld [vmem:[%s15570_s2 + $0x1b0] sm:$0xff]  ;;  %v1021_v57 = vld [vmem:[%s15570_s2 + $0x1b8] sm:$0xff] }
 0x83e   : > { %v15942_v41 = vpop.f32.mrf.mxu1  ;;  %v15944_v24 = vpop.f32.mrf.mxu0 }
 0x83f   : > { %17405 = vst [vmem:[#allocation61_spill] sm:$0xff] %v15942_v41  ;;  %17406 = vst [vmem:[#allocation60_spill] sm:$0xff] %v15944_v24 }
 0x840   : > { %v7842_v15 = vpop.f32.mrf.mxu1  ;;  %v15946_v55 = vpop.f32.mrf.mxu0 }
 0x841   : > { %17407 = vst [vmem:[#allocation62_spill] sm:$0xff] %v15946_v55  ;;  %v1057_v15 = vpack.c.bf16 %v1021_v57, %v1020_v30  ;;  %v1027_v57 = vld [vmem:[%s15570_s2 + $0x1e8] sm:$0xff] }
 0x842   : > { %v15948_v33 = vpop.f32.mrf.mxu1  ;;  %v15950_v53 = vpop.f32.mrf.mxu0  ;;  %11127 = vmatmul.mubr.msk.bf16.gmra.mxu1 %vm8605_vm4, %v1055_v52 }
 0x843   : > { %17408 = vst [vmem:[#allocation63_spill] sm:$0xff] %v15948_v33  ;;  %17409 = vst [vmem:[#allocation65_spill] sm:$0xff] %v15950_v53  ;;  %11130 = vmatprep.mubr.msk.bf16.mxu1 %vm8605_vm4, %v1056_v23  ;;  %v1058_v33 = vpack.c.bf16 %v1023_v9, %v1022_v8 }
 0x844   : > { %v7847_v41 = vpop.f32.mrf.mxu1  ;;  %v15956_v4 = vpop.f32.mrf.mxu0 }
 0x845   : > { %17410 = vst [vmem:[#allocation64_spill] sm:$0xff] %v15956_v4  ;;  %v1024_v41 = vld [vmem:[%s15570_s2 + $0x1d0] sm:$0xff]  ;;  %v1025_v4 = vld [vmem:[%s15570_s2 + $0x1d8] sm:$0xff] }
 0x846   : > { %v15960_v6 = vpop.f32.mrf.mxu1  ;;  %v15962_v20 = vpop.f32.mrf.mxu0  ;;  %v1059_v9 = vpack.c.bf16 %v1025_v4, %v1024_v41  ;;  %v1029_v4 = vld [vmem:[%s15570_s2 + $0x1f8] sm:$0xff] }
 0x847   : > { %17411 = vst [vmem:[#allocation66_spill] sm:$0xff] %v15960_v6  ;;  %v1026_v6 = vld [vmem:[%s15570_s2 + $0x1e0] sm:$0xff] }
 0x848   : > { %v7850_v52 = vpop.f32.mrf.mxu1  ;;  %v15964_v55 = vpop.f32.mrf.mxu0 }
 0x849   : > { %17412 = vst [vmem:[#allocation67_spill] sm:$0xff] %v15964_v55  ;;  %v1060_v52 = vpack.c.bf16 %v1027_v57, %v1026_v6 }
 0x84a   : > { %v15966_v23 = vpop.f32.mrf.mxu1  ;;  %v15968_v24 = vpop.f32.mrf.mxu0  ;;  %11131 = vmatmul.mubr.msk.bf16.gmra.mxu1 %vm8605_vm4, %v1057_v15  ;;  %v11700_v15 = vld [vmem:[%s17156_s26 + $0x30] sm:$0xff]  }
 0x84b   : > { %17413 = vst [vmem:[#allocation69_spill] sm:$0xff] %v15966_v23  ;;  %11134 = vmatprep.mubr.msk.bf16.mxu1 %vm8605_vm4, %v1058_v33  ;;  %11144 = vmatprep.subr.bf16.mxu0 %v11700_v15 }
 0x84c   : > { %v7855_v53 = vpop.f32.mrf.mxu1  ;;  %v15974_v46 = vpop.f32.mrf.mxu0  ;;  %11145 = vmatpush3.bf16.msra.mxu0 %v11700_v15 }
 0x84d   : > { %17414 = vst [vmem:[#allocation68_spill] sm:$0xff] %v15974_v46 }
 0x84e   : > { %v15978_v30 = vpop.f32.mrf.mxu1  ;;  %v15980_v8 = vpop.f32.mrf.mxu0 }
 0x84f   : > { %17415 = vst [vmem:[#allocation70_spill] sm:$0xff] %v15978_v30  ;;  %17416 = vst [vmem:[#allocation71_spill] sm:$0xff] %v15980_v8  ;;  %v1028_v30 = vld [vmem:[%s15570_s2 + $0x1f0] sm:$0xff]  ;;  %s16696_s2 = scalar_lea.vmem [#allocation2], %s10516_s30  ;;  %s17080_s30 = scalar_lea.hbm %s17598_s8, %s10999_s10 }
 0x850   : > { %v7858_v33 = vpop.f32.mrf.mxu1  ;;  %v15985_v23 = vpop.f32.mrf.mxu0  ;;  %s10438_s11 = sshll.u32 %s16696_s2, 4  ;;  %s12030_s10 = smov [#allocation2]   ;;  %s17082_s11 = int_to_ptr.vmem [resolvable:$true] %s10438_s11 }
 0x851   : > { %17417 = vst [vmem:[#allocation72_spill] sm:$0xff] %v15985_v23  ;;  %v1061_v23 = vpack.c.bf16 %v1029_v4, %v1028_v30  ;;  %v17425_v4 = vpack.c.bf16 %v15600_v44, %v15597_v42  ;;  %v17430_v42 = vpack.c.bf16 %v15679_v34, %v15674_v59  ;;  %v17434_v59 = vpack.c.bf16 %v15715_v61, %v15710_v49  ;;  %s11966_s3 = scalar_lea.vmem %s17082_s11, 8192  ;;  %s11970_s12 = sshll.u32 %s12030_s10, 4  ;;  %s11971_s12 = int_to_ptr.vmem [resolvable:$false] %s11970_s12 }
 0x852   : > { %v15987_v53 = vpop.f32.mrf.mxu1  ;;  %v15989_v46 = vpop.f32.mrf.mxu0  ;;  %11135 = vmatmul.mubr.msk.bf16.gmra.mxu1 %vm8605_vm4, %v1059_v9  ;;  %v17422_v9 = vpack.c.bf16 %v15612_v25, %v15607_v36  ;;  %v8223_v49 = vadd.f32 %v15739_v54, %v15584_v22  ;;  %p11967_p11 = scmp.ne.s32.totalorder %s17082_s11, %s11966_s3  ;;  %s11972_s9 = scalar_lea.vmem %s11971_s12, 16384 }
 0x853   : > { %17418 = vst [vmem:[#allocation13_spill] sm:$0xff] %v15987_v53  ;;  %17419 = vst [vmem:[#allocation73_spill] sm:$0xff] %v15989_v46  ;;  %11138 = vmatprep.mubr.msk.bf16.mxu1 %vm8605_vm4, %v1060_v52  ;;  %p11973_p0 = scmp.lt.s32.totalorder %s17082_s11, %s11971_s12  ;;  %p11974_p1 = scmp.lt.s32.totalorder %s11972_s9, %s11966_s3 }
 0x854   : > { %v7863_v6 = vpop.f32.mrf.mxu1  ;;  %v15995_v41 = vpop.f32.mrf.mxu0  ;;  %p11968_p12 = pnand %p11967_p11, %p12216_p5 }
 0x855   : > { %p11975_p2 = por %p11974_p1, %p11973_p0 }
 0x856   : > { %v15997_v57 = vpop.f32.mrf.mxu1  ;;  %v15999_v33 = vpop.f32.mrf.mxu0  ;;  %p11969_p13 = pneg %p11968_p12 }
 0x857   : > { %17420 = vst [vmem:[#allocation74_spill] sm:$0xff] %v15997_v57 }
 0x858   : > { %v7866_v8 = vpop.f32.mrf.mxu1  ;;  %v16001_v55 = vpop.f32.mrf.mxu0  ;;  %p11976_p3 = pnand %p11975_p2, %p11969_p13 }
 0x85a   : > { %v16003_v53 = vpop.f32.mrf.mxu1  ;;  %v16005_v46 = vpop.f32.mrf.mxu0  ;;  %11139 = vmatmul.mubr.msk.bf16.gmra.mxu1 %vm8605_vm4, %v1061_v23  ;;  %v17426_v23 = vpack.c.bf16 %v15643_v3, %v15638_v45 }
 0x85b   : > { %17421 = vst [vmem:[#allocation75_spill] sm:$0xff] %v16003_v53  ;;  %9125 = vmatprep.mubr.bf16.mxu1 %v17422_v9 }
 0x85c   : > { %v7871_v52 = vpop.f32.mrf.mxu1  ;;  %v16011_v15 = vpop.f32.mrf.mxu0 }
 0x85e   : > { %v16013_v6 = vpop.f32.mrf.mxu1  ;;  %v16015_v30 = vpop.f32.mrf.mxu0 }
 0x85f   : > { %17423 = vst [vmem:[#allocation76_spill] sm:$0xff] %v16013_v6 }
 0x860   : > { %v7874_v57 = vpop.f32.mrf.mxu1  ;;  %v16025_v25 = vpop.f32.mrf.mxu0 }
 0x862   : > { %v16017_v8 = vpop.f32.mrf.mxu1  ;;  %9126 = vmatmul.mubr.bf16.vlgmr.msra.gmra.mxu1 %v17425_v4  ;;  %v16029_v6 = vpop.f32.mrf.mxu0  ;;  %v11701_v4 = vld [vmem:[%s17156_s26 + $0x28] sm:$0xff]  }
 0x863   : > { %17424 = vst [vmem:[#allocation77_spill] sm:$0xff] %v16017_v8  ;;  %9133 = vmatprep.mubr.bf16.mxu1 %v17426_v23  ;;  %v17429_v8 = vpack.c.bf16 %v15632_v62, %v15629_v21  ;;  %11146 = vmatprep.subr.bf16.mxu0 %v11701_v4  ;;  %v17433_v62 = vpack.c.bf16 %v15668_v16, %v15665_v38 }
 0x864   : > { %v7879_v36 = vpop.f32.mrf.mxu1  ;;  %v16039_v45 = vpop.f32.mrf.mxu0  ;;  %11147 = vmatpush3.bf16.msra.mxu0 %v11701_v4  ;;  %v17437_v16 = vpack.c.bf16 %v15704_v51, %v15701_v39 }
 0x866   : > { %v16027_v9 = vpop.f32.mrf.mxu1  ;;  %v16046_v36 = vpop.f32.mrf.mxu0 }
 0x867   : > { %17427 = vst [vmem:[#allocation78_spill] sm:$0xff] %v16027_v9 }
 0x868   : > { %v7882_v52 = vpop.f32.mrf.mxu1 }
 0x869   : > { %v16058_v52 = vpop.f32.mrf.mxu0 }
 0x86a   : > { %v16031_v57 = vpop.f32.mrf.mxu1  ;;  %9134 = vmatmul.mubr.bf16.gmra.mxu1 %v17429_v8  ;;  %v8225_v8 = vadd.f32 %v15744_v60, %v15590_v56  ;;  %v8235_v60 = vadd.f32 %v15772_v12, %v15590_v56  ;;  %v8233_v12 = vadd.f32 %v15767_v63, %v15584_v22 }
 0x86b   : > { %17428 = vst [vmem:[#allocation79_spill] sm:$0xff] %v16031_v57  ;;  %9141 = vmatprep.mubr.bf16.mxu1 %v17430_v42 }
 0x86c   : > { %v7887_v44 = vpop.f32.mrf.mxu1 }
 0x86d   : > { %v8221_v44 = vadd.f32 %v15734_v37, %v15590_v56  ;;  %v8219_v37 = vadd.f32 %v15723_v1, %v15584_v22 }
 0x86e   : > { %v16041_v3 = vpop.f32.mrf.mxu1 }
 0x86f   : > { %17431 = vst [vmem:[#allocation80_spill] sm:$0xff] %v16041_v3  ;;  %v8505_v39 = vpack.c.bf16 %v8223_v49, %v8219_v37  ;;  %v8241_v49 = vadd.f32 %v15790_v50, %v15590_v56  ;;  %v8325_v3 = vadd.f32 %v15968_v24, %v15590_v56  ;;  %v17463_v24 = vld [vmem:[#allocation67_spill] sm:$0xff] }
 0x870   : > { %v7890_v23 = vpop.f32.mrf.mxu1 }
 0x871   : > { %v8506_v23 = vpack.c.bf16 %v8225_v8, %v8221_v44 }
 0x872   : > { %v16048_v21 = vpop.f32.mrf.mxu1  ;;  %9142 = vmatmul.mubr.bf16.gmra.mxu1 %v17433_v62 }
 0x873   : > { %17432 = vst [vmem:[#allocation81_spill] sm:$0xff] %v16048_v21  ;;  %9149 = vmatprep.mubr.bf16.mxu1 %v17434_v59  ;;  %v16064_v21 = vpop.f32.mrf.mxu0 }
 0x874   : > { %v7895_v34 = vpop.f32.mrf.mxu1 }
 0x875   : > { %v16077_v62 = vpop.f32.mrf.mxu0  ;;  %v8231_v34 = vadd.f32 %v15762_v26, %v15590_v56 }
 0x876   : > { %v16060_v42 = vpop.f32.mrf.mxu1 }
 0x877   : > { %17435 = vst [vmem:[#allocation82_spill] sm:$0xff] %v16060_v42  ;;  %v8508_v8 = vpack.c.bf16 %v8235_v60, %v8231_v34  ;;  %v16083_v44 = vpop.f32.mrf.mxu0 }
 0x878   : > { %v7898_v4 = vpop.f32.mrf.mxu1 }
 0x879   : > { %v8245_v4 = vadd.f32 %v15800_v32, %v15590_v56  ;;  %v16093_v26 = vpop.f32.mrf.mxu0  ;;  %v8243_v32 = vadd.f32 %v15795_v48, %v15584_v22 }
 0x87a   : > { %v16066_v38 = vpop.f32.mrf.mxu1  ;;  %9150 = vmatmul.mubr.bf16.gmra.mxu1 %v17437_v16 }
 0x87b   : > { %17436 = vst [vmem:[#allocation83_spill] sm:$0xff] %v16066_v38  ;;  %9157 = vmatprep.mubr.bf16.mxu1 %v8506_v23  ;;  %v8229_v23 = vadd.f32 %v15753_v11, %v15584_v22  ;;  %v8510_v37 = vpack.c.bf16 %v8245_v4, %v8241_v49  ;;  %v16099_v34 = vpop.f32.mrf.mxu0 }
 0x87c   : > { %v7903_v61 = vpop.f32.mrf.mxu1 }
 0x87d   : > { %v8507_v61 = vpack.c.bf16 %v8233_v12, %v8229_v23  ;;  %v16109_v50 = vpop.f32.mrf.mxu0  ;;  %v11702_v12 = vld [vmem:[%s17156_s26 + $0x20] sm:$0xff]  }
 0x87e   : > { %v16079_v59 = vpop.f32.mrf.mxu1  ;;  %11148 = vmatprep.subr.bf16.mxu0 %v11702_v12 }
 0x87f   : > { %17438 = vst [vmem:[#allocation84_spill] sm:$0xff] %v16079_v59  ;;  %11149 = vmatpush3.bf16.msra.mxu0 %v11702_v12 }
 0x880   : > { %v7906_v51 = vpop.f32.mrf.mxu1 }
 0x881   : > { %v8239_v51 = vadd.f32 %v15781_v17, %v15584_v22  ;;  %v8253_v17 = vadd.f32 %v15822_v7, %v15584_v22 }
 0x882   : > { %v16085_v54 = vpop.f32.mrf.mxu1  ;;  %9158 = vmatmul.mubr.bf16.gmra.mxu1 %v8505_v39  ;;  %v8255_v39 = vadd.f32 %v15827_v5, %v15590_v56  ;;  %v16118_v5 = vpop.f32.mrf.mxu0 }
 0x883   : > { %17439 = vst [vmem:[#allocation85_spill] sm:$0xff] %v16085_v54  ;;  %9165 = vmatprep.mubr.bf16.mxu1 %v8508_v8  ;;  %v8509_v4 = vpack.c.bf16 %v8243_v32, %v8239_v51  ;;  %v17452_v54 = vld [vmem:[#allocation65_spill] sm:$0xff] }
 0x884   : > { %v7911_v1 = vpop.f32.mrf.mxu1 }
 0x885   : > { %v8251_v1 = vadd.f32 %v15817_v40, %v15590_v56  ;;  %v8249_v40 = vadd.f32 %v15809_v47, %v15584_v22 }
 0x886   : > { %v16095_v16 = vpop.f32.mrf.mxu1 }
 0x887   : > { %17440 = vst [vmem:[#allocation86_spill] sm:$0xff] %v16095_v16  ;;  %v8512_v23 = vpack.c.bf16 %v8255_v39, %v8251_v1  ;;  %v8511_v39 = vpack.c.bf16 %v8253_v17, %v8249_v40  ;;  %v8271_v17 = vadd.f32 %v15869_v14, %v15590_v56  ;;  %v11703_v14 = vld [vmem:[%s17156_s26 + $0x18] sm:$0xff]  }
 0x888   : > { %v7914_v60 = vpop.f32.mrf.mxu1  ;;  %11150 = vmatprep.subr.bf16.mxu0 %v11703_v14 }
 0x889   : > { %v8265_v60 = vadd.f32 %v15853_v28, %v15590_v56  ;;  %v8263_v28 = vadd.f32 %v15848_v58, %v15584_v22  ;;  %11151 = vmatpush3.bf16.msra.mxu0 %v11703_v14 }
 0x88a   : > { %v16101_v63 = vpop.f32.mrf.mxu1  ;;  %9166 = vmatmul.mubr.bf16.gmra.mxu1 %v8507_v61 }
 0x88b   : > { %17441 = vst [vmem:[#allocation87_spill] sm:$0xff] %v16101_v63  ;;  %9173 = vmatprep.mubr.bf16.mxu1 %v8510_v37  ;;  %v16128_v37 = vpop.f32.mrf.mxu0  ;;  %v8315_v63 = vadd.f32 %v17452_v54, %v15590_v56  ;;  %v17457_v54 = vld [vmem:[#allocation62_spill] sm:$0xff] }
 0x88c   : > { %v7919_v11 = vpop.f32.mrf.mxu1 }
 0x88d   : > { %v8261_v11 = vadd.f32 %v15843_v10, %v15590_v56  ;;  %v16134_v1 = vpop.f32.mrf.mxu0 }
 0x88e   : > { %v16111_v8 = vpop.f32.mrf.mxu1 }
 0x88f   : > { %17442 = vst [vmem:[#allocation88_spill] sm:$0xff] %v16111_v8  ;;  %v8514_v12 = vpack.c.bf16 %v8265_v60, %v8261_v11  ;;  %v16144_v10 = vpop.f32.mrf.mxu0 }
 0x890   : > { %v7922_v48 = vpop.f32.mrf.mxu1 }
 0x891   : > { %v8259_v48 = vadd.f32 %v15836_v13, %v15584_v22  ;;  %v16150_v11 = vpop.f32.mrf.mxu0 }
 0x892   : > { %v16120_v49 = vpop.f32.mrf.mxu1  ;;  %9174 = vmatmul.mubr.bf16.gmra.mxu1 %v8509_v4  ;;  %v8275_v4 = vadd.f32 %v15875_v27, %v15590_v56  ;;  %v8273_v27 = vadd.f32 %v15871_v35, %v15584_v22 }
 0x893   : > { %17443 = vst [vmem:[#allocation89_spill] sm:$0xff] %v16120_v49  ;;  %9181 = vmatprep.mubr.bf16.mxu1 %v8512_v23 }
 0x894   : > { %v7927_v61 = vpop.f32.mrf.mxu1  ;;  %v8516_v40 = vpack.c.bf16 %v8275_v4, %v8271_v17 }
 0x895   : > { %v8513_v61 = vpack.c.bf16 %v8263_v28, %v8259_v48  ;;  %v11704_v48 = vld [vmem:[%s17156_s26 + $0x10] sm:$0xff]  }
 0x896   : > { %v16130_v32 = vpop.f32.mrf.mxu1  ;;  %11152 = vmatprep.subr.bf16.mxu0 %v11704_v48 }
 0x897   : > { %17444 = vst [vmem:[#allocation90_spill] sm:$0xff] %v16130_v32  ;;  %11153 = vmatpush3.bf16.msra.mxu0 %v11704_v48  ;;  %v17447_v48 = vld [vmem:[#allocation51_spill] sm:$0xff] }
 0x898   : > { %v7930_v51 = vpop.f32.mrf.mxu1 }
 0x899   : > { %v8269_v51 = vadd.f32 %v15862_v2, %v15584_v22 }
 0x89a   : > { %v16136_v7 = vpop.f32.mrf.mxu1  ;;  %9182 = vmatmul.mubr.bf16.gmra.mxu1 %v8511_v39  ;;  %v8285_v39 = vadd.f32 %v15893_v18, %v15590_v56 }
 0x89b   : > { %17445 = vst [vmem:[#allocation91_spill] sm:$0xff] %v16136_v7  ;;  %9189 = vmatprep.mubr.bf16.mxu1 %v8514_v12  ;;  %v16165_v12 = vpop.f32.mrf.mxu0  ;;  %v8515_v35 = vpack.c.bf16 %v8273_v27, %v8269_v51  ;;  %v8279_v27 = vadd.f32 %v15881_v43, %v15584_v22 }
 0x89c   : > { %v7935_v47 = vpop.f32.mrf.mxu1 }
 0x89d   : > { %v8281_v47 = vadd.f32 %v15887_v31, %v15590_v56  ;;  %v16176_v17 = vpop.f32.mrf.mxu0  ;;  %v8283_v31 = vadd.f32 %v15889_v29, %v15584_v22  ;;  %v8291_v29 = vadd.f32 %v15905_v0, %v15590_v56  ;;  %v8293_v0 = vadd.f32 %v17447_v48, %v15584_v22 }
 0x89e   : > { %v16146_v23 = vpop.f32.mrf.mxu1 }
 0x89f   : > { %17446 = vst [vmem:[#allocation92_spill] sm:$0xff] %v16146_v23  ;;  %v8518_v18 = vpack.c.bf16 %v8285_v39, %v8281_v47  ;;  %v16191_v39 = vpop.f32.mrf.mxu0  ;;  %v8517_v51 = vpack.c.bf16 %v8283_v31, %v8279_v27  ;;  %v17448_v31 = vld [vmem:[#allocation58_spill] sm:$0xff] }
 0x8a0   : > { %v7938_v60 = vpop.f32.mrf.mxu1 }
 0x8a1   : > { %v8295_v60 = vadd.f32 %v15914_v19, %v15590_v56 }
 0x8a2   : > { %v16152_v58 = vpop.f32.mrf.mxu1  ;;  %9190 = vmatmul.mubr.bf16.gmra.mxu1 %v8513_v61 }
 0x8a3   : > { %9197 = vmatprep.mubr.bf16.mxu1 %v8516_v40  ;;  %v11705_v40 = vld [vmem:[%s17156_s26 + $0x8] sm:$0xff]   ;;  %v8520_v19 = vpack.c.bf16 %v8295_v60, %v8291_v29  ;;  %v8305_v60 = vadd.f32 %v17448_v31, %v15590_v56  ;;  %v17451_v31 = vld [vmem:[#allocation57_spill] sm:$0xff] }
 0x8a4   : > { %v16156_v13 = vpop.f32.mrf.mxu1  ;;  %11154 = vmatprep.subr.bf16.mxu0 %v11705_v40 }
 0x8a5   : > { %11155 = vmatpush3.bf16.msra.mxu0 %v11705_v40  ;;  %v17449_v40 = vld [vmem:[#allocation48_spill] sm:$0xff] }
 0x8a6   : > { %v16167_v28 = vpop.f32.mrf.mxu1  ;;  %v8289_v27 = vadd.f32 %v17449_v40, %v15584_v22  ;;  %v8303_v40 = vadd.f32 %v17451_v31, %v15584_v22 }
 0x8a8   : > { %v16171_v4 = vpop.f32.mrf.mxu1  ;;  %v8519_v49 = vpack.c.bf16 %v8293_v0, %v8289_v27 }
 0x8aa   : > { %v16178_v2 = vpop.f32.mrf.mxu1  ;;  %9198 = vmatmul.mubr.bf16.gmra.mxu1 %v8515_v35  ;;  %v11706_v35 = vld [vmem:[%s17156_s26] sm:$0xff]  }
 0x8ab   : > { %9205 = vmatprep.mubr.bf16.mxu1 %v8518_v18  ;;  %v16202_v18 = vpop.f32.mrf.mxu0  ;;  %11156 = vmatprep.subr.bf16.mxu0 %v11706_v35 }
 0x8ac   : > { %v16182_v61 = vpop.f32.mrf.mxu1  ;;  %11157 = vmatpush3.bf16.msra.mxu0 %v11706_v35 }
 0x8ad   : > { %v16214_v29 = vpop.f32.mrf.mxu0 }
 0x8ae   : > { %v16193_v14 = vpop.f32.mrf.mxu1 }
 0x8af   : > { %v16222_v16 = vpop.f32.mrf.mxu0 }
 0x8b0   : > { %v16197_v47 = vpop.f32.mrf.mxu1 }
 0x8b1   : > { %v16234_v27 = vpop.f32.mrf.mxu0 }
 0x8b2   : > { %v16204_v43 = vpop.f32.mrf.mxu1  ;;  %9206 = vmatmul.mubr.bf16.gmra.mxu1 %v8517_v51  ;;  %v17450_v51 = vld [vmem:[#allocation55_spill] sm:$0xff] }
 0x8b3   : > { %9213 = vmatprep.mubr.bf16.mxu1 %v8520_v19  ;;  %v8301_v19 = vadd.f32 %v17450_v51, %v15590_v56  ;;  %v17453_v51 = vld [vmem:[#allocation52_spill] sm:$0xff]  ;;  %v16242_v31 = vpop.f32.mrf.mxu0 }
 0x8b4   : > { %v16208_v32 = vpop.f32.mrf.mxu1  ;;  %v8299_v0 = vadd.f32 %v17453_v51, %v15584_v22  ;;  %v8313_v51 = vadd.f32 %v17457_v54, %v15584_v22 }
 0x8b5   : > { %v8522_v48 = vpack.c.bf16 %v8305_v60, %v8301_v19  ;;  %v17455_v19 = vld [vmem:[#allocation60_spill] sm:$0xff] }
 0x8b6   : > { %v16216_v23 = vpop.f32.mrf.mxu1  ;;  %v8311_v42 = vadd.f32 %v17455_v19, %v15590_v56  ;;  %v17459_v19 = vld [vmem:[#allocation59_spill] sm:$0xff] }
 0x8b8   : > { %v16220_v7 = vpop.f32.mrf.mxu1  ;;  %v8524_v59 = vpack.c.bf16 %v8315_v63, %v8311_v42  ;;  %v8321_v63 = vadd.f32 %v15962_v20, %v15590_v56  ;;  %v17466_v20 = vld [vmem:[#allocation64_spill] sm:$0xff] }
 0x8ba   : > { %v16224_v35 = vpop.f32.mrf.mxu1  ;;  %9214 = vmatmul.mubr.bf16.gmra.mxu1 %v8519_v49  ;;  %v8521_v49 = vpack.c.bf16 %v8303_v40, %v8299_v0  ;;  %v8309_v40 = vadd.f32 %v17459_v19, %v15584_v22  ;;  %v16254_v0 = vpop.f32.mrf.mxu0  ;;  %v8526_v57 = vpack.c.bf16 %v8325_v3, %v8321_v63  ;;  %v8323_v19 = vadd.f32 %v17463_v24, %v15584_v22  ;;  %v17468_v63 = vld [vmem:[#allocation71_spill] sm:$0xff] }
 0x8bb   : > { %9221 = vmatprep.mubr.bf16.mxu1 %v8522_v48 }
 0x8bc   : > { %v16228_v8 = vpop.f32.mrf.mxu1  ;;  %v16262_v54 = vpop.f32.mrf.mxu0 }
 0x8be   : > { %v16236_v60 = vpop.f32.mrf.mxu1 }
 0x8bf   : > { %17454 = vst [vmem:[#allocation51_spill] sm:$0xff] %v16236_v60 }
 0x8c0   : > { %v16240_v48 = vpop.f32.mrf.mxu1 }
 0x8c2   : > { %v16244_v38 = vpop.f32.mrf.mxu1  ;;  %9222 = vmatmul.mubr.bf16.gmra.mxu1 %v8521_v49  ;;  %v8523_v49 = vpack.c.bf16 %v8313_v51, %v8309_v40  ;;  %v8319_v51 = vadd.f32 %v17466_v20, %v15584_v22  ;;  %v16274_v40 = vpop.f32.mrf.mxu0 }
 0x8c3   : > { %17456 = vst [vmem:[#allocation58_spill] sm:$0xff] %v16244_v38  ;;  %9229 = vmatprep.mubr.bf16.mxu1 %v8524_v59 }
 0x8c4   : > { %v16248_v9 = vpop.f32.mrf.mxu1  ;;  %v16282_v24 = vpop.f32.mrf.mxu0 }
 0x8c5   : > { %17458 = vst [vmem:[#allocation48_spill] sm:$0xff] %v16248_v9 }
 0x8c6   : > { %v16256_v42 = vpop.f32.mrf.mxu1 }
 0x8c7   : > { %17460 = vst [vmem:[#allocation55_spill] sm:$0xff] %v16256_v42  ;;  %v17465_v42 = vld [vmem:[#allocation73_spill] sm:$0xff] }
 0x8c8   : > { %v16260_v59 = vpop.f32.mrf.mxu1  ;;  %v8335_v9 = vadd.f32 %v17465_v42, %v15590_v56  ;;  %v17470_v42 = vld [vmem:[#allocation72_spill] sm:$0xff] }
 0x8c9   : > { %17461 = vst [vmem:[#allocation57_spill] sm:$0xff] %v16260_v59  ;;  %v8333_v20 = vadd.f32 %v17470_v42, %v15584_v22 }
 0x8ca   : > { %v16264_v53 = vpop.f32.mrf.mxu1  ;;  %9230 = vmatmul.mubr.bf16.gmra.mxu1 %v8523_v49  ;;  %v8525_v49 = vpack.c.bf16 %v8323_v19, %v8319_v51  ;;  %v16294_v51 = vpop.f32.mrf.mxu0 }
 0x8cb   : > { %17462 = vst [vmem:[#allocation65_spill] sm:$0xff] %v16264_v53  ;;  %9237 = vmatprep.mubr.bf16.mxu1 %v8526_v57  ;;  %v8331_v53 = vadd.f32 %v17468_v63, %v15590_v56  ;;  %v17472_v63 = vld [vmem:[#allocation68_spill] sm:$0xff] }
 0x8cc   : > { %v16268_v38 = vpop.f32.mrf.mxu1  ;;  %v8329_v19 = vadd.f32 %v17472_v63, %v15584_v22  ;;  %v16302_v42 = vpop.f32.mrf.mxu0 }
 0x8cd   : > { %17464 = vst [vmem:[#allocation52_spill] sm:$0xff] %v16268_v38  ;;  %v8528_v59 = vpack.c.bf16 %v8335_v9, %v8331_v53  ;;  %v8341_v9 = vadd.f32 %v15999_v33, %v15590_v56  ;;  %v8339_v33 = vadd.f32 %v15995_v41, %v15584_v22  ;;  %v8353_v41 = vadd.f32 %v16025_v25, %v15584_v22 }
 0x8ce   : > { %v16276_v3 = vpop.f32.mrf.mxu1 }
 0x8cf   : > { %17467 = vst [vmem:[#allocation60_spill] sm:$0xff] %v16276_v3  ;;  %v8345_v3 = vadd.f32 %v16005_v46, %v15590_v56  ;;  %v8343_v46 = vadd.f32 %v16001_v55, %v15584_v22 }
 0x8d0   : > { %v16280_v57 = vpop.f32.mrf.mxu1 }
 0x8d2   : > { %v16284_v38 = vpop.f32.mrf.mxu1  ;;  %9238 = vmatmul.mubr.bf16.gmra.mxu1 %v8525_v49  ;;  %v8527_v49 = vpack.c.bf16 %v8333_v20, %v8329_v19  ;;  %v16314_v20 = vpop.f32.mrf.mxu0  ;;  %v8351_v19 = vadd.f32 %v16015_v30, %v15590_v56  ;;  %v8349_v30 = vadd.f32 %v16011_v15, %v15584_v22  ;;  %v8363_v15 = vadd.f32 %v16058_v52, %v15584_v22 }
 0x8d3   : > { %17469 = vst [vmem:[#allocation62_spill] sm:$0xff] %v16284_v38  ;;  %9245 = vmatprep.mubr.bf16.mxu1 %v8528_v59  ;;  %v8530_v38 = vpack.c.bf16 %v8345_v3, %v8341_v9  ;;  %v8529_v9 = vpack.c.bf16 %v8343_v46, %v8339_v33  ;;  %v8361_v33 = vadd.f32 %v16046_v36, %v15590_v56 }
 0x8d4   : > { %v16288_v60 = vpop.f32.mrf.mxu1  ;;  %v16322_v55 = vpop.f32.mrf.mxu0  ;;  %v8359_v36 = vadd.f32 %v16039_v45, %v15584_v22  ;;  %v8373_v45 = vadd.f32 %v16093_v26, %v15584_v22 }
 0x8d5   : > { %17471 = vst [vmem:[#allocation59_spill] sm:$0xff] %v16288_v60 }
 0x8d6   : > { %v16296_v53 = vpop.f32.mrf.mxu1  ;;  %v16334_v46 = vpop.f32.mrf.mxu0 }
 0x8d7   : > { %17473 = vst [vmem:[#allocation67_spill] sm:$0xff] %v16296_v53  ;;  %v8355_v53 = vadd.f32 %v16029_v6, %v15590_v56 }
 0x8d8   : > { %v16300_v59 = vpop.f32.mrf.mxu1  ;;  %v16342_v25 = vpop.f32.mrf.mxu0 }
 0x8da   : > { %v16304_v60 = vpop.f32.mrf.mxu1  ;;  %9246 = vmatmul.mubr.bf16.gmra.mxu1 %v8527_v49  ;;  %v8532_v49 = vpack.c.bf16 %v8355_v53, %v8351_v19  ;;  %v8531_v19 = vpack.c.bf16 %v8353_v41, %v8349_v30  ;;  %v16354_v41 = vpop.f32.mrf.mxu0  ;;  %v8371_v30 = vadd.f32 %v16083_v44, %v15590_v56  ;;  %v8369_v44 = vadd.f32 %v16077_v62, %v15584_v22 }
 0x8db   : > { %17474 = vst [vmem:[#allocation73_spill] sm:$0xff] %v16304_v60  ;;  %9253 = vmatprep.mubr.bf16.mxu1 %v8530_v38  ;;  %v8383_v62 = vadd.f32 %v16128_v37, %v15584_v22 }
 0x8dc   : > { %v16308_v63 = vpop.f32.mrf.mxu1  ;;  %v16362_v52 = vpop.f32.mrf.mxu0 }
 0x8de   : > { %v16316_v3 = vpop.f32.mrf.mxu1 }
 0x8df   : > { %17475 = vst [vmem:[#allocation64_spill] sm:$0xff] %v16316_v3  ;;  %v8365_v3 = vadd.f32 %v16064_v21, %v15590_v56 }
 0x8e0   : > { %v16320_v38 = vpop.f32.mrf.mxu1 }
 0x8e2   : > { %v16324_v60 = vpop.f32.mrf.mxu1  ;;  %9254 = vmatmul.mubr.bf16.gmra.mxu1 %v8529_v9 }
 0x8e3   : > { %17476 = vst [vmem:[#allocation71_spill] sm:$0xff] %v16324_v60  ;;  %9261 = vmatprep.mubr.bf16.mxu1 %v8532_v49  ;;  %v8534_v49 = vpack.c.bf16 %v8365_v3, %v8361_v33  ;;  %v8533_v33 = vpack.c.bf16 %v8363_v15, %v8359_v36  ;;  %v16374_v15 = vpop.f32.mrf.mxu0  ;;  %v8381_v36 = vadd.f32 %v16118_v5, %v15590_v56 }
 0x8e4   : > { %v16328_v6 = vpop.f32.mrf.mxu1  ;;  %v8379_v5 = vadd.f32 %v16109_v50, %v15584_v22  ;;  %v8393_v50 = vadd.f32 %v16165_v12, %v15584_v22 }
 0x8e5   : > { %v16382_v26 = vpop.f32.mrf.mxu0 }
 0x8e6   : > { %v16336_v53 = vpop.f32.mrf.mxu1 }
 0x8e7   : > { %17477 = vst [vmem:[#allocation72_spill] sm:$0xff] %v16336_v53  ;;  %v8375_v53 = vadd.f32 %v16099_v34, %v15590_v56 }
 0x8e8   : > { %v16340_v9 = vpop.f32.mrf.mxu1 }
 0x8ea   : > { %v16344_v60 = vpop.f32.mrf.mxu1  ;;  %9262 = vmatmul.mubr.bf16.gmra.mxu1 %v8531_v19 }
 0x8eb   : > { %17478 = vst [vmem:[#allocation68_spill] sm:$0xff] %v16344_v60  ;;  %9269 = vmatprep.mubr.bf16.mxu1 %v8534_v49  ;;  %v8536_v49 = vpack.c.bf16 %v8375_v53, %v8371_v30  ;;  %v8535_v30 = vpack.c.bf16 %v8373_v45, %v8369_v44  ;;  %v16394_v45 = vpop.f32.mrf.mxu0  ;;  %v8391_v44 = vadd.f32 %v16150_v11, %v15590_v56 }
 0x8ec   : > { %v16348_v21 = vpop.f32.mrf.mxu1  ;;  %v8389_v11 = vadd.f32 %v16144_v10, %v15584_v22 }
 0x8ed   : > { %v16402_v37 = vpop.f32.mrf.mxu0 }
 0x8ee   : > { %v16356_v3 = vpop.f32.mrf.mxu1 }
 0x8ef   : > { %17479 = vst [vmem:[#allocation93_spill] sm:$0xff] %v16356_v3  ;;  %v8385_v3 = vadd.f32 %v16134_v1, %v15590_v56 }
 0x8f0   : > { %v16360_v19 = vpop.f32.mrf.mxu1 }
 0x8f2   : > { %v16364_v60 = vpop.f32.mrf.mxu1  ;;  %9270 = vmatmul.mubr.bf16.gmra.mxu1 %v8533_v33 }
 0x8f3   : > { %17480 = vst [vmem:[#allocation94_spill] sm:$0xff] %v16364_v60  ;;  %9277 = vmatprep.mubr.bf16.mxu1 %v8536_v49  ;;  %v8538_v49 = vpack.c.bf16 %v8385_v3, %v8381_v36  ;;  %v8537_v36 = vpack.c.bf16 %v8383_v62, %v8379_v5  ;;  %v16414_v62 = vpop.f32.mrf.mxu0  ;;  %v8401_v5 = vadd.f32 %v16202_v18, %v15590_v56 }
 0x8f4   : > { %v16368_v34 = vpop.f32.mrf.mxu1  ;;  %v8399_v18 = vadd.f32 %v16191_v39, %v15584_v22  ;;  %v8413_v39 = vadd.f32 %v16254_v0, %v15584_v22 }
 0x8f5   : > { %v16422_v12 = vpop.f32.mrf.mxu0 }
 0x8f6   : > { %v16376_v53 = vpop.f32.mrf.mxu1 }
 0x8f7   : > { %17481 = vst [vmem:[#allocation95_spill] sm:$0xff] %v16376_v53  ;;  %v8395_v53 = vadd.f32 %v16176_v17, %v15590_v56 }
 0x8f8   : > { %v16380_v33 = vpop.f32.mrf.mxu1 }
 0x8fa   : > { %v16384_v60 = vpop.f32.mrf.mxu1  ;;  %9278 = vmatmul.mubr.bf16.gmra.mxu1 %v8535_v30 }
 0x8fb   : > { %17482 = vst [vmem:[#allocation96_spill] sm:$0xff] %v16384_v60  ;;  %9285 = vmatprep.mubr.bf16.mxu1 %v8538_v49  ;;  %v8540_v49 = vpack.c.bf16 %v8395_v53, %v8391_v44  ;;  %v8539_v44 = vpack.c.bf16 %v8393_v50, %v8389_v11  ;;  %v16434_v50 = vpop.f32.mrf.mxu0  ;;  %v8411_v11 = vadd.f32 %v16242_v31, %v15590_v56 }
 0x8fc   : > { %v16388_v1 = vpop.f32.mrf.mxu1  ;;  %v8409_v31 = vadd.f32 %v16234_v27, %v15584_v22  ;;  %v8423_v27 = vadd.f32 %v16294_v51, %v15584_v22 }
 0x8fe   : > { %v16396_v3 = vpop.f32.mrf.mxu1 }
 0x8ff   : > { %17483 = vst [vmem:[#allocation97_spill] sm:$0xff] %v16396_v3  ;;  %v8405_v3 = vadd.f32 %v16222_v16, %v15590_v56  ;;  %v8403_v16 = vadd.f32 %v16214_v29, %v15584_v22  ;;  %v16442_v29 = vpop.f32.mrf.mxu0 }
 0x900   : > { %v16400_v30 = vpop.f32.mrf.mxu1 }
 0x902   : > { %v16404_v60 = vpop.f32.mrf.mxu1  ;;  %9286 = vmatmul.mubr.bf16.gmra.mxu1 %v8537_v36 }
 0x903   : > { %17484 = vst [vmem:[#allocation98_spill] sm:$0xff] %v16404_v60  ;;  %9293 = vmatprep.mubr.bf16.mxu1 %v8540_v49  ;;  %v8542_v49 = vpack.c.bf16 %v8405_v3, %v8401_v5  ;;  %v8541_v5 = vpack.c.bf16 %v8403_v16, %v8399_v18  ;;  %v16454_v16 = vpop.f32.mrf.mxu0  ;;  %v8421_v18 = vadd.f32 %v16282_v24, %v15590_v56 }
 0x904   : > { %v16408_v17 = vpop.f32.mrf.mxu1  ;;  %v8419_v24 = vadd.f32 %v16274_v40, %v15584_v22  ;;  %v8433_v40 = vadd.f32 %v16334_v46, %v15584_v22 }
 0x905   : > { %v16462_v0 = vpop.f32.mrf.mxu0 }
 0x906   : > { %v16416_v53 = vpop.f32.mrf.mxu1 }
 0x907   : > { %17485 = vst [vmem:[#allocation99_spill] sm:$0xff] %v16416_v53  ;;  %v8415_v53 = vadd.f32 %v16262_v54, %v15590_v56 }
 0x908   : > { %v16420_v36 = vpop.f32.mrf.mxu1 }
 0x90a   : > { %v16424_v60 = vpop.f32.mrf.mxu1  ;;  %9294 = vmatmul.mubr.bf16.gmra.mxu1 %v8539_v44 }
 0x90b   : > { %17486 = vst [vmem:[#allocation100_spill] sm:$0xff] %v16424_v60  ;;  %9301 = vmatprep.mubr.bf16.mxu1 %v8542_v49  ;;  %v8544_v49 = vpack.c.bf16 %v8415_v53, %v8411_v11  ;;  %v8543_v11 = vpack.c.bf16 %v8413_v39, %v8409_v31  ;;  %v16474_v39 = vpop.f32.mrf.mxu0  ;;  %v8431_v31 = vadd.f32 %v16322_v55, %v15590_v56 }
 0x90c   : > { %v16428_v10 = vpop.f32.mrf.mxu1 }
 0x90d   : > { %v16482_v51 = vpop.f32.mrf.mxu0 }
 0x90e   : > { %v16436_v3 = vpop.f32.mrf.mxu1 }
 0x90f   : > { %17487 = vst [vmem:[#allocation101_spill] sm:$0xff] %v16436_v3  ;;  %v8425_v3 = vadd.f32 %v16302_v42, %v15590_v56 }
 0x910   : > { %v16440_v44 = vpop.f32.mrf.mxu1 }
 0x911   : > { %17488 = vst [vmem:[#allocation102_spill] sm:$0xff] %v16440_v44 }
 0x912   : > { %v16444_v60 = vpop.f32.mrf.mxu1  ;;  %9302 = vmatmul.mubr.bf16.gmra.mxu1 %v8541_v5 }
 0x913   : > { %17489 = vst [vmem:[#allocation103_spill] sm:$0xff] %v16444_v60  ;;  %9309 = vmatprep.mubr.bf16.mxu1 %v8544_v49  ;;  %v8546_v49 = vpack.c.bf16 %v8425_v3, %v8421_v18  ;;  %v8545_v18 = vpack.c.bf16 %v8423_v27, %v8419_v24  ;;  %v8445_v27 = vadd.f32 %v16382_v26, %v15590_v56  ;;  %v16496_v24 = vpop.f32.mrf.mxu0 }
 0x914   : > { %v16448_v54 = vpop.f32.mrf.mxu1 }
 0x915   : > { %17490 = vst [vmem:[#allocation104_spill] sm:$0xff] %v16448_v54 }
 0x916   : > { %v16456_v53 = vpop.f32.mrf.mxu1 }
 0x917   : > { %17491 = vst [vmem:[#allocation105_spill] sm:$0xff] %v16456_v53  ;;  %v8435_v53 = vadd.f32 %v16342_v25, %v15590_v56 }
 0x918   : > { %v16460_v5 = vpop.f32.mrf.mxu1 }
 0x919   : > { %17492 = vst [vmem:[#allocation106_spill] sm:$0xff] %v16460_v5 }
 0x91a   : > { %v16464_v60 = vpop.f32.mrf.mxu1  ;;  %9310 = vmatmul.mubr.bf16.gmra.mxu1 %v8543_v11 }
 0x91b   : > { %17493 = vst [vmem:[#allocation107_spill] sm:$0xff] %v16464_v60  ;;  %9317 = vmatprep.mubr.bf16.mxu1 %v8546_v49  ;;  %v8548_v49 = vpack.c.bf16 %v8435_v53, %v8431_v31  ;;  %v8429_v53 = vadd.f32 %v16314_v20, %v15584_v22 }
 0x91c   : > { %v16468_v42 = vpop.f32.mrf.mxu1 }
 0x91d   : > { %17494 = vst [vmem:[#allocation108_spill] sm:$0xff] %v16468_v42  ;;  %v8474_v42 = vpop.f32.mrf.mxu0 }
 0x91e   : > { %v16476_v3 = vpop.f32.mrf.mxu1 }
 0x91f   : > { %17495 = vst [vmem:[#allocation109_spill] sm:$0xff] %v16476_v3  ;;  %v16490_v3 = vld [vmem:[%s17155_s25] ss:$0 sm:$0xff] }
 0x920   : > { %v16480_v11 = vpop.f32.mrf.mxu1 }
 0x921   : > { %17496 = vst [vmem:[#allocation110_spill] sm:$0xff] %v16480_v11 }
 0x922   : > { %v9127_v60 = vpop.f32.mrf.mxu1  ;;  %9318 = vmatmul.mubr.bf16.gmra.mxu1 %v8545_v18  ;;  %v8547_v18 = vpack.c.bf16 %v8433_v40, %v8429_v53  ;;  %v8439_v40 = vadd.f32 %v16354_v41, %v15584_v22 }
 0x923   : > { %v9128_v25 = vadd.f32 %v9127_v60, %v16156_v13  ;;  %9325 = vmatprep.mubr.bf16.mxu1 %v8548_v49  ;;  %v8441_v13 = vadd.f32 %v16362_v52, %v15590_v56  ;;  %v8443_v52 = vadd.f32 %v16374_v15, %v15584_v22 }
 0x924   : > { %v9129_v55 = vpop.f32.mrf.mxu1 }
 0x925   : > { %v9389_v60 = vadd.f32 %v16490_v3, %v9128_v25  ;;  %v8550_v11 = vpack.c.bf16 %v8445_v27, %v8441_v13  ;;  %v16510_v27 = vpop.f32.mrf.mxu0  ;;  %v8549_v15 = vpack.c.bf16 %v8443_v52, %v8439_v40  ;;  %v8461_v52 = vadd.f32 %v16442_v29, %v15590_v56 }
 0x926   : > { %v9130_v31 = vpop.f32.mrf.mxu1  ;;  %v8463_v29 = vadd.f32 %v16454_v16, %v15584_v22 }
 0x927   : > { %v9131_v46 = vadd.f32 %v9130_v31, %v16171_v4  ;;  %v9453_v5 = vmax.f32 %v9389_v60, 0.0  ;;  %v8455_v4 = vadd.f32 %v16422_v12, %v15590_v56  ;;  %v8451_v31 = vadd.f32 %v16402_v37, %v15590_v56 }
 0x928   : > { %v9132_v49 = vpop.f32.mrf.mxu1  ;;  %v8453_v37 = vadd.f32 %v16414_v62, %v15584_v22 }
 0x929   : > { %v9390_v55 = vadd.f32 %v16490_v3, %v9131_v46  ;;  %v8552_v13 = vpack.c.bf16 %v8455_v4, %v8451_v31 }
 0x92a   : > { %v9135_v26 = vpop.f32.mrf.mxu1  ;;  %9326 = vmatmul.mubr.bf16.gmra.mxu1 %v8547_v18 }
 0x92b   : > { %v9454_v20 = vmax.f32 %v9390_v55, 0.0  ;;  %v9136_v54 = vadd.f32 %v16152_v58, %v9135_v26  ;;  %9333 = vmatprep.mubr.bf16.mxu1 %v8550_v11  ;;  %v8449_v55 = vadd.f32 %v16394_v45, %v15584_v22 }
 0x92c   : > { %v9137_v44 = vpop.f32.mrf.mxu1 }
 0x92d   : > { %v9517_v25 = vpack.c.bf16 %v9454_v20, %v9453_v5  ;;  %v9391_v58 = vadd.f32 %v16490_v3, %v9136_v54  ;;  %v8480_v5 = vpop.f32.mrf.mxu0 }
 0x92e   : > { %v9138_v53 = vpop.f32.mrf.mxu1 }
 0x92f   : > { %v9139_v11 = vadd.f32 %v16167_v28, %v9138_v53  ;;  %11158 = vmatprep.mubr.bf16.mxu0 %v9517_v25  ;;  %v9455_v41 = vmax.f32 %v9391_v58, 0.0  ;;  %v8465_v28 = vadd.f32 %v16462_v0, %v15590_v56  ;;  %v8482_v26 = vpop.f32.mrf.mxu0  ;;  %v8551_v25 = vpack.c.bf16 %v8453_v37, %v8449_v55 }
 0x930   : > { %v9140_v44 = vpop.f32.mrf.mxu1 }
 0x931   : > { %v9392_v12 = vadd.f32 %v16490_v3, %v9139_v11  ;;  %v8554_v40 = vpack.c.bf16 %v8465_v28, %v8461_v52  ;;  %v8484_v0 = vpop.f32.mrf.mxu0 }
 0x932   : > { %v9143_v60 = vpop.f32.mrf.mxu1  ;;  %9334 = vmatmul.mubr.bf16.gmra.mxu1 %v8549_v15 }
 0x933   : > { %v9456_v46 = vmax.f32 %v9392_v12, 0.0  ;;  %v9144_v18 = vadd.f32 %v9143_v60, %v16182_v61  ;;  %9341 = vmatprep.mubr.bf16.mxu1 %v8552_v13  ;;  %v8459_v13 = vadd.f32 %v16434_v50, %v15584_v22  ;;  %v8488_v12 = vpop.f32.mrf.mxu0 }
 0x934   : > { %v9145_v54 = vpop.f32.mrf.mxu1 }
 0x935   : > { %v9518_v49 = vpack.c.bf16 %v9456_v46, %v9455_v41  ;;  %v9393_v4 = vadd.f32 %v16490_v3, %v9144_v18  ;;  %v8471_v41 = vadd.f32 %v16482_v51, %v15590_v56  ;;  %v8553_v18 = vpack.c.bf16 %v8463_v29, %v8459_v13 }
 0x936   : > { %v9146_v20 = vpop.f32.mrf.mxu1  ;;  %v8473_v51 = vadd.f32 %v16496_v24, %v15584_v22 }
 0x937   : > { %v9147_v61 = vadd.f32 %v9146_v20, %v16197_v47  ;;  %11159 = vmatmul.mubr.bf16.vlgmr.msra.gmra.mxu0 %v9518_v49  ;;  %v9457_v58 = vmax.f32 %v9393_v4, 0.0  ;;  %v8475_v47 = vadd.f32 %v8474_v42, %v15590_v56  ;;  %v8490_v42 = vpop.f32.mrf.mxu0  ;;  %v8469_v4 = vadd.f32 %v16474_v39, %v15584_v22 }
 0x938   : > { %v9148_v62 = vpop.f32.mrf.mxu1 }
 0x939   : > { %v9394_v53 = vadd.f32 %v16490_v3, %v9147_v61  ;;  %v8556_v16 = vpack.c.bf16 %v8475_v47, %v8471_v41  ;;  %v8492_v61 = vpop.f32.mrf.mxu0  ;;  %v8481_v62 = vadd.f32 %v8480_v5, %v15590_v56  ;;  %v8483_v5 = vadd.f32 %v8482_v26, %v15584_v22 }
 0x93a   : > { %v9151_v31 = vpop.f32.mrf.mxu1  ;;  %9342 = vmatmul.mubr.bf16.gmra.mxu1 %v8551_v25 }
 0x93b   : > { %v9458_v45 = vmax.f32 %v9394_v53, 0.0  ;;  %v9152_v11 = vadd.f32 %v16178_v2, %v9151_v31  ;;  %9349 = vmatprep.mubr.bf16.mxu1 %v8554_v40 }
 0x93c   : > { %v9153_v15 = vpop.f32.mrf.mxu1 }
 0x93d   : > { %v9519_v44 = vpack.c.bf16 %v9458_v45, %v9457_v58  ;;  %v9395_v46 = vadd.f32 %v16490_v3, %v9152_v11  ;;  %v8494_v45 = vpop.f32.mrf.mxu0 }
 0x93e   : > { %v9154_v60 = vpop.f32.mrf.mxu1  ;;  %v8495_v47 = vadd.f32 %v8494_v45, %v15590_v56  ;;  %v17498_v45 = vld [vmem:[#allocation48_spill] sm:$0xff] }
 0x93f   : > { %v9155_v2 = vadd.f32 %v16193_v14, %v9154_v60  ;;  %11162 = vmatprep.mubr.bf16.mxu0 %v9519_v44  ;;  %v9459_v49 = vmax.f32 %v9395_v46, 0.0  ;;  %v8485_v14 = vadd.f32 %v8484_v0, %v15590_v56  ;;  %v8479_v44 = vadd.f32 %v16510_v27, %v15584_v22 }
 0x940   : > { %v9156_v37 = vpop.f32.mrf.mxu1  ;;  %v8491_v60 = vadd.f32 %v8490_v42, %v15590_v56  ;;  %v8493_v27 = vadd.f32 %v8492_v61, %v15584_v22 }
 0x941   : > { %v9396_v54 = vadd.f32 %v16490_v3, %v9155_v2  ;;  %v8558_v58 = vpack.c.bf16 %v8485_v14, %v8481_v62  ;;  %v8557_v2 = vpack.c.bf16 %v8483_v5, %v8479_v44  ;;  %v17499_v5 = vld [vmem:[#allocation57_spill] sm:$0xff] }
 0x942   : > { %v9159_v28 = vpop.f32.mrf.mxu1  ;;  %9350 = vmatmul.mubr.bf16.gmra.mxu1 %v8553_v18  ;;  %v8560_v18 = vpack.c.bf16 %v8495_v47, %v8491_v60 }
 0x943   : > { %v9460_v50 = vmax.f32 %v9396_v54, 0.0  ;;  %v9160_v55 = vadd.f32 %v9159_v28, %v16208_v32  ;;  %9357 = vmatprep.mubr.bf16.mxu1 %v8556_v16  ;;  %v8555_v32 = vpack.c.bf16 %v8473_v51, %v8469_v4 }
 0x944   : > { %v9161_v20 = vpop.f32.mrf.mxu1 }
 0x945   : > { %v9520_v52 = vpack.c.bf16 %v9460_v50, %v9459_v49  ;;  %v9397_v40 = vadd.f32 %v16490_v3, %v9160_v55  ;;  %v8489_v49 = vadd.f32 %v8488_v12, %v15584_v22  ;;  %v17497_v12 = vld [vmem:[#allocation51_spill] sm:$0xff] }
 0x946   : > { %v9162_v25 = vpop.f32.mrf.mxu1 }
 0x947   : > { %v9163_v53 = vadd.f32 %v9162_v25, %v16220_v7  ;;  %11163 = vmatmul.mubr.bf16.gmra.mxu0 %v9520_v52  ;;  %v9461_v11 = vmax.f32 %v9397_v40, 0.0  ;;  %v8559_v51 = vpack.c.bf16 %v8493_v27, %v8489_v49  ;;  %v17502_v49 = vld [vmem:[#allocation52_spill] sm:$0xff] }
 0x948   : > { %v9164_v31 = vpop.f32.mrf.mxu1 }
 0x949   : > { %v9398_v24 = vadd.f32 %v16490_v3, %v9163_v53 }
 0x94a   : > { %v9167_v0 = vpop.f32.mrf.mxu1  ;;  %9358 = vmatmul.mubr.bf16.gmra.mxu1 %v8555_v32 }
 0x94b   : > { %v9462_v29 = vmax.f32 %v9398_v24, 0.0  ;;  %v9168_v39 = vadd.f32 %v16204_v43, %v9167_v0  ;;  %9365 = vmatprep.mubr.bf16.mxu1 %v8558_v58 }
 0x94c   : > { %v9169_v15 = vpop.f32.mrf.mxu1 }
 0x94d   : > { %v9521_v7 = vpack.c.bf16 %v9462_v29, %v9461_v11  ;;  %v9399_v41 = vadd.f32 %v16490_v3, %v9168_v39 }
 0x94e   : > { %v9170_v13 = vpop.f32.mrf.mxu1 }
 0x94f   : > { %v9171_v46 = vadd.f32 %v16216_v23, %v9170_v13  ;;  %11166 = vmatprep.mubr.bf16.mxu0 %v9521_v7  ;;  %v9463_v16 = vmax.f32 %v9399_v41, 0.0  ;;  %v17500_v41 = vld [vmem:[#allocation58_spill] sm:$0xff] }
 0x950   : > { %v9172_v43 = vpop.f32.mrf.mxu1 }
 0x951   : > { %v9400_v26 = vadd.f32 %v16490_v3, %v9171_v46 }
 0x952   : > { %v9175_v37 = vpop.f32.mrf.mxu1  ;;  %9366 = vmatmul.mubr.bf16.gmra.mxu1 %v8557_v2 }
 0x953   : > { %v9464_v54 = vmax.f32 %v9400_v26, 0.0  ;;  %v9176_v28 = vadd.f32 %v9175_v37, %v16228_v8  ;;  %9373 = vmatprep.mubr.bf16.mxu1 %v8560_v18  ;;  %v17501_v37 = vld [vmem:[#allocation55_spill] sm:$0xff] }
 0x954   : > { %v9177_v56 = vpop.f32.mrf.mxu1 }
 0x955   : > { %v9522_v42 = vpack.c.bf16 %v9464_v54, %v9463_v16  ;;  %v9401_v50 = vadd.f32 %v16490_v3, %v9176_v28 }
 0x956   : > { %v9178_v23 = vpop.f32.mrf.mxu1 }
 0x957   : > { %v9179_v55 = vadd.f32 %v9178_v23, %v16240_v48  ;;  %11167 = vmatmul.mubr.bf16.gmra.mxu0 %v9522_v42  ;;  %v9465_v8 = vmax.f32 %v9401_v50, 0.0 }
 0x958   : > { %v9180_v20 = vpop.f32.mrf.mxu1 }
 0x959   : > { %v9402_v14 = vadd.f32 %v16490_v3, %v9179_v55 }
 0x95a   : > { %v9183_v52 = vpop.f32.mrf.mxu1  ;;  %9374 = vmatmul.mubr.bf16.gmra.mxu1 %v8559_v51 }
 0x95b   : > { %v9466_v4 = vmax.f32 %v9402_v14, 0.0  ;;  %v9184_v61 = vadd.f32 %v16224_v35, %v9183_v52 }
 0x95c   : > { %v9185_v25 = vpop.f32.mrf.mxu1 }
 0x95d   : > { %v9523_v62 = vpack.c.bf16 %v9466_v4, %v9465_v8  ;;  %v9403_v22 = vadd.f32 %v16490_v3, %v9184_v61 }
 0x95e   : > { %v9186_v40 = vpop.f32.mrf.mxu1 }
 0x95f   : > { %v9187_v53 = vadd.f32 %v17497_v12, %v9186_v40  ;;  %11170 = vmatprep.mubr.bf16.mxu0 %v9523_v62  ;;  %v9467_v58 = vmax.f32 %v9403_v22, 0.0  ;;  %v17503_v62 = vld [vmem:[#allocation65_spill] sm:$0xff] }
 0x960   : > { %v9188_v48 = vpop.f32.mrf.mxu1 }
 0x961   : > { %v9404_v32 = vadd.f32 %v16490_v3, %v9187_v53 }
 0x962   : > { %v9191_v31 = vpop.f32.mrf.mxu1 }
 0x963   : > { %v9468_v24 = vmax.f32 %v9404_v32, 0.0  ;;  %v9192_v0 = vadd.f32 %v9191_v31, %v17498_v45  ;;  %v17504_v32 = vld [vmem:[#allocation60_spill] sm:$0xff] }
 0x964   : > { %v9193_v11 = vpop.f32.mrf.mxu1 }
 0x965   : > { %v9524_v29 = vpack.c.bf16 %v9468_v24, %v9467_v58  ;;  %v9405_v35 = vadd.f32 %v16490_v3, %v9192_v0  ;;  %v17505_v11 = vld [vmem:[#allocation59_spill] sm:$0xff] }
 0x966   : > { %v9194_v39 = vpop.f32.mrf.mxu1 }
 0x967   : > { %v9195_v15 = vadd.f32 %v9194_v39, %v17499_v5  ;;  %11171 = vmatmul.mubr.bf16.gmra.mxu0 %v9524_v29  ;;  %v9469_v13 = vmax.f32 %v9405_v35, 0.0 }
 0x968   : > { %v9196_v47 = vpop.f32.mrf.mxu1 }
 0x969   : > { %v9406_v7 = vadd.f32 %v16490_v3, %v9195_v15 }
 0x96a   : > { %v9199_v44 = vpop.f32.mrf.mxu1 }
 0x96b   : > { %v9470_v60 = vmax.f32 %v9406_v7, 0.0  ;;  %v9200_v46 = vadd.f32 %v17500_v41, %v9199_v44 }
 0x96c   : > { %v9201_v2 = vpop.f32.mrf.mxu1 }
 0x96d   : > { %v9525_v43 = vpack.c.bf16 %v9470_v60, %v9469_v13  ;;  %v9407_v26 = vadd.f32 %v16490_v3, %v9200_v46  ;;  %v17506_v46 = vld [vmem:[#allocation62_spill] sm:$0xff] }
 0x96e   : > { %v9202_v18 = vpop.f32.mrf.mxu1 }
 0x96f   : > { %v9203_v16 = vadd.f32 %v17501_v37, %v9202_v18  ;;  %11174 = vmatprep.mubr.bf16.mxu0 %v9525_v43  ;;  %v9471_v56 = vmax.f32 %v9407_v26, 0.0 }
 0x970   : > { %v9204_v54 = vpop.f32.mrf.mxu1 }
 0x971   : > { %v9408_v28 = vadd.f32 %v16490_v3, %v9203_v16  ;;  %v17507_v16 = vld [vmem:[#allocation67_spill] sm:$0xff] }
 0x972   : > { %v9207_v27 = vpop.f32.mrf.mxu1 }
 0x973   : > { %v9472_v42 = vmax.f32 %v9408_v28, 0.0  ;;  %v9208_v23 = vadd.f32 %v9207_v27, %v17502_v49 }
 0x974   : > { %v9209_v50 = vpop.f32.mrf.mxu1 }
 0x975   : > { %v9526_v55 = vpack.c.bf16 %v9472_v42, %v9471_v56  ;;  %v9409_v20 = vadd.f32 %v16490_v3, %v9208_v23 }
 0x976   : > { %v9210_v51 = vpop.f32.mrf.mxu1 }
 0x977   : > { %v9211_v14 = vadd.f32 %v9210_v51, %v16280_v57  ;;  %11175 = vmatmul.mubr.bf16.gmra.mxu0 %v9526_v55  ;;  %v9473_v61 = vmax.f32 %v9409_v20, 0.0 }
 0x978   : > { %v9212_v52 = vpop.f32.mrf.mxu1 }
 0x979   : > { %v9410_v8 = vadd.f32 %v16490_v3, %v9211_v14 }
 0x97a   : > { %v9215_v4 = vpop.f32.mrf.mxu1 }
 0x97b   : > { %v9474_v25 = vmax.f32 %v9410_v8, 0.0  ;;  %v9216_v40 = vadd.f32 %v17503_v62, %v9215_v4 }
 0x97c   : > { %v9217_v22 = vpop.f32.mrf.mxu1 }
 0x97d   : > { %v9527_v12 = vpack.c.bf16 %v9474_v25, %v9473_v61  ;;  %v9411_v48 = vadd.f32 %v16490_v3, %v9216_v40  ;;  %v17508_v25 = vld [vmem:[#allocation73_spill] sm:$0xff] }
 0x97e   : > { %v9218_v53 = vpop.f32.mrf.mxu1 }
 0x97f   : > { %v9219_v31 = vadd.f32 %v17504_v32, %v9218_v53  ;;  %11178 = vmatprep.mubr.bf16.mxu0 %v9527_v12  ;;  %v9475_v45 = vmax.f32 %v9411_v48, 0.0  ;;  %v17509_v53 = vld [vmem:[#allocation64_spill] sm:$0xff] }
 0x980   : > { %v9220_v58 = vpop.f32.mrf.mxu1 }
 0x981   : > { %v9412_v57 = vadd.f32 %v16490_v3, %v9219_v31 }
 0x982   : > { %v9223_v24 = vpop.f32.mrf.mxu1 }
 0x983   : > { %v9476_v0 = vmax.f32 %v9412_v57, 0.0  ;;  %v9224_v29 = vadd.f32 %v9223_v24, %v17505_v11 }
 0x984   : > { %v9225_v39 = vpop.f32.mrf.mxu1 }
 0x985   : > { %v9528_v35 = vpack.c.bf16 %v9476_v0, %v9475_v45  ;;  %v9413_v15 = vadd.f32 %v16490_v3, %v9224_v29 }
 0x986   : > { %v9226_v5 = vpop.f32.mrf.mxu1 }
 0x987   : > { %v9227_v47 = vadd.f32 %v9226_v5, %v16300_v59  ;;  %11179 = vmatmul.mubr.bf16.gmra.mxu0 %v9528_v35  ;;  %v9477_v60 = vmax.f32 %v9413_v15, 0.0 }
 0x988   : > { %v9228_v7 = vpop.f32.mrf.mxu1 }
 0x989   : > { %v9414_v44 = vadd.f32 %v16490_v3, %v9227_v47 }
 0x98a   : > { %v9231_v13 = vpop.f32.mrf.mxu1 }
 0x98b   : > { %v9478_v41 = vmax.f32 %v9414_v44, 0.0  ;;  %v9232_v2 = vadd.f32 %v17506_v46, %v9231_v13  ;;  %v17510_v44 = vld [vmem:[#allocation71_spill] sm:$0xff] }
 0x98c   : > { %v9233_v43 = vpop.f32.mrf.mxu1 }
 0x98d   : > { %v9529_v18 = vpack.c.bf16 %v9478_v41, %v9477_v60  ;;  %v9415_v37 = vadd.f32 %v16490_v3, %v9232_v2  ;;  %v17511_v2 = vld [vmem:[#allocation72_spill] sm:$0xff] }
 0x98e   : > { %v9234_v26 = vpop.f32.mrf.mxu1 }
 0x98f   : > { %v9235_v54 = vadd.f32 %v17507_v16, %v9234_v26  ;;  %11182 = vmatprep.mubr.bf16.mxu0 %v9529_v18  ;;  %v9479_v56 = vmax.f32 %v9415_v37, 0.0 }
 0x990   : > { %v9236_v28 = vpop.f32.mrf.mxu1 }
 0x991   : > { %v9416_v59 = vadd.f32 %v16490_v3, %v9235_v54 }
 0x992   : > { %v9239_v27 = vpop.f32.mrf.mxu1 }
 0x993   : > { %v9480_v42 = vmax.f32 %v9416_v59, 0.0  ;;  %v9240_v49 = vadd.f32 %v9239_v27, %v16308_v63 }
 0x994   : > { %v9241_v23 = vpop.f32.mrf.mxu1 }
 0x995   : > { %v9530_v50 = vpack.c.bf16 %v9480_v42, %v9479_v56  ;;  %v9417_v51 = vadd.f32 %v16490_v3, %v9240_v49 }
 0x996   : > { %v9242_v55 = vpop.f32.mrf.mxu1 }
 0x997   : > { %v9243_v20 = vadd.f32 %v9242_v55, %v16320_v38  ;;  %11183 = vmatmul.mubr.bf16.gmra.mxu0 %v9530_v50  ;;  %v9481_v4 = vmax.f32 %v9417_v51, 0.0 }
 0x998   : > { %v9244_v14 = vpop.f32.mrf.mxu1 }
 0x999   : > { %v9418_v52 = vadd.f32 %v16490_v3, %v9243_v20  ;;  %v17512_v20 = vld [vmem:[#allocation68_spill] sm:$0xff] }
 0x99a   : > { %v9247_v8 = vpop.f32.mrf.mxu1 }
 0x99b   : > { %v9482_v61 = vmax.f32 %v9418_v52, 0.0  ;;  %v9248_v62 = vadd.f32 %v17508_v25, %v9247_v8 }
 0x99c   : > { %v9249_v40 = vpop.f32.mrf.mxu1 }
 0x99d   : > { %v9531_v22 = vpack.c.bf16 %v9482_v61, %v9481_v4  ;;  %v9419_v63 = vadd.f32 %v16490_v3, %v9248_v62  ;;  %v17513_v61 = vld [vmem:[#allocation93_spill] sm:$0xff] }
 0x99e   : > { %v9250_v12 = vpop.f32.mrf.mxu1 }
 0x99f   : > { %v9251_v48 = vadd.f32 %v17509_v53, %v9250_v12  ;;  %11186 = vmatprep.mubr.bf16.mxu0 %v9531_v22  ;;  %v9483_v58 = vmax.f32 %v9419_v63, 0.0 }
 0x9a0   : > { %v9252_v32 = vpop.f32.mrf.mxu1 }
 0x9a1   : > { %v9420_v38 = vadd.f32 %v16490_v3, %v9251_v48 }
 0x9a2   : > { %v9255_v31 = vpop.f32.mrf.mxu1 }
 0x9a3   : > { %v9484_v57 = vmax.f32 %v9420_v38, 0.0  ;;  %v9256_v24 = vadd.f32 %v9255_v31, %v16328_v6 }
 0x9a4   : > { %v9257_v45 = vpop.f32.mrf.mxu1 }
 0x9a5   : > { %v9532_v0 = vpack.c.bf16 %v9484_v57, %v9483_v58  ;;  %v9421_v29 = vadd.f32 %v16490_v3, %v9256_v24 }
 0x9a6   : > { %v9258_v11 = vpop.f32.mrf.mxu1 }
 0x9a7   : > { %v9259_v39 = vadd.f32 %v9258_v11, %v16340_v9  ;;  %11187 = vmatmul.mubr.bf16.gmra.mxu0 %v9532_v0  ;;  %v9485_v47 = vmax.f32 %v9421_v29, 0.0  ;;  %v17514_v11 = vld [vmem:[#allocation94_spill] sm:$0xff] }
 0x9a8   : > { %v9260_v35 = vpop.f32.mrf.mxu1 }
 0x9a9   : > { %v9422_v5 = vadd.f32 %v16490_v3, %v9259_v39 }
 0x9aa   : > { %v9263_v15 = vpop.f32.mrf.mxu1 }
 0x9ab   : > { %v9486_v7 = vmax.f32 %v9422_v5, 0.0  ;;  %v9264_v13 = vadd.f32 %v17510_v44, %v9263_v15  ;;  %v17515_v15 = vld [vmem:[#allocation95_spill] sm:$0xff] }
 0x9ac   : > { %v9265_v60 = vpop.f32.mrf.mxu1 }
 0x9ad   : > { %v9533_v41 = vpack.c.bf16 %v9486_v7, %v9485_v47  ;;  %v9423_v6 = vadd.f32 %v16490_v3, %v9264_v13 }
 0x9ae   : > { %v9266_v46 = vpop.f32.mrf.mxu1 }
 0x9af   : > { %v9267_v43 = vadd.f32 %v17511_v2, %v9266_v46  ;;  %11190 = vmatprep.mubr.bf16.mxu0 %v9533_v41  ;;  %v9487_v37 = vmax.f32 %v9423_v6, 0.0 }
 0x9b0   : > { %v9268_v18 = vpop.f32.mrf.mxu1 }
 0x9b1   : > { %v9424_v9 = vadd.f32 %v16490_v3, %v9267_v43 }
 0x9b2   : > { %v9271_v26 = vpop.f32.mrf.mxu1 }
 0x9b3   : > { %v9488_v16 = vmax.f32 %v9424_v9, 0.0  ;;  %v9272_v54 = vadd.f32 %v9271_v26, %v16348_v21 }
 0x9b4   : > { %v9273_v28 = vpop.f32.mrf.mxu1 }
 0x9b5   : > { %v9534_v59 = vpack.c.bf16 %v9488_v16, %v9487_v37  ;;  %v9425_v56 = vadd.f32 %v16490_v3, %v9272_v54  ;;  %v17516_v28 = vld [vmem:[#allocation96_spill] sm:$0xff] }
 0x9b6   : > { %v9274_v27 = vpop.f32.mrf.mxu1 }
 0x9b7   : > { %v9275_v42 = vadd.f32 %v9274_v27, %v16360_v19  ;;  %11191 = vmatmul.mubr.bf16.gmra.mxu0 %v9534_v59  ;;  %v9489_v55 = vmax.f32 %v9425_v56, 0.0 }
 0x9b8   : > { %v9276_v49 = vpop.f32.mrf.mxu1 }
 0x9b9   : > { %v9426_v23 = vadd.f32 %v16490_v3, %v9275_v42  ;;  %v17517_v49 = vld [vmem:[#allocation97_spill] sm:$0xff] }
 0x9ba   : > { %v9279_v50 = vpop.f32.mrf.mxu1 }
 0x9bb   : > { %v9490_v51 = vmax.f32 %v9426_v23, 0.0  ;;  %v9280_v14 = vadd.f32 %v17512_v20, %v9279_v50 }
 0x9bc   : > { %v9281_v52 = vpop.f32.mrf.mxu1 }
 0x9bd   : > { %v9535_v8 = vpack.c.bf16 %v9490_v51, %v9489_v55  ;;  %v9427_v21 = vadd.f32 %v16490_v3, %v9280_v14 }
 0x9be   : > { %v9282_v4 = vpop.f32.mrf.mxu1 }
 0x9bf   : > { %v9283_v25 = vadd.f32 %v17513_v61, %v9282_v4  ;;  %11194 = vmatprep.mubr.bf16.mxu0 %v9535_v8  ;;  %v9491_v22 = vmax.f32 %v9427_v21, 0.0 }
 0x9c0   : > { %v9284_v62 = vpop.f32.mrf.mxu1 }
 0x9c1   : > { %v9428_v19 = vadd.f32 %v16490_v3, %v9283_v25 }
 0x9c2   : > { %v9287_v40 = vpop.f32.mrf.mxu1 }
 0x9c3   : > { %v9492_v12 = vmax.f32 %v9428_v19, 0.0  ;;  %v9288_v63 = vadd.f32 %v9287_v40, %v16368_v34 }
 0x9c4   : > { %v9289_v53 = vpop.f32.mrf.mxu1 }
 0x9c5   : > { %v9536_v48 = vpack.c.bf16 %v9492_v12, %v9491_v22  ;;  %v9429_v38 = vadd.f32 %v16490_v3, %v9288_v63  ;;  %v17518_v12 = vld [vmem:[#allocation98_spill] sm:$0xff] }
 0x9c6   : > { %v9290_v32 = vpop.f32.mrf.mxu1 }
 0x9c7   : > { %v9291_v31 = vadd.f32 %v9290_v32, %v16380_v33  ;;  %11195 = vmatmul.mubr.bf16.gmra.mxu0 %v9536_v48  ;;  %v9493_v45 = vmax.f32 %v9429_v38, 0.0  ;;  %v17519_v38 = vld [vmem:[#allocation99_spill] sm:$0xff] }
 0x9c8   : > { %v9292_v58 = vpop.f32.mrf.mxu1 }
 0x9c9   : > { %v9430_v57 = vadd.f32 %v16490_v3, %v9291_v31 }
 0x9ca   : > { %v9295_v24 = vpop.f32.mrf.mxu1 }
 0x9cb   : > { %v9494_v0 = vmax.f32 %v9430_v57, 0.0  ;;  %v9296_v29 = vadd.f32 %v17514_v11, %v9295_v24 }
 0x9cc   : > { %v9297_v39 = vpop.f32.mrf.mxu1 }
 0x9cd   : > { %v9537_v35 = vpack.c.bf16 %v9494_v0, %v9493_v45  ;;  %v9431_v34 = vadd.f32 %v16490_v3, %v9296_v29  ;;  %v16645_v39 = vld [vmem:[%s17157_s27] ss:$0 sm:$0xff] }
 0x9ce   : > { %v9298_v5 = vpop.f32.mrf.mxu1 }
 0x9cf   : > { %v9299_v47 = vadd.f32 %v17515_v15, %v9298_v5  ;;  %11198 = vmatprep.mubr.bf16.mxu0 %v9537_v35  ;;  %v9495_v13 = vmax.f32 %v9431_v34, 0.0  ;;  %v17520_v34 = vld [vmem:[#allocation102_spill] sm:$0xff] }
 0x9d0   : > { %v9300_v7 = vpop.f32.mrf.mxu1 }
 0x9d1   : > { %v9432_v33 = vadd.f32 %v16490_v3, %v9299_v47 }
 0x9d2   : > { %v9303_v44 = vpop.f32.mrf.mxu1 }
 0x9d3   : > { %v9496_v60 = vmax.f32 %v9432_v33, 0.0  ;;  %v9304_v41 = vadd.f32 %v9303_v44, %v16388_v1 }
 0x9d4   : > { %v9305_v46 = vpop.f32.mrf.mxu1 }
 0x9d5   : > { %v9538_v6 = vpack.c.bf16 %v9496_v60, %v9495_v13  ;;  %v9433_v43 = vadd.f32 %v16490_v3, %v9304_v41 }
 0x9d6   : > { %v9306_v2 = vpop.f32.mrf.mxu1 }
 0x9d7   : > { %v9307_v18 = vadd.f32 %v9306_v2, %v16400_v30  ;;  %11199 = vmatmul.mubr.bf16.gmra.mxu0 %v9538_v6  ;;  %v9497_v16 = vmax.f32 %v9433_v43, 0.0  ;;  %v17521_v2 = vld [vmem:[#allocation100_spill] sm:$0xff] }
 0x9d8   : > { %v9308_v9 = vpop.f32.mrf.mxu1 }
 0x9d9   : > { %v9434_v26 = vadd.f32 %v16490_v3, %v9307_v18 }
 0x9da   : > { %v9311_v37 = vpop.f32.mrf.mxu1 }
 0x9db   : > { %v9498_v54 = vmax.f32 %v9434_v26, 0.0  ;;  %v9312_v59 = vadd.f32 %v17516_v28, %v9311_v37 }
 0x9dc   : > { %v9313_v27 = vpop.f32.mrf.mxu1 }
 0x9dd   : > { %v9539_v56 = vpack.c.bf16 %v9498_v54, %v9497_v16  ;;  %v9435_v1 = vadd.f32 %v16490_v3, %v9312_v59 }
 0x9de   : > { %v9314_v42 = vpop.f32.mrf.mxu1 }
 0x9df   : > { %v9315_v23 = vadd.f32 %v17517_v49, %v9314_v42  ;;  %11202 = vmatprep.mubr.bf16.mxu0 %v9539_v56  ;;  %v9499_v51 = vmax.f32 %v9435_v1, 0.0  ;;  %v17522_v42 = vld [vmem:[#allocation101_spill] sm:$0xff] }
 0x9e0   : > { %v9316_v50 = vpop.f32.mrf.mxu1 }
 0x9e1   : > { %v9436_v30 = vadd.f32 %v16490_v3, %v9315_v23 }
 0x9e2   : > { %v9319_v55 = vpop.f32.mrf.mxu1 }
 0x9e3   : > { %v9500_v20 = vmax.f32 %v9436_v30, 0.0  ;;  %v9320_v14 = vadd.f32 %v9319_v55, %v16408_v17 }
 0x9e4   : > { %v9321_v52 = vpop.f32.mrf.mxu1 }
 0x9e5   : > { %v9540_v8 = vpack.c.bf16 %v9500_v20, %v9499_v51  ;;  %v9437_v21 = vadd.f32 %v16490_v3, %v9320_v14  ;;  %v17523_v20 = vld [vmem:[#allocation104_spill] sm:$0xff] }
 0x9e6   : > { %v9322_v4 = vpop.f32.mrf.mxu1 }
 0x9e7   : > { %v9323_v61 = vadd.f32 %v9322_v4, %v16420_v36  ;;  %11203 = vmatmul.mubr.bf16.gmra.mxu0 %v9540_v8  ;;  %v9501_v40 = vmax.f32 %v9437_v21, 0.0 }
 0x9e8   : > { %v9324_v25 = vpop.f32.mrf.mxu1 }
 0x9e9   : > { %v9438_v62 = vadd.f32 %v16490_v3, %v9323_v61  ;;  %v17524_v61 = vld [vmem:[#allocation106_spill] sm:$0xff] }
 0x9ea   : > { %v9327_v19 = vpop.f32.mrf.mxu1 }
 0x9eb   : > { %v9502_v22 = vmax.f32 %v9438_v62, 0.0  ;;  %v9328_v63 = vadd.f32 %v17518_v12, %v9327_v19 }
 0x9ec   : > { %v9329_v53 = vpop.f32.mrf.mxu1 }
 0x9ed   : > { %v9541_v48 = vpack.c.bf16 %v9502_v22, %v9501_v40  ;;  %v9439_v17 = vadd.f32 %v16490_v3, %v9328_v63 }
 0x9ee   : > { %v9330_v32 = vpop.f32.mrf.mxu1 }
 0x9ef   : > { %v9331_v31 = vadd.f32 %v17519_v38, %v9330_v32  ;;  %11206 = vmatprep.mubr.bf16.mxu0 %v9541_v48  ;;  %v9503_v24 = vmax.f32 %v9439_v17, 0.0 }
 0x9f0   : > { %v9332_v58 = vpop.f32.mrf.mxu1 }
 0x9f1   : > { %v9440_v36 = vadd.f32 %v16490_v3, %v9331_v31 }
 0x9f2   : > { %v9335_v57 = vpop.f32.mrf.mxu1 }
 0x9f3   : > { %v9504_v45 = vmax.f32 %v9440_v36, 0.0  ;;  %v9336_v0 = vadd.f32 %v9335_v57, %v16428_v10  ;;  %v17525_v36 = vld [vmem:[#allocation103_spill] sm:$0xff] }
 0x9f4   : > { %v9337_v11 = vpop.f32.mrf.mxu1 }
 0x9f5   : > { %v9542_v29 = vpack.c.bf16 %v9504_v45, %v9503_v24  ;;  %v9441_v5 = vadd.f32 %v16490_v3, %v9336_v0 }
 0x9f6   : > { %v9338_v35 = vpop.f32.mrf.mxu1 }
 0x9f7   : > { %v9339_v15 = vadd.f32 %v9338_v35, %v17520_v34  ;;  %v11160_v47 = vpop.f32.mrf.mxu0  ;;  %11207 = vmatmul.mubr.bf16.gmra.mxu0 %v9542_v29  ;;  %v9505_v46 = vmax.f32 %v9441_v5, 0.0 }
 0x9f8   : > { %v9663_v7 = vadd.f32 %v11160_v47, %v16645_v39  ;;  %v9340_v33 = vpop.f32.mrf.mxu1 }
 0x9f9   : > { %v9442_v44 = vadd.f32 %v16490_v3, %v9339_v15  ;;  %v9654_v10 = vpop.f32.mrf.mxu0 }
 0x9fa   : > { %v10932_v13 = vmul.f32 -1.442695, %v9663_v7  ;;  %v9655_v60 = vadd.f32 %v16645_v39, %v9654_v10  ;;  %v9343_v41 = vpop.f32.mrf.mxu1 }
 0x9fb   : > { %v9506_v6 = vmax.f32 %v9442_v44, 0.0  ;;  %v9344_v43 = vadd.f32 %v17521_v2, %v9343_v41  ;;  %v11161_v18 = vpop.f32.mrf.mxu0 }
 0x9fc   : > { %11707 = vpow2.f32 %v10932_v13  ;;  %v10930_v9 = vmul.f32 -1.442695, %v9655_v60  ;;  %v9666_v26 = vadd.f32 %v11161_v18, %v16645_v39  ;;  %v9345_v37 = vpop.f32.mrf.mxu1  ;;  %v17526_v13 = vld [vmem:[#allocation105_spill] sm:$0xff] }
 0x9fd   : > { %v9657_v16 = vpop.f32.mrf.mxu0  ;;  %v9543_v54 = vpack.c.bf16 %v9506_v6, %v9505_v46  ;;  %v9443_v56 = vadd.f32 %v16490_v3, %v9344_v43  ;;  %v17527_v43 = vlaneseq }
 0x9fe   : > { %11709 = vpow2.f32 %v10930_v9  ;;  %v10933_v28 = vmul.f32 -1.442695, %v9666_v26  ;;  %v9658_v59 = vadd.f32 %v16645_v39, %v9657_v16  ;;  %v9346_v27 = vpop.f32.mrf.mxu1  ;;  %v17528_v16 = vld [vmem:[#allocation108_spill] sm:$0xff] }
 0x9ff   : > { %v9347_v1 = vadd.f32 %v17522_v42, %v9346_v27  ;;  %11210 = vmatprep.mubr.bf16.mxu0 %v9543_v54  ;;  %v9507_v55 = vmax.f32 %v9443_v56, 0.0  ;;  %v16671_v18 = vand.u32 127, %v17527_v43  ;;  %v16680_v27 = vld [vmem:[%s17150_s20] ss:$0 sm:$0xff] }
 0xa00   : > { %11711 = vpow2.f32 %v10933_v28  ;;  %v10931_v49 = vmul.f32 -1.442695, %v9658_v59  ;;  %v9348_v23 = vpop.f32.mrf.mxu1 }
 0xa01   : > { %v9444_v50 = vadd.f32 %v16490_v3, %v9347_v1  ;;  %vm10295_vm5 = vcmp.lt.s32.totalorder %v16671_v18, 3  ;;  %v17529_v1 = vld [vmem:[#allocation110_spill] sm:$0xff] }
 0xa02   : > { %11713 = vpow2.f32 %v10931_v49  ;;  %v9351_v30 = vpop.f32.mrf.mxu1 }
 0xa03   : > { %v9508_v51 = vmax.f32 %v9444_v50, 0.0  ;;  %v9352_v14 = vadd.f32 %v9351_v30, %v17523_v20  ;;  %v17530_v50 = vld [vmem:[#allocation16_spill] sm:$0xff] }
 0xa04   : > { %v9353_v52 = vpop.f32.mrf.mxu1  ;;  %v7694_v30 = vadd.f32 %v16680_v27, %v17530_v50 }
 0xa05   : > { %v9544_v8 = vpack.c.bf16 %v9508_v51, %v9507_v55  ;;  %v9445_v21 = vadd.f32 %v16490_v3, %v9352_v14  ;;  %v17531_v14 = vld [vmem:[#allocation14_spill] sm:$0xff] }
 0xa06   : > { %v9354_v4 = vpop.f32.mrf.mxu1  ;;  %v7686_v52 = vadd.f32 %v16680_v27, %v17531_v14 }
 0xa07   : > { %v9355_v25 = vadd.f32 %v9354_v4, %v17524_v61  ;;  %v11164_v62 = vpop.f32.mrf.mxu0  ;;  %11211 = vmatmul.mubr.bf16.gmra.mxu0 %v9544_v8  ;;  %v9509_v31 = vmax.f32 %v9445_v21, 0.0  ;;  %v17532_v61 = vld [vmem:[#allocation18_spill] sm:$0xff] }
 0xa08   : > { %v9679_v19 = vadd.f32 %v11164_v62, %v16645_v39  ;;  %v9356_v40 = vpop.f32.mrf.mxu1 }
 0xa09   : > { %v11708_v22 = vpop.eup %11707  ;;  %v9446_v12 = vadd.f32 %v16490_v3, %v9355_v25  ;;  %v9670_v63 = vpop.f32.mrf.mxu0  ;;  %v7697_v25 = vadd.f32 %v16680_v27, %v17532_v61 }
 0xa0a   : > { %v10103_v53 = vadd.f32 1.0, %v11708_v22  ;;  %v10936_v48 = vmul.f32 -1.442695, %v9679_v19  ;;  %v9671_v32 = vadd.f32 %v16645_v39, %v9670_v63  ;;  %v9359_v17 = vpop.f32.mrf.mxu1 }
 0xa0b   : > { %v11710_v38 = vpop.eup %11709  ;;  %v9510_v58 = vmax.f32 %v9446_v12, 0.0  ;;  %v9360_v57 = vadd.f32 %v17525_v36, %v9359_v17  ;;  %v11165_v24 = vpop.f32.mrf.mxu0 }
 0xa0c   : > { %11715 = vrcp.f32 %v10103_v53  ;;  %v10101_v45 = vadd.f32 1.0, %v11710_v38  ;;  %v10934_v0 = vmul.f32 -1.442695, %v9671_v32  ;;  %v9682_v11 = vadd.f32 %v11165_v24, %v16645_v39  ;;  %v9361_v29 = vpop.f32.mrf.mxu1 }
 0xa0d   : > { %v11712_v35 = vpop.eup %11711  ;;  %11717 = vpow2.f32 %v10936_v48  ;;  %v9673_v5 = vpop.f32.mrf.mxu0  ;;  %v9545_v34 = vpack.c.bf16 %v9510_v58, %v9509_v31  ;;  %v9447_v10 = vadd.f32 %v16490_v3, %v9360_v57  ;;  %v17533_v48 = vld [vmem:[#allocation107_spill] sm:$0xff] }
 0xa0e   : > { %11719 = vrcp.f32 %v10101_v45  ;;  %v10104_v15 = vadd.f32 1.0, %v11712_v35  ;;  %v10937_v47 = vmul.f32 -1.442695, %v9682_v11  ;;  %v9674_v7 = vadd.f32 %v16645_v39, %v9673_v5  ;;  %v9362_v33 = vpop.f32.mrf.mxu1  ;;  %v17534_v45 = vld [vmem:[#allocation15_spill] sm:$0xff] }
 0xa0f   : > { %v11714_v44 = vpop.eup %11713  ;;  %11721 = vpow2.f32 %v10934_v0  ;;  %v9363_v60 = vadd.f32 %v17526_v13, %v9362_v33  ;;  %11214 = vmatprep.mubr.bf16.mxu0 %v9545_v34  ;;  %v9511_v26 = vmax.f32 %v9447_v10, 0.0  ;;  %v7689_v0 = vadd.f32 %v16680_v27, %v17534_v45  ;;  %v11963_v10 = vld [vmem:[%s17155_s25] ss:$0 sm:$0xff] }
 0xa10   : > { %11723 = vrcp.f32 %v10104_v15  ;;  %v10102_v41 = vadd.f32 1.0, %v11714_v44  ;;  %v10935_v46 = vmul.f32 -1.442695, %v9674_v7  ;;  %v9364_v6 = vpop.f32.mrf.mxu1 }
 0xa11   : > { %11725 = vpow2.f32 %v10937_v47  ;;  %v9448_v2 = vadd.f32 %v16490_v3, %v9363_v60  ;;  %v17535_v60 = vld [vmem:[#allocation109_spill] sm:$0xff] }
 0xa12   : > { %11727 = vrcp.f32 %v10102_v41  ;;  %v9367_v9 = vpop.f32.mrf.mxu1 }
 0xa13   : > { %11729 = vpow2.f32 %v10935_v46  ;;  %v9512_v37 = vmax.f32 %v9448_v2, 0.0  ;;  %v9368_v54 = vadd.f32 %v9367_v9, %v17528_v16 }
 0xa14   : > { %v9369_v28 = vpop.f32.mrf.mxu1 }
 0xa15   : > { %v9546_v59 = vpack.c.bf16 %v9512_v37, %v9511_v26  ;;  %v9449_v42 = vadd.f32 %v16490_v3, %v9368_v54 }
 0xa16   : > { %v9370_v56 = vpop.f32.mrf.mxu1 }
 0xa17   : > { %v9371_v49 = vadd.f32 %v9370_v56, %v17529_v1  ;;  %v11168_v23 = vpop.f32.mrf.mxu0  ;;  %11215 = vmatmul.mubr.bf16.gmra.mxu0 %v9546_v59 }
 0xa18   : > { %v9695_v55 = vadd.f32 %v11168_v23, %v16645_v39  ;;  %v9372_v51 = vpop.f32.mrf.mxu1 }
 0xa19   : > { %v11716_v20 = vpop.eup %11715  ;;  %v9450_v8 = vadd.f32 %v16490_v3, %v9371_v49  ;;  %v9686_v4 = vpop.f32.mrf.mxu0  ;;  %v9513_v3 = vmax.f32 %v9449_v42, 0.0  ;;  %v17536_v42 = vld [vmem:[#allocation20_spill] sm:$0xff] }
 0xa1a   : > { %v11718_v21 = vpop.eup %11717  ;;  %v10298_v62 = vsel %vm10295_vm5, %v11716_v20, %v7694_v30  ;;  %v10940_v19 = vmul.f32 -1.442695, %v9695_v55  ;;  %v9687_v40 = vadd.f32 %v16645_v39, %v9686_v4  ;;  %v9375_v22 = vpop.f32.mrf.mxu1  ;;  %v7710_v1 = vadd.f32 %v16680_v27, %v17536_v42  ;;  %v17537_v20 = vld [vmem:[#allocation17_spill] sm:$0xff] }
 0xa1b   : > { %v11720_v12 = vpop.eup %11719  ;;  %10362 = vst [vmem:[%s16696_s2 + $0x10] sm:$0xff] %v10298_v62  ;;  %v10107_v63 = vadd.f32 1.0, %v11718_v21  ;;  %v9514_v53 = vmax.f32 %v9450_v8, 0.0  ;;  %v9376_v32 = vadd.f32 %v17533_v48, %v9375_v22  ;;  %v11169_v17 = vpop.f32.mrf.mxu0  ;;  %v7702_v14 = vadd.f32 %v16680_v27, %v17537_v20 }
 0xa1c   : > { %v11722_v38 = vpop.eup %11721  ;;  %v10296_v31 = vsel %vm10295_vm5, %v11720_v12, %v7686_v52  ;;  %11731 = vpow2.f32 %v10940_v19  ;;  %v10938_v58 = vmul.f32 -1.442695, %v9687_v40  ;;  %v9698_v36 = vadd.f32 %v11169_v17, %v16645_v39  ;;  %v9377_v57 = vpop.f32.mrf.mxu1  ;;  %v17538_v19 = vld [vmem:[#allocation22_spill] sm:$0xff]  ;;  %v17539_v17 = vld [vmem:[#allocation19_spill] sm:$0xff] }
 0xa1d   : > { %v11724_v24 = vpop.eup %11723  ;;  %10360 = vst [vmem:[%s16696_s2] sm:$0xff] %v10296_v31  ;;  %11733 = vrcp.f32 %v10107_v63  ;;  %v10105_v11 = vadd.f32 1.0, %v11722_v38  ;;  %v9689_v29 = vpop.f32.mrf.mxu0  ;;  %v9547_v35 = vpack.c.bf16 %v9514_v53, %v9513_v3  ;;  %v9451_v13 = vadd.f32 %v11963_v10, %v9376_v32 }
 0xa1e   : > { %v11726_v5 = vpop.eup %11725  ;;  %v10299_v34 = vsel %vm10295_vm5, %v11724_v24, %v7697_v25  ;;  %11735 = vpow2.f32 %v10938_v58  ;;  %v10941_v15 = vmul.f32 -1.442695, %v9698_v36  ;;  %v9690_v47 = vadd.f32 %v16645_v39, %v9689_v29  ;;  %v9378_v7 = vpop.f32.mrf.mxu1 }
 0xa1f   : > { %v11728_v33 = vpop.eup %11727  ;;  %10363 = vst [vmem:[%s16696_s2 + $0x18] sm:$0xff] %v10299_v34  ;;  %11737 = vrcp.f32 %v10105_v11  ;;  %v10108_v44 = vadd.f32 1.0, %v11726_v5  ;;  %v9379_v41 = vadd.f32 %v17535_v60, %v9378_v7  ;;  %11218 = vmatprep.mubr.bf16.mxu0 %v9547_v35  ;;  %v9515_v37 = vmax.f32 %v9451_v13, 0.0  ;;  %v17542_v13 = vld [vmem:[#allocation25_spill] sm:$0xff] }
 0xa20   : > { %v11730_v46 = vpop.eup %11729  ;;  %v10297_v6 = vsel %vm10295_vm5, %v11728_v33, %v7689_v0  ;;  %11739 = vpow2.f32 %v10941_v15  ;;  %v10939_v2 = vmul.f32 -1.442695, %v9690_v47  ;;  %v9380_v43 = vpop.f32.mrf.mxu1  ;;  %v7713_v40 = vadd.f32 %v16680_v27, %v17538_v19  ;;  %v17540_v0 = vld [vmem:[#allocation24_spill] sm:$0xff]  ;;  %v17541_v15 = vld [vmem:[#allocation21_spill] sm:$0xff] }
 0xa21   : > { %10361 = vst [vmem:[%s16696_s2 + $0x8] sm:$0xff] %v10297_v6  ;;  %11741 = vrcp.f32 %v10108_v44  ;;  %v10106_v9 = vadd.f32 1.0, %v11730_v46  ;;  %v9452_v26 = vadd.f32 %v11963_v10, %v9379_v41  ;;  %v7705_v38 = vadd.f32 %v16680_v27, %v17539_v17 }
 0xa22   : > { %11743 = vpow2.f32 %v10939_v2  ;;  %v7726_v11 = vadd.f32 %v16680_v27, %v17540_v0  ;;  %v7718_v47 = vadd.f32 %v16680_v27, %v17541_v15  ;;  %v7729_v60 = vadd.f32 %v16680_v27, %v17542_v13 }
 0xa23   : > { %11745 = vrcp.f32 %v10106_v9  ;;  %v9516_v16 = vmax.f32 %v9452_v26, 0.0 }
 0xa25   : > { %v9548_v54 = vpack.c.bf16 %v9516_v16, %v9515_v37  ;;  %v17543_v37 = vld [vmem:[#allocation23_spill] sm:$0xff] }
 0xa26   : > { %v7721_v16 = vadd.f32 %v16680_v27, %v17543_v37 }
 0xa27   : > { %v11172_v28 = vpop.f32.mrf.mxu0  ;;  %11219 = vmatmul.mubr.bf16.gmra.mxu0 %v9548_v54 }
 0xa28   : > { %v9711_v59 = vadd.f32 %v11172_v28, %v16645_v39 }
 0xa29   : > { %v11732_v56 = vpop.eup %11731  ;;  %v9702_v49 = vpop.f32.mrf.mxu0 }
 0xa2a   : > { %v11734_v23 = vpop.eup %11733  ;;  %v10111_v50 = vadd.f32 1.0, %v11732_v56  ;;  %v10944_v30 = vmul.f32 -1.442695, %v9711_v59  ;;  %v9703_v55 = vadd.f32 %v16645_v39, %v9702_v49 }
 0xa2b   : > { %v11736_v51 = vpop.eup %11735  ;;  %v10302_v52 = vsel %vm10295_vm5, %v11734_v23, %v7710_v1  ;;  %v11173_v8 = vpop.f32.mrf.mxu0 }
 0xa2c   : > { %v11738_v4 = vpop.eup %11737  ;;  %10366 = vst [vmem:[%s16696_s2 + $0x30] sm:$0xff] %v10302_v52  ;;  %11747 = vrcp.f32 %v10111_v50  ;;  %v10109_v21 = vadd.f32 1.0, %v11736_v51  ;;  %v10942_v61 = vmul.f32 -1.442695, %v9703_v55  ;;  %v9714_v25 = vadd.f32 %v11173_v8, %v16645_v39  ;;  %v17544_v8 = vld [vmem:[#allocation29_spill] sm:$0xff] }
 0xa2d   : > { %v11740_v62 = vpop.eup %11739  ;;  %v10300_v22 = vsel %vm10295_vm5, %v11738_v4, %v7702_v14  ;;  %11749 = vpow2.f32 %v10944_v30  ;;  %v9705_v12 = vpop.f32.mrf.mxu0  ;;  %v7742_v4 = vadd.f32 %v16680_v27, %v17544_v8 }
 0xa2e   : > { %v11742_v63 = vpop.eup %11741  ;;  %10364 = vst [vmem:[%s16696_s2 + $0x20] sm:$0xff] %v10300_v22  ;;  %11751 = vrcp.f32 %v10109_v21  ;;  %v10112_v3 = vadd.f32 1.0, %v11740_v62  ;;  %v10945_v53 = vmul.f32 -1.442695, %v9714_v25  ;;  %v9706_v48 = vadd.f32 %v16645_v39, %v9705_v12  ;;  %v17545_v22 = vld [vmem:[#allocation26_spill] sm:$0xff] }
 0xa2f   : > { %v11744_v32 = vpop.eup %11743  ;;  %v10303_v31 = vsel %vm10295_vm5, %v11742_v63, %v7713_v40  ;;  %11753 = vpow2.f32 %v10942_v61  ;;  %v7734_v12 = vadd.f32 %v16680_v27, %v17545_v22 }
 0xa30   : > { %v11746_v58 = vpop.eup %11745  ;;  %10367 = vst [vmem:[%s16696_s2 + $0x38] sm:$0xff] %v10303_v31  ;;  %11755 = vrcp.f32 %v10112_v3  ;;  %v10110_v36 = vadd.f32 1.0, %v11744_v32  ;;  %v10943_v57 = vmul.f32 -1.442695, %v9706_v48  ;;  %v17546_v31 = vld [vmem:[#allocation28_spill] sm:$0xff] }
 0xa31   : > { %v10301_v24 = vsel %vm10295_vm5, %v11746_v58, %v7705_v38  ;;  %11757 = vpow2.f32 %v10945_v53  ;;  %v7745_v58 = vadd.f32 %v16680_v27, %v17546_v31 }
 0xa32   : > { %10365 = vst [vmem:[%s16696_s2 + $0x28] sm:$0xff] %v10301_v24  ;;  %11759 = vrcp.f32 %v10110_v36 }
 0xa33   : > { %11761 = vpow2.f32 %v10943_v57 }
 0xa37   : > { %v11176_v45 = vpop.f32.mrf.mxu0 }
 0xa38   : > { %v9727_v29 = vadd.f32 %v11176_v45, %v16645_v39 }
 0xa39   : > { %v11748_v35 = vpop.eup %11747  ;;  %v9718_v5 = vpop.f32.mrf.mxu0 }
 0xa3a   : > { %v11750_v34 = vpop.eup %11749  ;;  %v10306_v7 = vsel %vm10295_vm5, %v11748_v35, %v7726_v11  ;;  %v10948_v33 = vmul.f32 -1.442695, %v9727_v29  ;;  %v9719_v44 = vadd.f32 %v16645_v39, %v9718_v5  ;;  %v17547_v35 = vld [vmem:[#allocation27_spill] sm:$0xff] }
 0xa3b   : > { %v11752_v10 = vpop.eup %11751  ;;  %10370 = vst [vmem:[%s16696_s2 + $0x50] sm:$0xff] %v10306_v7  ;;  %v10115_v41 = vadd.f32 1.0, %v11750_v34  ;;  %v11177_v46 = vpop.f32.mrf.mxu0  ;;  %v7737_v5 = vadd.f32 %v16680_v27, %v17547_v35 }
 0xa3c   : > { %v11754_v6 = vpop.eup %11753  ;;  %v10304_v2 = vsel %vm10295_vm5, %v11752_v10, %v7718_v47  ;;  %11763 = vpow2.f32 %v10948_v33  ;;  %v10946_v43 = vmul.f32 -1.442695, %v9719_v44  ;;  %v9730_v9 = vadd.f32 %v11177_v46, %v16645_v39  ;;  %v17548_v10 = vld [vmem:[#allocation33_spill] sm:$0xff] }
 0xa3d   : > { %v11756_v26 = vpop.eup %11755  ;;  %10368 = vst [vmem:[%s16696_s2 + $0x40] sm:$0xff] %v10304_v2  ;;  %11765 = vrcp.f32 %v10115_v41  ;;  %v10113_v54 = vadd.f32 1.0, %v11754_v6  ;;  %v9721_v28 = vpop.f32.mrf.mxu0  ;;  %v7758_v13 = vadd.f32 %v16680_v27, %v17548_v10  ;;  %v17549_v2 = vld [vmem:[#allocation30_spill] sm:$0xff] }
 0xa3e   : > { %v11758_v59 = vpop.eup %11757  ;;  %v10307_v56 = vsel %vm10295_vm5, %v11756_v26, %v7729_v60  ;;  %11767 = vpow2.f32 %v10946_v43  ;;  %v10949_v42 = vmul.f32 -1.442695, %v9730_v9  ;;  %v9722_v1 = vadd.f32 %v16645_v39, %v9721_v28 }
 0xa3f   : > { %v11760_v49 = vpop.eup %11759  ;;  %10371 = vst [vmem:[%s16696_s2 + $0x58] sm:$0xff] %v10307_v56  ;;  %11769 = vrcp.f32 %v10113_v54  ;;  %v10116_v23 = vadd.f32 1.0, %v11758_v59  ;;  %v7750_v43 = vadd.f32 %v16680_v27, %v17549_v2  ;;  %v17550_v54 = vld [vmem:[#allocation32_spill] sm:$0xff] }
 0xa40   : > { %v11762_v50 = vpop.eup %11761  ;;  %v10305_v30 = vsel %vm10295_vm5, %v11760_v49, %v7721_v16  ;;  %11771 = vpow2.f32 %v10949_v42  ;;  %v10947_v55 = vmul.f32 -1.442695, %v9722_v1  ;;  %v7761_v28 = vadd.f32 %v16680_v27, %v17550_v54 }
 0xa41   : > { %10369 = vst [vmem:[%s16696_s2 + $0x48] sm:$0xff] %v10305_v30  ;;  %11773 = vrcp.f32 %v10116_v23  ;;  %v10114_v51 = vadd.f32 1.0, %v11762_v50  ;;  %v17551_v30 = vld [vmem:[#allocation31_spill] sm:$0xff] }
 0xa42   : > { %11775 = vpow2.f32 %v10947_v55  ;;  %v7753_v55 = vadd.f32 %v16680_v27, %v17551_v30 }
 0xa43   : > { %11777 = vrcp.f32 %v10114_v51 }
 0xa47   : > { %v11180_v20 = vpop.f32.mrf.mxu0 }
 0xa48   : > { %v9743_v14 = vadd.f32 %v11180_v20, %v16645_v39 }
 0xa49   : > { %v11764_v52 = vpop.eup %11763  ;;  %v9734_v21 = vpop.f32.mrf.mxu0 }
 0xa4a   : > { %v11766_v61 = vpop.eup %11765  ;;  %v10119_v25 = vadd.f32 1.0, %v11764_v52  ;;  %v10952_v62 = vmul.f32 -1.442695, %v9743_v14  ;;  %v9735_v19 = vadd.f32 %v16645_v39, %v9734_v21 }
 0xa4b   : > { %v11768_v40 = vpop.eup %11767  ;;  %v10310_v63 = vsel %vm10295_vm5, %v11766_v61, %v7742_v4  ;;  %v11181_v3 = vpop.f32.mrf.mxu0 }
 0xa4c   : > { %v11770_v53 = vpop.eup %11769  ;;  %10374 = vst [vmem:[%s16696_s2 + $0x70] sm:$0xff] %v10310_v63  ;;  %11779 = vrcp.f32 %v10119_v25  ;;  %v10117_v48 = vadd.f32 1.0, %v11768_v40  ;;  %v10950_v32 = vmul.f32 -1.442695, %v9735_v19  ;;  %v9746_v17 = vadd.f32 %v11181_v3, %v16645_v39  ;;  %v17552_v3 = vld [vmem:[#allocation37_spill] sm:$0xff] }
 0xa4d   : > { %v11772_v38 = vpop.eup %11771  ;;  %v10308_v36 = vsel %vm10295_vm5, %v11770_v53, %v7734_v12  ;;  %11781 = vpow2.f32 %v10952_v62  ;;  %v9737_v57 = vpop.f32.mrf.mxu0  ;;  %v7774_v53 = vadd.f32 %v16680_v27, %v17552_v3 }
 0xa4e   : > { %v11774_v24 = vpop.eup %11773  ;;  %10372 = vst [vmem:[%s16696_s2 + $0x60] sm:$0xff] %v10308_v36  ;;  %11783 = vrcp.f32 %v10117_v48  ;;  %v10120_v45 = vadd.f32 1.0, %v11772_v38  ;;  %v10953_v0 = vmul.f32 -1.442695, %v9746_v17  ;;  %v9738_v11 = vadd.f32 %v16645_v39, %v9737_v57  ;;  %v17553_v36 = vld [vmem:[#allocation34_spill] sm:$0xff] }
 0xa4f   : > { %v11776_v29 = vpop.eup %11775  ;;  %v10311_v34 = vsel %vm10295_vm5, %v11774_v24, %v7745_v58  ;;  %11785 = vpow2.f32 %v10950_v32  ;;  %v7766_v57 = vadd.f32 %v16680_v27, %v17553_v36 }
 0xa50   : > { %v11778_v15 = vpop.eup %11777  ;;  %10375 = vst [vmem:[%s16696_s2 + $0x78] sm:$0xff] %v10311_v34  ;;  %11787 = vrcp.f32 %v10120_v45  ;;  %v10118_v47 = vadd.f32 1.0, %v11776_v29  ;;  %v10951_v7 = vmul.f32 -1.442695, %v9738_v11  ;;  %v17554_v34 = vld [vmem:[#allocation36_spill] sm:$0xff] }
 0xa51   : > { %v10309_v33 = vsel %vm10295_vm5, %v11778_v15, %v7737_v5  ;;  %11789 = vpow2.f32 %v10953_v0  ;;  %v7777_v15 = vadd.f32 %v16680_v27, %v17554_v34 }
 0xa52   : > { %10373 = vst [vmem:[%s16696_s2 + $0x68] sm:$0xff] %v10309_v33  ;;  %11791 = vrcp.f32 %v10118_v47 }
 0xa53   : > { %11793 = vpow2.f32 %v10951_v7 }
 0xa57   : > { %v11184_v44 = vpop.f32.mrf.mxu0 }
 0xa58   : > { %v9759_v60 = vadd.f32 %v11184_v44, %v16645_v39 }
 0xa59   : > { %v11780_v41 = vpop.eup %11779  ;;  %v9750_v46 = vpop.f32.mrf.mxu0 }
 0xa5a   : > { %v11782_v6 = vpop.eup %11781  ;;  %v10314_v9 = vsel %vm10295_vm5, %v11780_v41, %v7758_v13  ;;  %v10956_v26 = vmul.f32 -1.442695, %v9759_v60  ;;  %v9751_v37 = vadd.f32 %v16645_v39, %v9750_v46  ;;  %v17555_v41 = vld [vmem:[#allocation35_spill] sm:$0xff] }
 0xa5b   : > { %v11784_v16 = vpop.eup %11783  ;;  %10378 = vst [vmem:[%s16696_s2 + $0x90] sm:$0xff] %v10314_v9  ;;  %v10123_v59 = vadd.f32 1.0, %v11782_v6  ;;  %v11185_v56 = vpop.f32.mrf.mxu0  ;;  %v7769_v46 = vadd.f32 %v16680_v27, %v17555_v41 }
 0xa5c   : > { %v11786_v42 = vpop.eup %11785  ;;  %v10312_v1 = vsel %vm10295_vm5, %v11784_v16, %v7750_v43  ;;  %11795 = vpow2.f32 %v10956_v26  ;;  %v10954_v49 = vmul.f32 -1.442695, %v9751_v37  ;;  %v9762_v23 = vadd.f32 %v11185_v56, %v16645_v39  ;;  %v17556_v16 = vld [vmem:[#allocation41_spill] sm:$0xff] }
 0xa5d   : > { %v11788_v50 = vpop.eup %11787  ;;  %10376 = vst [vmem:[%s16696_s2 + $0x80] sm:$0xff] %v10312_v1  ;;  %11797 = vrcp.f32 %v10123_v59  ;;  %v10121_v51 = vadd.f32 1.0, %v11786_v42  ;;  %v9753_v20 = vpop.f32.mrf.mxu0  ;;  %v7790_v54 = vadd.f32 %v16680_v27, %v17556_v16  ;;  %v17557_v1 = vld [vmem:[#allocation38_spill] sm:$0xff] }
 0xa5e   : > { %v11790_v14 = vpop.eup %11789  ;;  %v10315_v52 = vsel %vm10295_vm5, %v11788_v50, %v7761_v28  ;;  %11799 = vpow2.f32 %v10954_v49  ;;  %v10957_v8 = vmul.f32 -1.442695, %v9762_v23  ;;  %v9754_v4 = vadd.f32 %v16645_v39, %v9753_v20 }
 0xa5f   : > { %v11792_v21 = vpop.eup %11791  ;;  %10379 = vst [vmem:[%s16696_s2 + $0x98] sm:$0xff] %v10315_v52  ;;  %11801 = vrcp.f32 %v10121_v51  ;;  %v10124_v61 = vadd.f32 1.0, %v11790_v14  ;;  %v7782_v49 = vadd.f32 %v16680_v27, %v17557_v1  ;;  %v17558_v51 = vld [vmem:[#allocation40_spill] sm:$0xff] }
 0xa60   : > { %v11794_v25 = vpop.eup %11793  ;;  %v10313_v62 = vsel %vm10295_vm5, %v11792_v21, %v7753_v55  ;;  %11803 = vpow2.f32 %v10957_v8  ;;  %v10955_v19 = vmul.f32 -1.442695, %v9754_v4  ;;  %v7793_v20 = vadd.f32 %v16680_v27, %v17558_v51 }
 0xa61   : > { %10377 = vst [vmem:[%s16696_s2 + $0x88] sm:$0xff] %v10313_v62  ;;  %11805 = vrcp.f32 %v10124_v61  ;;  %v10122_v40 = vadd.f32 1.0, %v11794_v25  ;;  %v17559_v62 = vld [vmem:[#allocation39_spill] sm:$0xff] }
 0xa62   : > { %11807 = vpow2.f32 %v10955_v19  ;;  %v7785_v19 = vadd.f32 %v16680_v27, %v17559_v62 }
 0xa63   : > { %11809 = vrcp.f32 %v10122_v40 }
 0xa67   : > { %v11188_v22 = vpop.f32.mrf.mxu0 }
 0xa68   : > { %v9775_v12 = vadd.f32 %v11188_v22, %v16645_v39 }
 0xa69   : > { %v11796_v63 = vpop.eup %11795  ;;  %v9766_v48 = vpop.f32.mrf.mxu0 }
 0xa6a   : > { %v11798_v32 = vpop.eup %11797  ;;  %v10127_v17 = vadd.f32 1.0, %v11796_v63  ;;  %v10960_v38 = vmul.f32 -1.442695, %v9775_v12  ;;  %v9767_v31 = vadd.f32 %v16645_v39, %v9766_v48 }
 0xa6b   : > { %v11800_v58 = vpop.eup %11799  ;;  %v10318_v24 = vsel %vm10295_vm5, %v11798_v32, %v7774_v53  ;;  %v11189_v45 = vpop.f32.mrf.mxu0 }
 0xa6c   : > { %v11802_v0 = vpop.eup %11801  ;;  %10382 = vst [vmem:[%s16696_s2 + $0xb0] sm:$0xff] %v10318_v24  ;;  %11811 = vrcp.f32 %v10127_v17  ;;  %v10125_v11 = vadd.f32 1.0, %v11800_v58  ;;  %v10958_v29 = vmul.f32 -1.442695, %v9767_v31  ;;  %v9778_v35 = vadd.f32 %v11189_v45, %v16645_v39  ;;  %v17560_v45 = vld [vmem:[#allocation45_spill] sm:$0xff] }
 0xa6d   : > { %v11804_v5 = vpop.eup %11803  ;;  %v10316_v47 = vsel %vm10295_vm5, %v11802_v0, %v7766_v57  ;;  %11813 = vpow2.f32 %v10960_v38  ;;  %v9769_v7 = vpop.f32.mrf.mxu0  ;;  %v7806_v0 = vadd.f32 %v16680_v27, %v17560_v45 }
 0xa6e   : > { %v11806_v33 = vpop.eup %11805  ;;  %10380 = vst [vmem:[%s16696_s2 + $0xa0] sm:$0xff] %v10316_v47  ;;  %11815 = vrcp.f32 %v10125_v11  ;;  %v10128_v44 = vadd.f32 1.0, %v11804_v5  ;;  %v10961_v10 = vmul.f32 -1.442695, %v9778_v35  ;;  %v9770_v13 = vadd.f32 %v16645_v39, %v9769_v7  ;;  %v17561_v47 = vld [vmem:[#allocation42_spill] sm:$0xff] }
 0xa6f   : > { %v11808_v60 = vpop.eup %11807  ;;  %v10319_v6 = vsel %vm10295_vm5, %v11806_v33, %v7777_v15  ;;  %11817 = vpow2.f32 %v10958_v29  ;;  %v7798_v7 = vadd.f32 %v16680_v27, %v17561_v47 }
 0xa70   : > { %v11810_v2 = vpop.eup %11809  ;;  %10383 = vst [vmem:[%s16696_s2 + $0xb8] sm:$0xff] %v10319_v6  ;;  %11819 = vrcp.f32 %v10128_v44  ;;  %v10126_v43 = vadd.f32 1.0, %v11808_v60  ;;  %v10959_v9 = vmul.f32 -1.442695, %v9770_v13  ;;  %v17562_v6 = vld [vmem:[#allocation44_spill] sm:$0xff] }
 0xa71   : > { %v10317_v26 = vsel %vm10295_vm5, %v11810_v2, %v7769_v46  ;;  %11821 = vpow2.f32 %v10961_v10  ;;  %v7809_v2 = vadd.f32 %v16680_v27, %v17562_v6 }
 0xa72   : > { %10381 = vst [vmem:[%s16696_s2 + $0xa8] sm:$0xff] %v10317_v26  ;;  %11823 = vrcp.f32 %v10126_v43 }
 0xa73   : > { %11825 = vpow2.f32 %v10959_v9 }
 0xa77   : > { %v11192_v37 = vpop.f32.mrf.mxu0 }
 0xa78   : > { %v9791_v28 = vadd.f32 %v11192_v37, %v16645_v39 }
 0xa79   : > { %v11812_v59 = vpop.eup %11811  ;;  %v9782_v56 = vpop.f32.mrf.mxu0 }
 0xa7a   : > { %v11814_v42 = vpop.eup %11813  ;;  %v10322_v23 = vsel %vm10295_vm5, %v11812_v59, %v7790_v54  ;;  %v10964_v50 = vmul.f32 -1.442695, %v9791_v28  ;;  %v9783_v30 = vadd.f32 %v16645_v39, %v9782_v56  ;;  %v17563_v59 = vld [vmem:[#allocation43_spill] sm:$0xff] }
 0xa7b   : > { %v11816_v55 = vpop.eup %11815  ;;  %10386 = vst [vmem:[%s16696_s2 + $0xd0] sm:$0xff] %v10322_v23  ;;  %v10131_v14 = vadd.f32 1.0, %v11814_v42  ;;  %v11193_v52 = vpop.f32.mrf.mxu0  ;;  %v7801_v56 = vadd.f32 %v16680_v27, %v17563_v59 }
 0xa7c   : > { %v11818_v8 = vpop.eup %11817  ;;  %v10320_v4 = vsel %vm10295_vm5, %v11816_v55, %v7782_v49  ;;  %11827 = vpow2.f32 %v10964_v50  ;;  %v10962_v21 = vmul.f32 -1.442695, %v9783_v30  ;;  %v9794_v61 = vadd.f32 %v11193_v52, %v16645_v39  ;;  %v17564_v55 = vld [vmem:[#allocation49_spill] sm:$0xff] }
 0xa7d   : > { %v11820_v25 = vpop.eup %11819  ;;  %10384 = vst [vmem:[%s16696_s2 + $0xc0] sm:$0xff] %v10320_v4  ;;  %11829 = vrcp.f32 %v10131_v14  ;;  %v10129_v40 = vadd.f32 1.0, %v11818_v8  ;;  %v9785_v22 = vpop.f32.mrf.mxu0  ;;  %v7822_v51 = vadd.f32 %v16680_v27, %v17564_v55  ;;  %v17565_v4 = vld [vmem:[#allocation46_spill] sm:$0xff] }
 0xa7e   : > { %v11822_v12 = vpop.eup %11821  ;;  %v10323_v63 = vsel %vm10295_vm5, %v11820_v25, %v7793_v20  ;;  %11831 = vpow2.f32 %v10962_v21  ;;  %v10965_v3 = vmul.f32 -1.442695, %v9794_v61  ;;  %v9786_v53 = vadd.f32 %v16645_v39, %v9785_v22 }
 0xa7f   : > { %v11824_v48 = vpop.eup %11823  ;;  %10387 = vst [vmem:[%s16696_s2 + $0xd8] sm:$0xff] %v10323_v63  ;;  %11833 = vrcp.f32 %v10129_v40  ;;  %v10132_v32 = vadd.f32 1.0, %v11822_v12  ;;  %v7814_v21 = vadd.f32 %v16680_v27, %v17565_v4  ;;  %v17566_v40 = vld [vmem:[#allocation50_spill] sm:$0xff] }
 0xa80   : > { %v11826_v17 = vpop.eup %11825  ;;  %v10321_v38 = vsel %vm10295_vm5, %v11824_v48, %v7785_v19  ;;  %11835 = vpow2.f32 %v10965_v3  ;;  %v10963_v31 = vmul.f32 -1.442695, %v9786_v53  ;;  %v7825_v22 = vadd.f32 %v16680_v27, %v17566_v40 }
 0xa81   : > { %10385 = vst [vmem:[%s16696_s2 + $0xc8] sm:$0xff] %v10321_v38  ;;  %11837 = vrcp.f32 %v10132_v32  ;;  %v10130_v58 = vadd.f32 1.0, %v11826_v17  ;;  %v17567_v38 = vld [vmem:[#allocation47_spill] sm:$0xff] }
 0xa82   : > { %11839 = vpow2.f32 %v10963_v31  ;;  %v7817_v31 = vadd.f32 %v16680_v27, %v17567_v38 }
 0xa83   : > { %11841 = vrcp.f32 %v10130_v58 }
 0xa87   : > { %v11196_v36 = vpop.f32.mrf.mxu0 }
 0xa88   : > { %v9807_v57 = vadd.f32 %v11196_v36, %v16645_v39 }
 0xa89   : > { %v11828_v24 = vpop.eup %11827  ;;  %v9798_v11 = vpop.f32.mrf.mxu0 }
 0xa8a   : > { %v11830_v29 = vpop.eup %11829  ;;  %v10135_v35 = vadd.f32 1.0, %v11828_v24  ;;  %v10968_v5 = vmul.f32 -1.442695, %v9807_v57  ;;  %v9799_v34 = vadd.f32 %v16645_v39, %v9798_v11 }
 0xa8b   : > { %v11832_v15 = vpop.eup %11831  ;;  %v10326_v33 = vsel %vm10295_vm5, %v11830_v29, %v7806_v0  ;;  %v11197_v44 = vpop.f32.mrf.mxu0 }
 0xa8c   : > { %v11834_v10 = vpop.eup %11833  ;;  %10390 = vst [vmem:[%s16696_s2 + $0xf0] sm:$0xff] %v10326_v33  ;;  %11843 = vrcp.f32 %v10135_v35  ;;  %v10133_v13 = vadd.f32 1.0, %v11832_v15  ;;  %v10966_v60 = vmul.f32 -1.442695, %v9799_v34  ;;  %v9810_v41 = vadd.f32 %v11197_v44, %v16645_v39  ;;  %v17568_v44 = vld [vmem:[#allocation56_spill] sm:$0xff] }
 0xa8d   : > { %v11836_v46 = vpop.eup %11835  ;;  %v10324_v43 = vsel %vm10295_vm5, %v11834_v10, %v7798_v7  ;;  %11845 = vpow2.f32 %v10968_v5  ;;  %v9801_v9 = vpop.f32.mrf.mxu0  ;;  %v7838_v10 = vadd.f32 %v16680_v27, %v17568_v44 }
 0xa8e   : > { %v11838_v26 = vpop.eup %11837  ;;  %10388 = vst [vmem:[%s16696_s2 + $0xe0] sm:$0xff] %v10324_v43  ;;  %11847 = vrcp.f32 %v10133_v13  ;;  %v10136_v37 = vadd.f32 1.0, %v11836_v46  ;;  %v10969_v16 = vmul.f32 -1.442695, %v9810_v41  ;;  %v9802_v54 = vadd.f32 %v16645_v39, %v9801_v9  ;;  %v17569_v43 = vld [vmem:[#allocation53_spill] sm:$0xff] }
 0xa8f   : > { %v11840_v28 = vpop.eup %11839  ;;  %v10327_v42 = vsel %vm10295_vm5, %v11838_v26, %v7809_v2  ;;  %11849 = vpow2.f32 %v10966_v60  ;;  %v7830_v9 = vadd.f32 %v16680_v27, %v17569_v43 }
 0xa90   : > { %v11842_v1 = vpop.eup %11841  ;;  %10391 = vst [vmem:[%s16696_s2 + $0xf8] sm:$0xff] %v10327_v42  ;;  %11851 = vrcp.f32 %v10136_v37  ;;  %v10134_v49 = vadd.f32 1.0, %v11840_v28  ;;  %v10967_v23 = vmul.f32 -1.442695, %v9802_v54  ;;  %v17570_v42 = vld [vmem:[#allocation61_spill] sm:$0xff] }
 0xa91   : > { %v10325_v50 = vsel %vm10295_vm5, %v11842_v1, %v7801_v56  ;;  %11853 = vpow2.f32 %v10969_v16  ;;  %v7841_v1 = vadd.f32 %v16680_v27, %v17570_v42 }
 0xa92   : > { %10389 = vst [vmem:[%s16696_s2 + $0xe8] sm:$0xff] %v10325_v50  ;;  %11855 = vrcp.f32 %v10134_v49 }
 0xa93   : > { %11857 = vpow2.f32 %v10967_v23 }
 0xa97   : > { %v11200_v30 = vpop.f32.mrf.mxu0 }
 0xa98   : > { %v9823_v20 = vadd.f32 %v11200_v30, %v16645_v39 }
 0xa99   : > { %v11844_v14 = vpop.eup %11843  ;;  %v9814_v52 = vpop.f32.mrf.mxu0 }
 0xa9a   : > { %v11846_v8 = vpop.eup %11845  ;;  %v10330_v61 = vsel %vm10295_vm5, %v11844_v14, %v7822_v51  ;;  %v10972_v25 = vmul.f32 -1.442695, %v9823_v20  ;;  %v9815_v62 = vadd.f32 %v16645_v39, %v9814_v52  ;;  %v17571_v14 = vld [vmem:[#allocation54_spill] sm:$0xff] }
 0xa9b   : > { %v11848_v19 = vpop.eup %11847  ;;  %10394 = vst [vmem:[%s16696_s2 + $0x110] sm:$0xff] %v10330_v61  ;;  %v10139_v12 = vadd.f32 1.0, %v11846_v8  ;;  %v11201_v63 = vpop.f32.mrf.mxu0  ;;  %v7833_v52 = vadd.f32 %v16680_v27, %v17571_v14 }
 0xa9c   : > { %v11850_v3 = vpop.eup %11849  ;;  %v10328_v53 = vsel %vm10295_vm5, %v11848_v19, %v7814_v21  ;;  %11859 = vpow2.f32 %v10972_v25  ;;  %v10970_v48 = vmul.f32 -1.442695, %v9815_v62  ;;  %v9826_v32 = vadd.f32 %v11201_v63, %v16645_v39  ;;  %v17572_v19 = vld [vmem:[#allocation69_spill] sm:$0xff] }
 0xa9d   : > { %v11852_v17 = vpop.eup %11851  ;;  %10392 = vst [vmem:[%s16696_s2 + $0x100] sm:$0xff] %v10328_v53  ;;  %11861 = vrcp.f32 %v10139_v12  ;;  %v10137_v58 = vadd.f32 1.0, %v11850_v3  ;;  %v9817_v36 = vpop.f32.mrf.mxu0  ;;  %v7854_v40 = vadd.f32 %v16680_v27, %v17572_v19  ;;  %v17573_v53 = vld [vmem:[#allocation63_spill] sm:$0xff] }
 0xa9e   : > { %v11854_v57 = vpop.eup %11853  ;;  %v10331_v24 = vsel %vm10295_vm5, %v11852_v17, %v7825_v22  ;;  %11863 = vpow2.f32 %v10970_v48  ;;  %v10973_v45 = vmul.f32 -1.442695, %v9826_v32  ;;  %v9818_v0 = vadd.f32 %v16645_v39, %v9817_v36  ;;  %v16912_v39 = vld [vmem:[%s17157_s27] ss:$0 sm:$0xff] }
 0xa9f   : > { %v11856_v11 = vpop.eup %11855  ;;  %10395 = vst [vmem:[%s16696_s2 + $0x118] sm:$0xff] %v10331_v24  ;;  %11865 = vrcp.f32 %v10137_v58  ;;  %v10140_v29 = vadd.f32 1.0, %v11854_v57  ;;  %v7846_v48 = vadd.f32 %v16680_v27, %v17573_v53  ;;  %v17574_v58 = vld [vmem:[#allocation70_spill] sm:$0xff] }
 0xaa0   : > { %v11858_v35 = vpop.eup %11857  ;;  %v10329_v5 = vsel %vm10295_vm5, %v11856_v11, %v7817_v31  ;;  %11867 = vpow2.f32 %v10973_v45  ;;  %v10971_v34 = vmul.f32 -1.442695, %v9818_v0  ;;  %v7857_v36 = vadd.f32 %v16680_v27, %v17574_v58 }
 0xaa1   : > { %10393 = vst [vmem:[%s16696_s2 + $0x108] sm:$0xff] %v10329_v5  ;;  %11869 = vrcp.f32 %v10140_v29  ;;  %v10138_v15 = vadd.f32 1.0, %v11858_v35  ;;  %v17575_v5 = vld [vmem:[#allocation66_spill] sm:$0xff] }
 0xaa2   : > { %11871 = vpow2.f32 %v10971_v34  ;;  %v7849_v34 = vadd.f32 %v16680_v27, %v17575_v5 }
 0xaa3   : > { %11873 = vrcp.f32 %v10138_v15 }
 0xaa7   : > { %v11204_v47 = vpop.f32.mrf.mxu0 }
 0xaa8   : > { %v9839_v7 = vadd.f32 %v16912_v39, %v11204_v47 }
 0xaa9   : > { %v11860_v33 = vpop.eup %11859  ;;  %v9830_v13 = vpop.f32.mrf.mxu0 }
 0xaaa   : > { %v11862_v60 = vpop.eup %11861  ;;  %v10143_v41 = vadd.f32 1.0, %v11860_v33  ;;  %v10976_v46 = vmul.f32 -1.442695, %v9839_v7  ;;  %v9831_v6 = vadd.f32 %v16912_v39, %v9830_v13 }
 0xaab   : > { %v11864_v2 = vpop.eup %11863  ;;  %v10334_v26 = vsel %vm10295_vm5, %v11862_v60, %v7838_v10  ;;  %v11205_v37 = vpop.f32.mrf.mxu0 }
 0xaac   : > { %v11866_v16 = vpop.eup %11865  ;;  %10398 = vst [vmem:[%s16696_s2 + $0x130] sm:$0xff] %v10334_v26  ;;  %11875 = vrcp.f32 %v10143_v41  ;;  %v10141_v54 = vadd.f32 1.0, %v11864_v2  ;;  %v10974_v28 = vmul.f32 -1.442695, %v9831_v6  ;;  %v9842_v59 = vadd.f32 %v16912_v39, %v11205_v37  ;;  %v16966_v26 = vld [vmem:[%s17150_s20] ss:$0 sm:$0xff] }
 0xaad   : > { %v11868_v56 = vpop.eup %11867  ;;  %v10332_v49 = vsel %vm10295_vm5, %v11866_v16, %v7830_v9  ;;  %11877 = vpow2.f32 %v10976_v46  ;;  %v9833_v23 = vpop.f32.mrf.mxu0  ;;  %v17576_v37 = vld [vmem:[#allocation75_spill] sm:$0xff] }
 0xaae   : > { %v11870_v50 = vpop.eup %11869  ;;  %10396 = vst [vmem:[%s16696_s2 + $0x120] sm:$0xff] %v10332_v49  ;;  %11879 = vrcp.f32 %v10141_v54  ;;  %v10144_v30 = vadd.f32 1.0, %v11868_v56  ;;  %v10977_v55 = vmul.f32 -1.442695, %v9842_v59  ;;  %v9834_v51 = vadd.f32 %v16912_v39, %v9833_v23  ;;  %v17577_v49 = vld [vmem:[#allocation13_spill] sm:$0xff] }
 0xaaf   : > { %v11872_v20 = vpop.eup %11871  ;;  %v10335_v8 = vsel %vm10295_vm5, %v11870_v50, %v7841_v1  ;;  %11881 = vpow2.f32 %v10974_v28  ;;  %v7870_v16 = vadd.f32 %v16966_v26, %v17576_v37  ;;  %v7862_v23 = vadd.f32 %v16966_v26, %v17577_v49 }
 0xab0   : > { %v11874_v4 = vpop.eup %11873  ;;  %10399 = vst [vmem:[%s16696_s2 + $0x138] sm:$0xff] %v10335_v8  ;;  %11883 = vrcp.f32 %v10144_v30  ;;  %v10142_v21 = vadd.f32 1.0, %v11872_v20  ;;  %v10975_v61 = vmul.f32 -1.442695, %v9834_v51  ;;  %v17578_v8 = vld [vmem:[#allocation76_spill] sm:$0xff] }
 0xab1   : > { %v10333_v25 = vsel %vm10295_vm5, %v11874_v4, %v7833_v52  ;;  %11885 = vpow2.f32 %v10977_v55  ;;  %v7873_v4 = vadd.f32 %v16966_v26, %v17578_v8 }
 0xab2   : > { %10397 = vst [vmem:[%s16696_s2 + $0x128] sm:$0xff] %v10333_v25  ;;  %11887 = vrcp.f32 %v10142_v21 }
 0xab3   : > { %11889 = vpow2.f32 %v10975_v61 }
 0xab7   : > { %v11208_v62 = vpop.f32.mrf.mxu0 }
 0xab8   : > { %v9855_v22 = vadd.f32 %v16912_v39, %v11208_v62 }
 0xab9   : > { %v11876_v12 = vpop.eup %11875  ;;  %v9846_v63 = vpop.f32.mrf.mxu0 }
 0xaba   : > { %v11878_v3 = vpop.eup %11877  ;;  %v10338_v32 = vsel %vm10295_vm5, %v11876_v12, %v7854_v40  ;;  %v10980_v17 = vmul.f32 -1.442695, %v9855_v22  ;;  %v9847_v38 = vadd.f32 %v16912_v39, %v9846_v63  ;;  %v17579_v12 = vld [vmem:[#allocation74_spill] sm:$0xff] }
 0xabb   : > { %v11880_v31 = vpop.eup %11879  ;;  %10402 = vst [vmem:[%s16696_s2 + $0x150] sm:$0xff] %v10338_v32  ;;  %v10147_v57 = vadd.f32 1.0, %v11878_v3  ;;  %v11209_v24 = vpop.f32.mrf.mxu0  ;;  %v7865_v63 = vadd.f32 %v16966_v26, %v17579_v12 }
 0xabc   : > { %v11882_v45 = vpop.eup %11881  ;;  %v10336_v0 = vsel %vm10295_vm5, %v11880_v31, %v7846_v48  ;;  %11891 = vpow2.f32 %v10980_v17  ;;  %v10978_v11 = vmul.f32 -1.442695, %v9847_v38  ;;  %v9858_v29 = vadd.f32 %v16912_v39, %v11209_v24  ;;  %v17580_v31 = vld [vmem:[#allocation79_spill] sm:$0xff] }
 0xabd   : > { %v11884_v35 = vpop.eup %11883  ;;  %10400 = vst [vmem:[%s16696_s2 + $0x140] sm:$0xff] %v10336_v0  ;;  %11893 = vrcp.f32 %v10147_v57  ;;  %v10145_v15 = vadd.f32 1.0, %v11882_v45  ;;  %v9849_v47 = vpop.f32.mrf.mxu0  ;;  %v7886_v58 = vadd.f32 %v16966_v26, %v17580_v31  ;;  %v17581_v0 = vld [vmem:[#allocation77_spill] sm:$0xff] }
 0xabe   : > { %v11886_v7 = vpop.eup %11885  ;;  %v10339_v33 = vsel %vm10295_vm5, %v11884_v35, %v7857_v36  ;;  %11895 = vpow2.f32 %v10978_v11  ;;  %v10981_v44 = vmul.f32 -1.442695, %v9858_v29  ;;  %v9850_v10 = vadd.f32 %v16912_v39, %v9849_v47 }
 0xabf   : > { %v11888_v13 = vpop.eup %11887  ;;  %10403 = vst [vmem:[%s16696_s2 + $0x158] sm:$0xff] %v10339_v33  ;;  %11897 = vrcp.f32 %v10145_v15  ;;  %v10148_v60 = vadd.f32 1.0, %v11886_v7  ;;  %v7878_v11 = vadd.f32 %v16966_v26, %v17581_v0  ;;  %v17582_v15 = vld [vmem:[#allocation80_spill] sm:$0xff] }
 0xac0   : > { %v11890_v41 = vpop.eup %11889  ;;  %v10337_v27 = vsel %vm10295_vm5, %v11888_v13, %v7849_v34  ;;  %11899 = vpow2.f32 %v10981_v44  ;;  %v10979_v46 = vmul.f32 -1.442695, %v9850_v10  ;;  %v7889_v47 = vadd.f32 %v16966_v26, %v17582_v15 }
 0xac1   : > { %10401 = vst [vmem:[%s16696_s2 + $0x148] sm:$0xff] %v10337_v27  ;;  %11901 = vrcp.f32 %v10148_v60  ;;  %v10146_v6 = vadd.f32 1.0, %v11890_v41  ;;  %v17583_v27 = vld [vmem:[#allocation78_spill] sm:$0xff] }
 0xac2   : > { %11903 = vpow2.f32 %v10979_v46  ;;  %v7881_v46 = vadd.f32 %v16966_v26, %v17583_v27 }
 0xac3   : > { %11905 = vrcp.f32 %v10146_v6 }
 0xac7   : > { %v11212_v2 = vpop.f32.mrf.mxu0 }
 0xac8   : > { %v9871_v43 = vadd.f32 %v16912_v39, %v11212_v2 }
 0xac9   : > { %v11892_v9 = vpop.eup %11891  ;;  %v9862_v54 = vpop.f32.mrf.mxu0 }
 0xaca   : > { %v11894_v28 = vpop.eup %11893  ;;  %v10151_v59 = vadd.f32 1.0, %v11892_v9  ;;  %v10984_v56 = vmul.f32 -1.442695, %v9871_v43  ;;  %v9863_v42 = vadd.f32 %v16912_v39, %v9862_v54 }
 0xacb   : > { %v11896_v1 = vpop.eup %11895  ;;  %v10342_v50 = vsel %vm10295_vm5, %v11894_v28, %v7870_v16  ;;  %v11213_v30 = vpop.f32.mrf.mxu0 }
 0xacc   : > { %v11898_v55 = vpop.eup %11897  ;;  %10406 = vst [vmem:[%s16696_s2 + $0x170] sm:$0xff] %v10342_v50  ;;  %11907 = vrcp.f32 %v10151_v59  ;;  %v10149_v51 = vadd.f32 1.0, %v11896_v1  ;;  %v10982_v20 = vmul.f32 -1.442695, %v9863_v42  ;;  %v9874_v14 = vadd.f32 %v16912_v39, %v11213_v30  ;;  %v17584_v30 = vld [vmem:[#allocation83_spill] sm:$0xff] }
 0xacd   : > { %v11900_v52 = vpop.eup %11899  ;;  %v10340_v21 = vsel %vm10295_vm5, %v11898_v55, %v7862_v23  ;;  %11909 = vpow2.f32 %v10984_v56  ;;  %v9865_v61 = vpop.f32.mrf.mxu0  ;;  %v7902_v55 = vadd.f32 %v16966_v26, %v17584_v30 }
 0xace   : > { %v11902_v25 = vpop.eup %11901  ;;  %10404 = vst [vmem:[%s16696_s2 + $0x160] sm:$0xff] %v10340_v21  ;;  %11911 = vrcp.f32 %v10149_v51  ;;  %v10152_v62 = vadd.f32 1.0, %v11900_v52  ;;  %v10985_v19 = vmul.f32 -1.442695, %v9874_v14  ;;  %v9866_v40 = vadd.f32 %v16912_v39, %v9865_v61  ;;  %v17585_v21 = vld [vmem:[#allocation81_spill] sm:$0xff] }
 0xacf   : > { %v11904_v22 = vpop.eup %11903  ;;  %v10343_v3 = vsel %vm10295_vm5, %v11902_v25, %v7873_v4  ;;  %11913 = vpow2.f32 %v10982_v20  ;;  %v7894_v61 = vadd.f32 %v16966_v26, %v17585_v21 }
 0xad0   : > { %v11906_v53 = vpop.eup %11905  ;;  %10407 = vst [vmem:[%s16696_s2 + $0x178] sm:$0xff] %v10343_v3  ;;  %11915 = vrcp.f32 %v10152_v62  ;;  %v10150_v48 = vadd.f32 1.0, %v11904_v22  ;;  %v10983_v32 = vmul.f32 -1.442695, %v9866_v40  ;;  %v17586_v3 = vld [vmem:[#allocation84_spill] sm:$0xff] }
 0xad1   : > { %v10341_v17 = vsel %vm10295_vm5, %v11906_v53, %v7865_v63  ;;  %11917 = vpow2.f32 %v10985_v19  ;;  %v7905_v53 = vadd.f32 %v16966_v26, %v17586_v3 }
 0xad2   : > { %10405 = vst [vmem:[%s16696_s2 + $0x168] sm:$0xff] %v10341_v17  ;;  %11919 = vrcp.f32 %v10150_v48 }
 0xad3   : > { %11921 = vpow2.f32 %v10983_v32 }
 0xad7   : > { %v11216_v38 = vpop.f32.mrf.mxu0 }
 0xad8   : > { %v9887_v36 = vadd.f32 %v16912_v39, %v11216_v38 }
 0xad9   : > { %v11908_v57 = vpop.eup %11907  ;;  %v9878_v24 = vpop.f32.mrf.mxu0 }
 0xada   : > { %v11910_v45 = vpop.eup %11909  ;;  %v10346_v29 = vsel %vm10295_vm5, %v11908_v57, %v7886_v58  ;;  %v10988_v35 = vmul.f32 -1.442695, %v9887_v36  ;;  %v9879_v5 = vadd.f32 %v16912_v39, %v9878_v24  ;;  %v17587_v57 = vld [vmem:[#allocation82_spill] sm:$0xff] }
 0xadb   : > { %v11912_v34 = vpop.eup %11911  ;;  %10410 = vst [vmem:[%s16696_s2 + $0x190] sm:$0xff] %v10346_v29  ;;  %v10155_v7 = vadd.f32 1.0, %v11910_v45  ;;  %v11217_v33 = vpop.f32.mrf.mxu0  ;;  %v7897_v24 = vadd.f32 %v16966_v26, %v17587_v57 }
 0xadc   : > { %v11914_v44 = vpop.eup %11913  ;;  %v10344_v10 = vsel %vm10295_vm5, %v11912_v34, %v7878_v11  ;;  %11923 = vpow2.f32 %v10988_v35  ;;  %v10986_v13 = vmul.f32 -1.442695, %v9879_v5  ;;  %v9890_v60 = vadd.f32 %v16912_v39, %v11217_v33 }
 0xadd   : > { %v11916_v41 = vpop.eup %11915  ;;  %10408 = vst [vmem:[%s16696_s2 + $0x180] sm:$0xff] %v10344_v10  ;;  %11925 = vrcp.f32 %v10155_v7  ;;  %v10153_v6 = vadd.f32 1.0, %v11914_v44  ;;  %v9881_v2 = vpop.f32.mrf.mxu0 }
 0xade   : > { %v11918_v43 = vpop.eup %11917  ;;  %v10347_v9 = vsel %vm10295_vm5, %v11916_v41, %v7889_v47  ;;  %11927 = vpow2.f32 %v10986_v13  ;;  %v10989_v37 = vmul.f32 -1.442695, %v9890_v60  ;;  %v9882_v16 = vadd.f32 %v16912_v39, %v9881_v2  ;;  %v17589_v47 = vld [vmem:[#allocation85_spill] sm:$0xff]  ;;  %v17590_v60 = vld [vmem:[#allocation88_spill] sm:$0xff] }
 0xadf   : > { %v11920_v54 = vpop.eup %11919  ;;  %10411 = vst [vmem:[%s16696_s2 + $0x198] sm:$0xff] %v10347_v9  ;;  %11929 = vrcp.f32 %v10153_v6  ;;  %v10156_v28 = vadd.f32 1.0, %v11918_v43  ;;  %v7910_v7 = vadd.f32 %v16966_v26, %v17589_v47  ;;  %v7921_v41 = vadd.f32 %v16966_v26, %v17590_v60  ;;  %v17591_v43 = vld [vmem:[#allocation86_spill] sm:$0xff] }
 0xae0   : > { %v11922_v59 = vpop.eup %11921  ;;  %v10345_v56 = vsel %vm10295_vm5, %v11920_v54, %v7881_v46  ;;  %11931 = vpow2.f32 %v10989_v37  ;;  %v10987_v42 = vmul.f32 -1.442695, %v9882_v16  ;;  %v7913_v9 = vadd.f32 %v16966_v26, %v17591_v43 }
 0xae1   : > { %10409 = vst [vmem:[%s16696_s2 + $0x188] sm:$0xff] %v10345_v56  ;;  %11933 = vrcp.f32 %v10156_v28  ;;  %v10154_v1 = vadd.f32 1.0, %v11922_v59 }
 0xae2   : > { %11935 = vpow2.f32 %v10987_v42  ;;  %v17593_v42 = vld [vmem:[#allocation91_spill] sm:$0xff] }
 0xae3   : > { %11937 = vrcp.f32 %v10154_v1  ;;  %v7934_v1 = vadd.f32 %v16966_v26, %v17593_v42 }
 0xae7   : > { %v11220_v49 = vpop.f32.mrf.mxu0 }
 0xae8   : > { %v9903_v23 = vadd.f32 %v16912_v39, %v11220_v49 }
 0xae9   : > { %v11924_v50 = vpop.eup %11923  ;;  %v9894_v51 = vpop.f32.mrf.mxu0 }
 0xaea   : > { %v11926_v20 = vpop.eup %11925  ;;  %v10159_v14 = vadd.f32 1.0, %v11924_v50  ;;  %v10992_v52 = vmul.f32 -1.442695, %v9903_v23  ;;  %v9895_v8 = vadd.f32 %v16912_v39, %v9894_v51  ;;  %v17594_v23 = vld [vmem:[#allocation89_spill] sm:$0xff]  ;;  %v17595_v51 = vld [vmem:[#allocation92_spill] sm:$0xff] }
 0xaeb   : > { %v11928_v4 = vpop.eup %11927  ;;  %v10350_v25 = vsel %vm10295_vm5, %v11926_v20, %v7902_v55  ;;  %v11221_v62 = vpop.f32.mrf.mxu0  ;;  %v7926_v50 = vadd.f32 %v16966_v26, %v17594_v23  ;;  %v7937_v20 = vadd.f32 %v16966_v26, %v17595_v51 }
 0xaec   : > { %v11930_v19 = vpop.eup %11929  ;;  %10414 = vst [vmem:[%s16696_s2 + $0x1b0] sm:$0xff] %v10350_v25  ;;  %11939 = vrcp.f32 %v10159_v14  ;;  %v10157_v40 = vadd.f32 1.0, %v11928_v4  ;;  %v10990_v22 = vmul.f32 -1.442695, %v9895_v8  ;;  %v9906_v12 = vadd.f32 %v16912_v39, %v11221_v62  ;;  %v17597_v8 = vld [vmem:[#allocation90_spill] sm:$0xff] }
 0xaed   : > { %v11932_v63 = vpop.eup %11931  ;;  %v10348_v48 = vsel %vm10295_vm5, %v11930_v19, %v7894_v61  ;;  %11941 = vpow2.f32 %v10992_v52  ;;  %v9897_v32 = vpop.f32.mrf.mxu0  ;;  %v7929_v4 = vadd.f32 %v16966_v26, %v17597_v8 }
 0xaee   : > { %v11934_v17 = vpop.eup %11933  ;;  %10412 = vst [vmem:[%s16696_s2 + $0x1a0] sm:$0xff] %v10348_v48  ;;  %11943 = vrcp.f32 %v10157_v40  ;;  %v10160_v38 = vadd.f32 1.0, %v11932_v63  ;;  %v10993_v31 = vmul.f32 -1.442695, %v9906_v12  ;;  %v9898_v58 = vadd.f32 %v16912_v39, %v9897_v32  ;;  %v17588_v39 = vld [vmem:[#allocation87_spill] sm:$0xff] }
 0xaef   : > { %v11936_v36 = vpop.eup %11935  ;;  %v10351_v45 = vsel %vm10295_vm5, %v11934_v17, %v7905_v53  ;;  %11945 = vpow2.f32 %v10990_v22  ;;  %v7918_v5 = vadd.f32 %v16966_v26, %v17588_v39 }
 0xaf0   : > { %v11938_v0 = vpop.eup %11937  ;;  %10415 = vst [vmem:[%s16696_s2 + $0x1b8] sm:$0xff] %v10351_v45  ;;  %11947 = vrcp.f32 %v10160_v38  ;;  %v10158_v11 = vadd.f32 1.0, %v11936_v36  ;;  %v10991_v29 = vmul.f32 -1.442695, %v9898_v58 }
 0xaf1   : > { %v10349_v35 = vsel %vm10295_vm5, %v11938_v0, %v7897_v24  ;;  %11949 = vpow2.f32 %v10993_v31 }
 0xaf2   : > { %10413 = vst [vmem:[%s16696_s2 + $0x1a8] sm:$0xff] %v10349_v35  ;;  %11951 = vrcp.f32 %v10158_v11 }
 0xaf3   : > { %11953 = vpow2.f32 %v10991_v29 }
 0xaf9   : > { %v11940_v34 = vpop.eup %11939 }
 0xafa   : > { %v11942_v15 = vpop.eup %11941  ;;  %v10354_v33 = vsel %vm10295_vm5, %v11940_v34, %v7918_v5 }
 0xafb   : > { %v11944_v44 = vpop.eup %11943  ;;  %10418 = vst [vmem:[%s16696_s2 + $0x1d0] sm:$0xff] %v10354_v33  ;;  %v10163_v10 = vadd.f32 1.0, %v11942_v15 }
 0xafc   : > { %v11946_v13 = vpop.eup %11945  ;;  %v10352_v27 = vsel %vm10295_vm5, %v11944_v44, %v7910_v7 }
 0xafd   : > { %v11948_v46 = vpop.eup %11947  ;;  %10416 = vst [vmem:[%s16696_s2 + $0x1c0] sm:$0xff] %v10352_v27  ;;  %11955 = vrcp.f32 %v10163_v10  ;;  %v10161_v6 = vadd.f32 1.0, %v11946_v13 }
 0xafe   : > { %v11950_v2 = vpop.eup %11949  ;;  %v10355_v37 = vsel %vm10295_vm5, %v11948_v46, %v7921_v41 }
 0xaff   : > { %v11952_v16 = vpop.eup %11951  ;;  %10419 = vst [vmem:[%s16696_s2 + $0x1d8] sm:$0xff] %v10355_v37  ;;  %11957 = vrcp.f32 %v10161_v6  ;;  %v10164_v54 = vadd.f32 1.0, %v11950_v2 }
 0xb00   : > { %v11954_v28 = vpop.eup %11953  ;;  %v10353_v59 = vsel %vm10295_vm5, %v11952_v16, %v7913_v9 }
 0xb01   : > { %10417 = vst [vmem:[%s16696_s2 + $0x1c8] sm:$0xff] %v10353_v59  ;;  %11959 = vrcp.f32 %v10164_v54  ;;  %v10162_v56 = vadd.f32 1.0, %v11954_v28 }
 0xb03   : > { %11961 = vrcp.f32 %v10162_v56 }
 0xb0a   : > { %v11956_v49 = vpop.eup %11955 }
 0xb0b   : > { %v10358_v30 = vsel %vm10295_vm5, %v11956_v49, %v7934_v1 }
 0xb0c   : > { %v11958_v55 = vpop.eup %11957  ;;  %10422 = vst [vmem:[%s16696_s2 + $0x1f0] sm:$0xff] %v10358_v30 }
 0xb0d   : > { %v10356_v14 = vsel %vm10295_vm5, %v11958_v55, %v7926_v50 }
 0xb0e   : > { %v11960_v52 = vpop.eup %11959  ;;  %10420 = vst [vmem:[%s16696_s2 + $0x1e0] sm:$0xff] %v10356_v14 }
 0xb0f   : > { %v10359_v21 = vsel %vm10295_vm5, %v11960_v52, %v7937_v20 }
 0xb10   : > { %v11962_v61 = vpop.eup %11961  ;;  %10423 = vst [vmem:[%s16696_s2 + $0x1f8] sm:$0xff] %v10359_v21 }
 0xb11   : > { %v10357_v25 = vsel %vm10295_vm5, %v11962_v61, %v7929_v4 }
 0xb12   : > { %10421 = vst [vmem:[%s16696_s2 + $0x1e8] sm:$0xff] %v10357_v25 }
 0xb13   : > { %11979 = shalt.err (!%p11976_p3)
}
 0xb14   : > { %s11980_s2 = scalar_lea.hbm %s17080_s30, 8192  ;;  %s11984_s10 = scalar_lea.hbm %s17599_s28, 32768 }
 0xb15   : > { %p11981_p4 = scmp.ne.s32.totalorder %s17080_s30, %s11980_s2  ;;  %p11985_p9 = scmp.lt.s32.totalorder %s17080_s30, %s17599_s28 }
 0xb16   : > { %p11986_p10 = scmp.lt.s32.totalorder %s11984_s10, %s11980_s2 }
 0xb17   : > { %p11982_p7 = pnand %p11981_p4, %p12216_p5 }
 0xb18   : > { %p11987_p11 = por %p11986_p10, %p11985_p9 }
 0xb19   : > { %p11983_p8 = pneg %p11982_p7 }
 0xb1b   : > { %p11988_p12 = pnand %p11987_p11, %p11983_p8 }
 0xb1d   : > { %11991 = shalt.err (!%p11988_p12)
}
 0xb1e   : > { %s12031_s3 = smov 128   ;;  %s12032_s12 = smov 8  }
 0xb1f   : > { %11222 = dma.vmem_to_hbm [thread:$0]  (%p12216_p5), %s17082_s11, 8192, %s17080_s30, %s17090_s1, %s12031_s3, %s12031_s3, %s12032_s12  }
 0xb20 PF: > { %s17601_s9 = sld [smem:[#allocation7_spill]] }
 0xb21   : > { %s17602_s8 = sld [smem:[#allocation5_spill]] }
 0xb26   : > { %p11228_p13 = scmp.ge.s32.totalorder %s17601_s9, 2 }
 0xb27   : > { %s10453_s13 = sand.u32 1, %s17602_s8  }
 0xb28   : > { %p11225_p0 = pnand %p11228_p13, %p12220_p6  ;;  %s10454_s7 = scalar_lea.sflag [#allocation3], %s10453_s13 }
 0xb2a   : > { %p11226_p1 = pneg %p11225_p0 }
 0xb2c   : > { %12009 = dma.done.wait (%p11226_p1), %s10454_s7, 8192  }
 0xb2d   : > { %12011 = vsyncadd (%p11226_p1), %s10454_s7, 4294959104  ;;  %s17604_s30 = sld [smem:[#allocation9_spill]]  ;;  %s17607_s8 = smov %s12018_s5 }
 0xb2e   : > { %s17605_s4 = sld [smem:[#allocation6_spill]] }
 0xb2f   : > { %s17606_s9 = sld [smem:[#allocation10_spill]] }
 0xb33   : > { %p38_p2 = scmp.ge.s32.totalorder %s17604_s30, 6  }
 0xb34   : > { %s17608_s5 = smov %s17605_s4 }
 0xb35   :  { %40 = sbr.rel (!%p38_p2) target bundleno = 19 (0x13), region = 170 }
 0xb3a   :  { %10459 = vsyncpa [#allocation3], 1 }
 0xb3b   :  { %10461 = vsyncpa [#allocation3 + $0x1], 1 }

</bundles_post_ra>
